<compile_context>
chip_gen: v7x
topology: tpu7x:2x2x1
jax: 0.10.0
libtpu: 0.0.40
codegen_flags: <defaults>
</compile_context>

<pallas_src>
import functools

import jax
import jax.numpy as jnp
from jax.experimental import pallas as pl
from jax.experimental.pallas import tpu as pltpu

LN_EPS = 1e-5          # nn.LayerNorm default eps
L2_EPS = 1e-12         # F.normalize default eps
_INV_SQRT2 = 0.7071067811865476

HIDDEN = 256           # hidden_dim == latent_dim == 256 in SimpleMLP
HEAD_LANES = 128       # lane-dense padded width for the fused out|var head


def _gelu(x):
    # Exact (erf-based) GELU, matching nn.GELU() default.
    return 0.5 * x * (1.0 + jax.lax.erf(x * _INV_SQRT2))


def _layernorm(h, g, b):
    mu = jnp.mean(h, axis=-1, keepdims=True)
    var = jnp.mean(jnp.square(h - mu), axis=-1, keepdims=True)
    return (h - mu) * jax.lax.rsqrt(var + LN_EPS) * g + b


def _simple_mlp_kernel(x_ref, bw1_ref, wstk_ref, hw1_ref, hwo_ref, p_ref, hbo_ref,
                       head_ref, emb_ref, *, in_dim):
    f32 = jnp.float32

    def prow(i):                      # (1, 256) row of the packed small-param array
        return p_ref[i:i + 1, :]

    def mm(a, w):
        # Activations follow the weight dtype (f32 default, bf16 knob); f32 accumulate.
        return jnp.dot(a.astype(w.dtype), w, preferred_element_type=f32)

    x = x_ref[...]

    # ---- net_base ----
    if in_dim == 1:
        # K=1 matmul -> VPU broadcast multiply (skips one MXU round trip).
        h = x * bw1_ref[0:1, :] + prow(0)
    else:
        h = mm(x, bw1_ref[...]) + prow(0)
    h = _gelu(_layernorm(h, prow(1), prow(2)))
    h = _gelu(_layernorm(mm(h, wstk_ref[0]) + prow(3), prow(4), prow(5)))
    h = _gelu(_layernorm(mm(h, wstk_ref[1]) + prow(6), prow(7), prow(8)))
    emb = mm(h, wstk_ref[2]) + prow(9)

    # ---- F.normalize(emb, dim=1, p=2) ----
    nrm = jnp.sqrt(jnp.sum(emb * emb, axis=-1, keepdims=True))
    emb = emb / jnp.maximum(nrm, L2_EPS)
    emb_ref[...] = emb.astype(emb_ref.dtype)

    # ---- fused first layers of net_avg / net_var: one N=512 matmul ----
    h01 = mm(emb, hw1_ref[...])                              # (tb, 512)
    ha = _gelu(_layernorm(h01[:, :HIDDEN] + prow(10), prow(11), prow(12)))
    hv = _gelu(h01[:, HIDDEN:] + prow(19))

    # ---- net_avg middle layers ----
    ha = _gelu(_layernorm(mm(ha, wstk_ref[3]) + prow(13), prow(14), prow(15)))
    ha = _gelu(_layernorm(mm(ha, wstk_ref[4]) + prow(16), prow(17), prow(18)))

    # ---- net_var middle layer ----
    hv = _gelu(mm(hv, wstk_ref[5]) + prow(20))

    # ---- fused final projections: two accumulated matmuls into one lane-dense slab
    # hwo[0] has aw4 in cols [0:out_dim] (zeros elsewhere), hwo[1] has vw3 in
    # cols [out_dim:2*out_dim] (zeros elsewhere) -> plain add composes them.
    head = mm(ha, hwo_ref[0]) + mm(hv, hwo_ref[1]) + hbo_ref[...]   # (tb, 128)
    head_ref[...] = head.astype(head_ref.dtype)


def pack_params(p, *, weight_dtype=jnp.float32):
    """Pack per-layer params (dict, weights as (in,out)) into the kernel's fused layout.

    weight_dtype=jnp.bfloat16 enables the bf16-input / f32-accumulate MXU path
    (faster on v6e/v7x, small numeric deviation from PyTorch).  Biases/LN params
    stay f32.
    """
    f32 = jnp.float32
    wd = weight_dtype
    out_dim = p["aw4"].shape[1]
    assert 2 * out_dim <= HEAD_LANES

    wstk = jnp.stack([p["bw2"], p["bw3"], p["bw4"],
                      p["aw2"], p["aw3"], p["vw2"]]).astype(wd)          # (6,256,256)
    hw1 = jnp.concatenate([p["aw1"], p["vw1"]], axis=1).astype(wd)       # (256,512)

    hwo_a = jnp.zeros((HIDDEN, HEAD_LANES), f32)
    hwo_a = hwo_a.at[:, :out_dim].set(p["aw4"].astype(f32))
    hwo_v = jnp.zeros((HIDDEN, HEAD_LANES), f32)
    hwo_v = hwo_v.at[:, out_dim:2 * out_dim].set(p["vw3"].astype(f32))
    hwo = jnp.stack([hwo_a, hwo_v]).astype(wd)                           # (2,256,128)

    hbo = jnp.zeros((1, HEAD_LANES), f32)
    hbo = hbo.at[:, :out_dim].set(p["ab4"].reshape(1, -1).astype(f32))
    hbo = hbo.at[:, out_dim:2 * out_dim].set(p["vb3"].reshape(1, -1).astype(f32))

    small = jnp.stack([
        p["bb1"], p["bg1"], p["bB1"],
        p["bb2"], p["bg2"], p["bB2"],
        p["bb3"], p["bg3"], p["bB3"],
        p["bb4"],
        p["ab1"], p["ag1"], p["aB1"],
        p["ab2"], p["ag2"], p["aB2"],
        p["ab3"], p["ag3"], p["aB3"],
        p["vb1"], p["vb2"],
    ]).astype(f32).reshape(21, HIDDEN)                                    # (21,256)

    bw1 = p["bw1"].astype(wd)                                             # (in_dim,256)
    return bw1, wstk, hw1, hwo, small, hbo


def _round_up(n, m):
    return ((n + m - 1) // m) * m


def _choose_tile_b(B):
    """Batch tile: big enough to amortize per-step overhead, but >=2 grid steps for
    B >= 16 so v7x's two TensorCores both get work; capped at 512 rows."""
    b8 = _round_up(max(B, 1), 8)
    if b8 < 16:
        return b8
    return min(512, _round_up((b8 + 1) // 2, 8))


# Flipped to False (once) if this Pallas build rejects pipeline_mode=pl.Buffered(1).
_WEIGHT_SINGLE_BUFFER_OK = True


def _pallas_forward(x, packed, *, tile_b, grid, in_dim, b_pad, single_buffer):
    bw1, wstk, hw1, hwo, small, hbo = packed
    kernel = functools.partial(_simple_mlp_kernel, in_dim=in_dim)
    const2 = lambda i: (0, 0)
    const3 = lambda i: (0, 0, 0)

    if single_buffer:
        # Weight blocks never change -> single-buffer them (halves their VMEM).
        wspec = lambda shp, imap: pl.BlockSpec(shp, imap, pipeline_mode=pl.Buffered(1))
    else:
        wspec = lambda shp, imap: pl.BlockSpec(shp, imap)

    return pl.pallas_call(
        kernel,
        grid=grid,
        in_specs=[
            pl.BlockSpec((tile_b, in_dim), lambda i: (i, 0)),   # x: tiled over batch
            wspec(bw1.shape, const2),                           # weights: VMEM-resident
            wspec(wstk.shape, const3),
            wspec(hw1.shape, const2),
            wspec(hwo.shape, const3),
            wspec(small.shape, const2),
            wspec(hbo.shape, const2),
        ],
        out_specs=(
            pl.BlockSpec((tile_b, HEAD_LANES), lambda i: (i, 0)),
            pl.BlockSpec((tile_b, HIDDEN), lambda i: (i, 0)),
        ),
        out_shape=(
            jax.ShapeDtypeStruct((b_pad, HEAD_LANES), jnp.float32),  # fused out|var slab
            jax.ShapeDtypeStruct((b_pad, HIDDEN), jnp.float32),      # emb
        ),
        compiler_params=pltpu.CompilerParams(
            dimension_semantics=("parallel",),
            vmem_limit_bytes=32 << 20,
        ),
    )(x, bw1, wstk, hw1, hwo, small, hbo)


def simple_mlp_forward(x, packed, *, out_dim=1):
    global _WEIGHT_SINGLE_BUFFER_OK
    B, in_dim = x.shape

    tile_b = _choose_tile_b(B)
    b_pad = _round_up(B, tile_b)
    if b_pad != B:
        x = jnp.pad(x, ((0, b_pad - B), (0, 0)))
    grid = (b_pad // tile_b,)

    head = emb = None
    if _WEIGHT_SINGLE_BUFFER_OK:
        try:
            head, emb = _pallas_forward(x, packed, tile_b=tile_b, grid=grid,
                                        in_dim=in_dim, b_pad=b_pad, single_buffer=True)
            jax.block_until_ready((head, emb))
        except Exception:
            # This Pallas build doesn't support Buffered(1); use default buffering.
            _WEIGHT_SINGLE_BUFFER_OK = False
            head = emb = None
    if head is None:
        head, emb = _pallas_forward(x, packed, tile_b=tile_b, grid=grid,
                                    in_dim=in_dim, b_pad=b_pad, single_buffer=False)

    return {
        "out": head[:B, :out_dim],
        "var": head[:B, out_dim:2 * out_dim],
        "emb": emb[:B, :],
    }


# ----------------------------- reference & test ------------------------------

def _reference_forward(x, p):
    hp = jax.lax.Precision.HIGHEST

    def lin(h, w, b):
        return jnp.dot(h, w, precision=hp) + b

    def ln(h, g, b):
        mu = h.mean(-1, keepdims=True)
        v = ((h - mu) ** 2).mean(-1, keepdims=True)
        return (h - mu) / jnp.sqrt(v + LN_EPS) * g + b

    g = _gelu
    h = g(ln(lin(x, p["bw1"], p["bb1"]), p["bg1"], p["bB1"]))
    h = g(ln(lin(h, p["bw2"], p["bb2"]), p["bg2"], p["bB2"]))
    h = g(ln(lin(h, p["bw3"], p["bb3"]), p["bg3"], p["bB3"]))
    emb = lin(h, p["bw4"], p["bb4"])
    emb = emb / jnp.maximum(
        jnp.sqrt(jnp.sum(emb * emb, axis=-1, keepdims=True)), L2_EPS)
    ha = g(ln(lin(emb, p["aw1"], p["ab1"]), p["ag1"], p["aB1"]))
    ha = g(ln(lin(ha, p["aw2"], p["ab2"]), p["ag2"], p["aB2"]))
    ha = g(ln(lin(ha, p["aw3"], p["ab3"]), p["ag3"], p["aB3"]))
    out = lin(ha, p["aw4"], p["ab4"])
    hv = g(lin(emb, p["vw1"], p["vb1"]))
    hv = g(lin(hv, p["vw2"], p["vb2"]))
    var = lin(hv, p["vw3"], p["vb3"])
    return {"out": out, "var": var, "emb": emb}


def init_params(key, in_dim=1, out_dim=1):
    ks = iter(jax.random.split(key, 64))
    H = HIDDEN

    def w(fin, fout, s=0.05):
        return (s * jax.random.normal(next(ks), (fin, fout))).astype(jnp.float32)

    def b(fout, s=0.02):
        return (s * jax.random.normal(next(ks), (fout,))).astype(jnp.float32)

    def g(dim):
        return (1.0 + 0.02 * jax.random.normal(next(ks), (dim,))).astype(jnp.float32)

    return dict(
        bw1=w(in_dim, H), bb1=b(H), bg1=g(H), bB1=b(H),
        bw2=w(H, H), bb2=b(H), bg2=g(H), bB2=b(H),
        bw3=w(H, H), bb3=b(H), bg3=g(H), bB3=b(H),
        bw4=w(H, H), bb4=b(H),
        aw1=w(H, H), ab1=b(H), ag1=g(H), aB1=b(H),
        aw2=w(H, H), ab2=b(H), ag2=g(H), aB2=b(H),
        aw3=w(H, H), ab3=b(H), ag3=g(H), aB3=b(H),
        aw4=w(H, out_dim), ab4=b(out_dim),
        vw1=w(H, H), vb1=b(H),
        vw2=w(H, H), vb2=b(H),
        vw3=w(H, out_dim), vb3=b(out_dim),
    )


def _check(name, a, b, atol=2e-3, rtol=2e-3):
    if not bool(jnp.allclose(a, b, atol=atol, rtol=rtol)):
        err = float(jnp.max(jnp.abs(a - b)))
        raise AssertionError(f"{name} mismatch, max abs err = {err}")


if __name__ == "__main__":
    in_dim, out_dim = 1, 1

    key = jax.random.PRNGKey(0)
    kx1, kx2, kp = jax.random.split(key, 3)
    params = init_params(kp, in_dim=in_dim, out_dim=out_dim)
    packed = pack_params(params)

    # Small-batch case (single grid step, tile_b=8).
    batch = 8
    x = jax.random.normal(kx1, (batch, in_dim), dtype=jnp.float32)
    res = simple_mlp_forward(x, packed, out_dim=out_dim)
    jax.block_until_ready(res)
    assert res["out"].shape == (batch, out_dim)
    assert res["var"].shape == (batch, out_dim)
    assert res["emb"].shape == (batch, HIDDEN)
    ref = _reference_forward(x, params)
    _check("out", res["out"], ref["out"])
    _check("var", res["var"], ref["var"])
    _check("emb", res["emb"], ref["emb"])

    # Larger batch exercising the batch grid (tile_b=104, padded to 208, 2 grid steps
    # so both v7x TensorCores get work).
    batch2 = 200
    x2 = jax.random.normal(kx2, (batch2, in_dim), dtype=jnp.float32)
    res2 = simple_mlp_forward(x2, packed, out_dim=out_dim)
    jax.block_until_ready(res2)
    ref2 = _reference_forward(x2, params)
    _check("out(batched)", res2["out"], ref2["out"])
    _check("var(batched)", res2["var"], ref2["var"])
    _check("emb(batched)", res2["emb"], ref2["emb"])

    # bf16-matmul knob (biggest MXU-throughput lever on v6e/v7x). Numerics deviate
    # slightly from the f32 PyTorch reference, so only sanity-check finiteness here.
    packed_bf16 = pack_params(params, weight_dtype=jnp.bfloat16)
    res_bf16 = simple_mlp_forward(x2, packed_bf16, out_dim=out_dim)
    jax.block_until_ready(res_bf16)
    for k in ("out", "var", "emb"):
        assert bool(jnp.all(jnp.isfinite(res_bf16[k]))), f"bf16 {k} not finite"

    print("KERNEL_OK")
</pallas_src>

<mosaic_0001>
module attributes {stable_mosaic.version = 11 : i64} {
  func.func @_simple_mlp_kernel(%arg0: i32, %arg1: memref<8x1xf32, #tpu.memory_space<vmem>>, %arg2: memref<1x256xf32, #tpu.memory_space<vmem>>, %arg3: memref<6x256x256xf32, #tpu.memory_space<vmem>>, %arg4: memref<256x512xf32, #tpu.memory_space<vmem>>, %arg5: memref<2x256x128xf32, #tpu.memory_space<vmem>>, %arg6: memref<21x256xf32, #tpu.memory_space<vmem>>, %arg7: memref<1x128xf32, #tpu.memory_space<vmem>>, %arg8: memref<8x128xf32, #tpu.memory_space<vmem>>, %arg9: memref<8x256xf32, #tpu.memory_space<vmem>>) attributes {dimension_semantics = [#tpu.dimension_semantics<parallel>], iteration_bounds = array<i64: 1>, scalar_prefetch = 0 : i64, scratch_operands = 0 : i64, tpu.core_type = #tpu.core_type<tc>, window_params = [{transform_indices = @transform_0, window_bounds = array<i64: 8, 1>}, {pipeline_mode = #tpu.pipeline_mode<synchronous>, transform_indices = @transform_1, window_bounds = array<i64: 1, 256>}, {pipeline_mode = #tpu.pipeline_mode<synchronous>, transform_indices = @transform_2, window_bounds = array<i64: 6, 256, 256>}, {pipeline_mode = #tpu.pipeline_mode<synchronous>, transform_indices = @transform_3, window_bounds = array<i64: 256, 512>}, {pipeline_mode = #tpu.pipeline_mode<synchronous>, transform_indices = @transform_4, window_bounds = array<i64: 2, 256, 128>}, {pipeline_mode = #tpu.pipeline_mode<synchronous>, transform_indices = @transform_5, window_bounds = array<i64: 21, 256>}, {pipeline_mode = #tpu.pipeline_mode<synchronous>, transform_indices = @transform_6, window_bounds = array<i64: 1, 128>}, {transform_indices = @transform_7, window_bounds = array<i64: 8, 128>}, {transform_indices = @transform_8, window_bounds = array<i64: 8, 256>}]} {
    %c0 = arith.constant 0 : index
    %c0_0 = arith.constant 0 : index
    %0 = vector.load %arg1[%c0, %c0_0] : memref<8x1xf32, #tpu.memory_space<vmem>>, vector<8x1xf32>
    %c0_1 = arith.constant 0 : index
    %c0_2 = arith.constant 0 : index
    %1 = vector.load %arg2[%c0_1, %c0_2] : memref<1x256xf32, #tpu.memory_space<vmem>>, vector<1x256xf32>
    %2 = vector.broadcast %0 : vector<8x1xf32> to vector<8x256xf32>
    %3 = vector.broadcast %1 : vector<1x256xf32> to vector<8x256xf32>
    %4 = arith.mulf %2, %3 : vector<8x256xf32>
    %c0_3 = arith.constant 0 : index
    %c0_4 = arith.constant 0 : index
    %5 = vector.load %arg6[%c0_3, %c0_4] : memref<21x256xf32, #tpu.memory_space<vmem>>, vector<1x256xf32>
    %6 = vector.broadcast %5 : vector<1x256xf32> to vector<8x256xf32>
    %7 = arith.addf %4, %6 : vector<8x256xf32>
    %c1 = arith.constant 1 : index
    %c0_5 = arith.constant 0 : index
    %8 = vector.load %arg6[%c1, %c0_5] : memref<21x256xf32, #tpu.memory_space<vmem>>, vector<1x256xf32>
    %c2 = arith.constant 2 : index
    %c0_6 = arith.constant 0 : index
    %9 = vector.load %arg6[%c2, %c0_6] : memref<21x256xf32, #tpu.memory_space<vmem>>, vector<1x256xf32>
    %cst = arith.constant dense<0.000000e+00> : vector<8xf32>
    %10 = vector.multi_reduction <add>, %7, %cst [1] : vector<8x256xf32> to vector<8xf32>
    %11 = vector.shape_cast %10 : vector<8xf32> to vector<8x1xf32>
    %cst_7 = arith.constant 2.560000e+02 : f32
    %12 = vector.broadcast %cst_7 : f32 to vector<8x1xf32>
    %13 = arith.divf %11, %12 : vector<8x1xf32>
    %14 = vector.broadcast %13 : vector<8x1xf32> to vector<8x256xf32>
    %15 = arith.subf %7, %14 : vector<8x256xf32>
    %16 = arith.mulf %15, %15 : vector<8x256xf32>
    %cst_8 = arith.constant dense<0.000000e+00> : vector<8xf32>
    %17 = vector.multi_reduction <add>, %16, %cst_8 [1] : vector<8x256xf32> to vector<8xf32>
    %18 = vector.shape_cast %17 : vector<8xf32> to vector<8x1xf32>
    %cst_9 = arith.constant 2.560000e+02 : f32
    %19 = vector.broadcast %cst_9 : f32 to vector<8x1xf32>
    %20 = arith.divf %18, %19 : vector<8x1xf32>
    %21 = vector.broadcast %13 : vector<8x1xf32> to vector<8x256xf32>
    %22 = arith.subf %7, %21 : vector<8x256xf32>
    %cst_10 = arith.constant 9.99999974E-6 : f32
    %23 = vector.broadcast %cst_10 : f32 to vector<8x1xf32>
    %24 = arith.addf %20, %23 : vector<8x1xf32>
    %25 = math.rsqrt %24 : vector<8x1xf32>
    %26 = vector.broadcast %25 : vector<8x1xf32> to vector<8x256xf32>
    %27 = arith.mulf %22, %26 : vector<8x256xf32>
    %28 = vector.broadcast %8 : vector<1x256xf32> to vector<8x256xf32>
    %29 = arith.mulf %27, %28 : vector<8x256xf32>
    %30 = vector.broadcast %9 : vector<1x256xf32> to vector<8x256xf32>
    %31 = arith.addf %29, %30 : vector<8x256xf32>
    %cst_11 = arith.constant 5.000000e-01 : f32
    %32 = vector.broadcast %cst_11 : f32 to vector<8x256xf32>
    %33 = arith.mulf %32, %31 : vector<8x256xf32>
    %cst_12 = arith.constant 0.707106769 : f32
    %34 = vector.broadcast %cst_12 : f32 to vector<8x256xf32>
    %35 = arith.mulf %31, %34 : vector<8x256xf32>
    %36 = math.erf %35 : vector<8x256xf32>
    %cst_13 = arith.constant 1.000000e+00 : f32
    %37 = vector.broadcast %cst_13 : f32 to vector<8x256xf32>
    %38 = arith.addf %37, %36 : vector<8x256xf32>
    %39 = arith.mulf %33, %38 : vector<8x256xf32>
    %c0_14 = arith.constant 0 : index
    %c0_15 = arith.constant 0 : index
    %c0_16 = arith.constant 0 : index
    %40 = vector.load %arg3[%c0_14, %c0_15, %c0_16] : memref<6x256x256xf32, #tpu.memory_space<vmem>>, vector<1x256x256xf32>
    %41 = vector.shape_cast %40 : vector<1x256x256xf32> to vector<256x256xf32>
    %cst_17 = arith.constant dense<0.000000e+00> : vector<8x256xf32>
    %42 = tpu.matmul %39, %41, %cst_17 {dimension_numbers = #tpu.dot_dimension_numbers<[1], [0], [0], [1], [0, 0, 1, 1], [], []>} : vector<8x256xf32>, vector<256x256xf32>, vector<8x256xf32> -> vector<8x256xf32>
    %c3 = arith.constant 3 : index
    %c0_18 = arith.constant 0 : index
    %43 = vector.load %arg6[%c3, %c0_18] : memref<21x256xf32, #tpu.memory_space<vmem>>, vector<1x256xf32>
    %44 = vector.broadcast %43 : vector<1x256xf32> to vector<8x256xf32>
    %45 = arith.addf %42, %44 : vector<8x256xf32>
    %c4 = arith.constant 4 : index
    %c0_19 = arith.constant 0 : index
    %46 = vector.load %arg6[%c4, %c0_19] : memref<21x256xf32, #tpu.memory_space<vmem>>, vector<1x256xf32>
    %c5 = arith.constant 5 : index
    %c0_20 = arith.constant 0 : index
    %47 = vector.load %arg6[%c5, %c0_20] : memref<21x256xf32, #tpu.memory_space<vmem>>, vector<1x256xf32>
    %cst_21 = arith.constant dense<0.000000e+00> : vector<8xf32>
    %48 = vector.multi_reduction <add>, %45, %cst_21 [1] : vector<8x256xf32> to vector<8xf32>
    %49 = vector.shape_cast %48 : vector<8xf32> to vector<8x1xf32>
    %cst_22 = arith.constant 2.560000e+02 : f32
    %50 = vector.broadcast %cst_22 : f32 to vector<8x1xf32>
    %51 = arith.divf %49, %50 : vector<8x1xf32>
    %52 = vector.broadcast %51 : vector<8x1xf32> to vector<8x256xf32>
    %53 = arith.subf %45, %52 : vector<8x256xf32>
    %54 = arith.mulf %53, %53 : vector<8x256xf32>
    %cst_23 = arith.constant dense<0.000000e+00> : vector<8xf32>
    %55 = vector.multi_reduction <add>, %54, %cst_23 [1] : vector<8x256xf32> to vector<8xf32>
    %56 = vector.shape_cast %55 : vector<8xf32> to vector<8x1xf32>
    %cst_24 = arith.constant 2.560000e+02 : f32
    %57 = vector.broadcast %cst_24 : f32 to vector<8x1xf32>
    %58 = arith.divf %56, %57 : vector<8x1xf32>
    %59 = vector.broadcast %51 : vector<8x1xf32> to vector<8x256xf32>
    %60 = arith.subf %45, %59 : vector<8x256xf32>
    %cst_25 = arith.constant 9.99999974E-6 : f32
    %61 = vector.broadcast %cst_25 : f32 to vector<8x1xf32>
    %62 = arith.addf %58, %61 : vector<8x1xf32>
    %63 = math.rsqrt %62 : vector<8x1xf32>
    %64 = vector.broadcast %63 : vector<8x1xf32> to vector<8x256xf32>
    %65 = arith.mulf %60, %64 : vector<8x256xf32>
    %66 = vector.broadcast %46 : vector<1x256xf32> to vector<8x256xf32>
    %67 = arith.mulf %65, %66 : vector<8x256xf32>
    %68 = vector.broadcast %47 : vector<1x256xf32> to vector<8x256xf32>
    %69 = arith.addf %67, %68 : vector<8x256xf32>
    %cst_26 = arith.constant 5.000000e-01 : f32
    %70 = vector.broadcast %cst_26 : f32 to vector<8x256xf32>
    %71 = arith.mulf %70, %69 : vector<8x256xf32>
    %cst_27 = arith.constant 0.707106769 : f32
    %72 = vector.broadcast %cst_27 : f32 to vector<8x256xf32>
    %73 = arith.mulf %69, %72 : vector<8x256xf32>
    %74 = math.erf %73 : vector<8x256xf32>
    %cst_28 = arith.constant 1.000000e+00 : f32
    %75 = vector.broadcast %cst_28 : f32 to vector<8x256xf32>
    %76 = arith.addf %75, %74 : vector<8x256xf32>
    %77 = arith.mulf %71, %76 : vector<8x256xf32>
    %c1_29 = arith.constant 1 : index
    %c0_30 = arith.constant 0 : index
    %c0_31 = arith.constant 0 : index
    %78 = vector.load %arg3[%c1_29, %c0_30, %c0_31] : memref<6x256x256xf32, #tpu.memory_space<vmem>>, vector<1x256x256xf32>
    %79 = vector.shape_cast %78 : vector<1x256x256xf32> to vector<256x256xf32>
    %cst_32 = arith.constant dense<0.000000e+00> : vector<8x256xf32>
    %80 = tpu.matmul %77, %79, %cst_32 {dimension_numbers = #tpu.dot_dimension_numbers<[1], [0], [0], [1], [0, 0, 1, 1], [], []>} : vector<8x256xf32>, vector<256x256xf32>, vector<8x256xf32> -> vector<8x256xf32>
    %c6 = arith.constant 6 : index
    %c0_33 = arith.constant 0 : index
    %81 = vector.load %arg6[%c6, %c0_33] : memref<21x256xf32, #tpu.memory_space<vmem>>, vector<1x256xf32>
    %82 = vector.broadcast %81 : vector<1x256xf32> to vector<8x256xf32>
    %83 = arith.addf %80, %82 : vector<8x256xf32>
    %c7 = arith.constant 7 : index
    %c0_34 = arith.constant 0 : index
    %84 = vector.load %arg6[%c7, %c0_34] : memref<21x256xf32, #tpu.memory_space<vmem>>, vector<1x256xf32>
    %c8 = arith.constant 8 : index
    %c0_35 = arith.constant 0 : index
    %85 = vector.load %arg6[%c8, %c0_35] : memref<21x256xf32, #tpu.memory_space<vmem>>, vector<1x256xf32>
    %cst_36 = arith.constant dense<0.000000e+00> : vector<8xf32>
    %86 = vector.multi_reduction <add>, %83, %cst_36 [1] : vector<8x256xf32> to vector<8xf32>
    %87 = vector.shape_cast %86 : vector<8xf32> to vector<8x1xf32>
    %cst_37 = arith.constant 2.560000e+02 : f32
    %88 = vector.broadcast %cst_37 : f32 to vector<8x1xf32>
    %89 = arith.divf %87, %88 : vector<8x1xf32>
    %90 = vector.broadcast %89 : vector<8x1xf32> to vector<8x256xf32>
    %91 = arith.subf %83, %90 : vector<8x256xf32>
    %92 = arith.mulf %91, %91 : vector<8x256xf32>
    %cst_38 = arith.constant dense<0.000000e+00> : vector<8xf32>
    %93 = vector.multi_reduction <add>, %92, %cst_38 [1] : vector<8x256xf32> to vector<8xf32>
    %94 = vector.shape_cast %93 : vector<8xf32> to vector<8x1xf32>
    %cst_39 = arith.constant 2.560000e+02 : f32
    %95 = vector.broadcast %cst_39 : f32 to vector<8x1xf32>
    %96 = arith.divf %94, %95 : vector<8x1xf32>
    %97 = vector.broadcast %89 : vector<8x1xf32> to vector<8x256xf32>
    %98 = arith.subf %83, %97 : vector<8x256xf32>
    %cst_40 = arith.constant 9.99999974E-6 : f32
    %99 = vector.broadcast %cst_40 : f32 to vector<8x1xf32>
    %100 = arith.addf %96, %99 : vector<8x1xf32>
    %101 = math.rsqrt %100 : vector<8x1xf32>
    %102 = vector.broadcast %101 : vector<8x1xf32> to vector<8x256xf32>
    %103 = arith.mulf %98, %102 : vector<8x256xf32>
    %104 = vector.broadcast %84 : vector<1x256xf32> to vector<8x256xf32>
    %105 = arith.mulf %103, %104 : vector<8x256xf32>
    %106 = vector.broadcast %85 : vector<1x256xf32> to vector<8x256xf32>
    %107 = arith.addf %105, %106 : vector<8x256xf32>
    %cst_41 = arith.constant 5.000000e-01 : f32
    %108 = vector.broadcast %cst_41 : f32 to vector<8x256xf32>
    %109 = arith.mulf %108, %107 : vector<8x256xf32>
    %cst_42 = arith.constant 0.707106769 : f32
    %110 = vector.broadcast %cst_42 : f32 to vector<8x256xf32>
    %111 = arith.mulf %107, %110 : vector<8x256xf32>
    %112 = math.erf %111 : vector<8x256xf32>
    %cst_43 = arith.constant 1.000000e+00 : f32
    %113 = vector.broadcast %cst_43 : f32 to vector<8x256xf32>
    %114 = arith.addf %113, %112 : vector<8x256xf32>
    %115 = arith.mulf %109, %114 : vector<8x256xf32>
    %c2_44 = arith.constant 2 : index
    %c0_45 = arith.constant 0 : index
    %c0_46 = arith.constant 0 : index
    %116 = vector.load %arg3[%c2_44, %c0_45, %c0_46] : memref<6x256x256xf32, #tpu.memory_space<vmem>>, vector<1x256x256xf32>
    %117 = vector.shape_cast %116 : vector<1x256x256xf32> to vector<256x256xf32>
    %cst_47 = arith.constant dense<0.000000e+00> : vector<8x256xf32>
    %118 = tpu.matmul %115, %117, %cst_47 {dimension_numbers = #tpu.dot_dimension_numbers<[1], [0], [0], [1], [0, 0, 1, 1], [], []>} : vector<8x256xf32>, vector<256x256xf32>, vector<8x256xf32> -> vector<8x256xf32>
    %c9 = arith.constant 9 : index
    %c0_48 = arith.constant 0 : index
    %119 = vector.load %arg6[%c9, %c0_48] : memref<21x256xf32, #tpu.memory_space<vmem>>, vector<1x256xf32>
    %120 = vector.broadcast %119 : vector<1x256xf32> to vector<8x256xf32>
    %121 = arith.addf %118, %120 : vector<8x256xf32>
    %122 = arith.mulf %121, %121 : vector<8x256xf32>
    %cst_49 = arith.constant dense<0.000000e+00> : vector<8xf32>
    %123 = vector.multi_reduction <add>, %122, %cst_49 [1] : vector<8x256xf32> to vector<8xf32>
    %124 = vector.shape_cast %123 : vector<8xf32> to vector<8x1xf32>
    %125 = math.sqrt %124 : vector<8x1xf32>
    %cst_50 = arith.constant 9.99999996E-13 : f32
    %126 = vector.broadcast %cst_50 : f32 to vector<8x1xf32>
    %127 = arith.maximumf %125, %126 : vector<8x1xf32>
    %128 = vector.broadcast %127 : vector<8x1xf32> to vector<8x256xf32>
    %129 = arith.divf %121, %128 : vector<8x256xf32>
    %c0_51 = arith.constant 0 : index
    %c0_52 = arith.constant 0 : index
    %130 = vector.load %arg9[%c0_51, %c0_52] : memref<8x256xf32, #tpu.memory_space<vmem>>, vector<8x256xf32>
    tpu.vector_store %arg9[%c0_51, %c0_52], %129 {strides = array<i32>} : memref<8x256xf32, #tpu.memory_space<vmem>>, vector<8x256xf32>,
    %c0_53 = arith.constant 0 : index
    %c0_54 = arith.constant 0 : index
    %131 = vector.load %arg4[%c0_53, %c0_54] : memref<256x512xf32, #tpu.memory_space<vmem>>, vector<256x512xf32>
    %cst_55 = arith.constant dense<0.000000e+00> : vector<8x512xf32>
    %132 = tpu.matmul %129, %131, %cst_55 {dimension_numbers = #tpu.dot_dimension_numbers<[1], [0], [0], [1], [0, 0, 1, 1], [], []>} : vector<8x256xf32>, vector<256x512xf32>, vector<8x512xf32> -> vector<8x512xf32>
    %133 = vector.extract_strided_slice %132 {offsets = [0, 0], sizes = [8, 256], strides = [1, 1]} : vector<8x512xf32> to vector<8x256xf32>
    %c10 = arith.constant 10 : index
    %c0_56 = arith.constant 0 : index
    %134 = vector.load %arg6[%c10, %c0_56] : memref<21x256xf32, #tpu.memory_space<vmem>>, vector<1x256xf32>
    %135 = vector.broadcast %134 : vector<1x256xf32> to vector<8x256xf32>
    %136 = arith.addf %133, %135 : vector<8x256xf32>
    %c11 = arith.constant 11 : index
    %c0_57 = arith.constant 0 : index
    %137 = vector.load %arg6[%c11, %c0_57] : memref<21x256xf32, #tpu.memory_space<vmem>>, vector<1x256xf32>
    %c12 = arith.constant 12 : index
    %c0_58 = arith.constant 0 : index
    %138 = vector.load %arg6[%c12, %c0_58] : memref<21x256xf32, #tpu.memory_space<vmem>>, vector<1x256xf32>
    %cst_59 = arith.constant dense<0.000000e+00> : vector<8xf32>
    %139 = vector.multi_reduction <add>, %136, %cst_59 [1] : vector<8x256xf32> to vector<8xf32>
    %140 = vector.shape_cast %139 : vector<8xf32> to vector<8x1xf32>
    %cst_60 = arith.constant 2.560000e+02 : f32
    %141 = vector.broadcast %cst_60 : f32 to vector<8x1xf32>
    %142 = arith.divf %140, %141 : vector<8x1xf32>
    %143 = vector.broadcast %142 : vector<8x1xf32> to vector<8x256xf32>
    %144 = arith.subf %136, %143 : vector<8x256xf32>
    %145 = arith.mulf %144, %144 : vector<8x256xf32>
    %cst_61 = arith.constant dense<0.000000e+00> : vector<8xf32>
    %146 = vector.multi_reduction <add>, %145, %cst_61 [1] : vector<8x256xf32> to vector<8xf32>
    %147 = vector.shape_cast %146 : vector<8xf32> to vector<8x1xf32>
    %cst_62 = arith.constant 2.560000e+02 : f32
    %148 = vector.broadcast %cst_62 : f32 to vector<8x1xf32>
    %149 = arith.divf %147, %148 : vector<8x1xf32>
    %150 = vector.broadcast %142 : vector<8x1xf32> to vector<8x256xf32>
    %151 = arith.subf %136, %150 : vector<8x256xf32>
    %cst_63 = arith.constant 9.99999974E-6 : f32
    %152 = vector.broadcast %cst_63 : f32 to vector<8x1xf32>
    %153 = arith.addf %149, %152 : vector<8x1xf32>
    %154 = math.rsqrt %153 : vector<8x1xf32>
    %155 = vector.broadcast %154 : vector<8x1xf32> to vector<8x256xf32>
    %156 = arith.mulf %151, %155 : vector<8x256xf32>
    %157 = vector.broadcast %137 : vector<1x256xf32> to vector<8x256xf32>
    %158 = arith.mulf %156, %157 : vector<8x256xf32>
    %159 = vector.broadcast %138 : vector<1x256xf32> to vector<8x256xf32>
    %160 = arith.addf %158, %159 : vector<8x256xf32>
    %cst_64 = arith.constant 5.000000e-01 : f32
    %161 = vector.broadcast %cst_64 : f32 to vector<8x256xf32>
    %162 = arith.mulf %161, %160 : vector<8x256xf32>
    %cst_65 = arith.constant 0.707106769 : f32
    %163 = vector.broadcast %cst_65 : f32 to vector<8x256xf32>
    %164 = arith.mulf %160, %163 : vector<8x256xf32>
    %165 = math.erf %164 : vector<8x256xf32>
    %cst_66 = arith.constant 1.000000e+00 : f32
    %166 = vector.broadcast %cst_66 : f32 to vector<8x256xf32>
    %167 = arith.addf %166, %165 : vector<8x256xf32>
    %168 = arith.mulf %162, %167 : vector<8x256xf32>
    %169 = vector.extract_strided_slice %132 {offsets = [0, 256], sizes = [8, 256], strides = [1, 1]} : vector<8x512xf32> to vector<8x256xf32>
    %c19 = arith.constant 19 : index
    %c0_67 = arith.constant 0 : index
    %170 = vector.load %arg6[%c19, %c0_67] : memref<21x256xf32, #tpu.memory_space<vmem>>, vector<1x256xf32>
    %171 = vector.broadcast %170 : vector<1x256xf32> to vector<8x256xf32>
    %172 = arith.addf %169, %171 : vector<8x256xf32>
    %cst_68 = arith.constant 5.000000e-01 : f32
    %173 = vector.broadcast %cst_68 : f32 to vector<8x256xf32>
    %174 = arith.mulf %173, %172 : vector<8x256xf32>
    %cst_69 = arith.constant 0.707106769 : f32
    %175 = vector.broadcast %cst_69 : f32 to vector<8x256xf32>
    %176 = arith.mulf %172, %175 : vector<8x256xf32>
    %177 = math.erf %176 : vector<8x256xf32>
    %cst_70 = arith.constant 1.000000e+00 : f32
    %178 = vector.broadcast %cst_70 : f32 to vector<8x256xf32>
    %179 = arith.addf %178, %177 : vector<8x256xf32>
    %180 = arith.mulf %174, %179 : vector<8x256xf32>
    %c3_71 = arith.constant 3 : index
    %c0_72 = arith.constant 0 : index
    %c0_73 = arith.constant 0 : index
    %181 = vector.load %arg3[%c3_71, %c0_72, %c0_73] : memref<6x256x256xf32, #tpu.memory_space<vmem>>, vector<1x256x256xf32>
    %182 = vector.shape_cast %181 : vector<1x256x256xf32> to vector<256x256xf32>
    %cst_74 = arith.constant dense<0.000000e+00> : vector<8x256xf32>
    %183 = tpu.matmul %168, %182, %cst_74 {dimension_numbers = #tpu.dot_dimension_numbers<[1], [0], [0], [1], [0, 0, 1, 1], [], []>} : vector<8x256xf32>, vector<256x256xf32>, vector<8x256xf32> -> vector<8x256xf32>
    %c13 = arith.constant 13 : index
    %c0_75 = arith.constant 0 : index
    %184 = vector.load %arg6[%c13, %c0_75] : memref<21x256xf32, #tpu.memory_space<vmem>>, vector<1x256xf32>
    %185 = vector.broadcast %184 : vector<1x256xf32> to vector<8x256xf32>
    %186 = arith.addf %183, %185 : vector<8x256xf32>
    %c14 = arith.constant 14 : index
    %c0_76 = arith.constant 0 : index
    %187 = vector.load %arg6[%c14, %c0_76] : memref<21x256xf32, #tpu.memory_space<vmem>>, vector<1x256xf32>
    %c15 = arith.constant 15 : index
    %c0_77 = arith.constant 0 : index
    %188 = vector.load %arg6[%c15, %c0_77] : memref<21x256xf32, #tpu.memory_space<vmem>>, vector<1x256xf32>
    %cst_78 = arith.constant dense<0.000000e+00> : vector<8xf32>
    %189 = vector.multi_reduction <add>, %186, %cst_78 [1] : vector<8x256xf32> to vector<8xf32>
    %190 = vector.shape_cast %189 : vector<8xf32> to vector<8x1xf32>
    %cst_79 = arith.constant 2.560000e+02 : f32
    %191 = vector.broadcast %cst_79 : f32 to vector<8x1xf32>
    %192 = arith.divf %190, %191 : vector<8x1xf32>
    %193 = vector.broadcast %192 : vector<8x1xf32> to vector<8x256xf32>
    %194 = arith.subf %186, %193 : vector<8x256xf32>
    %195 = arith.mulf %194, %194 : vector<8x256xf32>
    %cst_80 = arith.constant dense<0.000000e+00> : vector<8xf32>
    %196 = vector.multi_reduction <add>, %195, %cst_80 [1] : vector<8x256xf32> to vector<8xf32>
    %197 = vector.shape_cast %196 : vector<8xf32> to vector<8x1xf32>
    %cst_81 = arith.constant 2.560000e+02 : f32
    %198 = vector.broadcast %cst_81 : f32 to vector<8x1xf32>
    %199 = arith.divf %197, %198 : vector<8x1xf32>
    %200 = vector.broadcast %192 : vector<8x1xf32> to vector<8x256xf32>
    %201 = arith.subf %186, %200 : vector<8x256xf32>
    %cst_82 = arith.constant 9.99999974E-6 : f32
    %202 = vector.broadcast %cst_82 : f32 to vector<8x1xf32>
    %203 = arith.addf %199, %202 : vector<8x1xf32>
    %204 = math.rsqrt %203 : vector<8x1xf32>
    %205 = vector.broadcast %204 : vector<8x1xf32> to vector<8x256xf32>
    %206 = arith.mulf %201, %205 : vector<8x256xf32>
    %207 = vector.broadcast %187 : vector<1x256xf32> to vector<8x256xf32>
    %208 = arith.mulf %206, %207 : vector<8x256xf32>
    %209 = vector.broadcast %188 : vector<1x256xf32> to vector<8x256xf32>
    %210 = arith.addf %208, %209 : vector<8x256xf32>
    %cst_83 = arith.constant 5.000000e-01 : f32
    %211 = vector.broadcast %cst_83 : f32 to vector<8x256xf32>
    %212 = arith.mulf %211, %210 : vector<8x256xf32>
    %cst_84 = arith.constant 0.707106769 : f32
    %213 = vector.broadcast %cst_84 : f32 to vector<8x256xf32>
    %214 = arith.mulf %210, %213 : vector<8x256xf32>
    %215 = math.erf %214 : vector<8x256xf32>
    %cst_85 = arith.constant 1.000000e+00 : f32
    %216 = vector.broadcast %cst_85 : f32 to vector<8x256xf32>
    %217 = arith.addf %216, %215 : vector<8x256xf32>
    %218 = arith.mulf %212, %217 : vector<8x256xf32>
    %c4_86 = arith.constant 4 : index
    %c0_87 = arith.constant 0 : index
    %c0_88 = arith.constant 0 : index
    %219 = vector.load %arg3[%c4_86, %c0_87, %c0_88] : memref<6x256x256xf32, #tpu.memory_space<vmem>>, vector<1x256x256xf32>
    %220 = vector.shape_cast %219 : vector<1x256x256xf32> to vector<256x256xf32>
    %cst_89 = arith.constant dense<0.000000e+00> : vector<8x256xf32>
    %221 = tpu.matmul %218, %220, %cst_89 {dimension_numbers = #tpu.dot_dimension_numbers<[1], [0], [0], [1], [0, 0, 1, 1], [], []>} : vector<8x256xf32>, vector<256x256xf32>, vector<8x256xf32> -> vector<8x256xf32>
    %c16 = arith.constant 16 : index
    %c0_90 = arith.constant 0 : index
    %222 = vector.load %arg6[%c16, %c0_90] : memref<21x256xf32, #tpu.memory_space<vmem>>, vector<1x256xf32>
    %223 = vector.broadcast %222 : vector<1x256xf32> to vector<8x256xf32>
    %224 = arith.addf %221, %223 : vector<8x256xf32>
    %c17 = arith.constant 17 : index
    %c0_91 = arith.constant 0 : index
    %225 = vector.load %arg6[%c17, %c0_91] : memref<21x256xf32, #tpu.memory_space<vmem>>, vector<1x256xf32>
    %c18 = arith.constant 18 : index
    %c0_92 = arith.constant 0 : index
    %226 = vector.load %arg6[%c18, %c0_92] : memref<21x256xf32, #tpu.memory_space<vmem>>, vector<1x256xf32>
    %cst_93 = arith.constant dense<0.000000e+00> : vector<8xf32>
    %227 = vector.multi_reduction <add>, %224, %cst_93 [1] : vector<8x256xf32> to vector<8xf32>
    %228 = vector.shape_cast %227 : vector<8xf32> to vector<8x1xf32>
    %cst_94 = arith.constant 2.560000e+02 : f32
    %229 = vector.broadcast %cst_94 : f32 to vector<8x1xf32>
    %230 = arith.divf %228, %229 : vector<8x1xf32>
    %231 = vector.broadcast %230 : vector<8x1xf32> to vector<8x256xf32>
    %232 = arith.subf %224, %231 : vector<8x256xf32>
    %233 = arith.mulf %232, %232 : vector<8x256xf32>
    %cst_95 = arith.constant dense<0.000000e+00> : vector<8xf32>
    %234 = vector.multi_reduction <add>, %233, %cst_95 [1] : vector<8x256xf32> to vector<8xf32>
    %235 = vector.shape_cast %234 : vector<8xf32> to vector<8x1xf32>
    %cst_96 = arith.constant 2.560000e+02 : f32
    %236 = vector.broadcast %cst_96 : f32 to vector<8x1xf32>
    %237 = arith.divf %235, %236 : vector<8x1xf32>
    %238 = vector.broadcast %230 : vector<8x1xf32> to vector<8x256xf32>
    %239 = arith.subf %224, %238 : vector<8x256xf32>
    %cst_97 = arith.constant 9.99999974E-6 : f32
    %240 = vector.broadcast %cst_97 : f32 to vector<8x1xf32>
    %241 = arith.addf %237, %240 : vector<8x1xf32>
    %242 = math.rsqrt %241 : vector<8x1xf32>
    %243 = vector.broadcast %242 : vector<8x1xf32> to vector<8x256xf32>
    %244 = arith.mulf %239, %243 : vector<8x256xf32>
    %245 = vector.broadcast %225 : vector<1x256xf32> to vector<8x256xf32>
    %246 = arith.mulf %244, %245 : vector<8x256xf32>
    %247 = vector.broadcast %226 : vector<1x256xf32> to vector<8x256xf32>
    %248 = arith.addf %246, %247 : vector<8x256xf32>
    %cst_98 = arith.constant 5.000000e-01 : f32
    %249 = vector.broadcast %cst_98 : f32 to vector<8x256xf32>
    %250 = arith.mulf %249, %248 : vector<8x256xf32>
    %cst_99 = arith.constant 0.707106769 : f32
    %251 = vector.broadcast %cst_99 : f32 to vector<8x256xf32>
    %252 = arith.mulf %248, %251 : vector<8x256xf32>
    %253 = math.erf %252 : vector<8x256xf32>
    %cst_100 = arith.constant 1.000000e+00 : f32
    %254 = vector.broadcast %cst_100 : f32 to vector<8x256xf32>
    %255 = arith.addf %254, %253 : vector<8x256xf32>
    %256 = arith.mulf %250, %255 : vector<8x256xf32>
    %c5_101 = arith.constant 5 : index
    %c0_102 = arith.constant 0 : index
    %c0_103 = arith.constant 0 : index
    %257 = vector.load %arg3[%c5_101, %c0_102, %c0_103] : memref<6x256x256xf32, #tpu.memory_space<vmem>>, vector<1x256x256xf32>
    %258 = vector.shape_cast %257 : vector<1x256x256xf32> to vector<256x256xf32>
    %cst_104 = arith.constant dense<0.000000e+00> : vector<8x256xf32>
    %259 = tpu.matmul %180, %258, %cst_104 {dimension_numbers = #tpu.dot_dimension_numbers<[1], [0], [0], [1], [0, 0, 1, 1], [], []>} : vector<8x256xf32>, vector<256x256xf32>, vector<8x256xf32> -> vector<8x256xf32>
    %c20 = arith.constant 20 : index
    %c0_105 = arith.constant 0 : index
    %260 = vector.load %arg6[%c20, %c0_105] : memref<21x256xf32, #tpu.memory_space<vmem>>, vector<1x256xf32>
    %261 = vector.broadcast %260 : vector<1x256xf32> to vector<8x256xf32>
    %262 = arith.addf %259, %261 : vector<8x256xf32>
    %cst_106 = arith.constant 5.000000e-01 : f32
    %263 = vector.broadcast %cst_106 : f32 to vector<8x256xf32>
    %264 = arith.mulf %263, %262 : vector<8x256xf32>
    %cst_107 = arith.constant 0.707106769 : f32
    %265 = vector.broadcast %cst_107 : f32 to vector<8x256xf32>
    %266 = arith.mulf %262, %265 : vector<8x256xf32>
    %267 = math.erf %266 : vector<8x256xf32>
    %cst_108 = arith.constant 1.000000e+00 : f32
    %268 = vector.broadcast %cst_108 : f32 to vector<8x256xf32>
    %269 = arith.addf %268, %267 : vector<8x256xf32>
    %270 = arith.mulf %264, %269 : vector<8x256xf32>
    %c0_109 = arith.constant 0 : index
    %c0_110 = arith.constant 0 : index
    %c0_111 = arith.constant 0 : index
    %271 = vector.load %arg5[%c0_109, %c0_110, %c0_111] : memref<2x256x128xf32, #tpu.memory_space<vmem>>, vector<1x256x128xf32>
    %272 = vector.shape_cast %271 : vector<1x256x128xf32> to vector<256x128xf32>
    %cst_112 = arith.constant dense<0.000000e+00> : vector<8x128xf32>
    %273 = tpu.matmul %256, %272, %cst_112 {dimension_numbers = #tpu.dot_dimension_numbers<[1], [0], [0], [1], [0, 0, 1, 1], [], []>} : vector<8x256xf32>, vector<256x128xf32>, vector<8x128xf32> -> vector<8x128xf32>
    %c1_113 = arith.constant 1 : index
    %c0_114 = arith.constant 0 : index
    %c0_115 = arith.constant 0 : index
    %274 = vector.load %arg5[%c1_113, %c0_114, %c0_115] : memref<2x256x128xf32, #tpu.memory_space<vmem>>, vector<1x256x128xf32>
    %275 = vector.shape_cast %274 : vector<1x256x128xf32> to vector<256x128xf32>
    %cst_116 = arith.constant dense<0.000000e+00> : vector<8x128xf32>
    %276 = tpu.matmul %270, %275, %cst_116 {dimension_numbers = #tpu.dot_dimension_numbers<[1], [0], [0], [1], [0, 0, 1, 1], [], []>} : vector<8x256xf32>, vector<256x128xf32>, vector<8x128xf32> -> vector<8x128xf32>
    %277 = arith.addf %273, %276 : vector<8x128xf32>
    %c0_117 = arith.constant 0 : index
    %c0_118 = arith.constant 0 : index
    %278 = vector.load %arg7[%c0_117, %c0_118] : memref<1x128xf32, #tpu.memory_space<vmem>>, vector<1x128xf32>
    %279 = vector.broadcast %278 : vector<1x128xf32> to vector<8x128xf32>
    %280 = arith.addf %277, %279 : vector<8x128xf32>
    %c0_119 = arith.constant 0 : index
    %c0_120 = arith.constant 0 : index
    %281 = vector.load %arg8[%c0_119, %c0_120] : memref<8x128xf32, #tpu.memory_space<vmem>>, vector<8x128xf32>
    tpu.vector_store %arg8[%c0_119, %c0_120], %280 {strides = array<i32>} : memref<8x128xf32, #tpu.memory_space<vmem>>, vector<8x128xf32>,
    return
  }
  func.func @transform_0(%arg0: i32) -> (i32, i32) {
    %c0_i32 = arith.constant 0 : i32
    %c0_i32_0 = arith.constant 0 : i32
    return %arg0, %c0_i32 : i32, i32
  }
  func.func @transform_1(%arg0: i32) -> (i32, i32) {
    %c0_i32 = arith.constant 0 : i32
    %c0_i32_0 = arith.constant 0 : i32
    %c0_i32_1 = arith.constant 0 : i32
    return %c0_i32, %c0_i32_0 : i32, i32
  }
  func.func @transform_2(%arg0: i32) -> (i32, i32, i32) {
    %c0_i32 = arith.constant 0 : i32
    %c0_i32_0 = arith.constant 0 : i32
    %c0_i32_1 = arith.constant 0 : i32
    %c0_i32_2 = arith.constant 0 : i32
    return %c0_i32, %c0_i32_0, %c0_i32_1 : i32, i32, i32
  }
  func.func @transform_3(%arg0: i32) -> (i32, i32) {
    %c0_i32 = arith.constant 0 : i32
    %c0_i32_0 = arith.constant 0 : i32
    %c0_i32_1 = arith.constant 0 : i32
    return %c0_i32, %c0_i32_0 : i32, i32
  }
  func.func @transform_4(%arg0: i32) -> (i32, i32, i32) {
    %c0_i32 = arith.constant 0 : i32
    %c0_i32_0 = arith.constant 0 : i32
    %c0_i32_1 = arith.constant 0 : i32
    %c0_i32_2 = arith.constant 0 : i32
    return %c0_i32, %c0_i32_0, %c0_i32_1 : i32, i32, i32
  }
  func.func @transform_5(%arg0: i32) -> (i32, i32) {
    %c0_i32 = arith.constant 0 : i32
    %c0_i32_0 = arith.constant 0 : i32
    %c0_i32_1 = arith.constant 0 : i32
    return %c0_i32, %c0_i32_0 : i32, i32
  }
  func.func @transform_6(%arg0: i32) -> (i32, i32) {
    %c0_i32 = arith.constant 0 : i32
    %c0_i32_0 = arith.constant 0 : i32
    %c0_i32_1 = arith.constant 0 : i32
    return %c0_i32, %c0_i32_0 : i32, i32
  }
  func.func @transform_7(%arg0: i32) -> (i32, i32) {
    %c0_i32 = arith.constant 0 : i32
    %c0_i32_0 = arith.constant 0 : i32
    return %arg0, %c0_i32 : i32, i32
  }
  func.func @transform_8(%arg0: i32) -> (i32, i32) {
    %c0_i32 = arith.constant 0 : i32
    %c0_i32_0 = arith.constant 0 : i32
    return %arg0, %c0_i32 : i32, i32
  }
}

module attributes {stable_mosaic.version = 11 : i64} {
  func.func @_simple_mlp_kernel(%arg0: i32, %arg1: memref<8x1xf32, #tpu.memory_space<vmem>>, %arg2: memref<1x256xf32, #tpu.memory_space<vmem>>, %arg3: memref<6x256x256xf32, #tpu.memory_space<vmem>>, %arg4: memref<256x512xf32, #tpu.memory_space<vmem>>, %arg5: memref<2x256x128xf32, #tpu.memory_space<vmem>>, %arg6: memref<21x256xf32, #tpu.memory_space<vmem>>, %arg7: memref<1x128xf32, #tpu.memory_space<vmem>>, %arg8: memref<8x128xf32, #tpu.memory_space<vmem>>, %arg9: memref<8x256xf32, #tpu.memory_space<vmem>>) attributes {dimension_semantics = [#tpu.dimension_semantics<parallel>], iteration_bounds = array<i64: 1>, scalar_prefetch = 0 : i64, scratch_operands = 0 : i64, tpu.core_type = #tpu.core_type<tc>, window_params = [{transform_indices = @transform_0, window_bounds = array<i64: 8, 1>}, {pipeline_mode = #tpu.pipeline_mode<synchronous>, transform_indices = @transform_1, window_bounds = array<i64: 1, 256>}, {pipeline_mode = #tpu.pipeline_mode<synchronous>, transform_indices = @transform_2, window_bounds = array<i64: 6, 256, 256>}, {pipeline_mode = #tpu.pipeline_mode<synchronous>, transform_indices = @transform_3, window_bounds = array<i64: 256, 512>}, {pipeline_mode = #tpu.pipeline_mode<synchronous>, transform_indices = @transform_4, window_bounds = array<i64: 2, 256, 128>}, {pipeline_mode = #tpu.pipeline_mode<synchronous>, transform_indices = @transform_5, window_bounds = array<i64: 21, 256>}, {pipeline_mode = #tpu.pipeline_mode<synchronous>, transform_indices = @transform_6, window_bounds = array<i64: 1, 128>}, {transform_indices = @transform_7, window_bounds = array<i64: 8, 128>}, {transform_indices = @transform_8, window_bounds = array<i64: 8, 256>}]} {
    %c0 = arith.constant 0 : index
    %c0_0 = arith.constant 0 : index
    %0 = vector.load %arg1[%c0, %c0_0] : memref<8x1xf32, #tpu.memory_space<vmem>>, vector<8x1xf32>
    %c0_1 = arith.constant 0 : index
    %c0_2 = arith.constant 0 : index
    %1 = vector.load %arg2[%c0_1, %c0_2] : memref<1x256xf32, #tpu.memory_space<vmem>>, vector<1x256xf32>
    %2 = vector.broadcast %0 : vector<8x1xf32> to vector<8x256xf32>
    %3 = vector.broadcast %1 : vector<1x256xf32> to vector<8x256xf32>
    %4 = arith.mulf %2, %3 : vector<8x256xf32>
    %c0_3 = arith.constant 0 : index
    %c0_4 = arith.constant 0 : index
    %5 = vector.load %arg6[%c0_3, %c0_4] : memref<21x256xf32, #tpu.memory_space<vmem>>, vector<1x256xf32>
    %6 = vector.broadcast %5 : vector<1x256xf32> to vector<8x256xf32>
    %7 = arith.addf %4, %6 : vector<8x256xf32>
    %c1 = arith.constant 1 : index
    %c0_5 = arith.constant 0 : index
    %8 = vector.load %arg6[%c1, %c0_5] : memref<21x256xf32, #tpu.memory_space<vmem>>, vector<1x256xf32>
    %c2 = arith.constant 2 : index
    %c0_6 = arith.constant 0 : index
    %9 = vector.load %arg6[%c2, %c0_6] : memref<21x256xf32, #tpu.memory_space<vmem>>, vector<1x256xf32>
    %cst = arith.constant dense<0.000000e+00> : vector<8xf32>
    %10 = vector.multi_reduction <add>, %7, %cst [1] : vector<8x256xf32> to vector<8xf32>
    %11 = vector.shape_cast %10 : vector<8xf32> to vector<8x1xf32>
    %cst_7 = arith.constant 2.560000e+02 : f32
    %12 = vector.broadcast %cst_7 : f32 to vector<8x1xf32>
    %13 = arith.divf %11, %12 : vector<8x1xf32>
    %14 = vector.broadcast %13 : vector<8x1xf32> to vector<8x256xf32>
    %15 = arith.subf %7, %14 : vector<8x256xf32>
    %16 = arith.mulf %15, %15 : vector<8x256xf32>
    %cst_8 = arith.constant dense<0.000000e+00> : vector<8xf32>
    %17 = vector.multi_reduction <add>, %16, %cst_8 [1] : vector<8x256xf32> to vector<8xf32>
    %18 = vector.shape_cast %17 : vector<8xf32> to vector<8x1xf32>
    %cst_9 = arith.constant 2.560000e+02 : f32
    %19 = vector.broadcast %cst_9 : f32 to vector<8x1xf32>
    %20 = arith.divf %18, %19 : vector<8x1xf32>
    %21 = vector.broadcast %13 : vector<8x1xf32> to vector<8x256xf32>
    %22 = arith.subf %7, %21 : vector<8x256xf32>
    %cst_10 = arith.constant 9.99999974E-6 : f32
    %23 = vector.broadcast %cst_10 : f32 to vector<8x1xf32>
    %24 = arith.addf %20, %23 : vector<8x1xf32>
    %25 = math.rsqrt %24 : vector<8x1xf32>
    %26 = vector.broadcast %25 : vector<8x1xf32> to vector<8x256xf32>
    %27 = arith.mulf %22, %26 : vector<8x256xf32>
    %28 = vector.broadcast %8 : vector<1x256xf32> to vector<8x256xf32>
    %29 = arith.mulf %27, %28 : vector<8x256xf32>
    %30 = vector.broadcast %9 : vector<1x256xf32> to vector<8x256xf32>
    %31 = arith.addf %29, %30 : vector<8x256xf32>
    %cst_11 = arith.constant 5.000000e-01 : f32
    %32 = vector.broadcast %cst_11 : f32 to vector<8x256xf32>
    %33 = arith.mulf %32, %31 : vector<8x256xf32>
    %cst_12 = arith.constant 0.707106769 : f32
    %34 = vector.broadcast %cst_12 : f32 to vector<8x256xf32>
    %35 = arith.mulf %31, %34 : vector<8x256xf32>
    %36 = math.erf %35 : vector<8x256xf32>
    %cst_13 = arith.constant 1.000000e+00 : f32
    %37 = vector.broadcast %cst_13 : f32 to vector<8x256xf32>
    %38 = arith.addf %37, %36 : vector<8x256xf32>
    %39 = arith.mulf %33, %38 : vector<8x256xf32>
    %c0_14 = arith.constant 0 : index
    %c0_15 = arith.constant 0 : index
    %c0_16 = arith.constant 0 : index
    %40 = vector.load %arg3[%c0_14, %c0_15, %c0_16] : memref<6x256x256xf32, #tpu.memory_space<vmem>>, vector<1x256x256xf32>
    %41 = vector.shape_cast %40 : vector<1x256x256xf32> to vector<256x256xf32>
    %cst_17 = arith.constant dense<0.000000e+00> : vector<8x256xf32>
    %42 = tpu.matmul %39, %41, %cst_17 {dimension_numbers = #tpu.dot_dimension_numbers<[1], [0], [0], [1], [0, 0, 1, 1], [], []>} : vector<8x256xf32>, vector<256x256xf32>, vector<8x256xf32> -> vector<8x256xf32>
    %c3 = arith.constant 3 : index
    %c0_18 = arith.constant 0 : index
    %43 = vector.load %arg6[%c3, %c0_18] : memref<21x256xf32, #tpu.memory_space<vmem>>, vector<1x256xf32>
    %44 = vector.broadcast %43 : vector<1x256xf32> to vector<8x256xf32>
    %45 = arith.addf %42, %44 : vector<8x256xf32>
    %c4 = arith.constant 4 : index
    %c0_19 = arith.constant 0 : index
    %46 = vector.load %arg6[%c4, %c0_19] : memref<21x256xf32, #tpu.memory_space<vmem>>, vector<1x256xf32>
    %c5 = arith.constant 5 : index
    %c0_20 = arith.constant 0 : index
    %47 = vector.load %arg6[%c5, %c0_20] : memref<21x256xf32, #tpu.memory_space<vmem>>, vector<1x256xf32>
    %cst_21 = arith.constant dense<0.000000e+00> : vector<8xf32>
    %48 = vector.multi_reduction <add>, %45, %cst_21 [1] : vector<8x256xf32> to vector<8xf32>
    %49 = vector.shape_cast %48 : vector<8xf32> to vector<8x1xf32>
    %cst_22 = arith.constant 2.560000e+02 : f32
    %50 = vector.broadcast %cst_22 : f32 to vector<8x1xf32>
    %51 = arith.divf %49, %50 : vector<8x1xf32>
    %52 = vector.broadcast %51 : vector<8x1xf32> to vector<8x256xf32>
    %53 = arith.subf %45, %52 : vector<8x256xf32>
    %54 = arith.mulf %53, %53 : vector<8x256xf32>
    %cst_23 = arith.constant dense<0.000000e+00> : vector<8xf32>
    %55 = vector.multi_reduction <add>, %54, %cst_23 [1] : vector<8x256xf32> to vector<8xf32>
    %56 = vector.shape_cast %55 : vector<8xf32> to vector<8x1xf32>
    %cst_24 = arith.constant 2.560000e+02 : f32
    %57 = vector.broadcast %cst_24 : f32 to vector<8x1xf32>
    %58 = arith.divf %56, %57 : vector<8x1xf32>
    %59 = vector.broadcast %51 : vector<8x1xf32> to vector<8x256xf32>
    %60 = arith.subf %45, %59 : vector<8x256xf32>
    %cst_25 = arith.constant 9.99999974E-6 : f32
    %61 = vector.broadcast %cst_25 : f32 to vector<8x1xf32>
    %62 = arith.addf %58, %61 : vector<8x1xf32>
    %63 = math.rsqrt %62 : vector<8x1xf32>
    %64 = vector.broadcast %63 : vector<8x1xf32> to vector<8x256xf32>
    %65 = arith.mulf %60, %64 : vector<8x256xf32>
    %66 = vector.broadcast %46 : vector<1x256xf32> to vector<8x256xf32>
    %67 = arith.mulf %65, %66 : vector<8x256xf32>
    %68 = vector.broadcast %47 : vector<1x256xf32> to vector<8x256xf32>
    %69 = arith.addf %67, %68 : vector<8x256xf32>
    %cst_26 = arith.constant 5.000000e-01 : f32
    %70 = vector.broadcast %cst_26 : f32 to vector<8x256xf32>
    %71 = arith.mulf %70, %69 : vector<8x256xf32>
    %cst_27 = arith.constant 0.707106769 : f32
    %72 = vector.broadcast %cst_27 : f32 to vector<8x256xf32>
    %73 = arith.mulf %69, %72 : vector<8x256xf32>
    %74 = math.erf %73 : vector<8x256xf32>
    %cst_28 = arith.constant 1.000000e+00 : f32
    %75 = vector.broadcast %cst_28 : f32 to vector<8x256xf32>
    %76 = arith.addf %75, %74 : vector<8x256xf32>
    %77 = arith.mulf %71, %76 : vector<8x256xf32>
    %c1_29 = arith.constant 1 : index
    %c0_30 = arith.constant 0 : index
    %c0_31 = arith.constant 0 : index
    %78 = vector.load %arg3[%c1_29, %c0_30, %c0_31] : memref<6x256x256xf32, #tpu.memory_space<vmem>>, vector<1x256x256xf32>
    %79 = vector.shape_cast %78 : vector<1x256x256xf32> to vector<256x256xf32>
    %cst_32 = arith.constant dense<0.000000e+00> : vector<8x256xf32>
    %80 = tpu.matmul %77, %79, %cst_32 {dimension_numbers = #tpu.dot_dimension_numbers<[1], [0], [0], [1], [0, 0, 1, 1], [], []>} : vector<8x256xf32>, vector<256x256xf32>, vector<8x256xf32> -> vector<8x256xf32>
    %c6 = arith.constant 6 : index
    %c0_33 = arith.constant 0 : index
    %81 = vector.load %arg6[%c6, %c0_33] : memref<21x256xf32, #tpu.memory_space<vmem>>, vector<1x256xf32>
    %82 = vector.broadcast %81 : vector<1x256xf32> to vector<8x256xf32>
    %83 = arith.addf %80, %82 : vector<8x256xf32>
    %c7 = arith.constant 7 : index
    %c0_34 = arith.constant 0 : index
    %84 = vector.load %arg6[%c7, %c0_34] : memref<21x256xf32, #tpu.memory_space<vmem>>, vector<1x256xf32>
    %c8 = arith.constant 8 : index
    %c0_35 = arith.constant 0 : index
    %85 = vector.load %arg6[%c8, %c0_35] : memref<21x256xf32, #tpu.memory_space<vmem>>, vector<1x256xf32>
    %cst_36 = arith.constant dense<0.000000e+00> : vector<8xf32>
    %86 = vector.multi_reduction <add>, %83, %cst_36 [1] : vector<8x256xf32> to vector<8xf32>
    %87 = vector.shape_cast %86 : vector<8xf32> to vector<8x1xf32>
    %cst_37 = arith.constant 2.560000e+02 : f32
    %88 = vector.broadcast %cst_37 : f32 to vector<8x1xf32>
    %89 = arith.divf %87, %88 : vector<8x1xf32>
    %90 = vector.broadcast %89 : vector<8x1xf32> to vector<8x256xf32>
    %91 = arith.subf %83, %90 : vector<8x256xf32>
    %92 = arith.mulf %91, %91 : vector<8x256xf32>
    %cst_38 = arith.constant dense<0.000000e+00> : vector<8xf32>
    %93 = vector.multi_reduction <add>, %92, %cst_38 [1] : vector<8x256xf32> to vector<8xf32>
    %94 = vector.shape_cast %93 : vector<8xf32> to vector<8x1xf32>
    %cst_39 = arith.constant 2.560000e+02 : f32
    %95 = vector.broadcast %cst_39 : f32 to vector<8x1xf32>
    %96 = arith.divf %94, %95 : vector<8x1xf32>
    %97 = vector.broadcast %89 : vector<8x1xf32> to vector<8x256xf32>
    %98 = arith.subf %83, %97 : vector<8x256xf32>
    %cst_40 = arith.constant 9.99999974E-6 : f32
    %99 = vector.broadcast %cst_40 : f32 to vector<8x1xf32>
    %100 = arith.addf %96, %99 : vector<8x1xf32>
    %101 = math.rsqrt %100 : vector<8x1xf32>
    %102 = vector.broadcast %101 : vector<8x1xf32> to vector<8x256xf32>
    %103 = arith.mulf %98, %102 : vector<8x256xf32>
    %104 = vector.broadcast %84 : vector<1x256xf32> to vector<8x256xf32>
    %105 = arith.mulf %103, %104 : vector<8x256xf32>
    %106 = vector.broadcast %85 : vector<1x256xf32> to vector<8x256xf32>
    %107 = arith.addf %105, %106 : vector<8x256xf32>
    %cst_41 = arith.constant 5.000000e-01 : f32
    %108 = vector.broadcast %cst_41 : f32 to vector<8x256xf32>
    %109 = arith.mulf %108, %107 : vector<8x256xf32>
    %cst_42 = arith.constant 0.707106769 : f32
    %110 = vector.broadcast %cst_42 : f32 to vector<8x256xf32>
    %111 = arith.mulf %107, %110 : vector<8x256xf32>
    %112 = math.erf %111 : vector<8x256xf32>
    %cst_43 = arith.constant 1.000000e+00 : f32
    %113 = vector.broadcast %cst_43 : f32 to vector<8x256xf32>
    %114 = arith.addf %113, %112 : vector<8x256xf32>
    %115 = arith.mulf %109, %114 : vector<8x256xf32>
    %c2_44 = arith.constant 2 : index
    %c0_45 = arith.constant 0 : index
    %c0_46 = arith.constant 0 : index
    %116 = vector.load %arg3[%c2_44, %c0_45, %c0_46] : memref<6x256x256xf32, #tpu.memory_space<vmem>>, vector<1x256x256xf32>
    %117 = vector.shape_cast %116 : vector<1x256x256xf32> to vector<256x256xf32>
    %cst_47 = arith.constant dense<0.000000e+00> : vector<8x256xf32>
    %118 = tpu.matmul %115, %117, %cst_47 {dimension_numbers = #tpu.dot_dimension_numbers<[1], [0], [0], [1], [0, 0, 1, 1], [], []>} : vector<8x256xf32>, vector<256x256xf32>, vector<8x256xf32> -> vector<8x256xf32>
    %c9 = arith.constant 9 : index
    %c0_48 = arith.constant 0 : index
    %119 = vector.load %arg6[%c9, %c0_48] : memref<21x256xf32, #tpu.memory_space<vmem>>, vector<1x256xf32>
    %120 = vector.broadcast %119 : vector<1x256xf32> to vector<8x256xf32>
    %121 = arith.addf %118, %120 : vector<8x256xf32>
    %122 = arith.mulf %121, %121 : vector<8x256xf32>
    %cst_49 = arith.constant dense<0.000000e+00> : vector<8xf32>
    %123 = vector.multi_reduction <add>, %122, %cst_49 [1] : vector<8x256xf32> to vector<8xf32>
    %124 = vector.shape_cast %123 : vector<8xf32> to vector<8x1xf32>
    %125 = math.sqrt %124 : vector<8x1xf32>
    %cst_50 = arith.constant 9.99999996E-13 : f32
    %126 = vector.broadcast %cst_50 : f32 to vector<8x1xf32>
    %127 = arith.maximumf %125, %126 : vector<8x1xf32>
    %128 = vector.broadcast %127 : vector<8x1xf32> to vector<8x256xf32>
    %129 = arith.divf %121, %128 : vector<8x256xf32>
    %c0_51 = arith.constant 0 : index
    %c0_52 = arith.constant 0 : index
    %130 = vector.load %arg9[%c0_51, %c0_52] : memref<8x256xf32, #tpu.memory_space<vmem>>, vector<8x256xf32>
    tpu.vector_store %arg9[%c0_51, %c0_52], %129 {strides = array<i32>} : memref<8x256xf32, #tpu.memory_space<vmem>>, vector<8x256xf32>,
    %c0_53 = arith.constant 0 : index
    %c0_54 = arith.constant 0 : index
    %131 = vector.load %arg4[%c0_53, %c0_54] : memref<256x512xf32, #tpu.memory_space<vmem>>, vector<256x512xf32>
    %cst_55 = arith.constant dense<0.000000e+00> : vector<8x512xf32>
    %132 = tpu.matmul %129, %131, %cst_55 {dimension_numbers = #tpu.dot_dimension_numbers<[1], [0], [0], [1], [0, 0, 1, 1], [], []>} : vector<8x256xf32>, vector<256x512xf32>, vector<8x512xf32> -> vector<8x512xf32>
    %133 = vector.extract_strided_slice %132 {offsets = [0, 0], sizes = [8, 256], strides = [1, 1]} : vector<8x512xf32> to vector<8x256xf32>
    %c10 = arith.constant 10 : index
    %c0_56 = arith.constant 0 : index
    %134 = vector.load %arg6[%c10, %c0_56] : memref<21x256xf32, #tpu.memory_space<vmem>>, vector<1x256xf32>
    %135 = vector.broadcast %134 : vector<1x256xf32> to vector<8x256xf32>
    %136 = arith.addf %133, %135 : vector<8x256xf32>
    %c11 = arith.constant 11 : index
    %c0_57 = arith.constant 0 : index
    %137 = vector.load %arg6[%c11, %c0_57] : memref<21x256xf32, #tpu.memory_space<vmem>>, vector<1x256xf32>
    %c12 = arith.constant 12 : index
    %c0_58 = arith.constant 0 : index
    %138 = vector.load %arg6[%c12, %c0_58] : memref<21x256xf32, #tpu.memory_space<vmem>>, vector<1x256xf32>
    %cst_59 = arith.constant dense<0.000000e+00> : vector<8xf32>
    %139 = vector.multi_reduction <add>, %136, %cst_59 [1] : vector<8x256xf32> to vector<8xf32>
    %140 = vector.shape_cast %139 : vector<8xf32> to vector<8x1xf32>
    %cst_60 = arith.constant 2.560000e+02 : f32
    %141 = vector.broadcast %cst_60 : f32 to vector<8x1xf32>
    %142 = arith.divf %140, %141 : vector<8x1xf32>
    %143 = vector.broadcast %142 : vector<8x1xf32> to vector<8x256xf32>
    %144 = arith.subf %136, %143 : vector<8x256xf32>
    %145 = arith.mulf %144, %144 : vector<8x256xf32>
    %cst_61 = arith.constant dense<0.000000e+00> : vector<8xf32>
    %146 = vector.multi_reduction <add>, %145, %cst_61 [1] : vector<8x256xf32> to vector<8xf32>
    %147 = vector.shape_cast %146 : vector<8xf32> to vector<8x1xf32>
    %cst_62 = arith.constant 2.560000e+02 : f32
    %148 = vector.broadcast %cst_62 : f32 to vector<8x1xf32>
    %149 = arith.divf %147, %148 : vector<8x1xf32>
    %150 = vector.broadcast %142 : vector<8x1xf32> to vector<8x256xf32>
    %151 = arith.subf %136, %150 : vector<8x256xf32>
    %cst_63 = arith.constant 9.99999974E-6 : f32
    %152 = vector.broadcast %cst_63 : f32 to vector<8x1xf32>
    %153 = arith.addf %149, %152 : vector<8x1xf32>
    %154 = math.rsqrt %153 : vector<8x1xf32>
    %155 = vector.broadcast %154 : vector<8x1xf32> to vector<8x256xf32>
    %156 = arith.mulf %151, %155 : vector<8x256xf32>
    %157 = vector.broadcast %137 : vector<1x256xf32> to vector<8x256xf32>
    %158 = arith.mulf %156, %157 : vector<8x256xf32>
    %159 = vector.broadcast %138 : vector<1x256xf32> to vector<8x256xf32>
    %160 = arith.addf %158, %159 : vector<8x256xf32>
    %cst_64 = arith.constant 5.000000e-01 : f32
    %161 = vector.broadcast %cst_64 : f32 to vector<8x256xf32>
    %162 = arith.mulf %161, %160 : vector<8x256xf32>
    %cst_65 = arith.constant 0.707106769 : f32
    %163 = vector.broadcast %cst_65 : f32 to vector<8x256xf32>
    %164 = arith.mulf %160, %163 : vector<8x256xf32>
    %165 = math.erf %164 : vector<8x256xf32>
    %cst_66 = arith.constant 1.000000e+00 : f32
    %166 = vector.broadcast %cst_66 : f32 to vector<8x256xf32>
    %167 = arith.addf %166, %165 : vector<8x256xf32>
    %168 = arith.mulf %162, %167 : vector<8x256xf32>
    %169 = vector.extract_strided_slice %132 {offsets = [0, 256], sizes = [8, 256], strides = [1, 1]} : vector<8x512xf32> to vector<8x256xf32>
    %c19 = arith.constant 19 : index
    %c0_67 = arith.constant 0 : index
    %170 = vector.load %arg6[%c19, %c0_67] : memref<21x256xf32, #tpu.memory_space<vmem>>, vector<1x256xf32>
    %171 = vector.broadcast %170 : vector<1x256xf32> to vector<8x256xf32>
    %172 = arith.addf %169, %171 : vector<8x256xf32>
    %cst_68 = arith.constant 5.000000e-01 : f32
    %173 = vector.broadcast %cst_68 : f32 to vector<8x256xf32>
    %174 = arith.mulf %173, %172 : vector<8x256xf32>
    %cst_69 = arith.constant 0.707106769 : f32
    %175 = vector.broadcast %cst_69 : f32 to vector<8x256xf32>
    %176 = arith.mulf %172, %175 : vector<8x256xf32>
    %177 = math.erf %176 : vector<8x256xf32>
    %cst_70 = arith.constant 1.000000e+00 : f32
    %178 = vector.broadcast %cst_70 : f32 to vector<8x256xf32>
    %179 = arith.addf %178, %177 : vector<8x256xf32>
    %180 = arith.mulf %174, %179 : vector<8x256xf32>
    %c3_71 = arith.constant 3 : index
    %c0_72 = arith.constant 0 : index
    %c0_73 = arith.constant 0 : index
    %181 = vector.load %arg3[%c3_71, %c0_72, %c0_73] : memref<6x256x256xf32, #tpu.memory_space<vmem>>, vector<1x256x256xf32>
    %182 = vector.shape_cast %181 : vector<1x256x256xf32> to vector<256x256xf32>
    %cst_74 = arith.constant dense<0.000000e+00> : vector<8x256xf32>
    %183 = tpu.matmul %168, %182, %cst_74 {dimension_numbers = #tpu.dot_dimension_numbers<[1], [0], [0], [1], [0, 0, 1, 1], [], []>} : vector<8x256xf32>, vector<256x256xf32>, vector<8x256xf32> -> vector<8x256xf32>
    %c13 = arith.constant 13 : index
    %c0_75 = arith.constant 0 : index
    %184 = vector.load %arg6[%c13, %c0_75] : memref<21x256xf32, #tpu.memory_space<vmem>>, vector<1x256xf32>
    %185 = vector.broadcast %184 : vector<1x256xf32> to vector<8x256xf32>
    %186 = arith.addf %183, %185 : vector<8x256xf32>
    %c14 = arith.constant 14 : index
    %c0_76 = arith.constant 0 : index
    %187 = vector.load %arg6[%c14, %c0_76] : memref<21x256xf32, #tpu.memory_space<vmem>>, vector<1x256xf32>
    %c15 = arith.constant 15 : index
    %c0_77 = arith.constant 0 : index
    %188 = vector.load %arg6[%c15, %c0_77] : memref<21x256xf32, #tpu.memory_space<vmem>>, vector<1x256xf32>
    %cst_78 = arith.constant dense<0.000000e+00> : vector<8xf32>
    %189 = vector.multi_reduction <add>, %186, %cst_78 [1] : vector<8x256xf32> to vector<8xf32>
    %190 = vector.shape_cast %189 : vector<8xf32> to vector<8x1xf32>
    %cst_79 = arith.constant 2.560000e+02 : f32
    %191 = vector.broadcast %cst_79 : f32 to vector<8x1xf32>
    %192 = arith.divf %190, %191 : vector<8x1xf32>
    %193 = vector.broadcast %192 : vector<8x1xf32> to vector<8x256xf32>
    %194 = arith.subf %186, %193 : vector<8x256xf32>
    %195 = arith.mulf %194, %194 : vector<8x256xf32>
    %cst_80 = arith.constant dense<0.000000e+00> : vector<8xf32>
    %196 = vector.multi_reduction <add>, %195, %cst_80 [1] : vector<8x256xf32> to vector<8xf32>
    %197 = vector.shape_cast %196 : vector<8xf32> to vector<8x1xf32>
    %cst_81 = arith.constant 2.560000e+02 : f32
    %198 = vector.broadcast %cst_81 : f32 to vector<8x1xf32>
    %199 = arith.divf %197, %198 : vector<8x1xf32>
    %200 = vector.broadcast %192 : vector<8x1xf32> to vector<8x256xf32>
    %201 = arith.subf %186, %200 : vector<8x256xf32>
    %cst_82 = arith.constant 9.99999974E-6 : f32
    %202 = vector.broadcast %cst_82 : f32 to vector<8x1xf32>
    %203 = arith.addf %199, %202 : vector<8x1xf32>
    %204 = math.rsqrt %203 : vector<8x1xf32>
    %205 = vector.broadcast %204 : vector<8x1xf32> to vector<8x256xf32>
    %206 = arith.mulf %201, %205 : vector<8x256xf32>
    %207 = vector.broadcast %187 : vector<1x256xf32> to vector<8x256xf32>
    %208 = arith.mulf %206, %207 : vector<8x256xf32>
    %209 = vector.broadcast %188 : vector<1x256xf32> to vector<8x256xf32>
    %210 = arith.addf %208, %209 : vector<8x256xf32>
    %cst_83 = arith.constant 5.000000e-01 : f32
    %211 = vector.broadcast %cst_83 : f32 to vector<8x256xf32>
    %212 = arith.mulf %211, %210 : vector<8x256xf32>
    %cst_84 = arith.constant 0.707106769 : f32
    %213 = vector.broadcast %cst_84 : f32 to vector<8x256xf32>
    %214 = arith.mulf %210, %213 : vector<8x256xf32>
    %215 = math.erf %214 : vector<8x256xf32>
    %cst_85 = arith.constant 1.000000e+00 : f32
    %216 = vector.broadcast %cst_85 : f32 to vector<8x256xf32>
    %217 = arith.addf %216, %215 : vector<8x256xf32>
    %218 = arith.mulf %212, %217 : vector<8x256xf32>
    %c4_86 = arith.constant 4 : index
    %c0_87 = arith.constant 0 : index
    %c0_88 = arith.constant 0 : index
    %219 = vector.load %arg3[%c4_86, %c0_87, %c0_88] : memref<6x256x256xf32, #tpu.memory_space<vmem>>, vector<1x256x256xf32>
    %220 = vector.shape_cast %219 : vector<1x256x256xf32> to vector<256x256xf32>
    %cst_89 = arith.constant dense<0.000000e+00> : vector<8x256xf32>
    %221 = tpu.matmul %218, %220, %cst_89 {dimension_numbers = #tpu.dot_dimension_numbers<[1], [0], [0], [1], [0, 0, 1, 1], [], []>} : vector<8x256xf32>, vector<256x256xf32>, vector<8x256xf32> -> vector<8x256xf32>
    %c16 = arith.constant 16 : index
    %c0_90 = arith.constant 0 : index
    %222 = vector.load %arg6[%c16, %c0_90] : memref<21x256xf32, #tpu.memory_space<vmem>>, vector<1x256xf32>
    %223 = vector.broadcast %222 : vector<1x256xf32> to vector<8x256xf32>
    %224 = arith.addf %221, %223 : vector<8x256xf32>
    %c17 = arith.constant 17 : index
    %c0_91 = arith.constant 0 : index
    %225 = vector.load %arg6[%c17, %c0_91] : memref<21x256xf32, #tpu.memory_space<vmem>>, vector<1x256xf32>
    %c18 = arith.constant 18 : index
    %c0_92 = arith.constant 0 : index
    %226 = vector.load %arg6[%c18, %c0_92] : memref<21x256xf32, #tpu.memory_space<vmem>>, vector<1x256xf32>
    %cst_93 = arith.constant dense<0.000000e+00> : vector<8xf32>
    %227 = vector.multi_reduction <add>, %224, %cst_93 [1] : vector<8x256xf32> to vector<8xf32>
    %228 = vector.shape_cast %227 : vector<8xf32> to vector<8x1xf32>
    %cst_94 = arith.constant 2.560000e+02 : f32
    %229 = vector.broadcast %cst_94 : f32 to vector<8x1xf32>
    %230 = arith.divf %228, %229 : vector<8x1xf32>
    %231 = vector.broadcast %230 : vector<8x1xf32> to vector<8x256xf32>
    %232 = arith.subf %224, %231 : vector<8x256xf32>
    %233 = arith.mulf %232, %232 : vector<8x256xf32>
    %cst_95 = arith.constant dense<0.000000e+00> : vector<8xf32>
    %234 = vector.multi_reduction <add>, %233, %cst_95 [1] : vector<8x256xf32> to vector<8xf32>
    %235 = vector.shape_cast %234 : vector<8xf32> to vector<8x1xf32>
    %cst_96 = arith.constant 2.560000e+02 : f32
    %236 = vector.broadcast %cst_96 : f32 to vector<8x1xf32>
    %237 = arith.divf %235, %236 : vector<8x1xf32>
    %238 = vector.broadcast %230 : vector<8x1xf32> to vector<8x256xf32>
    %239 = arith.subf %224, %238 : vector<8x256xf32>
    %cst_97 = arith.constant 9.99999974E-6 : f32
    %240 = vector.broadcast %cst_97 : f32 to vector<8x1xf32>
    %241 = arith.addf %237, %240 : vector<8x1xf32>
    %242 = math.rsqrt %241 : vector<8x1xf32>
    %243 = vector.broadcast %242 : vector<8x1xf32> to vector<8x256xf32>
    %244 = arith.mulf %239, %243 : vector<8x256xf32>
    %245 = vector.broadcast %225 : vector<1x256xf32> to vector<8x256xf32>
    %246 = arith.mulf %244, %245 : vector<8x256xf32>
    %247 = vector.broadcast %226 : vector<1x256xf32> to vector<8x256xf32>
    %248 = arith.addf %246, %247 : vector<8x256xf32>
    %cst_98 = arith.constant 5.000000e-01 : f32
    %249 = vector.broadcast %cst_98 : f32 to vector<8x256xf32>
    %250 = arith.mulf %249, %248 : vector<8x256xf32>
    %cst_99 = arith.constant 0.707106769 : f32
    %251 = vector.broadcast %cst_99 : f32 to vector<8x256xf32>
    %252 = arith.mulf %248, %251 : vector<8x256xf32>
    %253 = math.erf %252 : vector<8x256xf32>
    %cst_100 = arith.constant 1.000000e+00 : f32
    %254 = vector.broadcast %cst_100 : f32 to vector<8x256xf32>
    %255 = arith.addf %254, %253 : vector<8x256xf32>
    %256 = arith.mulf %250, %255 : vector<8x256xf32>
    %c5_101 = arith.constant 5 : index
    %c0_102 = arith.constant 0 : index
    %c0_103 = arith.constant 0 : index
    %257 = vector.load %arg3[%c5_101, %c0_102, %c0_103] : memref<6x256x256xf32, #tpu.memory_space<vmem>>, vector<1x256x256xf32>
    %258 = vector.shape_cast %257 : vector<1x256x256xf32> to vector<256x256xf32>
    %cst_104 = arith.constant dense<0.000000e+00> : vector<8x256xf32>
    %259 = tpu.matmul %180, %258, %cst_104 {dimension_numbers = #tpu.dot_dimension_numbers<[1], [0], [0], [1], [0, 0, 1, 1], [], []>} : vector<8x256xf32>, vector<256x256xf32>, vector<8x256xf32> -> vector<8x256xf32>
    %c20 = arith.constant 20 : index
    %c0_105 = arith.constant 0 : index
    %260 = vector.load %arg6[%c20, %c0_105] : memref<21x256xf32, #tpu.memory_space<vmem>>, vector<1x256xf32>
    %261 = vector.broadcast %260 : vector<1x256xf32> to vector<8x256xf32>
    %262 = arith.addf %259, %261 : vector<8x256xf32>
    %cst_106 = arith.constant 5.000000e-01 : f32
    %263 = vector.broadcast %cst_106 : f32 to vector<8x256xf32>
    %264 = arith.mulf %263, %262 : vector<8x256xf32>
    %cst_107 = arith.constant 0.707106769 : f32
    %265 = vector.broadcast %cst_107 : f32 to vector<8x256xf32>
    %266 = arith.mulf %262, %265 : vector<8x256xf32>
    %267 = math.erf %266 : vector<8x256xf32>
    %cst_108 = arith.constant 1.000000e+00 : f32
    %268 = vector.broadcast %cst_108 : f32 to vector<8x256xf32>
    %269 = arith.addf %268, %267 : vector<8x256xf32>
    %270 = arith.mulf %264, %269 : vector<8x256xf32>
    %c0_109 = arith.constant 0 : index
    %c0_110 = arith.constant 0 : index
    %c0_111 = arith.constant 0 : index
    %271 = vector.load %arg5[%c0_109, %c0_110, %c0_111] : memref<2x256x128xf32, #tpu.memory_space<vmem>>, vector<1x256x128xf32>
    %272 = vector.shape_cast %271 : vector<1x256x128xf32> to vector<256x128xf32>
    %cst_112 = arith.constant dense<0.000000e+00> : vector<8x128xf32>
    %273 = tpu.matmul %256, %272, %cst_112 {dimension_numbers = #tpu.dot_dimension_numbers<[1], [0], [0], [1], [0, 0, 1, 1], [], []>} : vector<8x256xf32>, vector<256x128xf32>, vector<8x128xf32> -> vector<8x128xf32>
    %c1_113 = arith.constant 1 : index
    %c0_114 = arith.constant 0 : index
    %c0_115 = arith.constant 0 : index
    %274 = vector.load %arg5[%c1_113, %c0_114, %c0_115] : memref<2x256x128xf32, #tpu.memory_space<vmem>>, vector<1x256x128xf32>
    %275 = vector.shape_cast %274 : vector<1x256x128xf32> to vector<256x128xf32>
    %cst_116 = arith.constant dense<0.000000e+00> : vector<8x128xf32>
    %276 = tpu.matmul %270, %275, %cst_116 {dimension_numbers = #tpu.dot_dimension_numbers<[1], [0], [0], [1], [0, 0, 1, 1], [], []>} : vector<8x256xf32>, vector<256x128xf32>, vector<8x128xf32> -> vector<8x128xf32>
    %277 = arith.addf %273, %276 : vector<8x128xf32>
    %c0_117 = arith.constant 0 : index
    %c0_118 = arith.constant 0 : index
    %278 = vector.load %arg7[%c0_117, %c0_118] : memref<1x128xf32, #tpu.memory_space<vmem>>, vector<1x128xf32>
    %279 = vector.broadcast %278 : vector<1x128xf32> to vector<8x128xf32>
    %280 = arith.addf %277, %279 : vector<8x128xf32>
    %c0_119 = arith.constant 0 : index
    %c0_120 = arith.constant 0 : index
    %281 = vector.load %arg8[%c0_119, %c0_120] : memref<8x128xf32, #tpu.memory_space<vmem>>, vector<8x128xf32>
    tpu.vector_store %arg8[%c0_119, %c0_120], %280 {strides = array<i32>} : memref<8x128xf32, #tpu.memory_space<vmem>>, vector<8x128xf32>,
    return
  }
  func.func @transform_0(%arg0: i32) -> (i32, i32) {
    %c0_i32 = arith.constant 0 : i32
    %c0_i32_0 = arith.constant 0 : i32
    return %arg0, %c0_i32 : i32, i32
  }
  func.func @transform_1(%arg0: i32) -> (i32, i32) {
    %c0_i32 = arith.constant 0 : i32
    %c0_i32_0 = arith.constant 0 : i32
    %c0_i32_1 = arith.constant 0 : i32
    return %c0_i32, %c0_i32_0 : i32, i32
  }
  func.func @transform_2(%arg0: i32) -> (i32, i32, i32) {
    %c0_i32 = arith.constant 0 : i32
    %c0_i32_0 = arith.constant 0 : i32
    %c0_i32_1 = arith.constant 0 : i32
    %c0_i32_2 = arith.constant 0 : i32
    return %c0_i32, %c0_i32_0, %c0_i32_1 : i32, i32, i32
  }
  func.func @transform_3(%arg0: i32) -> (i32, i32) {
    %c0_i32 = arith.constant 0 : i32
    %c0_i32_0 = arith.constant 0 : i32
    %c0_i32_1 = arith.constant 0 : i32
    return %c0_i32, %c0_i32_0 : i32, i32
  }
  func.func @transform_4(%arg0: i32) -> (i32, i32, i32) {
    %c0_i32 = arith.constant 0 : i32
    %c0_i32_0 = arith.constant 0 : i32
    %c0_i32_1 = arith.constant 0 : i32
    %c0_i32_2 = arith.constant 0 : i32
    return %c0_i32, %c0_i32_0, %c0_i32_1 : i32, i32, i32
  }
  func.func @transform_5(%arg0: i32) -> (i32, i32) {
    %c0_i32 = arith.constant 0 : i32
    %c0_i32_0 = arith.constant 0 : i32
    %c0_i32_1 = arith.constant 0 : i32
    return %c0_i32, %c0_i32_0 : i32, i32
  }
  func.func @transform_6(%arg0: i32) -> (i32, i32) {
    %c0_i32 = arith.constant 0 : i32
    %c0_i32_0 = arith.constant 0 : i32
    %c0_i32_1 = arith.constant 0 : i32
    return %c0_i32, %c0_i32_0 : i32, i32
  }
  func.func @transform_7(%arg0: i32) -> (i32, i32) {
    %c0_i32 = arith.constant 0 : i32
    %c0_i32_0 = arith.constant 0 : i32
    return %arg0, %c0_i32 : i32, i32
  }
  func.func @transform_8(%arg0: i32) -> (i32, i32) {
    %c0_i32 = arith.constant 0 : i32
    %c0_i32_0 = arith.constant 0 : i32
    return %arg0, %c0_i32 : i32, i32
  }
}

</mosaic_0001>

<bundles_post_ra>
// kernel: tpu_custom_call.1
= control target key start
LH: loop header
LB: loop body
LE: loop exit
PB: predicated region body
PF: predicated region fallthrough
CT: control target
= control target key end

     0   :  { %14 = vsyncpa [#allocation3], 0  ;;  %s3176_s0 = inlined_call_operand.vmem [shape: f32[8,1], index: 0, kind: input, shape index: {}]   ;;  %s3177_s1 = inlined_call_operand.hbm [shape: f32[1,256], index: 1, kind: input, shape index: {}]   ;;  %s3178_s2 = inlined_call_operand.hbm [shape: f32[6,256,256], index: 2, kind: input, shape index: {}]   ;;  %s3179_s3 = inlined_call_operand.hbm [shape: f32[256,512], index: 3, kind: input, shape index: {}]   ;;  %s3180_s4 = inlined_call_operand.hbm [shape: f32[2,256,128], index: 4, kind: input, shape index: {}]   ;;  %s3181_s5 = inlined_call_operand.hbm [shape: f32[21,256], index: 5, kind: input, shape index: {}]   ;;  %s3182_s6 = inlined_call_operand.hbm [shape: f32[1,128], index: 6, kind: input, shape index: {}]   ;;  %s3183_s7 = inlined_call_operand.hbm [shape: f32[8,128], index: 7, kind: output, shape index: {0}]   ;;  %s3184_s8 = inlined_call_operand.hbm [shape: f32[8,256], index: 8, kind: output, shape index: {1}]  }
   0x1   :  { %15 = vsyncpa [#allocation6], 0 }
   0x2   :  { %16 = vsyncpa [#allocation9], 0 }
   0x3   :  { %17 = vsyncpa [#allocation12], 0 }
   0x4   :  { %18 = vsyncpa [#allocation4], 0 }
   0x5   :  { %19 = vsyncpa [#allocation15], 0  ;;  %s2855_s27 = smov [#allocation5]   ;;  %s2667_s9 = scalar_lea.hbm %s3178_s2, 49152 }
   0x6   :  { %s37_s28 = sshll.u32 %s2855_s27, 4  ;;  %p2668_p0 = scmp.ne.s32.totalorder %s3178_s2, %s2667_s9  ;;  %s38_s28 = int_to_ptr.vmem [resolvable:$true] %s37_s28 }
   0x7   :  { %p2671_p1 = scmp.lt.u32.totalorder %s2667_s9, %s3178_s2 }
   0x9   :  { %p2673_p2 = pnand %p2671_p1, %p2668_p0 }
   0xb   :  { %2676 = shalt.err (!%p2673_p2)
}
   0xc   :  { %s2677_s14 = scalar_lea.vmem %s38_s28, 49152  ;;  %p2682_p4 = scmp.lt.s32.totalorder %s38_s28, %s38_s28 }
   0xd   :  { %p2678_p3 = scmp.ne.s32.totalorder %s38_s28, %s2677_s14  ;;  %p2683_p5 = scmp.lt.s32.totalorder %s2677_s14, %s2677_s14 }
   0xf   :  { %p2684_p6 = por %p2683_p5, %p2682_p4 }
  0x11   :  { %p2685_p7 = pnand %p2684_p6, %p2678_p3 }
  0x13   :  { %2688 = shalt.err (!%p2685_p7)
}
  0x14   :  { %s2856_s15 = smov 256   ;;  %s2857_s16 = smov 16  }
  0x15   :  { %43 = dma.hbm_to_vmem [thread:$0]  %s3178_s2, 49152, %s38_s28, [#allocation6], %s2856_s15, %s2856_s15, %s2857_s16  }
  0x16   :  { %s2858_s19 = smov [#allocation8]   ;;  %s2689_s23 = scalar_lea.hbm %s3180_s4, 8192 }
  0x17   :  { %s61_s20 = sshll.u32 %s2858_s19, 4  ;;  %p2690_p8 = scmp.ne.s32.totalorder %s3180_s4, %s2689_s23  ;;  %s62_s20 = int_to_ptr.vmem [resolvable:$true] %s61_s20 }
  0x18   :  { %p2693_p9 = scmp.lt.u32.totalorder %s2689_s23, %s3180_s4 }
  0x1a   :  { %p2695_p10 = pnand %p2693_p9, %p2690_p8 }
  0x1c   :  { %2698 = shalt.err (!%p2695_p10)
}
  0x1d   :  { %s2699_s29 = scalar_lea.vmem %s62_s20, 8192  ;;  %p2704_p12 = scmp.lt.s32.totalorder %s62_s20, %s62_s20 }
  0x1e   :  { %p2700_p11 = scmp.ne.s32.totalorder %s62_s20, %s2699_s29  ;;  %p2705_p13 = scmp.lt.s32.totalorder %s2699_s29, %s2699_s29 }
  0x20   :  { %p2706_p0 = por %p2705_p13, %p2704_p12 }
  0x22   :  { %p2707_p1 = pnand %p2706_p0, %p2700_p11 }
  0x24   :  { %2710 = shalt.err (!%p2707_p1)
}
  0x25   :  { %s2859_s2 = smov 128   ;;  %s2860_s28 = smov 8  }
  0x26   :  { %67 = dma.hbm_to_vmem [thread:$0]  %s3180_s4, 8192, %s62_s20, [#allocation9], %s2859_s2, %s2859_s2, %s2860_s28  }
  0x27   :  { %s2861_s10 = smov [#allocation2]   ;;  %s2862_s12 = smov [#allocation7]  }
  0x28   :  { %s28_s11 = sshll.u32 %s2861_s10, 4  ;;  %s49_s13 = sshll.u32 %s2862_s12, 4  ;;  %s29_s11 = int_to_ptr.vmem [resolvable:$true] %s28_s11  ;;  %s2942_s13 = int_to_ptr.vmem [resolvable:$true] %s49_s13 }
  0x29   :  { %s2711_s18 = scalar_lea.hbm %s3177_s1, 32 }
  0x2a   :  { %p2712_p2 = scmp.ne.s32.totalorder %s3177_s1, %s2711_s18  ;;  %p2715_p3 = scmp.lt.u32.totalorder %s2711_s18, %s3177_s1 }
  0x2c   :  { %p2717_p4 = pnand %p2715_p3, %p2712_p2 }
  0x2e   :  { %2720 = shalt.err (!%p2717_p4)
}
  0x2f   :  { %s2721_s4 = scalar_lea.vmem %s29_s11, 32  ;;  %p2726_p6 = scmp.lt.s32.totalorder %s29_s11, %s29_s11 }
  0x30   :  { %p2722_p5 = scmp.ne.s32.totalorder %s29_s11, %s2721_s4  ;;  %p2727_p7 = scmp.lt.s32.totalorder %s2721_s4, %s2721_s4 }
  0x32   :  { %p2728_p8 = por %p2727_p7, %p2726_p6 }
  0x34   :  { %p2729_p9 = pnand %p2728_p8, %p2722_p5 }
  0x36   :  { %2732 = shalt.err (!%p2729_p9)
}
  0x37   :  { %31 = dma.hbm_to_vmem [thread:$0]  %s3177_s1, 32, %s29_s11, [#allocation3]  }
  0x38   :  { %s2733_s27 = scalar_lea.hbm %s3179_s3, 16384 }
  0x39   :  { %p2734_p10 = scmp.ne.s32.totalorder %s3179_s3, %s2733_s27  ;;  %p2737_p11 = scmp.lt.u32.totalorder %s2733_s27, %s3179_s3 }
  0x3b   :  { %p2739_p12 = pnand %p2737_p11, %p2734_p10 }
  0x3d   :  { %2742 = shalt.err (!%p2739_p12)
}
  0x3e   :  { %s2743_s9 = scalar_lea.vmem %s2942_s13, 16384  ;;  %p2748_p0 = scmp.lt.s32.totalorder %s2942_s13, %s2942_s13 }
  0x3f   :  { %p2744_p13 = scmp.ne.s32.totalorder %s2942_s13, %s2743_s9  ;;  %p2749_p1 = scmp.lt.s32.totalorder %s2743_s9, %s2743_s9 }
  0x41   :  { %p2750_p2 = por %p2749_p1, %p2748_p0 }
  0x43   :  { %p2751_p3 = pnand %p2750_p2, %p2744_p13 }
  0x45   :  { %2754 = shalt.err (!%p2751_p3)
}
  0x46   :  { %s2863_s1 = smov 512   ;;  %s2864_s10 = smov 32  }
  0x47   :  { %55 = dma.hbm_to_vmem [thread:$0]  %s3179_s3, 16384, %s2942_s13, [#allocation6], %s2863_s1, %s2863_s1, %s2864_s10  }
  0x48   :  { %s2865_s14 = smov [#allocation10]   ;;  %s2866_s18 = smov [#allocation11]  }
  0x49   :  { %s73_s17 = sshll.u32 %s2865_s14, 4  ;;  %s86_s19 = sshll.u32 %s2866_s18, 4  ;;  %s74_s17 = int_to_ptr.vmem [resolvable:$true] %s73_s17  ;;  %s87_s19 = int_to_ptr.vmem [resolvable:$true] %s86_s19 }
  0x4a   :  { %s2755_s23 = scalar_lea.hbm %s3181_s5, 768 }
  0x4b   :  { %p2756_p4 = scmp.ne.s32.totalorder %s3181_s5, %s2755_s23  ;;  %p2759_p5 = scmp.lt.u32.totalorder %s2755_s23, %s3181_s5 }
  0x4d   :  { %p2761_p6 = pnand %p2759_p5, %p2756_p4 }
  0x4f   :  { %2764 = shalt.err (!%p2761_p6)
}
  0x50   :  { %s2765_s3 = scalar_lea.vmem %s74_s17, 768  ;;  %p2770_p8 = scmp.lt.s32.totalorder %s74_s17, %s74_s17 }
  0x51   :  { %p2766_p7 = scmp.ne.s32.totalorder %s74_s17, %s2765_s3  ;;  %p2771_p9 = scmp.lt.s32.totalorder %s2765_s3, %s2765_s3 }
  0x53   :  { %p2772_p10 = por %p2771_p9, %p2770_p8 }
  0x55   :  { %p2773_p11 = pnand %p2772_p10, %p2766_p7 }
  0x57   :  { %2776 = shalt.err (!%p2773_p11)
}
  0x58   :  { %79 = dma.hbm_to_vmem [thread:$0]  %s3181_s5, 768, %s74_s17, [#allocation9], %s2856_s15, %s2856_s15, %s2857_s16  }
  0x59   :  { %s2777_s2 = scalar_lea.hbm %s3182_s6, 16 }
  0x5a   :  { %p2778_p12 = scmp.ne.s32.totalorder %s3182_s6, %s2777_s2  ;;  %p2781_p13 = scmp.lt.u32.totalorder %s2777_s2, %s3182_s6 }
  0x5c   :  { %p2783_p0 = pnand %p2781_p13, %p2778_p12 }
  0x5e   :  { %2786 = shalt.err (!%p2783_p0)
}
  0x5f   :  { %s2787_s10 = scalar_lea.vmem %s87_s19, 16  ;;  %s2791_s11 = scalar_lea.vmem %s87_s19, 32 }
  0x60   :  { %p2788_p1 = scmp.ne.s32.totalorder %s87_s19, %s2787_s10  ;;  %p2792_p2 = scmp.lt.s32.totalorder %s87_s19, %s87_s19 }
  0x61   :  { %p2793_p3 = scmp.lt.s32.totalorder %s2791_s11, %s2787_s10 }
  0x63   :  { %p2794_p4 = por %p2793_p3, %p2792_p2 }
  0x65   :  { %p2795_p5 = pnand %p2794_p4, %p2788_p1 }
  0x67   :  { %2798 = shalt.err (!%p2795_p5)
}
  0x68   :  { %89 = dma.hbm_to_vmem [thread:$0]  %s3182_s6, 16, %s87_s19, [#allocation12]  }
  0x69   :  { %2843 = dma.done.wait [#allocation3], 32  }
  0x6a   :  { %2844 = vsyncadd [#allocation3], 4294967264 }
  0x6b   :  { %2845 = dma.done.wait [#allocation6], 65536  }
  0x6c   :  { %2846 = vsyncadd [#allocation6], 4294901760 }
  0x6d   :  { %2847 = dma.done.wait [#allocation9], 8960  }
  0x6e   :  { %2848 = vsyncadd [#allocation9], 4294958336 }
  0x6f   :  { %2849 = dma.done.wait [#allocation12], 16  }
  0x70   :  { %2850 = vsyncadd [#allocation12], 4294967280  ;;  %v2867_v0 = vmov 0   ;;  %v108_v1 = vld [vmem:[%s3176_s0] sm:$0xff]  ;;  %v116_v2 = vlaneseq  ;;  %v200_v18 = vld [vmem:[#allocation5 + $0x8] sm:$0xff]  ;;  %s2868_s0 = smov [#allocation14]  }
  0x71   :  { %2618 = vset.pattern.permute.xlu0 %v2867_v0  ;;  %v109_v6 = vld [vmem:[#allocation2] sm:$0x3]  ;;  %v128_v7 = vld [vmem:[#allocation10] ss:$8 sm:$0x3]  ;;  %v201_v22 = vld [vmem:[#allocation5 + $0x10] sm:$0xff] }
  0x72   :  { %112 = vperm.xlu0 %2618, %v108_v1   ;;  %v117_v3 = vshrl.u32 %v116_v2, 7  ;;  %v202_v19 = vld [vmem:[#allocation5 + $0x18] sm:$0xff]  ;;  %v199_v20 = vld [vmem:[#allocation5] sm:$0xff]  ;;  %v204_v23 = vld [vmem:[#allocation5 + $0x28] sm:$0xff]  ;;  %s1940_s6 = sshll.u32 %s2868_s0, 4  ;;  %s1941_s6 = int_to_ptr.vmem [resolvable:$true] %s1940_s6 }
  0x73   :  { %v2027_v21 = vpack.c.bf16 %v202_v19, %v200_v18  ;;  %v206_v24 = vld [vmem:[#allocation5 + $0x38] sm:$0xff]  ;;  %v2029_v25 = vpack.c.bf16 %v201_v22, %v199_v20  ;;  %v203_v27 = vld [vmem:[#allocation5 + $0x20] sm:$0xff]  ;;  %v205_v28 = vld [vmem:[#allocation5 + $0x30] sm:$0xff]  ;;  %s2799_s14 = scalar_lea.vmem %s1941_s6, 256  ;;  %p2804_p7 = scmp.lt.s32.totalorder %s1941_s6, %s1941_s6 }
  0x74   :  { %v3003_v4 = vsub.s32 0, %v117_v3  ;;  %v3005_v5 = vsub.s32 1, %v117_v3  ;;  %v2031_v26 = vpack.c.bf16 %v206_v24, %v204_v23  ;;  %v208_v29 = vld [vmem:[#allocation5 + $0x48] sm:$0xff]  ;;  %v210_v30 = vld [vmem:[#allocation5 + $0x58] sm:$0xff]  ;;  %v2033_v31 = vpack.c.bf16 %v205_v28, %v203_v27  ;;  %v207_v33 = vld [vmem:[#allocation5 + $0x40] sm:$0xff]  ;;  %p2800_p6 = scmp.ne.s32.totalorder %s1941_s6, %s2799_s14  ;;  %p2805_p8 = scmp.lt.s32.totalorder %s2799_s14, %s2799_s14 }
  0x75   :  { %2028 = vmatprep.subr.bf16.mxu0 %v2027_v21  ;;  %v2035_v32 = vpack.c.bf16 %v210_v30, %v208_v29  ;;  %v209_v34 = vld [vmem:[#allocation5 + $0x50] sm:$0xff]  ;;  %v212_v35 = vld [vmem:[#allocation5 + $0x68] sm:$0xff]  ;;  %v214_v36 = vld [vmem:[#allocation5 + $0x78] sm:$0xff] }
  0x76   :  { %v119_v8 = vrot.slane %v109_v6, %v3003_v4  ;;  %v123_v9 = vrot.slane %v109_v6, %v3005_v5  ;;  %v133_v10 = vrot.slane %v128_v7, %v3003_v4  ;;  %v137_v11 = vrot.slane %v128_v7, %v3005_v5  ;;  %2030 = vmatpush1.bf16.msra.mxu0 %v2029_v25  ;;  %v211_v39 = vld [vmem:[#allocation5 + $0x60] sm:$0xff]  ;;  %v213_v40 = vld [vmem:[#allocation5 + $0x70] sm:$0xff]  ;;  %v216_v41 = vld [vmem:[#allocation5 + $0x88] sm:$0xff]  ;;  %p2806_p9 = por %p2805_p8, %p2804_p7 }
  0x77   :  { %2032 = vmatprep.subr.bf16.mxu0 %v2031_v26  ;;  %v2037_v37 = vpack.c.bf16 %v209_v34, %v207_v33  ;;  %v2039_v38 = vpack.c.bf16 %v214_v36, %v212_v35  ;;  %v218_v42 = vld [vmem:[#allocation5 + $0x98] sm:$0xff]  ;;  %v2041_v43 = vpack.c.bf16 %v213_v40, %v211_v39  ;;  %v215_v45 = vld [vmem:[#allocation5 + $0x80] sm:$0xff]  ;;  %v217_v46 = vld [vmem:[#allocation5 + $0x90] sm:$0xff] }
  0x78   :  { %v2043_v44 = vpack.c.bf16 %v218_v42, %v216_v41  ;;  %v220_v47 = vld [vmem:[#allocation5 + $0xa8] sm:$0xff]  ;;  %v222_v48 = vld [vmem:[#allocation5 + $0xb8] sm:$0xff]  ;;  %v2045_v49 = vpack.c.bf16 %v217_v46, %v215_v45  ;;  %v219_v51 = vld [vmem:[#allocation5 + $0xa0] sm:$0xff]  ;;  %p2807_p10 = pnand %p2806_p9, %p2800_p6 }
  0x79   :  { %v2047_v50 = vpack.c.bf16 %v222_v48, %v220_v47  ;;  %v221_v52 = vld [vmem:[#allocation5 + $0xb0] sm:$0xff]  ;;  %v224_v53 = vld [vmem:[#allocation5 + $0xc8] sm:$0xff]  ;;  %v226_v54 = vld [vmem:[#allocation5 + $0xd8] sm:$0xff] }
  0x7a   :  { %2034 = vmatpush1.bf16.msra.mxu0 %v2033_v31  ;;  %v2049_v55 = vpack.c.bf16 %v221_v52, %v219_v51  ;;  %v2051_v56 = vpack.c.bf16 %v226_v54, %v224_v53  ;;  %v223_v0 = vld [vmem:[#allocation5 + $0xc0] sm:$0xff]  ;;  %v225_v1 = vld [vmem:[#allocation5 + $0xd0] sm:$0xff]  ;;  %v228_v3 = vld [vmem:[#allocation5 + $0xe8] sm:$0xff] }
  0x7b   :  { %2036 = vmatprep.subr.bf16.mxu0 %v2035_v32  ;;  %v2053_v2 = vpack.c.bf16 %v225_v1, %v223_v0  ;;  %v230_v6 = vld [vmem:[#allocation5 + $0xf8] sm:$0xff]  ;;  %v235_v20 = vld [vmem:[#allocation5 + $0x120] sm:$0xff]  ;;  %v237_v21 = vld [vmem:[#allocation5 + $0x130] sm:$0xff] }
  0x7c   :  { %v2055_v7 = vpack.c.bf16 %v230_v6, %v228_v3  ;;  %v240_v22 = vld [vmem:[#allocation5 + $0x148] sm:$0xff]  ;;  %v242_v23 = vld [vmem:[#allocation5 + $0x158] sm:$0xff]  ;;  %v2065_v24 = vpack.c.bf16 %v237_v21, %v235_v20  ;;  %v239_v26 = vld [vmem:[#allocation5 + $0x140] sm:$0xff] }
  0x7d   :  { %v2067_v25 = vpack.c.bf16 %v242_v23, %v240_v22  ;;  %v241_v27 = vld [vmem:[#allocation5 + $0x150] sm:$0xff]  ;;  %v244_v28 = vld [vmem:[#allocation5 + $0x168] sm:$0xff]  ;;  %v246_v29 = vld [vmem:[#allocation5 + $0x178] sm:$0xff] }
  0x7e   :  { %2038 = vmatpush1.bf16.msra.mxu0 %v2037_v37  ;;  %v2069_v30 = vpack.c.bf16 %v241_v27, %v239_v26  ;;  %v2071_v31 = vpack.c.bf16 %v246_v29, %v244_v28  ;;  %v243_v32 = vld [vmem:[#allocation5 + $0x160] sm:$0xff]  ;;  %v245_v33 = vld [vmem:[#allocation5 + $0x170] sm:$0xff]  ;;  %v248_v34 = vld [vmem:[#allocation5 + $0x188] sm:$0xff] }
  0x7f   :  { %2040 = vmatprep.subr.bf16.mxu0 %v2039_v38  ;;  %v250_v35 = vld [vmem:[#allocation5 + $0x198] sm:$0xff]  ;;  %v2073_v36 = vpack.c.bf16 %v245_v33, %v243_v32  ;;  %v247_v38 = vld [vmem:[#allocation5 + $0x180] sm:$0xff]  ;;  %v249_v39 = vld [vmem:[#allocation5 + $0x190] sm:$0xff] }
  0x80   :  { %v2075_v37 = vpack.c.bf16 %v250_v35, %v248_v34  ;;  %v252_v40 = vld [vmem:[#allocation5 + $0x1a8] sm:$0xff]  ;;  %v254_v41 = vld [vmem:[#allocation5 + $0x1b8] sm:$0xff]  ;;  %v2077_v42 = vpack.c.bf16 %v249_v39, %v247_v38  ;;  %v253_v45 = vld [vmem:[#allocation5 + $0x1b0] sm:$0xff] }
  0x81   :  { %v256_v46 = vld [vmem:[#allocation5 + $0x1c8] sm:$0xff]  ;;  %v258_v47 = vld [vmem:[#allocation5 + $0x1d8] sm:$0xff]  ;;  %v257_v51 = vld [vmem:[#allocation5 + $0x1d0] sm:$0xff] }
  0x82   :  { %2042 = vmatpush1.bf16.msra.mxu0 %v2041_v43  ;;  %v2079_v43 = vpack.c.bf16 %v254_v41, %v252_v40  ;;  %v260_v52 = vld [vmem:[#allocation5 + $0x1e8] sm:$0xff]  ;;  %v262_v53 = vld [vmem:[#allocation5 + $0x1f8] sm:$0xff]  ;;  %v404_v33 = vld [vmem:[#allocation5 + $0x200] sm:$0xff] }
  0x83   :  { %2044 = vmatprep.subr.bf16.mxu0 %v2043_v44  ;;  %v251_v44 = vld [vmem:[#allocation5 + $0x1a0] sm:$0xff]  ;;  %v407_v32 = vld [vmem:[#allocation5 + $0x218] sm:$0xff]  ;;  %v406_v35 = vld [vmem:[#allocation5 + $0x210] sm:$0xff] }
  0x84   :  { %v2081_v48 = vpack.c.bf16 %v253_v45, %v251_v44  ;;  %v143_v0 = vld [vmem:[#allocation10 + $0x1] ss:$8 sm:$0x3]  ;;  %v145_v1 = vld [vmem:[#allocation10 + $0x2] ss:$8 sm:$0x3]  ;;  %v2093_v38 = vpack.c.bf16 %v406_v35, %v404_v33 }
  0x85   :  { %v171_v3 = vrot.slane %v143_v0, %v3005_v5  ;;  %v408_v40 = vld [vmem:[#allocation5 + $0x220] sm:$0xff]  ;;  %v410_v41 = vld [vmem:[#allocation5 + $0x230] sm:$0xff]  ;;  %v445_v35 = vld [vmem:[#allocation5 + $0x348] sm:$0xff] }
  0x86   :  { %2046 = vmatpush1.bf16.msra.mxu0 %v2045_v49  ;;  %v2083_v49 = vpack.c.bf16 %v258_v47, %v256_v46  ;;  %v2097_v44 = vpack.c.bf16 %v410_v41, %v408_v40  ;;  %v412_v46 = vld [vmem:[#allocation5 + $0x240] sm:$0xff]  ;;  %v414_v47 = vld [vmem:[#allocation5 + $0x250] sm:$0xff]  ;;  %v449_v41 = vld [vmem:[#allocation5 + $0x368] sm:$0xff] }
  0x87   :  { %2048 = vmatprep.subr.bf16.mxu0 %v2047_v50  ;;  %v255_v50 = vld [vmem:[#allocation5 + $0x1c0] sm:$0xff]  ;;  %v446_v40 = vld [vmem:[#allocation5 + $0x350] sm:$0xff] }
  0x88   :  { %v2085_v54 = vpack.c.bf16 %v257_v51, %v255_v50  ;;  %v2101_v50 = vpack.c.bf16 %v414_v47, %v412_v46  ;;  %v440_v33 = vld [vmem:[#allocation5 + $0x320] sm:$0xff]  ;;  %v450_v46 = vld [vmem:[#allocation5 + $0x370] sm:$0xff]  ;;  %v453_v47 = vld [vmem:[#allocation5 + $0x388] sm:$0xff] }
  0x8a   :  { %2050 = vmatpush1.bf16.msra.mxu0 %v2049_v55  ;;  %v2087_v55 = vpack.c.bf16 %v262_v53, %v260_v52  ;;  %v416_v52 = vld [vmem:[#allocation5 + $0x260] sm:$0xff]  ;;  %v418_v53 = vld [vmem:[#allocation5 + $0x270] sm:$0xff] }
  0x8b   :  { %2052 = vmatprep.subr.bf16.mxu0 %v2051_v56  ;;  %v259_v56 = vld [vmem:[#allocation5 + $0x1e0] sm:$0xff] }
  0x8e   :  { %2054 = vmatpush1.bf16.msra.mxu0 %v2053_v2  ;;  %v167_v2 = vrot.slane %v143_v0, %v3003_v4 }
  0x8f   :  { %2056 = vmatprep.subr.bf16.mxu0 %v2055_v7 }
  0xf1   :  { %v113_v12 = vpop.permute.xlu0 %112 }
  0xf2   :  { %v126_v13 = vmul.f32 %v119_v8, %v113_v12  ;;  %v127_v14 = vmul.f32 %v123_v9, %v113_v12  ;;  %v227_v8 = vld [vmem:[#allocation5 + $0xe0] sm:$0xff]  ;;  %v229_v9 = vld [vmem:[#allocation5 + $0xf0] sm:$0xff]  ;;  %v234_v12 = vld [vmem:[#allocation5 + $0x118] sm:$0xff] }
  0xf4   :  { %v140_v15 = vadd.f32 %v133_v10, %v126_v13  ;;  %v141_v16 = vadd.f32 %v137_v11, %v127_v14  ;;  %v2057_v10 = vpack.c.bf16 %v229_v9, %v227_v8  ;;  %v232_v11 = vld [vmem:[#allocation5 + $0x108] sm:$0xff]  ;;  %v231_v13 = vld [vmem:[#allocation5 + $0x100] sm:$0xff]  ;;  %v180_v8 = vrot.slane %v145_v1, %v3003_v4 }
  0xf5   :  { %v2059_v14 = vpack.c.bf16 %v234_v12, %v232_v11  ;;  %v184_v9 = vrot.slane %v145_v1, %v3005_v5 }
  0xf6   :  { %v146_v17 = vadd.f32 %v141_v16, %v140_v15  ;;  %2058 = vmatpush1.bf16.msra.mxu0 %v2057_v10 }
  0xf7   :  { %2060 = vmatprep.subr.bf16.mxu0 %v2059_v14 }
  0xf8   :  { %147 = vadd.xlane.f32.xlu0 %v146_v17  ;;  %v238_v17 = vld [vmem:[#allocation5 + $0x138] sm:$0xff] }
 0x185   :  { %v148_v57 = vpop.xlane.xlu0 %147 }
 0x186   :  { %v150_v58 = vmul.f32 0.00390625, %v148_v57  ;;  %v261_v57 = vld [vmem:[#allocation5 + $0x1f0] sm:$0xff] }
 0x188   :  { %v3011_v59 = vsub.f32 %v140_v15, %v150_v58  ;;  %v3013_v60 = vsub.f32 %v141_v16, %v150_v58  ;;  %v233_v15 = vld [vmem:[#allocation5 + $0x110] sm:$0xff]  ;;  %v236_v16 = vld [vmem:[#allocation5 + $0x128] sm:$0xff]  ;;  %v2089_v58 = vpack.c.bf16 %v261_v57, %v259_v56  ;;  %v2105_v56 = vpack.c.bf16 %v418_v53, %v416_v52 }
 0x189   :  { %v2061_v18 = vpack.c.bf16 %v233_v15, %v231_v13  ;;  %v2063_v19 = vpack.c.bf16 %v238_v17, %v236_v16  ;;  %v454_v52 = vld [vmem:[#allocation5 + $0x390] sm:$0xff]  ;;  %v457_v53 = vld [vmem:[#allocation5 + $0x3a8] sm:$0xff] }
 0x18a   :  { %v153_v61 = vmul.f32 %v3011_v59, %v3011_v59  ;;  %v154_v62 = vmul.f32 %v3013_v60, %v3013_v60 }
 0x18b   :  { %2062 = vmatpush1.bf16.msra.mxu0 %v2061_v18 }
 0x18c   :  { %v155_v63 = vadd.f32 %v154_v62, %v153_v61  ;;  %2064 = vmatprep.subr.bf16.mxu0 %v2063_v19 }
 0x18e   :  { %156 = vadd.xlane.f32.xlu1 %v155_v63 }
 0x18f   :  { %2066 = vmatpush1.bf16.msra.mxu0 %v2065_v24  ;;  %v264_v24 = vld [vmem:[#allocation10 + $0x3] ss:$8 sm:$0x3] }
 0x190   :  { %2068 = vmatprep.subr.bf16.mxu0 %v2067_v25  ;;  %v273_v25 = vrot.slane %v264_v24, %v3005_v5 }
 0x193   :  { %2070 = vmatpush1.bf16.msra.mxu0 %v2069_v30 }
 0x194   :  { %2072 = vmatprep.subr.bf16.mxu0 %v2071_v31  ;;  %v405_v31 = vld [vmem:[#allocation5 + $0x208] sm:$0xff] }
 0x195   :  { %v2091_v34 = vpack.c.bf16 %v407_v32, %v405_v31 }
 0x197   :  { %2074 = vmatpush1.bf16.msra.mxu0 %v2073_v36  ;;  %v409_v36 = vld [vmem:[#allocation5 + $0x228] sm:$0xff]  ;;  %2092 = vmatprep.subr.bf16.mxu1 %v2091_v34  ;;  %v442_v34 = vld [vmem:[#allocation5 + $0x330] sm:$0xff] }
 0x198   :  { %2076 = vmatprep.subr.bf16.mxu0 %v2075_v37  ;;  %v411_v37 = vld [vmem:[#allocation5 + $0x238] sm:$0xff]  ;;  %2094 = vmatpush1.bf16.msra.mxu1 %v2093_v38 }
 0x199   :  { %v2095_v39 = vpack.c.bf16 %v411_v37, %v409_v36  ;;  %v447_v36 = vld [vmem:[#allocation5 + $0x358] sm:$0xff]  ;;  %v2129_v37 = vpack.c.bf16 %v442_v34, %v440_v33 }
 0x19a   :  { %v2131_v38 = vpack.c.bf16 %v447_v36, %v445_v35 }
 0x19b   :  { %2078 = vmatpush1.bf16.msra.mxu0 %v2077_v42  ;;  %v413_v42 = vld [vmem:[#allocation5 + $0x248] sm:$0xff]  ;;  %2096 = vmatprep.subr.bf16.mxu1 %v2095_v39  ;;  %v444_v39 = vld [vmem:[#allocation5 + $0x340] sm:$0xff] }
 0x19c   :  { %2080 = vmatprep.subr.bf16.mxu0 %v2079_v43  ;;  %v415_v43 = vld [vmem:[#allocation5 + $0x258] sm:$0xff]  ;;  %2098 = vmatpush1.bf16.msra.mxu1 %v2097_v44 }
 0x19d   :  { %v2099_v45 = vpack.c.bf16 %v415_v43, %v413_v42  ;;  %v451_v42 = vld [vmem:[#allocation5 + $0x378] sm:$0xff]  ;;  %v2133_v43 = vpack.c.bf16 %v446_v40, %v444_v39 }
 0x19e   :  { %v2135_v44 = vpack.c.bf16 %v451_v42, %v449_v41 }
 0x19f   :  { %2082 = vmatpush1.bf16.msra.mxu0 %v2081_v48  ;;  %v417_v48 = vld [vmem:[#allocation5 + $0x268] sm:$0xff]  ;;  %2100 = vmatprep.subr.bf16.mxu1 %v2099_v45  ;;  %v448_v45 = vld [vmem:[#allocation5 + $0x360] sm:$0xff] }
 0x1a0   :  { %2084 = vmatprep.subr.bf16.mxu0 %v2083_v49  ;;  %v419_v49 = vld [vmem:[#allocation5 + $0x278] sm:$0xff]  ;;  %2102 = vmatpush1.bf16.msra.mxu1 %v2101_v50 }
 0x1a1   :  { %v2103_v51 = vpack.c.bf16 %v419_v49, %v417_v48  ;;  %v455_v48 = vld [vmem:[#allocation5 + $0x398] sm:$0xff]  ;;  %v2137_v49 = vpack.c.bf16 %v450_v46, %v448_v45  ;;  %v609_v46 = vld [vmem:[#allocation5 + $0x400] sm:$0xff] }
 0x1a2   :  { %v2139_v50 = vpack.c.bf16 %v455_v48, %v453_v47  ;;  %v612_v45 = vld [vmem:[#allocation5 + $0x418] sm:$0xff]  ;;  %v611_v48 = vld [vmem:[#allocation5 + $0x410] sm:$0xff] }
 0x1a3   :  { %2086 = vmatpush1.bf16.msra.mxu0 %v2085_v54  ;;  %v421_v54 = vld [vmem:[#allocation5 + $0x288] sm:$0xff]  ;;  %2104 = vmatprep.subr.bf16.mxu1 %v2103_v51  ;;  %v452_v51 = vld [vmem:[#allocation5 + $0x380] sm:$0xff] }
 0x1a4   :  { %2088 = vmatprep.subr.bf16.mxu0 %v2087_v55  ;;  %v423_v55 = vld [vmem:[#allocation5 + $0x298] sm:$0xff]  ;;  %2106 = vmatpush1.bf16.msra.mxu1 %v2105_v56 }
 0x1a5   :  { %v2107_v57 = vpack.c.bf16 %v423_v55, %v421_v54  ;;  %v459_v54 = vld [vmem:[#allocation5 + $0x3b8] sm:$0xff]  ;;  %v2141_v55 = vpack.c.bf16 %v454_v52, %v452_v51  ;;  %v2157_v51 = vpack.c.bf16 %v611_v48, %v609_v46  ;;  %v645_v46 = vld [vmem:[#allocation5 + $0x520] sm:$0xff] }
 0x1a6   :  { %v2143_v56 = vpack.c.bf16 %v459_v54, %v457_v53  ;;  %v613_v53 = vld [vmem:[#allocation5 + $0x420] sm:$0xff]  ;;  %v615_v54 = vld [vmem:[#allocation5 + $0x430] sm:$0xff] }
 0x1a7   :  { %2090 = vmatpush1.bf16.msra.mxu0 %v2089_v58  ;;  %v420_v58 = vld [vmem:[#allocation5 + $0x280] sm:$0xff]  ;;  %2108 = vmatprep.subr.bf16.mxu1 %v2107_v57 }
 0x1a8   :  { %v456_v57 = vld [vmem:[#allocation5 + $0x3a0] sm:$0xff] }
 0x21b   :  { %v157_v61 = vpop.xlane.xlu1 %156 }
 0x21c   :  { %v158_v62 = vmul.f32 0.00390625, %v157_v61  ;;  %v422_v61 = vld [vmem:[#allocation5 + $0x290] sm:$0xff] }
 0x21d   :  { %v2109_v0 = vpack.c.bf16 %v422_v61, %v420_v58  ;;  %v458_v58 = vld [vmem:[#allocation5 + $0x3b0] sm:$0xff]  ;;  %v461_v61 = vld [vmem:[#allocation5 + $0x3c8] sm:$0xff] }
 0x21e   :  { %v159_v63 = vadd.f32 1e-05, %v158_v62  ;;  %v425_v62 = vld [vmem:[#allocation5 + $0x2a8] sm:$0xff] }
 0x21f   :  { %2110 = vmatpush1.bf16.msra.mxu1 %v2109_v0 }
 0x220   :  { %2619 = vrsqrt.f32 %v159_v63  ;;  %v427_v63 = vld [vmem:[#allocation5 + $0x2b8] sm:$0xff] }
 0x221   :  { %v2111_v1 = vpack.c.bf16 %v427_v63, %v425_v62  ;;  %v463_v62 = vld [vmem:[#allocation5 + $0x3d8] sm:$0xff]  ;;  %v2145_v63 = vpack.c.bf16 %v458_v58, %v456_v57  ;;  %v2161_v57 = vpack.c.bf16 %v615_v54, %v613_v53  ;;  %v651_v53 = vld [vmem:[#allocation5 + $0x550] sm:$0xff] }
 0x222   :  { %v2147_v0 = vpack.c.bf16 %v463_v62, %v461_v61  ;;  %v617_v61 = vld [vmem:[#allocation5 + $0x440] sm:$0xff]  ;;  %v619_v62 = vld [vmem:[#allocation5 + $0x450] sm:$0xff] }
 0x223   :  { %2112 = vmatprep.subr.bf16.mxu1 %v2111_v1  ;;  %v460_v1 = vld [vmem:[#allocation5 + $0x3c0] sm:$0xff] }
 0x22a   :  { %v2620_v6 = vpop.eup %2619 }
 0x22b   :  { %v162_v7 = vmul.f32 %v2620_v6, %v3013_v60  ;;  %v161_v10 = vmul.f32 %v2620_v6, %v3011_v59  ;;  %v269_v59 = vrot.slane %v264_v24, %v3003_v4  ;;  %v429_v6 = vld [vmem:[#allocation5 + $0x2c8] sm:$0xff] }
 0x22d   :  { %v175_v11 = vmul.f32 %v171_v3, %v162_v7  ;;  %v174_v12 = vmul.f32 %v167_v2, %v161_v10  ;;  %v424_v2 = vld [vmem:[#allocation5 + $0x2a0] sm:$0xff]  ;;  %v426_v3 = vld [vmem:[#allocation5 + $0x2b0] sm:$0xff]  ;;  %v431_v7 = vld [vmem:[#allocation5 + $0x2d8] sm:$0xff] }
 0x22f   :  { %v188_v13 = vadd.f32 %v184_v9, %v175_v11  ;;  %v187_v14 = vadd.f32 %v180_v8, %v174_v12  ;;  %v2113_v8 = vpack.c.bf16 %v426_v3, %v424_v2  ;;  %v2115_v9 = vpack.c.bf16 %v431_v7, %v429_v6  ;;  %v462_v2 = vld [vmem:[#allocation5 + $0x3d0] sm:$0xff]  ;;  %v465_v3 = vld [vmem:[#allocation5 + $0x3e8] sm:$0xff]  ;;  %v467_v6 = vld [vmem:[#allocation5 + $0x3f8] sm:$0xff] }
 0x230   :  { %v2149_v7 = vpack.c.bf16 %v462_v2, %v460_v1  ;;  %v2165_v1 = vpack.c.bf16 %v619_v62, %v617_v61  ;;  %v655_v61 = vld [vmem:[#allocation5 + $0x570] sm:$0xff]  ;;  %v658_v62 = vld [vmem:[#allocation5 + $0x588] sm:$0xff] }
 0x231   :  { %v192_v15 = vmul.f32 0.70710677, %v188_v13  ;;  %v191_v16 = vmul.f32 0.70710677, %v187_v14  ;;  %v190_v19 = vmul.f32 0.5, %v188_v13  ;;  %v189_v21 = vmul.f32 0.5, %v187_v14  ;;  %2114 = vmatpush1.bf16.msra.mxu1 %v2113_v8 }
 0x232   :  { %2116 = vmatprep.subr.bf16.mxu1 %v2115_v9  ;;  %v2151_v8 = vpack.c.bf16 %v467_v6, %v465_v3  ;;  %v464_v9 = vld [vmem:[#allocation5 + $0x3e0] sm:$0xff]  ;;  %v623_v6 = vld [vmem:[#allocation5 + $0x470] sm:$0xff] }
 0x233   :  { %2621 = verf.f32 %v192_v15  ;;  %v621_v3 = vld [vmem:[#allocation5 + $0x460] sm:$0xff] }
 0x234   :  { %2623 = verf.f32 %v191_v16 }
 0x23d   :  { %v2622_v17 = vpop.eup %2621 }
 0x23e   :  { %v2624_v18 = vpop.eup %2623  ;;  %v196_v20 = vadd.f32 1.0, %v2622_v17  ;;  %v428_v17 = vld [vmem:[#allocation5 + $0x2c0] sm:$0xff] }
 0x23f   :  { %v195_v60 = vadd.f32 1.0, %v2624_v18  ;;  %v430_v18 = vld [vmem:[#allocation5 + $0x2d0] sm:$0xff] }
 0x240   :  { %v198_v22 = vmul.f32 %v196_v20, %v190_v19  ;;  %v2117_v19 = vpack.c.bf16 %v430_v18, %v428_v17  ;;  %v433_v20 = vld [vmem:[#allocation5 + $0x2e8] sm:$0xff] }
 0x241   :  { %v197_v23 = vmul.f32 %v195_v60, %v189_v21  ;;  %v435_v21 = vld [vmem:[#allocation5 + $0x2f8] sm:$0xff]  ;;  %v348_v17 = vld [vmem:[#allocation10 + $0x4] ss:$8 sm:$0x3] }
 0x242   :  { %340 = vmatprep.mubr.f32.mxu0 %v198_v22  ;;  %2118 = vmatpush1.bf16.msra.mxu1 %v2117_v19  ;;  %v2119_v60 = vpack.c.bf16 %v435_v21, %v433_v20  ;;  %v432_v22 = vld [vmem:[#allocation5 + $0x2e0] sm:$0xff]  ;;  %v371_v19 = vrot.slane %v348_v17, %v3003_v4  ;;  %v375_v20 = vrot.slane %v348_v17, %v3005_v5 }
 0x243   :  { %341 = vmatmul.mubr.f32.vlgmr.msra.gmra.mrb[0].mxu0 %v197_v23  ;;  %v434_v23 = vld [vmem:[#allocation5 + $0x2f0] sm:$0xff]  ;;  %v350_v18 = vld [vmem:[#allocation10 + $0x5] ss:$8 sm:$0x3] }
 0x244   :  { %v2121_v24 = vpack.c.bf16 %v434_v23, %v432_v22  ;;  %2120 = vmatprep.subr.bf16.mxu1 %v2119_v60  ;;  %v384_v22 = vrot.slane %v350_v18, %v3003_v4  ;;  %v388_v23 = vrot.slane %v350_v18, %v3005_v5 }
 0x246   :  { %2122 = vmatpush1.bf16.msra.mxu1 %v2121_v24 }
 0x316   :  { %v342_v26 = vpop.f32.mrb[0].mxu0 }
 0x317   :  { %v343_v27 = vadd.f32 %v342_v26, %v269_v59  ;;  %v344_v28 = vpop.f32.mrb[1].mxu0  ;;  %v437_v59 = vld [vmem:[#allocation5 + $0x308] sm:$0xff]  ;;  %v436_v26 = vld [vmem:[#allocation5 + $0x300] sm:$0xff] }
 0x318   :  { %v345_v29 = vadd.f32 %v344_v28, %v273_v25  ;;  %v439_v25 = vld [vmem:[#allocation5 + $0x318] sm:$0xff]  ;;  %v438_v28 = vld [vmem:[#allocation5 + $0x310] sm:$0xff] }
 0x319   :  { %v2125_v31 = vpack.c.bf16 %v438_v28, %v436_v26 }
 0x31a   :  { %v351_v30 = vadd.f32 %v345_v29, %v343_v27 }
 0x31c   :  { %352 = vadd.xlane.f32.xlu1 %v351_v30  ;;  %v443_v30 = vld [vmem:[#allocation5 + $0x338] sm:$0xff] }
 0x3a9   :  { %v353_v10 = vpop.xlane.xlu1 %352 }
 0x3aa   :  { %v354_v11 = vmul.f32 0.00390625, %v353_v10  ;;  %v466_v10 = vld [vmem:[#allocation5 + $0x3f0] sm:$0xff] }
 0x3ac   :  { %v3027_v12 = vsub.f32 %v343_v27, %v354_v11  ;;  %v3029_v13 = vsub.f32 %v345_v29, %v354_v11  ;;  %v2123_v27 = vpack.c.bf16 %v439_v25, %v437_v59  ;;  %v441_v29 = vld [vmem:[#allocation5 + $0x328] sm:$0xff]  ;;  %v2153_v11 = vpack.c.bf16 %v466_v10, %v464_v9 }
 0x3ad   :  { %v2127_v32 = vpack.c.bf16 %v443_v30, %v441_v29  ;;  %v2169_v9 = vpack.c.bf16 %v623_v6, %v621_v3  ;;  %v659_v3 = vld [vmem:[#allocation5 + $0x590] sm:$0xff]  ;;  %v662_v6 = vld [vmem:[#allocation5 + $0x5a8] sm:$0xff] }
 0x3ae   :  { %v357_v14 = vmul.f32 %v3027_v12, %v3027_v12  ;;  %v358_v15 = vmul.f32 %v3029_v13, %v3029_v13  ;;  %2124 = vmatprep.subr.bf16.mxu1 %v2123_v27 }
 0x3af   :  { %2126 = vmatpush1.bf16.msra.mxu1 %v2125_v31 }
 0x3b0   :  { %v359_v16 = vadd.f32 %v358_v15, %v357_v14  ;;  %2128 = vmatprep.subr.bf16.mxu1 %v2127_v32 }
 0x3b2   :  { %360 = vadd.xlane.f32.xlu1 %v359_v16 }
 0x3b3   :  { %2130 = vmatpush1.bf16.msra.mxu1 %v2129_v37  ;;  %v469_v37 = vld [vmem:[#allocation10 + $0x6] ss:$8 sm:$0x3] }
 0x3b4   :  { %2132 = vmatprep.subr.bf16.mxu1 %v2131_v38  ;;  %v478_v38 = vrot.slane %v469_v37, %v3005_v5 }
 0x3b7   :  { %2134 = vmatpush1.bf16.msra.mxu1 %v2133_v43 }
 0x3b8   :  { %2136 = vmatprep.subr.bf16.mxu1 %v2135_v44  ;;  %v610_v44 = vld [vmem:[#allocation5 + $0x408] sm:$0xff] }
 0x3b9   :  { %v2155_v47 = vpack.c.bf16 %v612_v45, %v610_v44  ;;  %v648_v44 = vld [vmem:[#allocation5 + $0x538] sm:$0xff] }
 0x3bb   :  { %2138 = vmatpush1.bf16.msra.mxu1 %v2137_v49  ;;  %v614_v49 = vld [vmem:[#allocation5 + $0x428] sm:$0xff]  ;;  %2156 = vmatprep.subr.bf16.mxu0 %v2155_v47  ;;  %v647_v47 = vld [vmem:[#allocation5 + $0x530] sm:$0xff] }
 0x3bc   :  { %2140 = vmatprep.subr.bf16.mxu1 %v2139_v50  ;;  %v616_v50 = vld [vmem:[#allocation5 + $0x438] sm:$0xff]  ;;  %2158 = vmatpush1.bf16.msra.mxu0 %v2157_v51  ;;  %v2193_v48 = vpack.c.bf16 %v647_v47, %v645_v46 }
 0x3bd   :  { %v2159_v52 = vpack.c.bf16 %v616_v50, %v614_v49  ;;  %v650_v49 = vld [vmem:[#allocation5 + $0x548] sm:$0xff]  ;;  %v652_v50 = vld [vmem:[#allocation5 + $0x558] sm:$0xff] }
 0x3be   :  { %v2195_v51 = vpack.c.bf16 %v652_v50, %v650_v49  ;;  %v776_v49 = vld [vmem:[#allocation7 + $0x8] sm:$0xff] }
 0x3bf   :  { %2142 = vmatpush1.bf16.msra.mxu1 %v2141_v55  ;;  %v618_v55 = vld [vmem:[#allocation5 + $0x448] sm:$0xff]  ;;  %2160 = vmatprep.subr.bf16.mxu0 %v2159_v52  ;;  %v649_v52 = vld [vmem:[#allocation5 + $0x540] sm:$0xff] }
 0x3c0   :  { %2144 = vmatprep.subr.bf16.mxu1 %v2143_v56  ;;  %v620_v56 = vld [vmem:[#allocation5 + $0x458] sm:$0xff]  ;;  %2162 = vmatpush1.bf16.msra.mxu0 %v2161_v57  ;;  %v2197_v54 = vpack.c.bf16 %v651_v53, %v649_v52  ;;  %v653_v57 = vld [vmem:[#allocation5 + $0x560] sm:$0xff]  ;;  %v780_v50 = vld [vmem:[#allocation7 + $0x28] sm:$0xff] }
 0x3c1   :  { %v2163_v58 = vpack.c.bf16 %v620_v56, %v618_v55  ;;  %v654_v55 = vld [vmem:[#allocation5 + $0x568] sm:$0xff]  ;;  %v656_v56 = vld [vmem:[#allocation5 + $0x578] sm:$0xff]  ;;  %v2219_v52 = vpack.c.bf16 %v780_v50, %v776_v49 }
 0x3c2   :  { %v782_v53 = vld [vmem:[#allocation7 + $0x38] sm:$0xff] }
 0x3c3   :  { %2146 = vmatpush1.bf16.msra.mxu1 %v2145_v63  ;;  %v622_v63 = vld [vmem:[#allocation5 + $0x468] sm:$0xff]  ;;  %2164 = vmatprep.subr.bf16.mxu0 %v2163_v58  ;;  %v2199_v58 = vpack.c.bf16 %v656_v56, %v654_v55  ;;  %v779_v55 = vld [vmem:[#allocation7 + $0x20] sm:$0xff] }
 0x3c4   :  { %2148 = vmatprep.subr.bf16.mxu1 %v2147_v0  ;;  %v624_v0 = vld [vmem:[#allocation5 + $0x478] sm:$0xff]  ;;  %2166 = vmatpush1.bf16.msra.mxu0 %v2165_v1 }
 0x3c5   :  { %v2167_v2 = vpack.c.bf16 %v624_v0, %v622_v63  ;;  %v660_v63 = vld [vmem:[#allocation5 + $0x598] sm:$0xff]  ;;  %v2201_v0 = vpack.c.bf16 %v655_v61, %v653_v57  ;;  %v781_v61 = vld [vmem:[#allocation7 + $0x30] sm:$0xff] }
 0x3c6   :  { %v2203_v1 = vpack.c.bf16 %v660_v63, %v658_v62  ;;  %v784_v62 = vld [vmem:[#allocation7 + $0x48] sm:$0xff] }
 0x3c7   :  { %2150 = vmatpush1.bf16.msra.mxu1 %v2149_v7  ;;  %v626_v7 = vld [vmem:[#allocation5 + $0x488] sm:$0xff]  ;;  %2168 = vmatprep.subr.bf16.mxu0 %v2167_v2  ;;  %v657_v2 = vld [vmem:[#allocation5 + $0x580] sm:$0xff] }
 0x3c8   :  { %2152 = vmatprep.subr.bf16.mxu1 %v2151_v8  ;;  %v628_v8 = vld [vmem:[#allocation5 + $0x498] sm:$0xff]  ;;  %2170 = vmatpush1.bf16.msra.mxu0 %v2169_v9 }
 0x3c9   :  { %v2171_v10 = vpack.c.bf16 %v628_v8, %v626_v7  ;;  %v664_v7 = vld [vmem:[#allocation5 + $0x5b8] sm:$0xff]  ;;  %v2205_v8 = vpack.c.bf16 %v659_v3, %v657_v2 }
 0x3ca   :  { %v2207_v9 = vpack.c.bf16 %v664_v7, %v662_v6  ;;  %v790_v2 = vld [vmem:[#allocation7 + $0x78] sm:$0xff]  ;;  %v783_v7 = vld [vmem:[#allocation7 + $0x40] sm:$0xff] }
 0x3cb   :  { %2154 = vmatpush1.bf16.msra.mxu1 %v2153_v11  ;;  %v625_v11 = vld [vmem:[#allocation5 + $0x480] sm:$0xff]  ;;  %2172 = vmatprep.subr.bf16.mxu0 %v2171_v10 }
 0x3cc   :  { %v661_v10 = vld [vmem:[#allocation5 + $0x5a0] sm:$0xff]  ;;  %2220 = vmatprep.subr.bf16.mxu1 %v2219_v52 }
 0x3cd   :  { %v815_v52 = vld [vmem:[#allocation7 + $0x140] sm:$0xff] }
 0x43f   :  { %v361_v14 = vpop.xlane.xlu1 %360 }
 0x440   :  { %v362_v15 = vmul.f32 0.00390625, %v361_v14  ;;  %v627_v14 = vld [vmem:[#allocation5 + $0x490] sm:$0xff] }
 0x441   :  { %v2173_v17 = vpack.c.bf16 %v627_v14, %v625_v11  ;;  %v663_v11 = vld [vmem:[#allocation5 + $0x5b0] sm:$0xff]  ;;  %v666_v14 = vld [vmem:[#allocation5 + $0x5c8] sm:$0xff] }
 0x442   :  { %v363_v16 = vadd.f32 1e-05, %v362_v15  ;;  %v630_v15 = vld [vmem:[#allocation5 + $0x4a8] sm:$0xff] }
 0x443   :  { %2174 = vmatpush1.bf16.msra.mxu0 %v2173_v17 }
 0x444   :  { %2625 = vrsqrt.f32 %v363_v16  ;;  %v632_v16 = vld [vmem:[#allocation5 + $0x4b8] sm:$0xff] }
 0x445   :  { %v2175_v18 = vpack.c.bf16 %v632_v16, %v630_v15  ;;  %v668_v15 = vld [vmem:[#allocation5 + $0x5d8] sm:$0xff]  ;;  %v2209_v16 = vpack.c.bf16 %v663_v11, %v661_v10  ;;  %v789_v11 = vld [vmem:[#allocation7 + $0x70] sm:$0xff] }
 0x446   :  { %v2211_v17 = vpack.c.bf16 %v668_v15, %v666_v14  ;;  %v792_v14 = vld [vmem:[#allocation7 + $0x88] sm:$0xff] }
 0x447   :  { %2176 = vmatprep.subr.bf16.mxu0 %v2175_v18  ;;  %v665_v18 = vld [vmem:[#allocation5 + $0x5c0] sm:$0xff]  ;;  %v796_v15 = vld [vmem:[#allocation7 + $0xa8] sm:$0xff] }
 0x44e   :  { %v2626_v21 = vpop.eup %2625 }
 0x44f   :  { %v366_v60 = vmul.f32 %v2626_v21, %v3029_v13  ;;  %v365_v24 = vmul.f32 %v2626_v21, %v3027_v12  ;;  %v474_v12 = vrot.slane %v469_v37, %v3003_v4  ;;  %v634_v21 = vld [vmem:[#allocation5 + $0x4c8] sm:$0xff] }
 0x451   :  { %v379_v59 = vmul.f32 %v375_v20, %v366_v60  ;;  %v378_v25 = vmul.f32 %v371_v19, %v365_v24  ;;  %v629_v19 = vld [vmem:[#allocation5 + $0x4a0] sm:$0xff]  ;;  %v631_v20 = vld [vmem:[#allocation5 + $0x4b0] sm:$0xff]  ;;  %v636_v60 = vld [vmem:[#allocation5 + $0x4d8] sm:$0xff] }
 0x453   :  { %v392_v26 = vadd.f32 %v388_v23, %v379_v59  ;;  %v391_v27 = vadd.f32 %v384_v22, %v378_v25  ;;  %v2177_v22 = vpack.c.bf16 %v631_v20, %v629_v19  ;;  %v2179_v23 = vpack.c.bf16 %v636_v60, %v634_v21  ;;  %v667_v19 = vld [vmem:[#allocation5 + $0x5d0] sm:$0xff]  ;;  %v670_v20 = vld [vmem:[#allocation5 + $0x5e8] sm:$0xff]  ;;  %v672_v21 = vld [vmem:[#allocation5 + $0x5f8] sm:$0xff] }
 0x454   :  { %v2213_v60 = vpack.c.bf16 %v667_v19, %v665_v18  ;;  %v794_v18 = vld [vmem:[#allocation7 + $0x98] sm:$0xff] }
 0x455   :  { %v396_v28 = vmul.f32 0.70710677, %v392_v26  ;;  %v395_v29 = vmul.f32 0.70710677, %v391_v27  ;;  %v394_v32 = vmul.f32 0.5, %v392_v26  ;;  %v393_v34 = vmul.f32 0.5, %v391_v27  ;;  %2178 = vmatpush1.bf16.msra.mxu0 %v2177_v22 }
 0x456   :  { %2180 = vmatprep.subr.bf16.mxu0 %v2179_v23  ;;  %v2215_v22 = vpack.c.bf16 %v672_v21, %v670_v20  ;;  %v669_v23 = vld [vmem:[#allocation5 + $0x5e0] sm:$0xff]  ;;  %v798_v19 = vld [vmem:[#allocation7 + $0xb8] sm:$0xff] }
 0x457   :  { %2627 = verf.f32 %v396_v28  ;;  %v791_v20 = vld [vmem:[#allocation7 + $0x80] sm:$0xff]  ;;  %v2291_v21 = vpack.c.bf16 %v798_v19, %v794_v18 }
 0x458   :  { %2629 = verf.f32 %v395_v29  ;;  %v831_v18 = vld [vmem:[#allocation7 + $0x1c0] sm:$0xff] }
 0x459   :  { %v835_v19 = vld [vmem:[#allocation7 + $0x1e0] sm:$0xff] }
 0x461   :  { %v2628_v30 = vpop.eup %2627 }
 0x462   :  { %v2630_v31 = vpop.eup %2629  ;;  %v400_v33 = vadd.f32 1.0, %v2628_v30  ;;  %v633_v30 = vld [vmem:[#allocation5 + $0x4c0] sm:$0xff] }
 0x463   :  { %v399_v13 = vadd.f32 1.0, %v2630_v31  ;;  %v635_v31 = vld [vmem:[#allocation5 + $0x4d0] sm:$0xff] }
 0x464   :  { %v402_v35 = vmul.f32 %v400_v33, %v394_v32  ;;  %v2181_v32 = vpack.c.bf16 %v635_v31, %v633_v30  ;;  %v638_v33 = vld [vmem:[#allocation5 + $0x4e8] sm:$0xff]  ;;  %v555_v31 = vld [vmem:[#allocation10 + $0x10] ss:$8 sm:$0x3] }
 0x465   :  { %v401_v36 = vmul.f32 %v399_v13, %v393_v34  ;;  %v640_v34 = vld [vmem:[#allocation5 + $0x4f8] sm:$0xff]  ;;  %v553_v30 = vld [vmem:[#allocation10 + $0x7] ss:$8 sm:$0x3] }
 0x466   :  { %545 = vmatprep.mubr.f32.mxu1 %v402_v35  ;;  %2182 = vmatpush1.bf16.msra.mxu0 %v2181_v32  ;;  %v2183_v13 = vpack.c.bf16 %v640_v34, %v638_v33  ;;  %v637_v35 = vld [vmem:[#allocation5 + $0x4e0] sm:$0xff]  ;;  %v576_v32 = vrot.slane %v553_v30, %v3003_v4  ;;  %v580_v33 = vrot.slane %v553_v30, %v3005_v5 }
 0x467   :  { %546 = vmatmul.mubr.f32.vlgmr.msra.gmra.mrb[0].mxu1 %v401_v36  ;;  %v639_v36 = vld [vmem:[#allocation5 + $0x4f0] sm:$0xff] }
 0x468   :  { %v2185_v37 = vpack.c.bf16 %v639_v36, %v637_v35  ;;  %2184 = vmatprep.subr.bf16.mxu0 %v2183_v13  ;;  %v589_v36 = vrot.slane %v555_v31, %v3003_v4 }
 0x46a   :  { %2186 = vmatpush1.bf16.msra.mxu0 %v2185_v37  ;;  %v593_v37 = vrot.slane %v555_v31, %v3005_v5  ;;  %v806_v31 = vld [vmem:[#allocation7 + $0xf8] sm:$0xff] }
 0x53a   :  { %v547_v39 = vpop.f32.mrb[0].mxu1 }
 0x53b   :  { %v548_v40 = vadd.f32 %v547_v39, %v474_v12  ;;  %v549_v41 = vpop.f32.mrb[1].mxu1  ;;  %v642_v12 = vld [vmem:[#allocation5 + $0x508] sm:$0xff] }
 0x53c   :  { %v550_v42 = vadd.f32 %v549_v41, %v478_v38  ;;  %v644_v38 = vld [vmem:[#allocation5 + $0x518] sm:$0xff]  ;;  %v643_v41 = vld [vmem:[#allocation5 + $0x510] sm:$0xff] }
 0x53d   :  { %v2187_v39 = vpack.c.bf16 %v644_v38, %v642_v12 }
 0x53e   :  { %v556_v43 = vadd.f32 %v550_v42, %v548_v40 }
 0x53f   :  { %2188 = vmatprep.subr.bf16.mxu0 %v2187_v39 }
 0x540   :  { %557 = vadd.xlane.f32.xlu1 %v556_v43  ;;  %v646_v43 = vld [vmem:[#allocation5 + $0x528] sm:$0xff] }
 0x541   :  { %v2191_v45 = vpack.c.bf16 %v648_v44, %v646_v43 }
 0x5cd   :  { %v558_v24 = vpop.xlane.xlu1 %557 }
 0x5ce   :  { %v559_v59 = vmul.f32 0.00390625, %v558_v24  ;;  %v671_v24 = vld [vmem:[#allocation5 + $0x5f0] sm:$0xff] }
 0x5d0   :  { %v3043_v25 = vsub.f32 %v548_v40, %v559_v59  ;;  %v3045_v26 = vsub.f32 %v550_v42, %v559_v59  ;;  %v641_v40 = vld [vmem:[#allocation5 + $0x500] sm:$0xff]  ;;  %v2217_v59 = vpack.c.bf16 %v671_v24, %v669_v23  ;;  %v797_v23 = vld [vmem:[#allocation7 + $0xb0] sm:$0xff] }
 0x5d1   :  { %v2189_v42 = vpack.c.bf16 %v643_v41, %v641_v40 }
 0x5d2   :  { %v562_v27 = vmul.f32 %v3043_v25, %v3043_v25  ;;  %v563_v28 = vmul.f32 %v3045_v26, %v3045_v26 }
 0x5d3   :  { %2190 = vmatpush1.bf16.msra.mxu0 %v2189_v42 }
 0x5d4   :  { %v564_v29 = vadd.f32 %v563_v28, %v562_v27  ;;  %2192 = vmatprep.subr.bf16.mxu0 %v2191_v45 }
 0x5d6   :  { %565 = vadd.xlane.f32.xlu1 %v564_v29 }
 0x5d7   :  { %2194 = vmatpush1.bf16.msra.mxu0 %v2193_v48 }
 0x5d8   :  { %2196 = vmatprep.subr.bf16.mxu0 %v2195_v51  ;;  %v778_v51 = vld [vmem:[#allocation7 + $0x18] sm:$0xff] }
 0x5d9   :  { %v2283_v56 = vpack.c.bf16 %v782_v53, %v778_v51  ;;  %v819_v53 = vld [vmem:[#allocation7 + $0x160] sm:$0xff] }
 0x5db   :  { %2198 = vmatpush1.bf16.msra.mxu0 %v2197_v54  ;;  %v775_v54 = vld [vmem:[#allocation7] sm:$0xff] }
 0x5dc   :  { %2200 = vmatprep.subr.bf16.mxu0 %v2199_v58  ;;  %v2221_v57 = vpack.c.bf16 %v779_v55, %v775_v54  ;;  %v777_v58 = vld [vmem:[#allocation7 + $0x10] sm:$0xff] }
 0x5dd   :  { %v2285_v63 = vpack.c.bf16 %v781_v61, %v777_v58  ;;  %v817_v54 = vld [vmem:[#allocation7 + $0x150] sm:$0xff]  ;;  %v828_v58 = vld [vmem:[#allocation7 + $0x1a8] sm:$0xff]  ;;  %v826_v61 = vld [vmem:[#allocation7 + $0x198] sm:$0xff] }
 0x5de   :  { %2222 = vmatpush1.bf16.msra.mxu1 %v2221_v57  ;;  %v824_v57 = vld [vmem:[#allocation7 + $0x188] sm:$0xff] }
 0x5df   :  { %2202 = vmatpush1.bf16.msra.mxu0 %v2201_v0  ;;  %v788_v0 = vld [vmem:[#allocation7 + $0x68] sm:$0xff] }
 0x5e0   :  { %2204 = vmatprep.subr.bf16.mxu0 %v2203_v1  ;;  %v786_v1 = vld [vmem:[#allocation7 + $0x58] sm:$0xff]  ;;  %v2223_v3 = vpack.c.bf16 %v788_v0, %v784_v62 }
 0x5e1   :  { %v2287_v6 = vpack.c.bf16 %v790_v2, %v786_v1  ;;  %v830_v62 = vld [vmem:[#allocation7 + $0x1b8] sm:$0xff]  ;;  %v2243_v1 = vpack.c.bf16 %v828_v58, %v824_v57  ;;  %v823_v2 = vld [vmem:[#allocation7 + $0x180] sm:$0xff] }
 0x5e2   :  { %2224 = vmatprep.subr.bf16.mxu1 %v2223_v3  ;;  %v827_v3 = vld [vmem:[#allocation7 + $0x1a0] sm:$0xff]  ;;  %v858_v57 = vld [vmem:[#allocation7 + $0x298] sm:$0xff] }
 0x5e3   :  { %2206 = vmatpush1.bf16.msra.mxu0 %v2205_v8  ;;  %v787_v8 = vld [vmem:[#allocation7 + $0x60] sm:$0xff] }
 0x5e4   :  { %2208 = vmatprep.subr.bf16.mxu0 %v2207_v9  ;;  %v785_v9 = vld [vmem:[#allocation7 + $0x50] sm:$0xff]  ;;  %v2225_v10 = vpack.c.bf16 %v787_v8, %v783_v7  ;;  %v2307_v7 = vpack.c.bf16 %v830_v62, %v826_v61  ;;  %v862_v61 = vld [vmem:[#allocation7 + $0x2b8] sm:$0xff]  ;;  %v855_v62 = vld [vmem:[#allocation7 + $0x280] sm:$0xff] }
 0x5e5   :  { %v829_v8 = vld [vmem:[#allocation7 + $0x1b0] sm:$0xff] }
 0x5e6   :  { %2226 = vmatpush1.bf16.msra.mxu1 %v2225_v10  ;;  %v836_v10 = vld [vmem:[#allocation7 + $0x1e8] sm:$0xff] }
 0x5e7   :  { %2210 = vmatpush1.bf16.msra.mxu0 %v2209_v16  ;;  %v2289_v16 = vpack.c.bf16 %v789_v11, %v785_v9  ;;  %v832_v9 = vld [vmem:[#allocation7 + $0x1c8] sm:$0xff]  ;;  %v834_v11 = vld [vmem:[#allocation7 + $0x1d8] sm:$0xff] }
 0x5e8   :  { %2212 = vmatprep.subr.bf16.mxu0 %v2211_v17  ;;  %v2227_v17 = vpack.c.bf16 %v796_v15, %v792_v14  ;;  %v838_v14 = vld [vmem:[#allocation7 + $0x1f8] sm:$0xff]  ;;  %v2245_v15 = vpack.c.bf16 %v827_v3, %v823_v2  ;;  %v857_v2 = vld [vmem:[#allocation7 + $0x290] sm:$0xff] }
 0x5e9   :  { %v861_v3 = vld [vmem:[#allocation7 + $0x2b0] sm:$0xff] }
 0x5ea   :  { %2228 = vmatprep.subr.bf16.mxu1 %v2227_v17  ;;  %v2247_v17 = vpack.c.bf16 %v836_v10, %v832_v9  ;;  %v866_v9 = vld [vmem:[#allocation7 + $0x2d8] sm:$0xff] }
 0x5eb   :  { %2214 = vmatpush1.bf16.msra.mxu0 %v2213_v60  ;;  %v795_v60 = vld [vmem:[#allocation7 + $0xa0] sm:$0xff] }
 0x5ec   :  { %2216 = vmatprep.subr.bf16.mxu0 %v2215_v22  ;;  %v793_v22 = vld [vmem:[#allocation7 + $0x90] sm:$0xff]  ;;  %v2229_v24 = vpack.c.bf16 %v795_v60, %v791_v20 }
 0x5ed   :  { %v833_v20 = vld [vmem:[#allocation7 + $0x1d0] sm:$0xff] }
 0x5ee   :  { %2230 = vmatpush1.bf16.msra.mxu1 %v2229_v24  ;;  %v837_v60 = vld [vmem:[#allocation7 + $0x1f0] sm:$0xff]  ;;  %v842_v24 = vld [vmem:[#allocation7 + $0x218] sm:$0xff] }
 0x5ef   :  { %2218 = vmatpush1.bf16.msra.mxu0 %v2217_v59  ;;  %v800_v59 = vld [vmem:[#allocation7 + $0xc8] sm:$0xff] }
 0x5f0   :  { %2284 = vmatprep.subr.bf16.mxu0 %v2283_v56  ;;  %v821_v56 = vld [vmem:[#allocation7 + $0x170] sm:$0xff] }
 0x5f1   :  { %v2305_v0 = vpack.c.bf16 %v821_v56, %v817_v54  ;;  %v860_v56 = vld [vmem:[#allocation7 + $0x2a8] sm:$0xff] }
 0x663   :  { %v566_v27 = vpop.xlane.xlu1 %565 }
 0x664   :  { %v567_v28 = vmul.f32 0.00390625, %v566_v27  ;;  %v804_v27 = vld [vmem:[#allocation7 + $0xe8] sm:$0xff] }
 0x665   :  { %v2231_v30 = vpack.c.bf16 %v804_v27, %v800_v59  ;;  %v846_v59 = vld [vmem:[#allocation7 + $0x238] sm:$0xff]  ;;  %v2249_v27 = vpack.c.bf16 %v835_v19, %v831_v18  ;;  %v865_v18 = vld [vmem:[#allocation7 + $0x2d0] sm:$0xff] }
 0x666   :  { %v568_v29 = vadd.f32 1e-05, %v567_v28  ;;  %v802_v28 = vld [vmem:[#allocation7 + $0xd8] sm:$0xff]  ;;  %v869_v19 = vld [vmem:[#allocation7 + $0x2f0] sm:$0xff] }
 0x667   :  { %2232 = vmatprep.subr.bf16.mxu1 %v2231_v30  ;;  %v2315_v30 = vpack.c.bf16 %v846_v59, %v842_v24  ;;  %v878_v24 = vld [vmem:[#allocation7 + $0x338] sm:$0xff]  ;;  %v871_v59 = vld [vmem:[#allocation7 + $0x300] sm:$0xff] }
 0x668   :  { %2631 = vrsqrt.f32 %v568_v29  ;;  %v2293_v29 = vpack.c.bf16 %v797_v23, %v793_v22  ;;  %v840_v22 = vld [vmem:[#allocation7 + $0x208] sm:$0xff] }
 0x669   :  { %v844_v23 = vld [vmem:[#allocation7 + $0x228] sm:$0xff] }
 0x672   :  { %v2632_v34 = vpop.eup %2631 }
 0x673   :  { %v570_v13 = vmul.f32 %v2632_v34, %v3043_v25  ;;  %v571_v35 = vmul.f32 %v2632_v34, %v3045_v26  ;;  %v2295_v34 = vpack.c.bf16 %v806_v31, %v802_v28  ;;  %v2313_v28 = vpack.c.bf16 %v837_v60, %v833_v20  ;;  %v674_v31 = vld [vmem:[#allocation10 + $0x11] ss:$8 sm:$0x3]  ;;  %v876_v60 = vld [vmem:[#allocation7 + $0x328] sm:$0xff] }
 0x674   :  { %v2329_v20 = vpack.c.bf16 %v869_v19, %v865_v18  ;;  %v1046_v19 = vld [vmem:[#allocation10 + $0x12] ss:$8 sm:$0x3] }
 0x675   :  { %v584_v12 = vmul.f32 %v580_v33, %v571_v35  ;;  %v583_v38 = vmul.f32 %v576_v32, %v570_v13  ;;  %v799_v32 = vld [vmem:[#allocation7 + $0xc0] sm:$0xff]  ;;  %v801_v13 = vld [vmem:[#allocation7 + $0xd0] sm:$0xff] }
 0x676   :  { %v803_v33 = vld [vmem:[#allocation7 + $0xe0] sm:$0xff]  ;;  %v805_v35 = vld [vmem:[#allocation7 + $0xf0] sm:$0xff] }
 0x677   :  { %v597_v39 = vadd.f32 %v593_v37, %v584_v12  ;;  %v596_v40 = vadd.f32 %v589_v36, %v583_v38  ;;  %v808_v36 = vld [vmem:[#allocation7 + $0x108] sm:$0xff]  ;;  %v810_v12 = vld [vmem:[#allocation7 + $0x118] sm:$0xff] }
 0x678   :  { %v812_v37 = vld [vmem:[#allocation7 + $0x128] sm:$0xff]  ;;  %v814_v38 = vld [vmem:[#allocation7 + $0x138] sm:$0xff] }
 0x679   :  { %v601_v41 = vmul.f32 0.70710677, %v597_v39  ;;  %v600_v42 = vmul.f32 0.70710677, %v596_v40  ;;  %v599_v45 = vmul.f32 0.5, %v597_v39  ;;  %v598_v47 = vmul.f32 0.5, %v596_v40 }
 0x67a   :  { %v2233_v39 = vpack.c.bf16 %v803_v33, %v799_v32  ;;  %v2297_v40 = vpack.c.bf16 %v805_v35, %v801_v13  ;;  %v679_v32 = vrot.slane %v674_v31, %v3003_v4  ;;  %v683_v33 = vrot.slane %v674_v31, %v3005_v5  ;;  %v877_v31 = vld [vmem:[#allocation7 + $0x330] sm:$0xff] }
 0x67b   :  { %2633 = verf.f32 %v601_v41  ;;  %v2235_v41 = vpack.c.bf16 %v812_v37, %v808_v36 }
 0x67c   :  { %2635 = verf.f32 %v600_v42  ;;  %v807_v42 = vld [vmem:[#allocation7 + $0x100] sm:$0xff]  ;;  %2234 = vmatpush1.bf16.msra.mxu1 %v2233_v39 }
 0x67d   :  { %2236 = vmatprep.subr.bf16.mxu1 %v2235_v41  ;;  %v839_v39 = vld [vmem:[#allocation7 + $0x200] sm:$0xff]  ;;  %v841_v41 = vld [vmem:[#allocation7 + $0x210] sm:$0xff] }
 0x685   :  { %v2634_v43 = vpop.eup %2633 }
 0x686   :  { %v2636_v44 = vpop.eup %2635  ;;  %v605_v46 = vadd.f32 1.0, %v2634_v43  ;;  %v811_v43 = vld [vmem:[#allocation7 + $0x120] sm:$0xff] }
 0x687   :  { %v604_v25 = vadd.f32 1.0, %v2636_v44  ;;  %v809_v44 = vld [vmem:[#allocation7 + $0x110] sm:$0xff]  ;;  %v2237_v49 = vpack.c.bf16 %v811_v43, %v807_v42 }
 0x688   :  { %v607_v48 = vmul.f32 %v605_v46, %v599_v45  ;;  %v2299_v45 = vpack.c.bf16 %v814_v38, %v810_v12  ;;  %v813_v46 = vld [vmem:[#allocation7 + $0x130] sm:$0xff] }
 0x689   :  { %v606_v26 = vmul.f32 %v604_v25, %v598_v47  ;;  %v816_v47 = vld [vmem:[#allocation7 + $0x148] sm:$0xff]  ;;  %v2301_v50 = vpack.c.bf16 %v813_v46, %v809_v44  ;;  %2238 = vmatpush1.bf16.msra.mxu1 %v2237_v49  ;;  %v845_v43 = vld [vmem:[#allocation7 + $0x230] sm:$0xff]  ;;  %v851_v49 = vld [vmem:[#allocation7 + $0x260] sm:$0xff] }
 0x68a   :  { %750 = vmatprep.mubr.f32.mxu0 %v607_v48  ;;  %v820_v25 = vld [vmem:[#allocation7 + $0x168] sm:$0xff]  ;;  %v818_v48 = vld [vmem:[#allocation7 + $0x158] sm:$0xff]  ;;  %v2317_v44 = vpack.c.bf16 %v845_v43, %v841_v41  ;;  %v885_v43 = vld [vmem:[#allocation7 + $0x370] sm:$0xff] }
 0x68b   :  { %751 = vmatmul.mubr.f32.vlgmr.msra.gmra.mrb[2].mxu0 %v606_v26  ;;  %v822_v26 = vld [vmem:[#allocation7 + $0x178] sm:$0xff]  ;;  %v2239_v51 = vpack.c.bf16 %v820_v25, %v816_v47  ;;  %v852_v46 = vld [vmem:[#allocation7 + $0x268] sm:$0xff] }
 0x68c   :  { %2286 = vmatpush1.bf16.msra.mxu0 %v2285_v63  ;;  %v2303_v55 = vpack.c.bf16 %v822_v26, %v818_v48  ;;  %v2241_v63 = vpack.c.bf16 %v819_v53, %v815_v52  ;;  %v850_v47 = vld [vmem:[#allocation7 + $0x258] sm:$0xff]  ;;  %v847_v26 = vld [vmem:[#allocation7 + $0x240] sm:$0xff]  ;;  %v849_v52 = vld [vmem:[#allocation7 + $0x250] sm:$0xff] }
 0x68d   :  { %2288 = vmatprep.subr.bf16.mxu0 %v2287_v6  ;;  %2240 = vmatprep.subr.bf16.mxu1 %v2239_v51  ;;  %v825_v6 = vld [vmem:[#allocation7 + $0x190] sm:$0xff]  ;;  %v854_v48 = vld [vmem:[#allocation7 + $0x278] sm:$0xff]  ;;  %v2257_v51 = vpack.c.bf16 %v851_v49, %v847_v26  ;;  %v887_v49 = vld [vmem:[#allocation7 + $0x380] sm:$0xff] }
 0x68e   :  { %2242 = vmatpush1.bf16.msra.mxu1 %v2241_v63  ;;  %v853_v53 = vld [vmem:[#allocation7 + $0x270] sm:$0xff]  ;;  %v859_v63 = vld [vmem:[#allocation7 + $0x2a0] sm:$0xff] }
 0x68f   :  { %2244 = vmatprep.subr.bf16.mxu1 %v2243_v1  ;;  %v2321_v54 = vpack.c.bf16 %v853_v53, %v849_v52  ;;  %v2261_v1 = vpack.c.bf16 %v859_v63, %v855_v62  ;;  %v893_v53 = vld [vmem:[#allocation7 + $0x3b0] sm:$0xff]  ;;  %v895_v62 = vld [vmem:[#allocation7 + $0x3c0] sm:$0xff] }
 0x690   :  { %2290 = vmatpush1.bf16.msra.mxu0 %v2289_v16  ;;  %v2309_v16 = vpack.c.bf16 %v829_v8, %v825_v6  ;;  %v2325_v6 = vpack.c.bf16 %v861_v3, %v857_v2  ;;  %v868_v8 = vld [vmem:[#allocation7 + $0x2e8] sm:$0xff]  ;;  %v901_v2 = vld [vmem:[#allocation7 + $0x3f0] sm:$0xff] }
 0x691   :  { %2292 = vmatprep.subr.bf16.mxu0 %v2291_v21  ;;  %v2311_v21 = vpack.c.bf16 %v838_v14, %v834_v11  ;;  %v870_v11 = vld [vmem:[#allocation7 + $0x2f8] sm:$0xff]  ;;  %v863_v14 = vld [vmem:[#allocation7 + $0x2c0] sm:$0xff] }
 0x692   :  { %2246 = vmatpush1.bf16.msra.mxu1 %v2245_v15  ;;  %v867_v15 = vld [vmem:[#allocation7 + $0x2e0] sm:$0xff] }
 0x693   :  { %2248 = vmatprep.subr.bf16.mxu1 %v2247_v17  ;;  %v2265_v17 = vpack.c.bf16 %v867_v15, %v863_v14 }
 0x694   :  { %2294 = vmatpush1.bf16.msra.mxu0 %v2293_v29  ;;  %v2251_v29 = vpack.c.bf16 %v844_v23, %v840_v22  ;;  %v874_v22 = vld [vmem:[#allocation7 + $0x318] sm:$0xff] }
 0x695   :  { %2296 = vmatprep.subr.bf16.mxu0 %v2295_v34 }
 0x696   :  { %2250 = vmatpush1.bf16.msra.mxu1 %v2249_v27  ;;  %v875_v27 = vld [vmem:[#allocation7 + $0x320] sm:$0xff] }
 0x697   :  { %2252 = vmatprep.subr.bf16.mxu1 %v2251_v29  ;;  %v2269_v29 = vpack.c.bf16 %v875_v27, %v871_v59  ;;  %v1143_v27 = vld [vmem:[#allocation5 + $0x608] sm:$0xff] }
 0x698   :  { %2298 = vmatpush1.bf16.msra.mxu0 %v2297_v40  ;;  %v843_v40 = vld [vmem:[#allocation7 + $0x220] sm:$0xff] }
 0x699   :  { %2300 = vmatprep.subr.bf16.mxu0 %v2299_v45  ;;  %v2253_v42 = vpack.c.bf16 %v843_v40, %v839_v39  ;;  %v848_v45 = vld [vmem:[#allocation7 + $0x248] sm:$0xff]  ;;  %v883_v39 = vld [vmem:[#allocation7 + $0x360] sm:$0xff] }
 0x69a   :  { %v2255_v25 = vpack.c.bf16 %v852_v46, %v848_v45  ;;  %v892_v46 = vld [vmem:[#allocation7 + $0x3a8] sm:$0xff] }
 0x69b   :  { %2254 = vmatpush1.bf16.msra.mxu1 %v2253_v42  ;;  %v881_v42 = vld [vmem:[#allocation7 + $0x350] sm:$0xff] }
 0x69c   :  { %2302 = vmatpush1.bf16.msra.mxu0 %v2301_v50  ;;  %v2319_v50 = vpack.c.bf16 %v854_v48, %v850_v47  ;;  %2256 = vmatprep.subr.bf16.mxu1 %v2255_v25  ;;  %v2337_v45 = vpack.c.bf16 %v885_v43, %v881_v42  ;;  %v890_v47 = vld [vmem:[#allocation7 + $0x398] sm:$0xff]  ;;  %v1150_v42 = vld [vmem:[#allocation5 + $0x640] sm:$0xff]  ;;  %v1152_v43 = vld [vmem:[#allocation5 + $0x650] sm:$0xff] }
 0x69d   :  { %2304 = vmatprep.subr.bf16.mxu0 %v2303_v55  ;;  %v856_v55 = vld [vmem:[#allocation7 + $0x288] sm:$0xff]  ;;  %v894_v25 = vld [vmem:[#allocation7 + $0x3b8] sm:$0xff] }
 0x69e   :  { %v2259_v58 = vpack.c.bf16 %v860_v56, %v856_v55  ;;  %v2339_v26 = vpack.c.bf16 %v894_v25, %v890_v47  ;;  %v900_v55 = vld [vmem:[#allocation7 + $0x3e8] sm:$0xff]  ;;  %v1154_v25 = vld [vmem:[#allocation5 + $0x660] sm:$0xff] }
 0x69f   :  { %2258 = vmatpush1.bf16.msra.mxu1 %v2257_v51  ;;  %v889_v51 = vld [vmem:[#allocation7 + $0x390] sm:$0xff] }
 0x6a0   :  { %2306 = vmatpush1.bf16.msra.mxu0 %v2305_v0  ;;  %v2323_v0 = vpack.c.bf16 %v862_v61, %v858_v57  ;;  %2260 = vmatprep.subr.bf16.mxu1 %v2259_v58  ;;  %v2341_v56 = vpack.c.bf16 %v893_v53, %v889_v51  ;;  %v898_v58 = vld [vmem:[#allocation7 + $0x3d8] sm:$0xff]  ;;  %v1160_v53 = vld [vmem:[#allocation5 + $0x690] sm:$0xff] }
 0x6a1   :  { %2308 = vmatprep.subr.bf16.mxu0 %v2307_v7  ;;  %v864_v7 = vld [vmem:[#allocation7 + $0x2c8] sm:$0xff]  ;;  %v902_v61 = vld [vmem:[#allocation7 + $0x3f8] sm:$0xff] }
 0x6a2   :  { %v2263_v10 = vpack.c.bf16 %v868_v8, %v864_v7  ;;  %v2343_v63 = vpack.c.bf16 %v902_v61, %v898_v58  ;;  %v1162_v58 = vld [vmem:[#allocation5 + $0x6a0] sm:$0xff]  ;;  %v1164_v61 = vld [vmem:[#allocation5 + $0x6b0] sm:$0xff] }
 0x6a3   :  { %2262 = vmatpush1.bf16.msra.mxu1 %v2261_v1  ;;  %v897_v1 = vld [vmem:[#allocation7 + $0x3d0] sm:$0xff] }
 0x6a4   :  { %2310 = vmatpush1.bf16.msra.mxu0 %v2309_v16  ;;  %v2327_v16 = vpack.c.bf16 %v870_v11, %v866_v9  ;;  %2264 = vmatprep.subr.bf16.mxu1 %v2263_v10 }
 0x6a5   :  { %2312 = vmatprep.subr.bf16.mxu0 %v2311_v21  ;;  %v872_v21 = vld [vmem:[#allocation7 + $0x308] sm:$0xff] }
 0x6a6   :  { %v2267_v23 = vpack.c.bf16 %v876_v60, %v872_v21  ;;  %v1055_v21 = vrot.slane %v1046_v19, %v3005_v5 }
 0x6a7   :  { %2266 = vmatpush1.bf16.msra.mxu1 %v2265_v17 }
 0x6a8   :  { %2314 = vmatpush1.bf16.msra.mxu0 %v2313_v28  ;;  %v2331_v28 = vpack.c.bf16 %v878_v24, %v874_v22  ;;  %2268 = vmatprep.subr.bf16.mxu1 %v2267_v23 }
 0x6a9   :  { %2316 = vmatprep.subr.bf16.mxu0 %v2315_v30  ;;  %v873_v30 = vld [vmem:[#allocation7 + $0x310] sm:$0xff] }
 0x6ab   :  { %2270 = vmatpush1.bf16.msra.mxu1 %v2269_v29  ;;  %v1142_v29 = vld [vmem:[#allocation5 + $0x600] sm:$0xff] }
 0x6ac   :  { %2318 = vmatpush1.bf16.msra.mxu0 %v2317_v44  ;;  %v888_v44 = vld [vmem:[#allocation7 + $0x388] sm:$0xff] }
 0x6ad   :  { %2320 = vmatprep.subr.bf16.mxu0 %v2319_v50  ;;  %v2275_v48 = vpack.c.bf16 %v892_v46, %v888_v44  ;;  %v891_v50 = vld [vmem:[#allocation7 + $0x3a0] sm:$0xff]  ;;  %v1155_v44 = vld [vmem:[#allocation5 + $0x668] sm:$0xff]  ;;  %v2357_v46 = vpack.c.bf16 %v1152_v43, %v1150_v42 }
 0x6ae   :  { %v2277_v52 = vpack.c.bf16 %v891_v50, %v887_v49  ;;  %v1161_v49 = vld [vmem:[#allocation5 + $0x698] sm:$0xff]  ;;  %v1186_v42 = vld [vmem:[#allocation5 + $0x760] sm:$0xff] }
 0x6b0   :  { %2322 = vmatpush1.bf16.msra.mxu0 %v2321_v54  ;;  %v896_v54 = vld [vmem:[#allocation7 + $0x3c8] sm:$0xff] }
 0x6b1   :  { %2324 = vmatprep.subr.bf16.mxu0 %v2323_v0  ;;  %v2279_v57 = vpack.c.bf16 %v900_v55, %v896_v54  ;;  %v899_v0 = vld [vmem:[#allocation7 + $0x3e0] sm:$0xff]  ;;  %v1163_v54 = vld [vmem:[#allocation5 + $0x6a8] sm:$0xff]  ;;  %v1165_v55 = vld [vmem:[#allocation5 + $0x6b8] sm:$0xff] }
 0x6b2   :  { %v2281_v3 = vpack.c.bf16 %v899_v0, %v895_v62  ;;  %v1167_v62 = vld [vmem:[#allocation5 + $0x6c8] sm:$0xff]  ;;  %v2369_v0 = vpack.c.bf16 %v1164_v61, %v1162_v58  ;;  %v1198_v61 = vld [vmem:[#allocation5 + $0x7c0] sm:$0xff] }
 0x6b4   :  { %2326 = vmatpush1.bf16.msra.mxu0 %v2325_v6  ;;  %v2345_v6 = vpack.c.bf16 %v901_v2, %v897_v1  ;;  %v1166_v2 = vld [vmem:[#allocation5 + $0x6c0] sm:$0xff] }
 0x6b5   :  { %2328 = vmatprep.subr.bf16.mxu0 %v2327_v16 }
 0x6b8   :  { %2330 = vmatpush1.bf16.msra.mxu0 %v2329_v20  ;;  %v1051_v20 = vrot.slane %v1046_v19, %v3003_v4  ;;  %v1170_v19 = vld [vmem:[#allocation5 + $0x6e0] sm:$0xff] }
 0x6b9   :  { %2332 = vmatprep.subr.bf16.mxu0 %v2331_v28  ;;  %v1145_v28 = vld [vmem:[#allocation5 + $0x618] sm:$0xff] }
 0x75e   :  { %v752_v34 = vpop.f32.mrb[2].mxu0 }
 0x75f   :  { %v3059_v13 = vadd.f32 %v752_v34, %v679_v32  ;;  %v754_v35 = vpop.f32.mrb[3].mxu0  ;;  %v2333_v32 = vpack.c.bf16 %v877_v31, %v873_v30  ;;  %v884_v34 = vld [vmem:[#allocation7 + $0x368] sm:$0xff]  ;;  %v2347_v30 = vpack.c.bf16 %v1145_v28, %v1143_v27  ;;  %v1144_v31 = vld [vmem:[#allocation5 + $0x610] sm:$0xff] }
 0x760   :  { %v3061_v36 = vadd.f32 %v754_v35, %v683_v33  ;;  %v880_v33 = vld [vmem:[#allocation7 + $0x348] sm:$0xff]  ;;  %v882_v35 = vld [vmem:[#allocation7 + $0x358] sm:$0xff] }
 0x761   :  { %v757_v37 = vmul.f32 %v3059_v13, %v3059_v13  ;;  %2334 = vmatpush1.bf16.msra.mxu0 %v2333_v32  ;;  %v1147_v32 = vld [vmem:[#allocation5 + $0x628] sm:$0xff] }
 0x762   :  { %v758_v12 = vmul.f32 %v3061_v36, %v3061_v36  ;;  %v1179_v28 = vld [vmem:[#allocation5 + $0x728] sm:$0xff] }
 0x764   :  { %v759_v38 = vadd.f32 %v758_v12, %v757_v37  ;;  %v2271_v37 = vpack.c.bf16 %v884_v34, %v880_v33  ;;  %v886_v12 = vld [vmem:[#allocation7 + $0x378] sm:$0xff]  ;;  %v2349_v34 = vpack.c.bf16 %v1144_v31, %v1142_v29  ;;  %v1178_v31 = vld [vmem:[#allocation5 + $0x720] sm:$0xff] }
 0x765   :  { %v2335_v40 = vpack.c.bf16 %v886_v12, %v882_v35  ;;  %v1149_v33 = vld [vmem:[#allocation5 + $0x638] sm:$0xff]  ;;  %v1148_v12 = vld [vmem:[#allocation5 + $0x630] sm:$0xff] }
 0x766   :  { %760 = vadd.xlane.f32.xlu1 %v759_v38  ;;  %v879_v38 = vld [vmem:[#allocation7 + $0x340] sm:$0xff]  ;;  %2272 = vmatprep.subr.bf16.mxu1 %v2271_v37  ;;  %v2351_v35 = vpack.c.bf16 %v1149_v33, %v1147_v32  ;;  %v1181_v29 = vld [vmem:[#allocation5 + $0x738] sm:$0xff]  ;;  %v1180_v32 = vld [vmem:[#allocation5 + $0x730] sm:$0xff] }
 0x767   :  { %v2273_v41 = vpack.c.bf16 %v883_v39, %v879_v38  ;;  %2336 = vmatprep.subr.bf16.mxu0 %v2335_v40  ;;  %v1146_v37 = vld [vmem:[#allocation5 + $0x620] sm:$0xff]  ;;  %v1151_v38 = vld [vmem:[#allocation5 + $0x648] sm:$0xff]  ;;  %v1153_v39 = vld [vmem:[#allocation5 + $0x658] sm:$0xff]  ;;  %v2385_v33 = vpack.c.bf16 %v1180_v32, %v1178_v31 }
 0x768   :  { %2338 = vmatpush1.bf16.msra.mxu0 %v2337_v45  ;;  %v2353_v40 = vpack.c.bf16 %v1148_v12, %v1146_v37  ;;  %v1157_v45 = vld [vmem:[#allocation5 + $0x678] sm:$0xff]  ;;  %v1182_v12 = vld [vmem:[#allocation5 + $0x740] sm:$0xff] }
 0x769   :  { %2274 = vmatpush1.bf16.msra.mxu1 %v2273_v41  ;;  %2340 = vmatprep.subr.bf16.mxu0 %v2339_v26  ;;  %v2355_v41 = vpack.c.bf16 %v1153_v39, %v1151_v38  ;;  %v2359_v47 = vpack.c.bf16 %v1157_v45, %v1155_v44  ;;  %v1159_v26 = vld [vmem:[#allocation5 + $0x688] sm:$0xff]  ;;  %v1184_v38 = vld [vmem:[#allocation5 + $0x750] sm:$0xff] }
 0x76a   :  { %2276 = vmatprep.subr.bf16.mxu1 %v2275_v48  ;;  %v1156_v48 = vld [vmem:[#allocation5 + $0x670] sm:$0xff]  ;;  %v2363_v51 = vpack.c.bf16 %v1161_v49, %v1159_v26  ;;  %v2389_v39 = vpack.c.bf16 %v1184_v38, %v1182_v12  ;;  %v1191_v45 = vld [vmem:[#allocation5 + $0x788] sm:$0xff]  ;;  %v1552_v38 = vld [vmem:[#allocation5 + $0xa00] sm:$0xff] }
 0x76b   :  { %v2361_v50 = vpack.c.bf16 %v1156_v48, %v1154_v25  ;;  %v1188_v44 = vld [vmem:[#allocation5 + $0x770] sm:$0xff]  ;;  %v1190_v48 = vld [vmem:[#allocation5 + $0x780] sm:$0xff]  ;;  %v1195_v49 = vld [vmem:[#allocation5 + $0x7a8] sm:$0xff] }
 0x76c   :  { %2342 = vmatpush1.bf16.msra.mxu0 %v2341_v56  ;;  %v1192_v26 = vld [vmem:[#allocation5 + $0x790] sm:$0xff] }
 0x76d   :  { %2278 = vmatpush1.bf16.msra.mxu1 %v2277_v52  ;;  %2344 = vmatprep.subr.bf16.mxu0 %v2343_v63  ;;  %v1158_v52 = vld [vmem:[#allocation5 + $0x680] sm:$0xff]  ;;  %v1169_v63 = vld [vmem:[#allocation5 + $0x6d8] sm:$0xff] }
 0x76e   :  { %2280 = vmatprep.subr.bf16.mxu1 %v2279_v57  ;;  %v2365_v56 = vpack.c.bf16 %v1160_v53, %v1158_v52  ;;  %v2367_v57 = vpack.c.bf16 %v1165_v55, %v1163_v54  ;;  %v2371_v1 = vpack.c.bf16 %v1169_v63, %v1167_v62  ;;  %v1194_v53 = vld [vmem:[#allocation5 + $0x7a0] sm:$0xff]  ;;  %v1196_v54 = vld [vmem:[#allocation5 + $0x7b0] sm:$0xff]  ;;  %v1199_v55 = vld [vmem:[#allocation5 + $0x7c8] sm:$0xff] }
 0x76f   :  { %v1200_v62 = vld [vmem:[#allocation5 + $0x7d0] sm:$0xff]  ;;  %v1203_v63 = vld [vmem:[#allocation5 + $0x7e8] sm:$0xff] }
 0x770   :  { %2346 = vmatpush1.bf16.msra.mxu0 %v2345_v6 }
 0x771   :  { %2282 = vmatpush1.bf16.msra.mxu1 %v2281_v3  ;;  %v1168_v3 = vld [vmem:[#allocation5 + $0x6d0] sm:$0xff] }
 0x772   :  { %2348 = vmatprep.subr.bf16.mxu1 %v2347_v30  ;;  %v2373_v6 = vpack.c.bf16 %v1168_v3, %v1166_v2  ;;  %v2383_v30 = vpack.c.bf16 %v1181_v29, %v1179_v28  ;;  %v1202_v3 = vld [vmem:[#allocation5 + $0x7e0] sm:$0xff] }
 0x7f3   :  { %v761_v7 = vpop.xlane.xlu1 %760 }
 0x7f4   :  { %2637 = vrsqrt.f32 %v761_v7  ;;  %vm764_vm0 = vcmp.eq.f32.partialorder %v761_v7, inf  ;;  %v767_v10 = vand.u32 2147483648, %v761_v7  ;;  %vm766_vm1 = vcmp.eq.f32.partialorder %v761_v7, 0.0 }
 0x7fe   :  { %v2638_v8 = vpop.eup %2637 }
 0x7ff   :  { %v763_v9 = vmul.f32 %v2638_v8, %v761_v7 }
 0x801   :  { %v765_v11 = vsel %vm764_vm0, %v761_v7, %v763_v9 }
 0x802   :  { %v768_v14 = vsel %vm766_vm1, %v767_v10, %v765_v11 }
 0x803   :  { %v769_v15 = vmax.f32 %v768_v14, 1e-12 }
 0x805   :  { %2639 = vrcp.f32 %v769_v15 }
 0x80f   :  { %v2640_v16 = vpop.eup %2639 }
 0x810   :  { %v772_v17 = vmul.f32 %v2640_v16, %v3061_v36  ;;  %v771_v18 = vmul.f32 %v2640_v16, %v3059_v13  ;;  %v1171_v16 = vld [vmem:[#allocation5 + $0x6e8] sm:$0xff] }
 0x812   :  { %967 = vmatprep.mubr.f32.mxu1 %v772_v17  ;;  %774 = vst [vmem:[#allocation14 + $0x8] sm:$0xff] %v772_v17  ;;  %1038 = vmatprep.mubr.f32.mxu0 %v772_v17  ;;  %773 = vst [vmem:[#allocation14] sm:$0xff] %v771_v18  ;;  %v1173_v17 = vld [vmem:[#allocation5 + $0x6f8] sm:$0xff] }
 0x813   :  { %968 = vmatmul.mubr.f32.vlgmr.msra.gmra.mrb[2].mxu1 %v771_v18  ;;  %1039 = vmatmul.mubr.f32.vlgmr.msra.gmra.mrb[4].mxu0 %v771_v18  ;;  %v2375_v18 = vpack.c.bf16 %v1173_v17, %v1171_v16 }
 0x814   :  { %2350 = vmatpush1.bf16.msra.mxu1 %v2349_v34  ;;  %v1183_v34 = vld [vmem:[#allocation5 + $0x748] sm:$0xff] }
 0x815   :  { %2352 = vmatprep.subr.bf16.mxu1 %v2351_v35  ;;  %v1185_v35 = vld [vmem:[#allocation5 + $0x758] sm:$0xff] }
 0x816   :  { %v2387_v37 = vpack.c.bf16 %v1185_v35, %v1183_v34 }
 0x818   :  { %2354 = vmatpush1.bf16.msra.mxu1 %v2353_v40  ;;  %v1187_v40 = vld [vmem:[#allocation5 + $0x768] sm:$0xff] }
 0x819   :  { %2356 = vmatprep.subr.bf16.mxu1 %v2355_v41  ;;  %v1189_v41 = vld [vmem:[#allocation5 + $0x778] sm:$0xff] }
 0x81a   :  { %v2391_v43 = vpack.c.bf16 %v1189_v41, %v1187_v40 }
 0x81c   :  { %2358 = vmatpush1.bf16.msra.mxu1 %v2357_v46  ;;  %v1193_v46 = vld [vmem:[#allocation5 + $0x798] sm:$0xff] }
 0x81d   :  { %2360 = vmatprep.subr.bf16.mxu1 %v2359_v47  ;;  %v2393_v47 = vpack.c.bf16 %v1188_v44, %v1186_v42  ;;  %v2395_v25 = vpack.c.bf16 %v1193_v46, %v1191_v45  ;;  %v1557_v42 = vld [vmem:[#allocation5 + $0xa28] sm:$0xff] }
 0x820   :  { %2362 = vmatpush1.bf16.msra.mxu1 %v2361_v50  ;;  %v1197_v50 = vld [vmem:[#allocation5 + $0x7b8] sm:$0xff] }
 0x821   :  { %2364 = vmatprep.subr.bf16.mxu1 %v2363_v51  ;;  %v2397_v51 = vpack.c.bf16 %v1192_v26, %v1190_v48  ;;  %v2399_v52 = vpack.c.bf16 %v1197_v50, %v1195_v49  ;;  %v1556_v49 = vld [vmem:[#allocation5 + $0xa20] sm:$0xff]  ;;  %v1558_v50 = vld [vmem:[#allocation5 + $0xa30] sm:$0xff] }
 0x824   :  { %2366 = vmatpush1.bf16.msra.mxu1 %v2365_v56  ;;  %v1201_v56 = vld [vmem:[#allocation5 + $0x7d8] sm:$0xff] }
 0x825   :  { %2368 = vmatprep.subr.bf16.mxu1 %v2367_v57  ;;  %v2401_v57 = vpack.c.bf16 %v1196_v54, %v1194_v53  ;;  %v2403_v58 = vpack.c.bf16 %v1201_v56, %v1199_v55  ;;  %v1563_v53 = vld [vmem:[#allocation5 + $0xa58] sm:$0xff]  ;;  %v2481_v54 = vpack.c.bf16 %v1558_v50, %v1556_v49  ;;  %v1560_v56 = vld [vmem:[#allocation5 + $0xa40] sm:$0xff] }
 0x828   :  { %2370 = vmatpush1.bf16.msra.mxu1 %v2369_v0  ;;  %v1205_v0 = vld [vmem:[#allocation5 + $0x7f8] sm:$0xff] }
 0x829   :  { %2372 = vmatprep.subr.bf16.mxu1 %v2371_v1  ;;  %v2405_v1 = vpack.c.bf16 %v1200_v62, %v1198_v61  ;;  %v2407_v2 = vpack.c.bf16 %v1205_v0, %v1203_v63  ;;  %v1567_v61 = vld [vmem:[#allocation5 + $0xa78] sm:$0xff]  ;;  %v1564_v0 = vld [vmem:[#allocation5 + $0xa60] sm:$0xff] }
 0x82c   :  { %2374 = vmatpush1.bf16.msra.mxu1 %v2373_v6  ;;  %v1204_v6 = vld [vmem:[#allocation5 + $0x7f0] sm:$0xff] }
 0x82d   :  { %2376 = vmatprep.subr.bf16.mxu1 %v2375_v18  ;;  %v3087_v18 = vld [vmem:[#allocation10 + $0x23] ss:$8 sm:$0x3] }
 0x8e6   :  { %v969_v60 = vpop.f32.mrb[2].mxu1  ;;  %v3071_v22 = vpop.f32.mrb[4].mxu0 }
 0x8e7   :  { %v3073_v23 = vadd.f32 %v1051_v20, %v969_v60  ;;  %v971_v24 = vpop.f32.mrb[3].mxu1  ;;  %v3075_v36 = vpop.f32.mrb[5].mxu0  ;;  %v1172_v20 = vld [vmem:[#allocation5 + $0x6f0] sm:$0xff]  ;;  %v1175_v60 = vld [vmem:[#allocation5 + $0x708] sm:$0xff] }
 0x8e8   :  { %v1059_v13 = vadd.f32 %v1055_v21, %v971_v24  ;;  %v2377_v21 = vpack.c.bf16 %v1172_v20, %v1170_v19  ;;  %v1126_v19 = vrot.slane %v3087_v18, %v3005_v5  ;;  %v1061_v20 = vld [vmem:[#allocation10 + $0x13] ss:$8 sm:$0x3] }
 0x8ea   :  { %v1064_v59 = vadd.f32 %v1059_v13, %v3073_v23  ;;  %2378 = vmatpush1.bf16.msra.mxu1 %v2377_v21  ;;  %v1063_v21 = vld [vmem:[#allocation10 + $0x14] ss:$8 sm:$0x3] }
 0x8eb   :  { %v1097_v28 = vrot.slane %v1063_v21, %v3003_v4  ;;  %v1101_v29 = vrot.slane %v1063_v21, %v3005_v5  ;;  %v1577_v21 = vld [vmem:[#allocation5 + $0xac8] sm:$0xff] }
 0x8ec   :  { %1065 = vadd.xlane.f32.xlu1 %v1064_v59  ;;  %v1176_v59 = vld [vmem:[#allocation5 + $0x710] sm:$0xff] }
 0x979   :  { %v1066_v7 = vpop.xlane.xlu1 %1065 }
 0x97a   :  { %v1067_v8 = vmul.f32 0.00390625, %v1066_v7  ;;  %v2409_v7 = vpack.c.bf16 %v1204_v6, %v1202_v3  ;;  %v1571_v3 = vld [vmem:[#allocation5 + $0xa98] sm:$0xff] }
 0x97c   :  { %v3079_v9 = vsub.f32 %v3073_v23, %v1067_v8  ;;  %v3081_v10 = vsub.f32 %v1059_v13, %v1067_v8  ;;  %v1177_v23 = vld [vmem:[#allocation5 + $0x718] sm:$0xff]  ;;  %v1174_v13 = vld [vmem:[#allocation5 + $0x700] sm:$0xff]  ;;  %v1553_v8 = vld [vmem:[#allocation5 + $0xa08] sm:$0xff] }
 0x97d   :  { %v2379_v24 = vpack.c.bf16 %v1177_v23, %v1175_v60  ;;  %v2381_v27 = vpack.c.bf16 %v1176_v59, %v1174_v13  ;;  %v1130_v60 = vadd.f32 %v1126_v19, %v3075_v36  ;;  %v1084_v23 = vrot.slane %v1061_v20, %v3003_v4  ;;  %v1572_v19 = vld [vmem:[#allocation5 + $0xaa0] sm:$0xff] }
 0x97e   :  { %v1070_v11 = vmul.f32 %v3079_v9, %v3079_v9  ;;  %v1071_v14 = vmul.f32 %v3081_v10, %v3081_v10 }
 0x97f   :  { %2380 = vmatprep.subr.bf16.mxu1 %v2379_v24  ;;  %v1088_v24 = vrot.slane %v1061_v20, %v3005_v5  ;;  %v1132_v46 = vmul.f32 0.5, %v1130_v60  ;;  %v1574_v20 = vld [vmem:[#allocation5 + $0xab0] sm:$0xff] }
 0x980   :  { %v1072_v15 = vadd.f32 %v1071_v14, %v1070_v11  ;;  %2382 = vmatpush1.bf16.msra.mxu1 %v2381_v27  ;;  %v1555_v11 = vld [vmem:[#allocation5 + $0xa18] sm:$0xff] }
 0x981   :  { %2384 = vmatprep.subr.bf16.mxu1 %v2383_v30  ;;  %v2475_v14 = vpack.c.bf16 %v1555_v11, %v1553_v8  ;;  %v1134_v30 = vmul.f32 0.70710677, %v1130_v60  ;;  %v1568_v8 = vld [vmem:[#allocation5 + $0xa80] sm:$0xff]  ;;  %v1570_v11 = vld [vmem:[#allocation5 + $0xa90] sm:$0xff]  ;;  %v1579_v60 = vld [vmem:[#allocation5 + $0xad8] sm:$0xff] }
 0x982   :  { %1073 = vadd.xlane.f32.xlu1 %v1072_v15 }
 0x984   :  { %2386 = vmatpush1.bf16.msra.mxu1 %v2385_v33 }
 0x985   :  { %2388 = vmatprep.subr.bf16.mxu1 %v2387_v37 }
 0x988   :  { %2390 = vmatpush1.bf16.msra.mxu1 %v2389_v39 }
 0x989   :  { %2392 = vmatprep.subr.bf16.mxu1 %v2391_v43  ;;  %v1559_v43 = vld [vmem:[#allocation5 + $0xa38] sm:$0xff] }
 0x98a   :  { %v2479_v26 = vpack.c.bf16 %v1559_v43, %v1557_v42  ;;  %v1593_v42 = vld [vmem:[#allocation5 + $0xb48] sm:$0xff]  ;;  %v1595_v43 = vld [vmem:[#allocation5 + $0xb58] sm:$0xff] }
 0x98c   :  { %2394 = vmatpush1.bf16.msra.mxu1 %v2393_v47 }
 0x98d   :  { %2396 = vmatprep.subr.bf16.mxu1 %v2395_v25 }
 0x990   :  { %2398 = vmatpush1.bf16.msra.mxu1 %v2397_v51 }
 0x991   :  { %2400 = vmatprep.subr.bf16.mxu1 %v2399_v52  ;;  %v1561_v52 = vld [vmem:[#allocation5 + $0xa48] sm:$0xff] }
 0x992   :  { %v2483_v55 = vpack.c.bf16 %v1563_v53, %v1561_v52  ;;  %v1596_v52 = vld [vmem:[#allocation5 + $0xb60] sm:$0xff]  ;;  %v1598_v53 = vld [vmem:[#allocation5 + $0xb70] sm:$0xff] }
 0x994   :  { %2402 = vmatpush1.bf16.msra.mxu1 %v2401_v57  ;;  %v1562_v57 = vld [vmem:[#allocation5 + $0xa50] sm:$0xff] }
 0x995   :  { %2404 = vmatprep.subr.bf16.mxu1 %v2403_v58  ;;  %v1565_v58 = vld [vmem:[#allocation5 + $0xa68] sm:$0xff]  ;;  %v2485_v62 = vpack.c.bf16 %v1562_v57, %v1560_v56 }
 0x996   :  { %v2487_v63 = vpack.c.bf16 %v1567_v61, %v1565_v58  ;;  %v1600_v58 = vld [vmem:[#allocation5 + $0xb80] sm:$0xff]  ;;  %v1602_v61 = vld [vmem:[#allocation5 + $0xb90] sm:$0xff] }
 0x998   :  { %2406 = vmatpush1.bf16.msra.mxu1 %v2405_v1  ;;  %v1566_v1 = vld [vmem:[#allocation5 + $0xa70] sm:$0xff] }
 0x999   :  { %2408 = vmatprep.subr.bf16.mxu1 %v2407_v2  ;;  %v1569_v2 = vld [vmem:[#allocation5 + $0xa88] sm:$0xff]  ;;  %v2489_v6 = vpack.c.bf16 %v1566_v1, %v1564_v0  ;;  %v1604_v1 = vld [vmem:[#allocation5 + $0xba0] sm:$0xff] }
 0x99c   :  { %2410 = vmatpush1.bf16.msra.mxu1 %v2409_v7  ;;  %v2491_v7 = vpack.c.bf16 %v1571_v3, %v1569_v2  ;;  %v1606_v2 = vld [vmem:[#allocation5 + $0xbb0] sm:$0xff]  ;;  %v1609_v3 = vld [vmem:[#allocation5 + $0xbc8] sm:$0xff] }
 0x99d   :  { %2476 = vmatprep.subr.bf16.mxu1 %v2475_v14  ;;  %v1573_v14 = vld [vmem:[#allocation5 + $0xaa8] sm:$0xff] }
 0xa0f   :  { %v1074_v15 = vpop.xlane.xlu1 %1073 }
 0xa10   :  { %v1075_v16 = vmul.f32 0.00390625, %v1074_v15  ;;  %v1575_v15 = vld [vmem:[#allocation5 + $0xab8] sm:$0xff] }
 0xa12   :  { %v1076_v17 = vadd.f32 1e-05, %v1075_v16  ;;  %v2493_v16 = vpack.c.bf16 %v1570_v11, %v1568_v8  ;;  %v1608_v11 = vld [vmem:[#allocation5 + $0xbc0] sm:$0xff] }
 0xa14   :  { %2641 = vrsqrt.f32 %v1076_v17  ;;  %v2495_v17 = vpack.c.bf16 %v1575_v15, %v1573_v14  ;;  %v1610_v14 = vld [vmem:[#allocation5 + $0xbd0] sm:$0xff]  ;;  %v1613_v15 = vld [vmem:[#allocation5 + $0xbe8] sm:$0xff] }
 0xa15   :  { %2643 = verf.f32 %v1134_v30 }
 0xa1e   :  { %v2642_v13 = vpop.eup %2641 }
 0xa1f   :  { %v1078_v59 = vmul.f32 %v2642_v13, %v3079_v9  ;;  %v1079_v27 = vmul.f32 %v2642_v13, %v3081_v10  ;;  %v2644_v37 = vpop.eup %2643  ;;  %v1554_v9 = vld [vmem:[#allocation5 + $0xa10] sm:$0xff]  ;;  %v1576_v13 = vld [vmem:[#allocation5 + $0xac0] sm:$0xff] }
 0xa20   :  { %v1138_v10 = vadd.f32 1.0, %v2644_v37  ;;  %v2477_v25 = vpack.c.bf16 %v1554_v9, %v1552_v38  ;;  %v1584_v37 = vld [vmem:[#allocation5 + $0xb00] sm:$0xff]  ;;  %v1589_v38 = vld [vmem:[#allocation5 + $0xb28] sm:$0xff]  ;;  %v1591_v9 = vld [vmem:[#allocation5 + $0xb38] sm:$0xff] }
 0xa21   :  { %v1092_v31 = vmul.f32 %v1088_v24, %v1079_v27  ;;  %v1091_v32 = vmul.f32 %v1084_v23, %v1078_v59  ;;  %v2497_v23 = vpack.c.bf16 %v1574_v20, %v1572_v19  ;;  %v2499_v24 = vpack.c.bf16 %v1579_v60, %v1577_v21  ;;  %v1578_v59 = vld [vmem:[#allocation5 + $0xad0] sm:$0xff]  ;;  %v1581_v27 = vld [vmem:[#allocation5 + $0xae8] sm:$0xff]  ;;  %v1612_v20 = vld [vmem:[#allocation5 + $0xbe0] sm:$0xff] }
 0xa22   :  { %v1140_v51 = vmul.f32 %v1138_v10, %v1132_v46  ;;  %v2511_v10 = vpack.c.bf16 %v1591_v9, %v1589_v38  ;;  %v2515_v46 = vpack.c.bf16 %v1595_v43, %v1593_v42  ;;  %v1614_v21 = vld [vmem:[#allocation5 + $0xbf0] sm:$0xff]  ;;  %v1352_v9 = vld [vmem:[#allocation5 + $0x828] sm:$0xff] }
 0xa23   :  { %v1105_v33 = vadd.f32 %v1101_v29, %v1092_v31  ;;  %v1104_v34 = vadd.f32 %v1097_v28, %v1091_v32  ;;  %v1583_v28 = vld [vmem:[#allocation5 + $0xaf8] sm:$0xff]  ;;  %v2501_v29 = vpack.c.bf16 %v1578_v59, %v1576_v13  ;;  %v1580_v31 = vld [vmem:[#allocation5 + $0xae0] sm:$0xff]  ;;  %v1582_v32 = vld [vmem:[#allocation5 + $0xaf0] sm:$0xff] }
 0xa24   :  { %v2503_v30 = vpack.c.bf16 %v1583_v28, %v1581_v27  ;;  %v1207_v27 = vld [vmem:[#allocation10 + $0x15] ss:$8 sm:$0x3]  ;;  %v1356_v43 = vld [vmem:[#allocation5 + $0x848] sm:$0xff] }
 0xa25   :  { %v1109_v36 = vmul.f32 0.70710677, %v1105_v33  ;;  %v1108_v35 = vmul.f32 0.70710677, %v1104_v34  ;;  %v1107_v40 = vmul.f32 0.5, %v1105_v33  ;;  %v1106_v44 = vmul.f32 0.5, %v1104_v34 }
 0xa26   :  { %v1585_v33 = vld [vmem:[#allocation5 + $0xb08] sm:$0xff]  ;;  %v1587_v34 = vld [vmem:[#allocation5 + $0xb18] sm:$0xff]  ;;  %v1212_v28 = vrot.slane %v1207_v27, %v3003_v4  ;;  %v1349_v38 = vld [vmem:[#allocation5 + $0x810] sm:$0xff] }
 0xa27   :  { %2645 = verf.f32 %v1109_v36  ;;  %v2505_v36 = vpack.c.bf16 %v1582_v32, %v1580_v31  ;;  %v1353_v42 = vld [vmem:[#allocation5 + $0x830] sm:$0xff] }
 0xa28   :  { %2647 = verf.f32 %v1108_v35  ;;  %v2507_v35 = vpack.c.bf16 %v1587_v34, %v1585_v33 }
 0xa31   :  { %v2646_v12 = vpop.eup %2645 }
 0xa32   :  { %v2648_v39 = vpop.eup %2647  ;;  %v1113_v41 = vadd.f32 1.0, %v2646_v12  ;;  %v1586_v12 = vld [vmem:[#allocation5 + $0xb10] sm:$0xff] }
 0xa33   :  { %v1112_v45 = vadd.f32 1.0, %v2648_v39  ;;  %v2509_v39 = vpack.c.bf16 %v1586_v12, %v1584_v37  ;;  %v1347_v37 = vld [vmem:[#allocation5 + $0x800] sm:$0xff] }
 0xa34   :  { %v1115_v47 = vmul.f32 %v1113_v41, %v1107_v40  ;;  %v1588_v40 = vld [vmem:[#allocation5 + $0xb20] sm:$0xff]  ;;  %v1590_v41 = vld [vmem:[#allocation5 + $0xb30] sm:$0xff] }
 0xa35   :  { %v1114_v48 = vmul.f32 %v1112_v45, %v1106_v44  ;;  %v1122_v44 = vrot.slane %v3087_v18, %v3003_v4  ;;  %v2513_v45 = vpack.c.bf16 %v1590_v41, %v1588_v40  ;;  %v2521_v18 = vpack.c.bf16 %v1598_v53, %v1596_v52  ;;  %v1351_v41 = vld [vmem:[#allocation5 + $0x820] sm:$0xff]  ;;  %v1361_v52 = vld [vmem:[#allocation5 + $0x870] sm:$0xff]  ;;  %v1364_v53 = vld [vmem:[#allocation5 + $0x888] sm:$0xff] }
 0xa36   :  { %1283 = vmatprep.mubr.f32.mxu1 %v1115_v47  ;;  %v1592_v47 = vld [vmem:[#allocation5 + $0xb40] sm:$0xff] }
 0xa37   :  { %1284 = vmatmul.mubr.f32.vlgmr.msra.gmra.mrb[4].mxu1 %v1114_v48  ;;  %v1597_v48 = vld [vmem:[#allocation5 + $0xb68] sm:$0xff]  ;;  %v1129_v49 = vadd.f32 %v1122_v44, %v3071_v22  ;;  %v2525_v22 = vpack.c.bf16 %v1602_v61, %v1600_v58  ;;  %v1358_v44 = vld [vmem:[#allocation5 + $0x858] sm:$0xff] }
 0xa38   :  { %2478 = vmatpush1.bf16.msra.mxu1 %v2477_v25  ;;  %1693 = vmatprep.mubr.f32.mxu1 %v1140_v51  ;;  %v1594_v25 = vld [vmem:[#allocation5 + $0xb50] sm:$0xff]  ;;  %v1368_v58 = vld [vmem:[#allocation5 + $0x8a8] sm:$0xff]  ;;  %v1370_v61 = vld [vmem:[#allocation5 + $0x8b8] sm:$0xff] }
 0xa39   :  { %2480 = vmatprep.subr.bf16.mxu1 %v2479_v26  ;;  %v1599_v26 = vld [vmem:[#allocation5 + $0xb78] sm:$0xff]  ;;  %v2517_v50 = vpack.c.bf16 %v1594_v25, %v1592_v47  ;;  %v1133_v56 = vmul.f32 0.70710677, %v1129_v49  ;;  %v1131_v13 = vmul.f32 0.5, %v1129_v49  ;;  %v1355_v47 = vld [vmem:[#allocation5 + $0x840] sm:$0xff]  ;;  %v1357_v25 = vld [vmem:[#allocation5 + $0x850] sm:$0xff] }
 0xa3a   :  { %v2519_v51 = vpack.c.bf16 %v1599_v26, %v1597_v48  ;;  %v1360_v48 = vld [vmem:[#allocation5 + $0x868] sm:$0xff]  ;;  %v1362_v26 = vld [vmem:[#allocation5 + $0x878] sm:$0xff]  ;;  %v2421_v49 = vpack.c.bf16 %v1357_v25, %v1355_v47  ;;  %v1391_v47 = vld [vmem:[#allocation5 + $0x960] sm:$0xff] }
 0xa3b   :  { %2649 = verf.f32 %v1133_v56 }
 0xa3c   :  { %2482 = vmatpush1.bf16.msra.mxu1 %v2481_v54  ;;  %v1601_v54 = vld [vmem:[#allocation5 + $0xb88] sm:$0xff] }
 0xa3d   :  { %2484 = vmatprep.subr.bf16.mxu1 %v2483_v55  ;;  %v1603_v55 = vld [vmem:[#allocation5 + $0xb98] sm:$0xff] }
 0xa3e   :  { %v2523_v57 = vpack.c.bf16 %v1603_v55, %v1601_v54  ;;  %v1366_v54 = vld [vmem:[#allocation5 + $0x898] sm:$0xff] }
 0xa3f   :  { %v2427_v56 = vpack.c.bf16 %v1366_v54, %v1364_v53  ;;  %v1397_v53 = vld [vmem:[#allocation5 + $0x990] sm:$0xff]  ;;  %v1400_v54 = vld [vmem:[#allocation5 + $0x9a8] sm:$0xff] }
 0xa40   :  { %2486 = vmatpush1.bf16.msra.mxu1 %v2485_v62  ;;  %v1605_v62 = vld [vmem:[#allocation5 + $0xba8] sm:$0xff] }
 0xa41   :  { %2488 = vmatprep.subr.bf16.mxu1 %v2487_v63  ;;  %v1607_v63 = vld [vmem:[#allocation5 + $0xbb8] sm:$0xff] }
 0xa42   :  { %v2527_v0 = vpack.c.bf16 %v1607_v63, %v1605_v62  ;;  %v2431_v63 = vpack.c.bf16 %v1370_v61, %v1368_v58  ;;  %v1401_v58 = vld [vmem:[#allocation5 + $0x9b0] sm:$0xff]  ;;  %v1404_v61 = vld [vmem:[#allocation5 + $0x9c8] sm:$0xff] }
 0xa44   :  { %2490 = vmatpush1.bf16.msra.mxu1 %v2489_v6  ;;  %v1611_v6 = vld [vmem:[#allocation5 + $0xbd8] sm:$0xff] }
 0xa45   :  { %2492 = vmatprep.subr.bf16.mxu1 %v2491_v7  ;;  %v2529_v7 = vpack.c.bf16 %v1606_v2, %v1604_v1  ;;  %v2531_v8 = vpack.c.bf16 %v1611_v6, %v1609_v3  ;;  %v2650_v60 = vpop.eup %2649  ;;  %v1372_v1 = vld [vmem:[#allocation5 + $0x8c8] sm:$0xff]  ;;  %v1374_v2 = vld [vmem:[#allocation5 + $0x8d8] sm:$0xff] }
 0xa46   :  { %v2435_v6 = vpack.c.bf16 %v1374_v2, %v1372_v1  ;;  %v1405_v1 = vld [vmem:[#allocation5 + $0x9d0] sm:$0xff]  ;;  %v1408_v2 = vld [vmem:[#allocation5 + $0x9e8] sm:$0xff] }
 0xa48   :  { %2494 = vmatpush1.bf16.msra.mxu1 %v2493_v16  ;;  %v1615_v16 = vld [vmem:[#allocation5 + $0xbf8] sm:$0xff] }
 0xa49   :  { %2496 = vmatprep.subr.bf16.mxu1 %v2495_v17  ;;  %v2533_v17 = vpack.c.bf16 %v1610_v14, %v1608_v11  ;;  %v2535_v19 = vpack.c.bf16 %v1615_v16, %v1613_v15 }
 0xa4c   :  { %2498 = vmatpush1.bf16.msra.mxu1 %v2497_v23  ;;  %v2537_v23 = vpack.c.bf16 %v1614_v21, %v1612_v20 }
 0xa4d   :  { %2500 = vmatprep.subr.bf16.mxu1 %v2499_v24  ;;  %v1137_v24 = vadd.f32 1.0, %v2650_v60 }
 0xa4f   :  { %v1139_v59 = vmul.f32 %v1137_v24, %v1131_v13  ;;  %v1376_v24 = vld [vmem:[#allocation5 + $0x8e8] sm:$0xff]  ;;  %v1378_v13 = vld [vmem:[#allocation5 + $0x8f8] sm:$0xff] }
 0xa50   :  { %2502 = vmatpush1.bf16.msra.mxu1 %v2501_v29  ;;  %v1216_v29 = vrot.slane %v1207_v27, %v3005_v5  ;;  %v1375_v27 = vld [vmem:[#allocation5 + $0x8e0] sm:$0xff] }
 0xa51   :  { %2504 = vmatprep.subr.bf16.mxu1 %v2503_v30 }
 0xa54   :  { %2506 = vmatpush1.bf16.msra.mxu1 %v2505_v36  ;;  %v1348_v36 = vld [vmem:[#allocation5 + $0x808] sm:$0xff] }
 0xa55   :  { %2508 = vmatprep.subr.bf16.mxu1 %v2507_v35  ;;  %v1350_v35 = vld [vmem:[#allocation5 + $0x818] sm:$0xff] }
 0xa56   :  { %v2411_v12 = vpack.c.bf16 %v1350_v35, %v1348_v36  ;;  %v1384_v35 = vld [vmem:[#allocation5 + $0x928] sm:$0xff] }
 0xa58   :  { %2510 = vmatpush1.bf16.msra.mxu1 %v2509_v39  ;;  %v1354_v39 = vld [vmem:[#allocation5 + $0x838] sm:$0xff]  ;;  %2412 = vmatprep.subr.bf16.mxu0 %v2411_v12 }
 0xa59   :  { %2512 = vmatprep.subr.bf16.mxu1 %v2511_v10  ;;  %v2413_v10 = vpack.c.bf16 %v1349_v38, %v1347_v37  ;;  %v2415_v40 = vpack.c.bf16 %v1354_v39, %v1352_v9  ;;  %v1386_v37 = vld [vmem:[#allocation5 + $0x938] sm:$0xff]  ;;  %v1383_v38 = vld [vmem:[#allocation5 + $0x920] sm:$0xff]  ;;  %v1385_v9 = vld [vmem:[#allocation5 + $0x930] sm:$0xff] }
 0xa5a   :  { %v2447_v12 = vpack.c.bf16 %v1386_v37, %v1384_v35  ;;  %v2449_v39 = vpack.c.bf16 %v1385_v9, %v1383_v38 }
 0xa5b   :  { %2414 = vmatpush1.bf16.msra.mxu0 %v2413_v10  ;;  %v1388_v10 = vld [vmem:[#allocation5 + $0x948] sm:$0xff] }
 0xa5c   :  { %2514 = vmatpush1.bf16.msra.mxu1 %v2513_v45  ;;  %v2417_v45 = vpack.c.bf16 %v1353_v42, %v1351_v41  ;;  %2416 = vmatprep.subr.bf16.mxu0 %v2415_v40  ;;  %v1390_v40 = vld [vmem:[#allocation5 + $0x958] sm:$0xff]  ;;  %v1387_v42 = vld [vmem:[#allocation5 + $0x940] sm:$0xff] }
 0xa5d   :  { %2516 = vmatprep.subr.bf16.mxu1 %v2515_v46  ;;  %v2419_v46 = vpack.c.bf16 %v1358_v44, %v1356_v43  ;;  %v2451_v41 = vpack.c.bf16 %v1390_v40, %v1388_v10  ;;  %v1389_v43 = vld [vmem:[#allocation5 + $0x950] sm:$0xff] }
 0xa5e   :  { %v2453_v44 = vpack.c.bf16 %v1389_v43, %v1387_v42  ;;  %v1743_v43 = vld [vmem:[#allocation8 + $0x100] sm:$0xff] }
 0xa5f   :  { %2418 = vmatpush1.bf16.msra.mxu0 %v2417_v45  ;;  %v1392_v45 = vld [vmem:[#allocation5 + $0x968] sm:$0xff] }
 0xa60   :  { %2518 = vmatpush1.bf16.msra.mxu1 %v2517_v50  ;;  %2420 = vmatprep.subr.bf16.mxu0 %v2419_v46  ;;  %v2423_v50 = vpack.c.bf16 %v1362_v26, %v1360_v48  ;;  %v1394_v46 = vld [vmem:[#allocation5 + $0x978] sm:$0xff]  ;;  %v1393_v48 = vld [vmem:[#allocation5 + $0x970] sm:$0xff]  ;;  %v1396_v26 = vld [vmem:[#allocation5 + $0x988] sm:$0xff] }
 0xa61   :  { %2520 = vmatprep.subr.bf16.mxu1 %v2519_v51  ;;  %v1359_v51 = vld [vmem:[#allocation5 + $0x860] sm:$0xff]  ;;  %v2455_v25 = vpack.c.bf16 %v1394_v46, %v1392_v45 }
 0xa62   :  { %v2425_v55 = vpack.c.bf16 %v1361_v52, %v1359_v51  ;;  %v1395_v52 = vld [vmem:[#allocation5 + $0x980] sm:$0xff] }
 0xa63   :  { %2422 = vmatpush1.bf16.msra.mxu0 %v2421_v49  ;;  %v1398_v49 = vld [vmem:[#allocation5 + $0x998] sm:$0xff] }
 0xa64   :  { %2522 = vmatpush1.bf16.msra.mxu1 %v2521_v18  ;;  %2424 = vmatprep.subr.bf16.mxu0 %v2423_v50  ;;  %v1363_v18 = vld [vmem:[#allocation5 + $0x880] sm:$0xff]  ;;  %v2457_v50 = vpack.c.bf16 %v1393_v48, %v1391_v47  ;;  %v2459_v51 = vpack.c.bf16 %v1398_v49, %v1396_v26  ;;  %v1761_v47 = vld [vmem:[#allocation8 + $0x190] sm:$0xff] }
 0xa65   :  { %2524 = vmatprep.subr.bf16.mxu1 %v2523_v57  ;;  %v1365_v57 = vld [vmem:[#allocation5 + $0x890] sm:$0xff] }
 0xa66   :  { %v2429_v62 = vpack.c.bf16 %v1365_v57, %v1363_v18  ;;  %v1399_v57 = vld [vmem:[#allocation5 + $0x9a0] sm:$0xff] }
 0xa67   :  { %2426 = vmatpush1.bf16.msra.mxu0 %v2425_v55  ;;  %v1402_v55 = vld [vmem:[#allocation5 + $0x9b8] sm:$0xff] }
 0xa68   :  { %2526 = vmatpush1.bf16.msra.mxu1 %v2525_v22  ;;  %2428 = vmatprep.subr.bf16.mxu0 %v2427_v56  ;;  %v1367_v22 = vld [vmem:[#allocation5 + $0x8a0] sm:$0xff]  ;;  %v2461_v56 = vpack.c.bf16 %v1397_v53, %v1395_v52  ;;  %v2463_v18 = vpack.c.bf16 %v1402_v55, %v1400_v54  ;;  %v1745_v54 = vld [vmem:[#allocation8 + $0x110] sm:$0xff]  ;;  %v1746_v55 = vld [vmem:[#allocation8 + $0x118] sm:$0xff] }
 0xa69   :  { %2528 = vmatprep.subr.bf16.mxu1 %v2527_v0  ;;  %v1369_v0 = vld [vmem:[#allocation5 + $0x8b0] sm:$0xff] }
 0xa6a   :  { %v2433_v3 = vpack.c.bf16 %v1369_v0, %v1367_v22  ;;  %v1403_v0 = vld [vmem:[#allocation5 + $0x9c0] sm:$0xff] }
 0xa6b   :  { %2430 = vmatpush1.bf16.msra.mxu0 %v2429_v62  ;;  %v1406_v62 = vld [vmem:[#allocation5 + $0x9d8] sm:$0xff] }
 0xa6c   :  { %2530 = vmatpush1.bf16.msra.mxu1 %v2529_v7  ;;  %2432 = vmatprep.subr.bf16.mxu0 %v2431_v63  ;;  %v1371_v7 = vld [vmem:[#allocation5 + $0x8c0] sm:$0xff]  ;;  %v2465_v63 = vpack.c.bf16 %v1401_v58, %v1399_v57  ;;  %v2467_v22 = vpack.c.bf16 %v1406_v62, %v1404_v61  ;;  %v1764_v57 = vld [vmem:[#allocation8 + $0x1a8] sm:$0xff]  ;;  %v2545_v61 = vpack.c.bf16 %v1746_v55, %v1745_v54 }
 0xa6d   :  { %2532 = vmatprep.subr.bf16.mxu1 %v2531_v8  ;;  %v1373_v8 = vld [vmem:[#allocation5 + $0x8d0] sm:$0xff] }
 0xa6e   :  { %v2437_v11 = vpack.c.bf16 %v1373_v8, %v1371_v7  ;;  %v1407_v8 = vld [vmem:[#allocation5 + $0x9e0] sm:$0xff] }
 0xa6f   :  { %2434 = vmatpush1.bf16.msra.mxu0 %v2433_v3  ;;  %v1410_v3 = vld [vmem:[#allocation5 + $0x9f8] sm:$0xff] }
 0xa70   :  { %2534 = vmatpush1.bf16.msra.mxu1 %v2533_v17  ;;  %2436 = vmatprep.subr.bf16.mxu0 %v2435_v6  ;;  %v2469_v6 = vpack.c.bf16 %v1405_v1, %v1403_v0  ;;  %v2471_v7 = vpack.c.bf16 %v1410_v3, %v1408_v2  ;;  %v1765_v0 = vld [vmem:[#allocation8 + $0x1b0] sm:$0xff]  ;;  %v1766_v1 = vld [vmem:[#allocation8 + $0x1b8] sm:$0xff] }
 0xa71   :  { %2536 = vmatprep.subr.bf16.mxu1 %v2535_v19 }
 0xa73   :  { %2438 = vmatpush1.bf16.msra.mxu0 %v2437_v11  ;;  %v1409_v11 = vld [vmem:[#allocation5 + $0x9f0] sm:$0xff] }
 0xa74   :  { %2538 = vmatpush1.bf16.msra.mxu1 %v2537_v23 }
 0xa77   :  { %1694 = vmatmul.mubr.f32.vlgmr.msra.gmra.mrb[6].mxu1 %v1139_v59  ;;  %v2439_v59 = vpack.c.bf16 %v1378_v13, %v1376_v24 }
 0xa79   :  { %2440 = vmatprep.subr.bf16.mxu0 %v2439_v59  ;;  %v1617_v59 = vld [vmem:[#allocation10 + $0x24] ss:$8 sm:$0x3] }
 0xa7a   :  { %v1622_v58 = vrot.slane %v1617_v59, %v3003_v4 }
 0xb0a   :  { %v1285_v30 = vpop.f32.mrb[4].mxu1 }
 0xb0b   :  { %v3103_v31 = vadd.f32 %v1285_v30, %v1212_v28  ;;  %v1287_v32 = vpop.f32.mrb[5].mxu1  ;;  %v1377_v28 = vld [vmem:[#allocation5 + $0x8f0] sm:$0xff]  ;;  %v1380_v30 = vld [vmem:[#allocation5 + $0x908] sm:$0xff] }
 0xb0c   :  { %v3105_v33 = vadd.f32 %v1287_v32, %v1216_v29  ;;  %v2441_v29 = vpack.c.bf16 %v1377_v28, %v1375_v27  ;;  %v1626_v27 = vrot.slane %v1617_v59, %v3005_v5  ;;  %v1291_v28 = vld [vmem:[#allocation10 + $0x16] ss:$8 sm:$0x3] }
 0xb0d   :  { %v1770_v59 = vld [vmem:[#allocation8 + $0x1d8] sm:$0xff] }
 0xb0e   :  { %v1294_v34 = vadd.f32 %v3105_v33, %v3103_v31  ;;  %2442 = vmatpush1.bf16.msra.mxu0 %v2441_v29  ;;  %v1293_v29 = vld [vmem:[#allocation10 + $0x17] ss:$8 sm:$0x3] }
 0xb0f   :  { %v1327_v35 = vrot.slane %v1293_v29, %v3003_v4  ;;  %v1331_v37 = vrot.slane %v1293_v29, %v3005_v5  ;;  %v1754_v29 = vld [vmem:[#allocation8 + $0x158] sm:$0xff] }
 0xb10   :  { %1295 = vadd.xlane.f32.xlu1 %v1294_v34  ;;  %v1381_v34 = vld [vmem:[#allocation5 + $0x910] sm:$0xff] }
 0xb4a   :  { %v3109_v14 = vpop.f32.mrb[6].mxu1 }
 0xb4b   :  { %v3111_v15 = vpop.f32.mrb[7].mxu1  ;;  %v1696_v2 = vadd.f32 %v3109_v14, %v1622_v58 }
 0xb9d   :  { %v1296_v16 = vpop.xlane.xlu1 %1295 }
 0xb9e   :  { %v1297_v17 = vmul.f32 0.00390625, %v1296_v16  ;;  %v2473_v16 = vpack.c.bf16 %v1409_v11, %v1407_v8  ;;  %v1750_v8 = vld [vmem:[#allocation8 + $0x138] sm:$0xff]  ;;  %v1767_v11 = vld [vmem:[#allocation8 + $0x1c0] sm:$0xff] }
 0xba0   :  { %v3114_v19 = vsub.f32 %v3103_v31, %v1297_v17  ;;  %v3117_v20 = vsub.f32 %v3105_v33, %v1297_v17  ;;  %v1382_v31 = vld [vmem:[#allocation5 + $0x918] sm:$0xff]  ;;  %v1379_v33 = vld [vmem:[#allocation5 + $0x900] sm:$0xff] }
 0xba1   :  { %v2443_v32 = vpack.c.bf16 %v1382_v31, %v1380_v30  ;;  %v2445_v36 = vpack.c.bf16 %v1381_v34, %v1379_v33  ;;  %v1759_v17 = vld [vmem:[#allocation8 + $0x180] sm:$0xff]  ;;  %v1698_v30 = vadd.f32 %v3111_v15, %v1626_v27  ;;  %v1314_v31 = vrot.slane %v1291_v28, %v3003_v4 }
 0xba2   :  { %v1300_v21 = vmul.f32 %v3114_v19, %v3114_v19  ;;  %v1301_v60 = vmul.f32 %v3117_v20, %v3117_v20 }
 0xba3   :  { %2444 = vmatprep.subr.bf16.mxu0 %v2443_v32  ;;  %v1318_v32 = vrot.slane %v1291_v28, %v3005_v5  ;;  %v1701_v49 = vmul.f32 0.5, %v1698_v30  ;;  %v1753_v28 = vld [vmem:[#allocation8 + $0x150] sm:$0xff] }
 0xba4   :  { %v1302_v23 = vadd.f32 %v1301_v60, %v1300_v21  ;;  %2446 = vmatpush1.bf16.msra.mxu0 %v2445_v36  ;;  %v1760_v21 = vld [vmem:[#allocation8 + $0x188] sm:$0xff] }
 0xba5   :  { %2448 = vmatprep.subr.bf16.mxu0 %v2447_v12  ;;  %v2539_v60 = vpack.c.bf16 %v1760_v21, %v1759_v17  ;;  %v1703_v12 = vmul.f32 0.70710677, %v1698_v30  ;;  %v1702_v17 = vmul.f32 0.70710677, %v1696_v2  ;;  %v1771_v30 = vld [vmem:[#allocation8 + $0x1e0] sm:$0xff] }
 0xba6   :  { %1303 = vadd.xlane.f32.xlu0 %v1302_v23 }
 0xba8   :  { %2450 = vmatpush1.bf16.msra.mxu0 %v2449_v39 }
 0xba9   :  { %2452 = vmatprep.subr.bf16.mxu0 %v2451_v41 }
 0xbac   :  { %2454 = vmatpush1.bf16.msra.mxu0 %v2453_v44 }
 0xbad   :  { %2456 = vmatprep.subr.bf16.mxu0 %v2455_v25  ;;  %v1762_v25 = vld [vmem:[#allocation8 + $0x198] sm:$0xff] }
 0xbae   :  { %v2543_v53 = vpack.c.bf16 %v1762_v25, %v1761_v47 }
 0xbb0   :  { %2458 = vmatpush1.bf16.msra.mxu0 %v2457_v50 }
 0xbb1   :  { %2460 = vmatprep.subr.bf16.mxu0 %v2459_v51 }
 0xbb4   :  { %2462 = vmatpush1.bf16.msra.mxu0 %v2461_v56 }
 0xbb5   :  { %2464 = vmatprep.subr.bf16.mxu0 %v2463_v18  ;;  %v1763_v18 = vld [vmem:[#allocation8 + $0x1a0] sm:$0xff] }
 0xbb6   :  { %v2547_v62 = vpack.c.bf16 %v1764_v57, %v1763_v18  ;;  %v1726_v18 = vld [vmem:[#allocation8 + $0x80] sm:$0xff]  ;;  %v1727_v57 = vld [vmem:[#allocation8 + $0x88] sm:$0xff] }
 0xbb7   :  { %v2571_v58 = vpack.c.bf16 %v1727_v57, %v1726_v18 }
 0xbb8   :  { %2466 = vmatpush1.bf16.msra.mxu0 %v2465_v63  ;;  %v1747_v63 = vld [vmem:[#allocation8 + $0x120] sm:$0xff] }
 0xbb9   :  { %2468 = vmatprep.subr.bf16.mxu0 %v2467_v22  ;;  %v1748_v22 = vld [vmem:[#allocation8 + $0x128] sm:$0xff]  ;;  %2572 = vmatprep.subr.bf16.mxu1 %v2571_v58 }
 0xbba   :  { %v2549_v3 = vpack.c.bf16 %v1748_v22, %v1747_v63  ;;  %v1728_v22 = vld [vmem:[#allocation8 + $0x90] sm:$0xff] }
 0xbbc   :  { %2470 = vmatpush1.bf16.msra.mxu0 %v2469_v6  ;;  %v2551_v6 = vpack.c.bf16 %v1766_v1, %v1765_v0  ;;  %v1729_v0 = vld [vmem:[#allocation8 + $0x98] sm:$0xff] }
 0xbbd   :  { %2472 = vmatprep.subr.bf16.mxu0 %v2471_v7  ;;  %v1749_v7 = vld [vmem:[#allocation8 + $0x130] sm:$0xff]  ;;  %v2575_v1 = vpack.c.bf16 %v1729_v0, %v1728_v22 }
 0xbbe   :  { %v2553_v21 = vpack.c.bf16 %v1750_v8, %v1749_v7  ;;  %v1730_v7 = vld [vmem:[#allocation8 + $0xa0] sm:$0xff]  ;;  %v1731_v8 = vld [vmem:[#allocation8 + $0xa8] sm:$0xff] }
 0xbc0   :  { %2474 = vmatpush1.bf16.msra.mxu0 %v2473_v16  ;;  %v1768_v16 = vld [vmem:[#allocation8 + $0x1c8] sm:$0xff] }
 0xbc1   :  { %2540 = vmatprep.subr.bf16.mxu0 %v2539_v60  ;;  %v2555_v60 = vpack.c.bf16 %v1768_v16, %v1767_v11  ;;  %v2579_v11 = vpack.c.bf16 %v1731_v8, %v1730_v7  ;;  %v1714_v16 = vld [vmem:[#allocation8 + $0x20] sm:$0xff] }
 0xc33   :  { %v1304_v23 = vpop.xlane.xlu0 %1303 }
 0xc34   :  { %v1305_v24 = vmul.f32 0.00390625, %v1304_v23  ;;  %v1751_v23 = vld [vmem:[#allocation8 + $0x140] sm:$0xff] }
 0xc36   :  { %v1306_v13 = vadd.f32 1e-05, %v1305_v24  ;;  %v1752_v24 = vld [vmem:[#allocation8 + $0x148] sm:$0xff] }
 0xc37   :  { %v2557_v14 = vpack.c.bf16 %v1752_v24, %v1751_v23  ;;  %v1733_v23 = vld [vmem:[#allocation8 + $0xb8] sm:$0xff]  ;;  %v1716_v24 = vld [vmem:[#allocation8 + $0x30] sm:$0xff] }
 0xc38   :  { %2651 = vrsqrt.f32 %v1306_v13  ;;  %v1769_v13 = vld [vmem:[#allocation8 + $0x1d0] sm:$0xff] }
 0xc39   :  { %2653 = verf.f32 %v1703_v12  ;;  %v2559_v27 = vpack.c.bf16 %v1770_v59, %v1769_v13  ;;  %v1717_v59 = vld [vmem:[#allocation8 + $0x38] sm:$0xff] }
 0xc42   :  { %v2652_v33 = vpop.eup %2651 }
 0xc43   :  { %v1308_v34 = vmul.f32 %v2652_v33, %v3114_v19  ;;  %v1309_v36 = vmul.f32 %v2652_v33, %v3117_v20  ;;  %v2654_v41 = vpop.eup %2653  ;;  %v1744_v19 = vld [vmem:[#allocation8 + $0x108] sm:$0xff] }
 0xc44   :  { %v1707_v20 = vadd.f32 1.0, %v2654_v41  ;;  %v2541_v51 = vpack.c.bf16 %v1744_v19, %v1743_v43  ;;  %v1700_v41 = vmul.f32 0.5, %v1696_v2  ;;  %v1412_v43 = vld [vmem:[#allocation10 + $0x20] ss:$8 sm:$0x3]  ;;  %v1712_v2 = vld [vmem:[#allocation8 + $0x10] sm:$0xff] }
 0xc45   :  { %v1322_v38 = vmul.f32 %v1318_v32, %v1309_v36  ;;  %v1321_v9 = vmul.f32 %v1314_v31, %v1308_v34  ;;  %v1772_v31 = vld [vmem:[#allocation8 + $0x1e8] sm:$0xff]  ;;  %v2561_v32 = vpack.c.bf16 %v1754_v29, %v1753_v28  ;;  %v1755_v34 = vld [vmem:[#allocation8 + $0x160] sm:$0xff]  ;;  %v1417_v19 = vrot.slane %v1412_v43, %v3003_v4 }
 0xc46   :  { %v1709_v56 = vmul.f32 %v1707_v20, %v1701_v49  ;;  %v2563_v33 = vpack.c.bf16 %v1772_v31, %v1771_v30  ;;  %v1756_v36 = vld [vmem:[#allocation8 + $0x168] sm:$0xff]  ;;  %v2585_v28 = vpack.c.bf16 %v1717_v59, %v1716_v24  ;;  %v1718_v30 = vld [vmem:[#allocation8 + $0x40] sm:$0xff] }
 0xc47   :  { %v1335_v39 = vadd.f32 %v1331_v37, %v1322_v38  ;;  %v1334_v10 = vadd.f32 %v1327_v35, %v1321_v9  ;;  %v1773_v35 = vld [vmem:[#allocation8 + $0x1f0] sm:$0xff]  ;;  %v1774_v37 = vld [vmem:[#allocation8 + $0x1f8] sm:$0xff]  ;;  %v2565_v12 = vpack.c.bf16 %v1756_v36, %v1755_v34  ;;  %v1719_v31 = vld [vmem:[#allocation8 + $0x48] sm:$0xff] }
 0xc48   :  { %v2567_v38 = vpack.c.bf16 %v1774_v37, %v1773_v35  ;;  %v1757_v9 = vld [vmem:[#allocation8 + $0x170] sm:$0xff]  ;;  %v2589_v34 = vpack.c.bf16 %v1719_v31, %v1718_v30  ;;  %v1721_v37 = vld [vmem:[#allocation8 + $0x58] sm:$0xff] }
 0xc49   :  { %v1339_v15 = vmul.f32 0.70710677, %v1335_v39  ;;  %v1338_v40 = vmul.f32 0.70710677, %v1334_v10  ;;  %v1337_v45 = vmul.f32 0.5, %v1335_v39  ;;  %v1336_v48 = vmul.f32 0.5, %v1334_v10 }
 0xc4a   :  { %v1758_v39 = vld [vmem:[#allocation8 + $0x178] sm:$0xff]  ;;  %v1720_v35 = vld [vmem:[#allocation8 + $0x50] sm:$0xff] }
 0xc4b   :  { %2655 = verf.f32 %v1339_v15  ;;  %v2569_v15 = vpack.c.bf16 %v1758_v39, %v1757_v9  ;;  %v2593_v9 = vpack.c.bf16 %v1721_v37, %v1720_v35 }
 0xc4c   :  { %2657 = verf.f32 %v1338_v40 }
 0xc4d   :  { %2659 = verf.f32 %v1702_v17  ;;  %v1715_v17 = vld [vmem:[#allocation8 + $0x28] sm:$0xff] }
 0xc55   :  { %v2656_v42 = vpop.eup %2655 }
 0xc56   :  { %v2658_v44 = vpop.eup %2657  ;;  %v1343_v46 = vadd.f32 1.0, %v2656_v42 }
 0xc57   :  { %v1342_v26 = vadd.f32 1.0, %v2658_v44  ;;  %v2660_v10 = vpop.eup %2659  ;;  %v1421_v44 = vrot.slane %v1412_v43, %v3005_v5 }
 0xc58   :  { %v1345_v50 = vmul.f32 %v1343_v46, %v1337_v45  ;;  %v1706_v40 = vadd.f32 1.0, %v2660_v10  ;;  %v1722_v10 = vld [vmem:[#allocation8 + $0x60] sm:$0xff] }
 0xc59   :  { %v1344_v52 = vmul.f32 %v1342_v26, %v1336_v48 }
 0xc5a   :  { %1488 = vmatprep.mubr.f32.mxu0 %v1345_v50  ;;  %v1708_v42 = vmul.f32 %v1706_v40, %v1700_v41  ;;  %v1740_v40 = vld [vmem:[#allocation8 + $0xf0] sm:$0xff]  ;;  %v1741_v41 = vld [vmem:[#allocation8 + $0xf8] sm:$0xff] }
 0xc5b   :  { %1489 = vmatmul.mubr.f32.vlgmr.msra.gmra.mrb[6].mxu0 %v1344_v52  ;;  %v2599_v43 = vpack.c.bf16 %v1741_v41, %v1740_v40 }
 0xc5c   :  { %2542 = vmatpush3.bf16.msra.mxu0 %v2541_v51  ;;  %1839 = vmatprep.mubr.f32.mxu0 %v1709_v56 }
 0xc5d   :  { %2544 = vmatprep.subr.bf16.mxu0 %v2543_v53 }
 0xc60   :  { %2546 = vmatpush3.bf16.msra.mxu0 %v2545_v61  ;;  %v1710_v61 = vld [vmem:[#allocation8] sm:$0xff] }
 0xc61   :  { %2548 = vmatprep.subr.bf16.mxu0 %v2547_v62  ;;  %v1711_v62 = vld [vmem:[#allocation8 + $0x8] sm:$0xff] }
 0xc62   :  { %v2573_v63 = vpack.c.bf16 %v1711_v62, %v1710_v61 }
 0xc64   :  { %2550 = vmatpush3.bf16.msra.mxu0 %v2549_v3  ;;  %2574 = vmatpush3.bf16.msra.mxu1 %v2573_v63  ;;  %v1713_v3 = vld [vmem:[#allocation8 + $0x18] sm:$0xff] }
 0xc65   :  { %2552 = vmatprep.subr.bf16.mxu0 %v2551_v6  ;;  %v2577_v6 = vpack.c.bf16 %v1713_v3, %v1712_v2  ;;  %2576 = vmatprep.subr.bf16.mxu1 %v2575_v1 }
 0xc68   :  { %2554 = vmatpush3.bf16.msra.mxu0 %v2553_v21  ;;  %2578 = vmatpush3.bf16.msra.mxu1 %v2577_v6  ;;  %v2581_v21 = vpack.c.bf16 %v1715_v17, %v1714_v16 }
 0xc69   :  { %2556 = vmatprep.subr.bf16.mxu0 %v2555_v60  ;;  %v1732_v60 = vld [vmem:[#allocation8 + $0xb0] sm:$0xff]  ;;  %2580 = vmatprep.subr.bf16.mxu1 %v2579_v11 }
 0xc6a   :  { %v2583_v13 = vpack.c.bf16 %v1733_v23, %v1732_v60 }
 0xc6c   :  { %2558 = vmatpush3.bf16.msra.mxu0 %v2557_v14  ;;  %v1734_v14 = vld [vmem:[#allocation8 + $0xc0] sm:$0xff]  ;;  %2582 = vmatpush3.bf16.msra.mxu1 %v2581_v21 }
 0xc6d   :  { %2560 = vmatprep.subr.bf16.mxu0 %v2559_v27  ;;  %v1735_v27 = vld [vmem:[#allocation8 + $0xc8] sm:$0xff]  ;;  %2584 = vmatprep.subr.bf16.mxu1 %v2583_v13 }
 0xc6e   :  { %v2587_v29 = vpack.c.bf16 %v1735_v27, %v1734_v14 }
 0xc70   :  { %2562 = vmatpush3.bf16.msra.mxu0 %v2561_v32  ;;  %v1736_v32 = vld [vmem:[#allocation8 + $0xd0] sm:$0xff]  ;;  %2586 = vmatpush3.bf16.msra.mxu1 %v2585_v28 }
 0xc71   :  { %2564 = vmatprep.subr.bf16.mxu0 %v2563_v33  ;;  %v1737_v33 = vld [vmem:[#allocation8 + $0xd8] sm:$0xff]  ;;  %2588 = vmatprep.subr.bf16.mxu1 %v2587_v29 }
 0xc72   :  { %v2591_v36 = vpack.c.bf16 %v1737_v33, %v1736_v32 }
 0xc74   :  { %2566 = vmatpush3.bf16.msra.mxu0 %v2565_v12  ;;  %v1738_v12 = vld [vmem:[#allocation8 + $0xe0] sm:$0xff]  ;;  %2590 = vmatpush3.bf16.msra.mxu1 %v2589_v34 }
 0xc75   :  { %2568 = vmatprep.subr.bf16.mxu0 %v2567_v38  ;;  %v1739_v38 = vld [vmem:[#allocation8 + $0xe8] sm:$0xff]  ;;  %2592 = vmatprep.subr.bf16.mxu1 %v2591_v36 }
 0xc76   :  { %v2595_v39 = vpack.c.bf16 %v1739_v38, %v1738_v12 }
 0xc78   :  { %2570 = vmatpush3.bf16.msra.mxu0 %v2569_v15  ;;  %v1723_v15 = vld [vmem:[#allocation8 + $0x68] sm:$0xff]  ;;  %2594 = vmatpush3.bf16.msra.mxu1 %v2593_v9 }
 0xc79   :  { %2596 = vmatprep.subr.bf16.mxu1 %v2595_v39 }
 0xc7b   :  { %1840 = vmatmul.mubr.f32.vlgmr.msra.gmra.mrb[8].mxu0 %v1708_v42  ;;  %v2597_v42 = vpack.c.bf16 %v1723_v15, %v1722_v10 }
 0xc7d   :  { %2598 = vmatpush3.bf16.msra.mxu1 %v2597_v42 }
 0xc7e   :  { %2600 = vmatprep.subr.bf16.mxu1 %v2599_v43 }
 0xd2e   :  { %v1490_v20 = vpop.f32.mrb[6].mxu0 }
 0xd2f   :  { %v1491_v45 = vadd.f32 %v1490_v20, %v1417_v19  ;;  %v1492_v46 = vpop.f32.mrb[7].mxu0  ;;  %v1724_v19 = vld [vmem:[#allocation8 + $0x70] sm:$0xff] }
 0xd30   :  { %v1493_v47 = vadd.f32 %v1492_v46, %v1421_v44  ;;  %v1725_v44 = vld [vmem:[#allocation8 + $0x78] sm:$0xff] }
 0xd31   :  { %v2601_v20 = vpack.c.bf16 %v1725_v44, %v1724_v19 }
 0xd32   :  { %v1499_v25 = vadd.f32 %v1493_v47, %v1491_v45 }
 0xd33   :  { %2602 = vmatpush3.bf16.msra.mxu1 %v2601_v20 }
 0xd34   :  { %1500 = vadd.xlane.f32.xlu1 %v1499_v25  ;;  %v1496_v25 = vld [vmem:[#allocation10 + $0x21] ss:$8 sm:$0x3] }
 0xd4e   :  { %v1989_v48 = vpop.f32.mrb[8].mxu0 }
 0xd4f   :  { %v1990_v26 = vpop.f32.mrb[9].mxu0 }
 0xd50   :  { %v3135_v49 = vadd.f32 %v1990_v26, %v1989_v48  ;;  %v1498_v48 = vld [vmem:[#allocation10 + $0x22] ss:$8 sm:$0x3]  ;;  %v1519_v26 = vrot.slane %v1496_v25, %v3003_v4 }
 0xd51   :  { %v1536_v18 = vrot.slane %v1498_v48, %v3005_v5 }
 0xdc1   :  { %v1501_v50 = vpop.xlane.xlu1 %1500 }
 0xdc2   :  { %v1502_v51 = vmul.f32 0.00390625, %v1501_v50  ;;  %v1523_v50 = vrot.slane %v1496_v25, %v3005_v5 }
 0xdc4   :  { %v3137_v52 = vsub.f32 %v1491_v45, %v1502_v51  ;;  %v3139_v53 = vsub.f32 %v1493_v47, %v1502_v51 }
 0xdc6   :  { %v1505_v54 = vmul.f32 %v3137_v52, %v3137_v52  ;;  %v1506_v55 = vmul.f32 %v3139_v53, %v3139_v53 }
 0xdc8   :  { %v1507_v56 = vadd.f32 %v1506_v55, %v1505_v54 }
 0xdca   :  { %1508 = vadd.xlane.f32.xlu0 %v1507_v56  ;;  %v1532_v56 = vrot.slane %v1498_v48, %v3003_v4 }
 0xe57   :  { %v1509_v45 = vpop.xlane.xlu0 %1508 }
 0xe58   :  { %v1510_v46 = vmul.f32 0.00390625, %v1509_v45 }
 0xe5a   :  { %v1511_v47 = vadd.f32 1e-05, %v1510_v46 }
 0xe5c   :  { %2661 = vrsqrt.f32 %v1511_v47 }
 0xe66   :  { %v2662_v51 = vpop.eup %2661 }
 0xe67   :  { %v1513_v54 = vmul.f32 %v2662_v51, %v3137_v52  ;;  %v1514_v55 = vmul.f32 %v2662_v51, %v3139_v53 }
 0xe69   :  { %v1527_v57 = vmul.f32 %v1523_v50, %v1514_v55  ;;  %v1526_v58 = vmul.f32 %v1519_v26, %v1513_v54 }
 0xe6b   :  { %v1540_v61 = vadd.f32 %v1536_v18, %v1527_v57  ;;  %v1539_v62 = vadd.f32 %v1532_v56, %v1526_v58 }
 0xe6d   :  { %v1544_v63 = vmul.f32 0.70710677, %v1540_v61  ;;  %v1543_v22 = vmul.f32 0.70710677, %v1539_v62  ;;  %v1542_v2 = vmul.f32 0.5, %v1540_v61  ;;  %v1541_v6 = vmul.f32 0.5, %v1539_v62 }
 0xe6f   :  { %2663 = verf.f32 %v1544_v63 }
 0xe70   :  { %2665 = verf.f32 %v1543_v22 }
 0xe79   :  { %v2664_v0 = vpop.eup %2663 }
 0xe7a   :  { %v2666_v1 = vpop.eup %2665  ;;  %v1548_v3 = vadd.f32 1.0, %v2664_v0 }
 0xe7b   :  { %v1547_v52 = vadd.f32 1.0, %v2666_v1 }
 0xe7c   :  { %v1550_v7 = vmul.f32 %v1548_v3, %v1542_v2 }
 0xe7d   :  { %v1549_v53 = vmul.f32 %v1547_v52, %v1541_v6 }
 0xe7e   :  { %1909 = vmatprep.mubr.f32.mxu1 %v1550_v7 }
 0xe7f   :  { %1910 = vmatmul.mubr.f32.vlgmr.msra.gmra.mrb[8].mxu1 %v1549_v53 }
 0xe80   :  { %2810 = shalt.err (!%p2807_p10)
}
 0xe81   :  { %s2811_s19 = scalar_lea.hbm %s3184_s8, 256 }
 0xe82   :  { %p2812_p11 = scmp.ne.s32.totalorder %s3184_s8, %s2811_s19  ;;  %p2815_p12 = scmp.lt.u32.totalorder %s2811_s19, %s3184_s8 }
 0xe84   :  { %p2817_p13 = pnand %p2815_p12, %p2812_p11 }
 0xe86   :  { %2820 = shalt.err (!%p2817_p13)
}
 0xe87   :  { %1943 = dma.vmem_to_hbm [thread:$0]  %s1941_s6, 256, %s3184_s8, [#allocation15]   ;;  %v1956_v11 = vld [vmem:[#allocation11] ss:$0 sm:$0xff] }
 0xe88   :  { %s2869_s25 = smov [#allocation13]  }
 0xe89   :  { %s1930_s3 = sshll.u32 %s2869_s25, 4  ;;  %s1931_s3 = int_to_ptr.vmem [resolvable:$true] %s1930_s3 }
 0xe8a   :  { %s2821_s13 = scalar_lea.vmem %s1931_s3, 128  ;;  %p2826_p1 = scmp.lt.s32.totalorder %s1931_s3, %s1931_s3 }
 0xe8b   :  { %p2822_p0 = scmp.ne.s32.totalorder %s1931_s3, %s2821_s13  ;;  %p2827_p2 = scmp.lt.s32.totalorder %s2821_s13, %s2821_s13 }
 0xe8d   :  { %p2828_p3 = por %p2827_p2, %p2826_p1 }
 0xe8f   :  { %p2829_p4 = pnand %p2828_p3, %p2822_p0 }
 0xf52   :  { %v2024_v4 = vpop.f32.mrb[8].mxu1 }
 0xf53   :  { %v2025_v5 = vpop.f32.mrb[9].mxu1 }
 0xf54   :  { %v2026_v8 = vadd.f32 %v2025_v5, %v2024_v4 }
 0xf56   :  { %v1912_v16 = vadd.f32 %v2026_v8, %v3135_v49 }
 0xf58   :  { %v1922_v17 = vadd.f32 %v1956_v11, %v1912_v16 }
 0xf5a   :  { %1923 = vst [vmem:[#allocation13] sm:$0xff] %v1922_v17 }
 0xf5b   :  { %2832 = shalt.err (!%p2829_p4)
}
 0xf5c   :  { %s2833_s27 = scalar_lea.hbm %s3183_s7, 128 }
 0xf5d   :  { %p2834_p5 = scmp.ne.s32.totalorder %s3183_s7, %s2833_s27  ;;  %p2837_p6 = scmp.lt.u32.totalorder %s2833_s27, %s3183_s7 }
 0xf5f   :  { %p2839_p7 = pnand %p2837_p6, %p2834_p5 }
 0xf61   :  { %2842 = shalt.err (!%p2839_p7)
}
 0xf62   :  { %1933 = dma.vmem_to_hbm [thread:$0]  %s1931_s3, 128, %s3183_s7, [#allocation4]  }
 0xf63   :  { %2851 = dma.done.wait [#allocation4], 128  }
 0xf64   :  { %2852 = vsyncadd [#allocation4], 4294967168 }
 0xf65   :  { %2853 = dma.done.wait [#allocation15], 256  }
 0xf66   :  { %2854 = vsyncadd [#allocation15], 4294967040 }
 0xf67   :  { %1950 = vsyncpa [#allocation3], 1 }
 0xf68   :  { %1951 = vsyncpa [#allocation6], 1 }
 0xf69   :  { %1952 = vsyncpa [#allocation9], 1 }
 0xf6a   :  { %1953 = vsyncpa [#allocation12], 1 }
 0xf6b   :  { %1954 = vsyncpa [#allocation4], 1 }
 0xf6c   :  { %1955 = vsyncpa [#allocation15], 1 }

// kernel: tpu_custom_call.1
= control target key start
LH: loop header
LB: loop body
LE: loop exit
PB: predicated region body
PF: predicated region fallthrough
CT: control target
= control target key end

     0   :  { %14 = vsyncpa [#allocation3], 0  ;;  %s3176_s0 = inlined_call_operand.vmem [shape: f32[8,1], index: 0, kind: input, shape index: {}]   ;;  %s3177_s1 = inlined_call_operand.hbm [shape: f32[1,256], index: 1, kind: input, shape index: {}]   ;;  %s3178_s2 = inlined_call_operand.hbm [shape: f32[6,256,256], index: 2, kind: input, shape index: {}]   ;;  %s3179_s3 = inlined_call_operand.hbm [shape: f32[256,512], index: 3, kind: input, shape index: {}]   ;;  %s3180_s4 = inlined_call_operand.hbm [shape: f32[2,256,128], index: 4, kind: input, shape index: {}]   ;;  %s3181_s5 = inlined_call_operand.hbm [shape: f32[21,256], index: 5, kind: input, shape index: {}]   ;;  %s3182_s6 = inlined_call_operand.hbm [shape: f32[1,128], index: 6, kind: input, shape index: {}]   ;;  %s3183_s7 = inlined_call_operand.hbm [shape: f32[8,128], index: 7, kind: output, shape index: {0}]   ;;  %s3184_s8 = inlined_call_operand.hbm [shape: f32[8,256], index: 8, kind: output, shape index: {1}]  }
   0x1   :  { %15 = vsyncpa [#allocation6], 0 }
   0x2   :  { %16 = vsyncpa [#allocation9], 0 }
   0x3   :  { %17 = vsyncpa [#allocation12], 0 }
   0x4   :  { %18 = vsyncpa [#allocation4], 0 }
   0x5   :  { %19 = vsyncpa [#allocation15], 0  ;;  %s2855_s27 = smov [#allocation5]   ;;  %s2667_s9 = scalar_lea.hbm %s3178_s2, 49152 }
   0x6   :  { %s37_s28 = sshll.u32 %s2855_s27, 4  ;;  %p2668_p0 = scmp.ne.s32.totalorder %s3178_s2, %s2667_s9  ;;  %s38_s28 = int_to_ptr.vmem [resolvable:$true] %s37_s28 }
   0x7   :  { %p2671_p1 = scmp.lt.u32.totalorder %s2667_s9, %s3178_s2 }
   0x9   :  { %p2673_p2 = pnand %p2671_p1, %p2668_p0 }
   0xb   :  { %2676 = shalt.err (!%p2673_p2)
}
   0xc   :  { %s2677_s14 = scalar_lea.vmem %s38_s28, 49152  ;;  %p2682_p4 = scmp.lt.s32.totalorder %s38_s28, %s38_s28 }
   0xd   :  { %p2678_p3 = scmp.ne.s32.totalorder %s38_s28, %s2677_s14  ;;  %p2683_p5 = scmp.lt.s32.totalorder %s2677_s14, %s2677_s14 }
   0xf   :  { %p2684_p6 = por %p2683_p5, %p2682_p4 }
  0x11   :  { %p2685_p7 = pnand %p2684_p6, %p2678_p3 }
  0x13   :  { %2688 = shalt.err (!%p2685_p7)
}
  0x14   :  { %s2856_s15 = smov 256   ;;  %s2857_s16 = smov 16  }
  0x15   :  { %43 = dma.hbm_to_vmem [thread:$0]  %s3178_s2, 49152, %s38_s28, [#allocation6], %s2856_s15, %s2856_s15, %s2857_s16  }
  0x16   :  { %s2858_s19 = smov [#allocation8]   ;;  %s2689_s23 = scalar_lea.hbm %s3180_s4, 8192 }
  0x17   :  { %s61_s20 = sshll.u32 %s2858_s19, 4  ;;  %p2690_p8 = scmp.ne.s32.totalorder %s3180_s4, %s2689_s23  ;;  %s62_s20 = int_to_ptr.vmem [resolvable:$true] %s61_s20 }
  0x18   :  { %p2693_p9 = scmp.lt.u32.totalorder %s2689_s23, %s3180_s4 }
  0x1a   :  { %p2695_p10 = pnand %p2693_p9, %p2690_p8 }
  0x1c   :  { %2698 = shalt.err (!%p2695_p10)
}
  0x1d   :  { %s2699_s29 = scalar_lea.vmem %s62_s20, 8192  ;;  %p2704_p12 = scmp.lt.s32.totalorder %s62_s20, %s62_s20 }
  0x1e   :  { %p2700_p11 = scmp.ne.s32.totalorder %s62_s20, %s2699_s29  ;;  %p2705_p13 = scmp.lt.s32.totalorder %s2699_s29, %s2699_s29 }
  0x20   :  { %p2706_p0 = por %p2705_p13, %p2704_p12 }
  0x22   :  { %p2707_p1 = pnand %p2706_p0, %p2700_p11 }
  0x24   :  { %2710 = shalt.err (!%p2707_p1)
}
  0x25   :  { %s2859_s2 = smov 128   ;;  %s2860_s28 = smov 8  }
  0x26   :  { %67 = dma.hbm_to_vmem [thread:$0]  %s3180_s4, 8192, %s62_s20, [#allocation9], %s2859_s2, %s2859_s2, %s2860_s28  }
  0x27   :  { %s2861_s10 = smov [#allocation2]   ;;  %s2862_s12 = smov [#allocation7]  }
  0x28   :  { %s28_s11 = sshll.u32 %s2861_s10, 4  ;;  %s49_s13 = sshll.u32 %s2862_s12, 4  ;;  %s29_s11 = int_to_ptr.vmem [resolvable:$true] %s28_s11  ;;  %s2942_s13 = int_to_ptr.vmem [resolvable:$true] %s49_s13 }
  0x29   :  { %s2711_s18 = scalar_lea.hbm %s3177_s1, 32 }
  0x2a   :  { %p2712_p2 = scmp.ne.s32.totalorder %s3177_s1, %s2711_s18  ;;  %p2715_p3 = scmp.lt.u32.totalorder %s2711_s18, %s3177_s1 }
  0x2c   :  { %p2717_p4 = pnand %p2715_p3, %p2712_p2 }
  0x2e   :  { %2720 = shalt.err (!%p2717_p4)
}
  0x2f   :  { %s2721_s4 = scalar_lea.vmem %s29_s11, 32  ;;  %p2726_p6 = scmp.lt.s32.totalorder %s29_s11, %s29_s11 }
  0x30   :  { %p2722_p5 = scmp.ne.s32.totalorder %s29_s11, %s2721_s4  ;;  %p2727_p7 = scmp.lt.s32.totalorder %s2721_s4, %s2721_s4 }
  0x32   :  { %p2728_p8 = por %p2727_p7, %p2726_p6 }
  0x34   :  { %p2729_p9 = pnand %p2728_p8, %p2722_p5 }
  0x36   :  { %2732 = shalt.err (!%p2729_p9)
}
  0x37   :  { %31 = dma.hbm_to_vmem [thread:$0]  %s3177_s1, 32, %s29_s11, [#allocation3]  }
  0x38   :  { %s2733_s27 = scalar_lea.hbm %s3179_s3, 16384 }
  0x39   :  { %p2734_p10 = scmp.ne.s32.totalorder %s3179_s3, %s2733_s27  ;;  %p2737_p11 = scmp.lt.u32.totalorder %s2733_s27, %s3179_s3 }
  0x3b   :  { %p2739_p12 = pnand %p2737_p11, %p2734_p10 }
  0x3d   :  { %2742 = shalt.err (!%p2739_p12)
}
  0x3e   :  { %s2743_s9 = scalar_lea.vmem %s2942_s13, 16384  ;;  %p2748_p0 = scmp.lt.s32.totalorder %s2942_s13, %s2942_s13 }
  0x3f   :  { %p2744_p13 = scmp.ne.s32.totalorder %s2942_s13, %s2743_s9  ;;  %p2749_p1 = scmp.lt.s32.totalorder %s2743_s9, %s2743_s9 }
  0x41   :  { %p2750_p2 = por %p2749_p1, %p2748_p0 }
  0x43   :  { %p2751_p3 = pnand %p2750_p2, %p2744_p13 }
  0x45   :  { %2754 = shalt.err (!%p2751_p3)
}
  0x46   :  { %s2863_s1 = smov 512   ;;  %s2864_s10 = smov 32  }
  0x47   :  { %55 = dma.hbm_to_vmem [thread:$0]  %s3179_s3, 16384, %s2942_s13, [#allocation6], %s2863_s1, %s2863_s1, %s2864_s10  }
  0x48   :  { %s2865_s14 = smov [#allocation10]   ;;  %s2866_s18 = smov [#allocation11]  }
  0x49   :  { %s73_s17 = sshll.u32 %s2865_s14, 4  ;;  %s86_s19 = sshll.u32 %s2866_s18, 4  ;;  %s74_s17 = int_to_ptr.vmem [resolvable:$true] %s73_s17  ;;  %s87_s19 = int_to_ptr.vmem [resolvable:$true] %s86_s19 }
  0x4a   :  { %s2755_s23 = scalar_lea.hbm %s3181_s5, 768 }
  0x4b   :  { %p2756_p4 = scmp.ne.s32.totalorder %s3181_s5, %s2755_s23  ;;  %p2759_p5 = scmp.lt.u32.totalorder %s2755_s23, %s3181_s5 }
  0x4d   :  { %p2761_p6 = pnand %p2759_p5, %p2756_p4 }
  0x4f   :  { %2764 = shalt.err (!%p2761_p6)
}
  0x50   :  { %s2765_s3 = scalar_lea.vmem %s74_s17, 768  ;;  %p2770_p8 = scmp.lt.s32.totalorder %s74_s17, %s74_s17 }
  0x51   :  { %p2766_p7 = scmp.ne.s32.totalorder %s74_s17, %s2765_s3  ;;  %p2771_p9 = scmp.lt.s32.totalorder %s2765_s3, %s2765_s3 }
  0x53   :  { %p2772_p10 = por %p2771_p9, %p2770_p8 }
  0x55   :  { %p2773_p11 = pnand %p2772_p10, %p2766_p7 }
  0x57   :  { %2776 = shalt.err (!%p2773_p11)
}
  0x58   :  { %79 = dma.hbm_to_vmem [thread:$0]  %s3181_s5, 768, %s74_s17, [#allocation9], %s2856_s15, %s2856_s15, %s2857_s16  }
  0x59   :  { %s2777_s2 = scalar_lea.hbm %s3182_s6, 16 }
  0x5a   :  { %p2778_p12 = scmp.ne.s32.totalorder %s3182_s6, %s2777_s2  ;;  %p2781_p13 = scmp.lt.u32.totalorder %s2777_s2, %s3182_s6 }
  0x5c   :  { %p2783_p0 = pnand %p2781_p13, %p2778_p12 }
  0x5e   :  { %2786 = shalt.err (!%p2783_p0)
}
  0x5f   :  { %s2787_s10 = scalar_lea.vmem %s87_s19, 16  ;;  %s2791_s11 = scalar_lea.vmem %s87_s19, 32 }
  0x60   :  { %p2788_p1 = scmp.ne.s32.totalorder %s87_s19, %s2787_s10  ;;  %p2792_p2 = scmp.lt.s32.totalorder %s87_s19, %s87_s19 }
  0x61   :  { %p2793_p3 = scmp.lt.s32.totalorder %s2791_s11, %s2787_s10 }
  0x63   :  { %p2794_p4 = por %p2793_p3, %p2792_p2 }
  0x65   :  { %p2795_p5 = pnand %p2794_p4, %p2788_p1 }
  0x67   :  { %2798 = shalt.err (!%p2795_p5)
}
  0x68   :  { %89 = dma.hbm_to_vmem [thread:$0]  %s3182_s6, 16, %s87_s19, [#allocation12]  }
  0x69   :  { %2843 = dma.done.wait [#allocation3], 32  }
  0x6a   :  { %2844 = vsyncadd [#allocation3], 4294967264 }
  0x6b   :  { %2845 = dma.done.wait [#allocation6], 65536  }
  0x6c   :  { %2846 = vsyncadd [#allocation6], 4294901760 }
  0x6d   :  { %2847 = dma.done.wait [#allocation9], 8960  }
  0x6e   :  { %2848 = vsyncadd [#allocation9], 4294958336 }
  0x6f   :  { %2849 = dma.done.wait [#allocation12], 16  }
  0x70   :  { %2850 = vsyncadd [#allocation12], 4294967280  ;;  %v2867_v0 = vmov 0   ;;  %v108_v1 = vld [vmem:[%s3176_s0] sm:$0xff]  ;;  %v116_v2 = vlaneseq  ;;  %v200_v18 = vld [vmem:[#allocation5 + $0x8] sm:$0xff]  ;;  %s2868_s0 = smov [#allocation14]  }
  0x71   :  { %2618 = vset.pattern.permute.xlu0 %v2867_v0  ;;  %v109_v6 = vld [vmem:[#allocation2] sm:$0x3]  ;;  %v128_v7 = vld [vmem:[#allocation10] ss:$8 sm:$0x3]  ;;  %v201_v22 = vld [vmem:[#allocation5 + $0x10] sm:$0xff] }
  0x72   :  { %112 = vperm.xlu0 %2618, %v108_v1   ;;  %v117_v3 = vshrl.u32 %v116_v2, 7  ;;  %v202_v19 = vld [vmem:[#allocation5 + $0x18] sm:$0xff]  ;;  %v199_v20 = vld [vmem:[#allocation5] sm:$0xff]  ;;  %v204_v23 = vld [vmem:[#allocation5 + $0x28] sm:$0xff]  ;;  %s1940_s6 = sshll.u32 %s2868_s0, 4  ;;  %s1941_s6 = int_to_ptr.vmem [resolvable:$true] %s1940_s6 }
  0x73   :  { %v2027_v21 = vpack.c.bf16 %v202_v19, %v200_v18  ;;  %v206_v24 = vld [vmem:[#allocation5 + $0x38] sm:$0xff]  ;;  %v2029_v25 = vpack.c.bf16 %v201_v22, %v199_v20  ;;  %v203_v27 = vld [vmem:[#allocation5 + $0x20] sm:$0xff]  ;;  %v205_v28 = vld [vmem:[#allocation5 + $0x30] sm:$0xff]  ;;  %s2799_s14 = scalar_lea.vmem %s1941_s6, 256  ;;  %p2804_p7 = scmp.lt.s32.totalorder %s1941_s6, %s1941_s6 }
  0x74   :  { %v3003_v4 = vsub.s32 0, %v117_v3  ;;  %v3005_v5 = vsub.s32 1, %v117_v3  ;;  %v2031_v26 = vpack.c.bf16 %v206_v24, %v204_v23  ;;  %v208_v29 = vld [vmem:[#allocation5 + $0x48] sm:$0xff]  ;;  %v210_v30 = vld [vmem:[#allocation5 + $0x58] sm:$0xff]  ;;  %v2033_v31 = vpack.c.bf16 %v205_v28, %v203_v27  ;;  %v207_v33 = vld [vmem:[#allocation5 + $0x40] sm:$0xff]  ;;  %p2800_p6 = scmp.ne.s32.totalorder %s1941_s6, %s2799_s14  ;;  %p2805_p8 = scmp.lt.s32.totalorder %s2799_s14, %s2799_s14 }
  0x75   :  { %2028 = vmatprep.subr.bf16.mxu0 %v2027_v21  ;;  %v2035_v32 = vpack.c.bf16 %v210_v30, %v208_v29  ;;  %v209_v34 = vld [vmem:[#allocation5 + $0x50] sm:$0xff]  ;;  %v212_v35 = vld [vmem:[#allocation5 + $0x68] sm:$0xff]  ;;  %v214_v36 = vld [vmem:[#allocation5 + $0x78] sm:$0xff] }
  0x76   :  { %v119_v8 = vrot.slane %v109_v6, %v3003_v4  ;;  %v123_v9 = vrot.slane %v109_v6, %v3005_v5  ;;  %v133_v10 = vrot.slane %v128_v7, %v3003_v4  ;;  %v137_v11 = vrot.slane %v128_v7, %v3005_v5  ;;  %2030 = vmatpush1.bf16.msra.mxu0 %v2029_v25  ;;  %v211_v39 = vld [vmem:[#allocation5 + $0x60] sm:$0xff]  ;;  %v213_v40 = vld [vmem:[#allocation5 + $0x70] sm:$0xff]  ;;  %v216_v41 = vld [vmem:[#allocation5 + $0x88] sm:$0xff]  ;;  %p2806_p9 = por %p2805_p8, %p2804_p7 }
  0x77   :  { %2032 = vmatprep.subr.bf16.mxu0 %v2031_v26  ;;  %v2037_v37 = vpack.c.bf16 %v209_v34, %v207_v33  ;;  %v2039_v38 = vpack.c.bf16 %v214_v36, %v212_v35  ;;  %v218_v42 = vld [vmem:[#allocation5 + $0x98] sm:$0xff]  ;;  %v2041_v43 = vpack.c.bf16 %v213_v40, %v211_v39  ;;  %v215_v45 = vld [vmem:[#allocation5 + $0x80] sm:$0xff]  ;;  %v217_v46 = vld [vmem:[#allocation5 + $0x90] sm:$0xff] }
  0x78   :  { %v2043_v44 = vpack.c.bf16 %v218_v42, %v216_v41  ;;  %v220_v47 = vld [vmem:[#allocation5 + $0xa8] sm:$0xff]  ;;  %v222_v48 = vld [vmem:[#allocation5 + $0xb8] sm:$0xff]  ;;  %v2045_v49 = vpack.c.bf16 %v217_v46, %v215_v45  ;;  %v219_v51 = vld [vmem:[#allocation5 + $0xa0] sm:$0xff]  ;;  %p2807_p10 = pnand %p2806_p9, %p2800_p6 }
  0x79   :  { %v2047_v50 = vpack.c.bf16 %v222_v48, %v220_v47  ;;  %v221_v52 = vld [vmem:[#allocation5 + $0xb0] sm:$0xff]  ;;  %v224_v53 = vld [vmem:[#allocation5 + $0xc8] sm:$0xff]  ;;  %v226_v54 = vld [vmem:[#allocation5 + $0xd8] sm:$0xff] }
  0x7a   :  { %2034 = vmatpush1.bf16.msra.mxu0 %v2033_v31  ;;  %v2049_v55 = vpack.c.bf16 %v221_v52, %v219_v51  ;;  %v2051_v56 = vpack.c.bf16 %v226_v54, %v224_v53  ;;  %v223_v0 = vld [vmem:[#allocation5 + $0xc0] sm:$0xff]  ;;  %v225_v1 = vld [vmem:[#allocation5 + $0xd0] sm:$0xff]  ;;  %v228_v3 = vld [vmem:[#allocation5 + $0xe8] sm:$0xff] }
  0x7b   :  { %2036 = vmatprep.subr.bf16.mxu0 %v2035_v32  ;;  %v2053_v2 = vpack.c.bf16 %v225_v1, %v223_v0  ;;  %v230_v6 = vld [vmem:[#allocation5 + $0xf8] sm:$0xff]  ;;  %v235_v20 = vld [vmem:[#allocation5 + $0x120] sm:$0xff]  ;;  %v237_v21 = vld [vmem:[#allocation5 + $0x130] sm:$0xff] }
  0x7c   :  { %v2055_v7 = vpack.c.bf16 %v230_v6, %v228_v3  ;;  %v240_v22 = vld [vmem:[#allocation5 + $0x148] sm:$0xff]  ;;  %v242_v23 = vld [vmem:[#allocation5 + $0x158] sm:$0xff]  ;;  %v2065_v24 = vpack.c.bf16 %v237_v21, %v235_v20  ;;  %v239_v26 = vld [vmem:[#allocation5 + $0x140] sm:$0xff] }
  0x7d   :  { %v2067_v25 = vpack.c.bf16 %v242_v23, %v240_v22  ;;  %v241_v27 = vld [vmem:[#allocation5 + $0x150] sm:$0xff]  ;;  %v244_v28 = vld [vmem:[#allocation5 + $0x168] sm:$0xff]  ;;  %v246_v29 = vld [vmem:[#allocation5 + $0x178] sm:$0xff] }
  0x7e   :  { %2038 = vmatpush1.bf16.msra.mxu0 %v2037_v37  ;;  %v2069_v30 = vpack.c.bf16 %v241_v27, %v239_v26  ;;  %v2071_v31 = vpack.c.bf16 %v246_v29, %v244_v28  ;;  %v243_v32 = vld [vmem:[#allocation5 + $0x160] sm:$0xff]  ;;  %v245_v33 = vld [vmem:[#allocation5 + $0x170] sm:$0xff]  ;;  %v248_v34 = vld [vmem:[#allocation5 + $0x188] sm:$0xff] }
  0x7f   :  { %2040 = vmatprep.subr.bf16.mxu0 %v2039_v38  ;;  %v250_v35 = vld [vmem:[#allocation5 + $0x198] sm:$0xff]  ;;  %v2073_v36 = vpack.c.bf16 %v245_v33, %v243_v32  ;;  %v247_v38 = vld [vmem:[#allocation5 + $0x180] sm:$0xff]  ;;  %v249_v39 = vld [vmem:[#allocation5 + $0x190] sm:$0xff] }
  0x80   :  { %v2075_v37 = vpack.c.bf16 %v250_v35, %v248_v34  ;;  %v252_v40 = vld [vmem:[#allocation5 + $0x1a8] sm:$0xff]  ;;  %v254_v41 = vld [vmem:[#allocation5 + $0x1b8] sm:$0xff]  ;;  %v2077_v42 = vpack.c.bf16 %v249_v39, %v247_v38  ;;  %v253_v45 = vld [vmem:[#allocation5 + $0x1b0] sm:$0xff] }
  0x81   :  { %v256_v46 = vld [vmem:[#allocation5 + $0x1c8] sm:$0xff]  ;;  %v258_v47 = vld [vmem:[#allocation5 + $0x1d8] sm:$0xff]  ;;  %v257_v51 = vld [vmem:[#allocation5 + $0x1d0] sm:$0xff] }
  0x82   :  { %2042 = vmatpush1.bf16.msra.mxu0 %v2041_v43  ;;  %v2079_v43 = vpack.c.bf16 %v254_v41, %v252_v40  ;;  %v260_v52 = vld [vmem:[#allocation5 + $0x1e8] sm:$0xff]  ;;  %v262_v53 = vld [vmem:[#allocation5 + $0x1f8] sm:$0xff]  ;;  %v404_v33 = vld [vmem:[#allocation5 + $0x200] sm:$0xff] }
  0x83   :  { %2044 = vmatprep.subr.bf16.mxu0 %v2043_v44  ;;  %v251_v44 = vld [vmem:[#allocation5 + $0x1a0] sm:$0xff]  ;;  %v407_v32 = vld [vmem:[#allocation5 + $0x218] sm:$0xff]  ;;  %v406_v35 = vld [vmem:[#allocation5 + $0x210] sm:$0xff] }
  0x84   :  { %v2081_v48 = vpack.c.bf16 %v253_v45, %v251_v44  ;;  %v143_v0 = vld [vmem:[#allocation10 + $0x1] ss:$8 sm:$0x3]  ;;  %v145_v1 = vld [vmem:[#allocation10 + $0x2] ss:$8 sm:$0x3]  ;;  %v2093_v38 = vpack.c.bf16 %v406_v35, %v404_v33 }
  0x85   :  { %v171_v3 = vrot.slane %v143_v0, %v3005_v5  ;;  %v408_v40 = vld [vmem:[#allocation5 + $0x220] sm:$0xff]  ;;  %v410_v41 = vld [vmem:[#allocation5 + $0x230] sm:$0xff]  ;;  %v445_v35 = vld [vmem:[#allocation5 + $0x348] sm:$0xff] }
  0x86   :  { %2046 = vmatpush1.bf16.msra.mxu0 %v2045_v49  ;;  %v2083_v49 = vpack.c.bf16 %v258_v47, %v256_v46  ;;  %v2097_v44 = vpack.c.bf16 %v410_v41, %v408_v40  ;;  %v412_v46 = vld [vmem:[#allocation5 + $0x240] sm:$0xff]  ;;  %v414_v47 = vld [vmem:[#allocation5 + $0x250] sm:$0xff]  ;;  %v449_v41 = vld [vmem:[#allocation5 + $0x368] sm:$0xff] }
  0x87   :  { %2048 = vmatprep.subr.bf16.mxu0 %v2047_v50  ;;  %v255_v50 = vld [vmem:[#allocation5 + $0x1c0] sm:$0xff]  ;;  %v446_v40 = vld [vmem:[#allocation5 + $0x350] sm:$0xff] }
  0x88   :  { %v2085_v54 = vpack.c.bf16 %v257_v51, %v255_v50  ;;  %v2101_v50 = vpack.c.bf16 %v414_v47, %v412_v46  ;;  %v440_v33 = vld [vmem:[#allocation5 + $0x320] sm:$0xff]  ;;  %v450_v46 = vld [vmem:[#allocation5 + $0x370] sm:$0xff]  ;;  %v453_v47 = vld [vmem:[#allocation5 + $0x388] sm:$0xff] }
  0x8a   :  { %2050 = vmatpush1.bf16.msra.mxu0 %v2049_v55  ;;  %v2087_v55 = vpack.c.bf16 %v262_v53, %v260_v52  ;;  %v416_v52 = vld [vmem:[#allocation5 + $0x260] sm:$0xff]  ;;  %v418_v53 = vld [vmem:[#allocation5 + $0x270] sm:$0xff] }
  0x8b   :  { %2052 = vmatprep.subr.bf16.mxu0 %v2051_v56  ;;  %v259_v56 = vld [vmem:[#allocation5 + $0x1e0] sm:$0xff] }
  0x8e   :  { %2054 = vmatpush1.bf16.msra.mxu0 %v2053_v2  ;;  %v167_v2 = vrot.slane %v143_v0, %v3003_v4 }
  0x8f   :  { %2056 = vmatprep.subr.bf16.mxu0 %v2055_v7 }
  0xf1   :  { %v113_v12 = vpop.permute.xlu0 %112 }
  0xf2   :  { %v126_v13 = vmul.f32 %v119_v8, %v113_v12  ;;  %v127_v14 = vmul.f32 %v123_v9, %v113_v12  ;;  %v227_v8 = vld [vmem:[#allocation5 + $0xe0] sm:$0xff]  ;;  %v229_v9 = vld [vmem:[#allocation5 + $0xf0] sm:$0xff]  ;;  %v234_v12 = vld [vmem:[#allocation5 + $0x118] sm:$0xff] }
  0xf4   :  { %v140_v15 = vadd.f32 %v133_v10, %v126_v13  ;;  %v141_v16 = vadd.f32 %v137_v11, %v127_v14  ;;  %v2057_v10 = vpack.c.bf16 %v229_v9, %v227_v8  ;;  %v232_v11 = vld [vmem:[#allocation5 + $0x108] sm:$0xff]  ;;  %v231_v13 = vld [vmem:[#allocation5 + $0x100] sm:$0xff]  ;;  %v180_v8 = vrot.slane %v145_v1, %v3003_v4 }
  0xf5   :  { %v2059_v14 = vpack.c.bf16 %v234_v12, %v232_v11  ;;  %v184_v9 = vrot.slane %v145_v1, %v3005_v5 }
  0xf6   :  { %v146_v17 = vadd.f32 %v141_v16, %v140_v15  ;;  %2058 = vmatpush1.bf16.msra.mxu0 %v2057_v10 }
  0xf7   :  { %2060 = vmatprep.subr.bf16.mxu0 %v2059_v14 }
  0xf8   :  { %147 = vadd.xlane.f32.xlu0 %v146_v17  ;;  %v238_v17 = vld [vmem:[#allocation5 + $0x138] sm:$0xff] }
 0x185   :  { %v148_v57 = vpop.xlane.xlu0 %147 }
 0x186   :  { %v150_v58 = vmul.f32 0.00390625, %v148_v57  ;;  %v261_v57 = vld [vmem:[#allocation5 + $0x1f0] sm:$0xff] }
 0x188   :  { %v3011_v59 = vsub.f32 %v140_v15, %v150_v58  ;;  %v3013_v60 = vsub.f32 %v141_v16, %v150_v58  ;;  %v233_v15 = vld [vmem:[#allocation5 + $0x110] sm:$0xff]  ;;  %v236_v16 = vld [vmem:[#allocation5 + $0x128] sm:$0xff]  ;;  %v2089_v58 = vpack.c.bf16 %v261_v57, %v259_v56  ;;  %v2105_v56 = vpack.c.bf16 %v418_v53, %v416_v52 }
 0x189   :  { %v2061_v18 = vpack.c.bf16 %v233_v15, %v231_v13  ;;  %v2063_v19 = vpack.c.bf16 %v238_v17, %v236_v16  ;;  %v454_v52 = vld [vmem:[#allocation5 + $0x390] sm:$0xff]  ;;  %v457_v53 = vld [vmem:[#allocation5 + $0x3a8] sm:$0xff] }
 0x18a   :  { %v153_v61 = vmul.f32 %v3011_v59, %v3011_v59  ;;  %v154_v62 = vmul.f32 %v3013_v60, %v3013_v60 }
 0x18b   :  { %2062 = vmatpush1.bf16.msra.mxu0 %v2061_v18 }
 0x18c   :  { %v155_v63 = vadd.f32 %v154_v62, %v153_v61  ;;  %2064 = vmatprep.subr.bf16.mxu0 %v2063_v19 }
 0x18e   :  { %156 = vadd.xlane.f32.xlu1 %v155_v63 }
 0x18f   :  { %2066 = vmatpush1.bf16.msra.mxu0 %v2065_v24  ;;  %v264_v24 = vld [vmem:[#allocation10 + $0x3] ss:$8 sm:$0x3] }
 0x190   :  { %2068 = vmatprep.subr.bf16.mxu0 %v2067_v25  ;;  %v273_v25 = vrot.slane %v264_v24, %v3005_v5 }
 0x193   :  { %2070 = vmatpush1.bf16.msra.mxu0 %v2069_v30 }
 0x194   :  { %2072 = vmatprep.subr.bf16.mxu0 %v2071_v31  ;;  %v405_v31 = vld [vmem:[#allocation5 + $0x208] sm:$0xff] }
 0x195   :  { %v2091_v34 = vpack.c.bf16 %v407_v32, %v405_v31 }
 0x197   :  { %2074 = vmatpush1.bf16.msra.mxu0 %v2073_v36  ;;  %v409_v36 = vld [vmem:[#allocation5 + $0x228] sm:$0xff]  ;;  %2092 = vmatprep.subr.bf16.mxu1 %v2091_v34  ;;  %v442_v34 = vld [vmem:[#allocation5 + $0x330] sm:$0xff] }
 0x198   :  { %2076 = vmatprep.subr.bf16.mxu0 %v2075_v37  ;;  %v411_v37 = vld [vmem:[#allocation5 + $0x238] sm:$0xff]  ;;  %2094 = vmatpush1.bf16.msra.mxu1 %v2093_v38 }
 0x199   :  { %v2095_v39 = vpack.c.bf16 %v411_v37, %v409_v36  ;;  %v447_v36 = vld [vmem:[#allocation5 + $0x358] sm:$0xff]  ;;  %v2129_v37 = vpack.c.bf16 %v442_v34, %v440_v33 }
 0x19a   :  { %v2131_v38 = vpack.c.bf16 %v447_v36, %v445_v35 }
 0x19b   :  { %2078 = vmatpush1.bf16.msra.mxu0 %v2077_v42  ;;  %v413_v42 = vld [vmem:[#allocation5 + $0x248] sm:$0xff]  ;;  %2096 = vmatprep.subr.bf16.mxu1 %v2095_v39  ;;  %v444_v39 = vld [vmem:[#allocation5 + $0x340] sm:$0xff] }
 0x19c   :  { %2080 = vmatprep.subr.bf16.mxu0 %v2079_v43  ;;  %v415_v43 = vld [vmem:[#allocation5 + $0x258] sm:$0xff]  ;;  %2098 = vmatpush1.bf16.msra.mxu1 %v2097_v44 }
 0x19d   :  { %v2099_v45 = vpack.c.bf16 %v415_v43, %v413_v42  ;;  %v451_v42 = vld [vmem:[#allocation5 + $0x378] sm:$0xff]  ;;  %v2133_v43 = vpack.c.bf16 %v446_v40, %v444_v39 }
 0x19e   :  { %v2135_v44 = vpack.c.bf16 %v451_v42, %v449_v41 }
 0x19f   :  { %2082 = vmatpush1.bf16.msra.mxu0 %v2081_v48  ;;  %v417_v48 = vld [vmem:[#allocation5 + $0x268] sm:$0xff]  ;;  %2100 = vmatprep.subr.bf16.mxu1 %v2099_v45  ;;  %v448_v45 = vld [vmem:[#allocation5 + $0x360] sm:$0xff] }
 0x1a0   :  { %2084 = vmatprep.subr.bf16.mxu0 %v2083_v49  ;;  %v419_v49 = vld [vmem:[#allocation5 + $0x278] sm:$0xff]  ;;  %2102 = vmatpush1.bf16.msra.mxu1 %v2101_v50 }
 0x1a1   :  { %v2103_v51 = vpack.c.bf16 %v419_v49, %v417_v48  ;;  %v455_v48 = vld [vmem:[#allocation5 + $0x398] sm:$0xff]  ;;  %v2137_v49 = vpack.c.bf16 %v450_v46, %v448_v45  ;;  %v609_v46 = vld [vmem:[#allocation5 + $0x400] sm:$0xff] }
 0x1a2   :  { %v2139_v50 = vpack.c.bf16 %v455_v48, %v453_v47  ;;  %v612_v45 = vld [vmem:[#allocation5 + $0x418] sm:$0xff]  ;;  %v611_v48 = vld [vmem:[#allocation5 + $0x410] sm:$0xff] }
 0x1a3   :  { %2086 = vmatpush1.bf16.msra.mxu0 %v2085_v54  ;;  %v421_v54 = vld [vmem:[#allocation5 + $0x288] sm:$0xff]  ;;  %2104 = vmatprep.subr.bf16.mxu1 %v2103_v51  ;;  %v452_v51 = vld [vmem:[#allocation5 + $0x380] sm:$0xff] }
 0x1a4   :  { %2088 = vmatprep.subr.bf16.mxu0 %v2087_v55  ;;  %v423_v55 = vld [vmem:[#allocation5 + $0x298] sm:$0xff]  ;;  %2106 = vmatpush1.bf16.msra.mxu1 %v2105_v56 }
 0x1a5   :  { %v2107_v57 = vpack.c.bf16 %v423_v55, %v421_v54  ;;  %v459_v54 = vld [vmem:[#allocation5 + $0x3b8] sm:$0xff]  ;;  %v2141_v55 = vpack.c.bf16 %v454_v52, %v452_v51  ;;  %v2157_v51 = vpack.c.bf16 %v611_v48, %v609_v46  ;;  %v645_v46 = vld [vmem:[#allocation5 + $0x520] sm:$0xff] }
 0x1a6   :  { %v2143_v56 = vpack.c.bf16 %v459_v54, %v457_v53  ;;  %v613_v53 = vld [vmem:[#allocation5 + $0x420] sm:$0xff]  ;;  %v615_v54 = vld [vmem:[#allocation5 + $0x430] sm:$0xff] }
 0x1a7   :  { %2090 = vmatpush1.bf16.msra.mxu0 %v2089_v58  ;;  %v420_v58 = vld [vmem:[#allocation5 + $0x280] sm:$0xff]  ;;  %2108 = vmatprep.subr.bf16.mxu1 %v2107_v57 }
 0x1a8   :  { %v456_v57 = vld [vmem:[#allocation5 + $0x3a0] sm:$0xff] }
 0x21b   :  { %v157_v61 = vpop.xlane.xlu1 %156 }
 0x21c   :  { %v158_v62 = vmul.f32 0.00390625, %v157_v61  ;;  %v422_v61 = vld [vmem:[#allocation5 + $0x290] sm:$0xff] }
 0x21d   :  { %v2109_v0 = vpack.c.bf16 %v422_v61, %v420_v58  ;;  %v458_v58 = vld [vmem:[#allocation5 + $0x3b0] sm:$0xff]  ;;  %v461_v61 = vld [vmem:[#allocation5 + $0x3c8] sm:$0xff] }
 0x21e   :  { %v159_v63 = vadd.f32 1e-05, %v158_v62  ;;  %v425_v62 = vld [vmem:[#allocation5 + $0x2a8] sm:$0xff] }
 0x21f   :  { %2110 = vmatpush1.bf16.msra.mxu1 %v2109_v0 }
 0x220   :  { %2619 = vrsqrt.f32 %v159_v63  ;;  %v427_v63 = vld [vmem:[#allocation5 + $0x2b8] sm:$0xff] }
 0x221   :  { %v2111_v1 = vpack.c.bf16 %v427_v63, %v425_v62  ;;  %v463_v62 = vld [vmem:[#allocation5 + $0x3d8] sm:$0xff]  ;;  %v2145_v63 = vpack.c.bf16 %v458_v58, %v456_v57  ;;  %v2161_v57 = vpack.c.bf16 %v615_v54, %v613_v53  ;;  %v651_v53 = vld [vmem:[#allocation5 + $0x550] sm:$0xff] }
 0x222   :  { %v2147_v0 = vpack.c.bf16 %v463_v62, %v461_v61  ;;  %v617_v61 = vld [vmem:[#allocation5 + $0x440] sm:$0xff]  ;;  %v619_v62 = vld [vmem:[#allocation5 + $0x450] sm:$0xff] }
 0x223   :  { %2112 = vmatprep.subr.bf16.mxu1 %v2111_v1  ;;  %v460_v1 = vld [vmem:[#allocation5 + $0x3c0] sm:$0xff] }
 0x22a   :  { %v2620_v6 = vpop.eup %2619 }
 0x22b   :  { %v162_v7 = vmul.f32 %v2620_v6, %v3013_v60  ;;  %v161_v10 = vmul.f32 %v2620_v6, %v3011_v59  ;;  %v269_v59 = vrot.slane %v264_v24, %v3003_v4  ;;  %v429_v6 = vld [vmem:[#allocation5 + $0x2c8] sm:$0xff] }
 0x22d   :  { %v175_v11 = vmul.f32 %v171_v3, %v162_v7  ;;  %v174_v12 = vmul.f32 %v167_v2, %v161_v10  ;;  %v424_v2 = vld [vmem:[#allocation5 + $0x2a0] sm:$0xff]  ;;  %v426_v3 = vld [vmem:[#allocation5 + $0x2b0] sm:$0xff]  ;;  %v431_v7 = vld [vmem:[#allocation5 + $0x2d8] sm:$0xff] }
 0x22f   :  { %v188_v13 = vadd.f32 %v184_v9, %v175_v11  ;;  %v187_v14 = vadd.f32 %v180_v8, %v174_v12  ;;  %v2113_v8 = vpack.c.bf16 %v426_v3, %v424_v2  ;;  %v2115_v9 = vpack.c.bf16 %v431_v7, %v429_v6  ;;  %v462_v2 = vld [vmem:[#allocation5 + $0x3d0] sm:$0xff]  ;;  %v465_v3 = vld [vmem:[#allocation5 + $0x3e8] sm:$0xff]  ;;  %v467_v6 = vld [vmem:[#allocation5 + $0x3f8] sm:$0xff] }
 0x230   :  { %v2149_v7 = vpack.c.bf16 %v462_v2, %v460_v1  ;;  %v2165_v1 = vpack.c.bf16 %v619_v62, %v617_v61  ;;  %v655_v61 = vld [vmem:[#allocation5 + $0x570] sm:$0xff]  ;;  %v658_v62 = vld [vmem:[#allocation5 + $0x588] sm:$0xff] }
 0x231   :  { %v192_v15 = vmul.f32 0.70710677, %v188_v13  ;;  %v191_v16 = vmul.f32 0.70710677, %v187_v14  ;;  %v190_v19 = vmul.f32 0.5, %v188_v13  ;;  %v189_v21 = vmul.f32 0.5, %v187_v14  ;;  %2114 = vmatpush1.bf16.msra.mxu1 %v2113_v8 }
 0x232   :  { %2116 = vmatprep.subr.bf16.mxu1 %v2115_v9  ;;  %v2151_v8 = vpack.c.bf16 %v467_v6, %v465_v3  ;;  %v464_v9 = vld [vmem:[#allocation5 + $0x3e0] sm:$0xff]  ;;  %v623_v6 = vld [vmem:[#allocation5 + $0x470] sm:$0xff] }
 0x233   :  { %2621 = verf.f32 %v192_v15  ;;  %v621_v3 = vld [vmem:[#allocation5 + $0x460] sm:$0xff] }
 0x234   :  { %2623 = verf.f32 %v191_v16 }
 0x23d   :  { %v2622_v17 = vpop.eup %2621 }
 0x23e   :  { %v2624_v18 = vpop.eup %2623  ;;  %v196_v20 = vadd.f32 1.0, %v2622_v17  ;;  %v428_v17 = vld [vmem:[#allocation5 + $0x2c0] sm:$0xff] }
 0x23f   :  { %v195_v60 = vadd.f32 1.0, %v2624_v18  ;;  %v430_v18 = vld [vmem:[#allocation5 + $0x2d0] sm:$0xff] }
 0x240   :  { %v198_v22 = vmul.f32 %v196_v20, %v190_v19  ;;  %v2117_v19 = vpack.c.bf16 %v430_v18, %v428_v17  ;;  %v433_v20 = vld [vmem:[#allocation5 + $0x2e8] sm:$0xff] }
 0x241   :  { %v197_v23 = vmul.f32 %v195_v60, %v189_v21  ;;  %v435_v21 = vld [vmem:[#allocation5 + $0x2f8] sm:$0xff]  ;;  %v348_v17 = vld [vmem:[#allocation10 + $0x4] ss:$8 sm:$0x3] }
 0x242   :  { %340 = vmatprep.mubr.f32.mxu0 %v198_v22  ;;  %2118 = vmatpush1.bf16.msra.mxu1 %v2117_v19  ;;  %v2119_v60 = vpack.c.bf16 %v435_v21, %v433_v20  ;;  %v432_v22 = vld [vmem:[#allocation5 + $0x2e0] sm:$0xff]  ;;  %v371_v19 = vrot.slane %v348_v17, %v3003_v4  ;;  %v375_v20 = vrot.slane %v348_v17, %v3005_v5 }
 0x243   :  { %341 = vmatmul.mubr.f32.vlgmr.msra.gmra.mrb[0].mxu0 %v197_v23  ;;  %v434_v23 = vld [vmem:[#allocation5 + $0x2f0] sm:$0xff]  ;;  %v350_v18 = vld [vmem:[#allocation10 + $0x5] ss:$8 sm:$0x3] }
 0x244   :  { %v2121_v24 = vpack.c.bf16 %v434_v23, %v432_v22  ;;  %2120 = vmatprep.subr.bf16.mxu1 %v2119_v60  ;;  %v384_v22 = vrot.slane %v350_v18, %v3003_v4  ;;  %v388_v23 = vrot.slane %v350_v18, %v3005_v5 }
 0x246   :  { %2122 = vmatpush1.bf16.msra.mxu1 %v2121_v24 }
 0x316   :  { %v342_v26 = vpop.f32.mrb[0].mxu0 }
 0x317   :  { %v343_v27 = vadd.f32 %v342_v26, %v269_v59  ;;  %v344_v28 = vpop.f32.mrb[1].mxu0  ;;  %v437_v59 = vld [vmem:[#allocation5 + $0x308] sm:$0xff]  ;;  %v436_v26 = vld [vmem:[#allocation5 + $0x300] sm:$0xff] }
 0x318   :  { %v345_v29 = vadd.f32 %v344_v28, %v273_v25  ;;  %v439_v25 = vld [vmem:[#allocation5 + $0x318] sm:$0xff]  ;;  %v438_v28 = vld [vmem:[#allocation5 + $0x310] sm:$0xff] }
 0x319   :  { %v2125_v31 = vpack.c.bf16 %v438_v28, %v436_v26 }
 0x31a   :  { %v351_v30 = vadd.f32 %v345_v29, %v343_v27 }
 0x31c   :  { %352 = vadd.xlane.f32.xlu1 %v351_v30  ;;  %v443_v30 = vld [vmem:[#allocation5 + $0x338] sm:$0xff] }
 0x3a9   :  { %v353_v10 = vpop.xlane.xlu1 %352 }
 0x3aa   :  { %v354_v11 = vmul.f32 0.00390625, %v353_v10  ;;  %v466_v10 = vld [vmem:[#allocation5 + $0x3f0] sm:$0xff] }
 0x3ac   :  { %v3027_v12 = vsub.f32 %v343_v27, %v354_v11  ;;  %v3029_v13 = vsub.f32 %v345_v29, %v354_v11  ;;  %v2123_v27 = vpack.c.bf16 %v439_v25, %v437_v59  ;;  %v441_v29 = vld [vmem:[#allocation5 + $0x328] sm:$0xff]  ;;  %v2153_v11 = vpack.c.bf16 %v466_v10, %v464_v9 }
 0x3ad   :  { %v2127_v32 = vpack.c.bf16 %v443_v30, %v441_v29  ;;  %v2169_v9 = vpack.c.bf16 %v623_v6, %v621_v3  ;;  %v659_v3 = vld [vmem:[#allocation5 + $0x590] sm:$0xff]  ;;  %v662_v6 = vld [vmem:[#allocation5 + $0x5a8] sm:$0xff] }
 0x3ae   :  { %v357_v14 = vmul.f32 %v3027_v12, %v3027_v12  ;;  %v358_v15 = vmul.f32 %v3029_v13, %v3029_v13  ;;  %2124 = vmatprep.subr.bf16.mxu1 %v2123_v27 }
 0x3af   :  { %2126 = vmatpush1.bf16.msra.mxu1 %v2125_v31 }
 0x3b0   :  { %v359_v16 = vadd.f32 %v358_v15, %v357_v14  ;;  %2128 = vmatprep.subr.bf16.mxu1 %v2127_v32 }
 0x3b2   :  { %360 = vadd.xlane.f32.xlu1 %v359_v16 }
 0x3b3   :  { %2130 = vmatpush1.bf16.msra.mxu1 %v2129_v37  ;;  %v469_v37 = vld [vmem:[#allocation10 + $0x6] ss:$8 sm:$0x3] }
 0x3b4   :  { %2132 = vmatprep.subr.bf16.mxu1 %v2131_v38  ;;  %v478_v38 = vrot.slane %v469_v37, %v3005_v5 }
 0x3b7   :  { %2134 = vmatpush1.bf16.msra.mxu1 %v2133_v43 }
 0x3b8   :  { %2136 = vmatprep.subr.bf16.mxu1 %v2135_v44  ;;  %v610_v44 = vld [vmem:[#allocation5 + $0x408] sm:$0xff] }
 0x3b9   :  { %v2155_v47 = vpack.c.bf16 %v612_v45, %v610_v44  ;;  %v648_v44 = vld [vmem:[#allocation5 + $0x538] sm:$0xff] }
 0x3bb   :  { %2138 = vmatpush1.bf16.msra.mxu1 %v2137_v49  ;;  %v614_v49 = vld [vmem:[#allocation5 + $0x428] sm:$0xff]  ;;  %2156 = vmatprep.subr.bf16.mxu0 %v2155_v47  ;;  %v647_v47 = vld [vmem:[#allocation5 + $0x530] sm:$0xff] }
 0x3bc   :  { %2140 = vmatprep.subr.bf16.mxu1 %v2139_v50  ;;  %v616_v50 = vld [vmem:[#allocation5 + $0x438] sm:$0xff]  ;;  %2158 = vmatpush1.bf16.msra.mxu0 %v2157_v51  ;;  %v2193_v48 = vpack.c.bf16 %v647_v47, %v645_v46 }
 0x3bd   :  { %v2159_v52 = vpack.c.bf16 %v616_v50, %v614_v49  ;;  %v650_v49 = vld [vmem:[#allocation5 + $0x548] sm:$0xff]  ;;  %v652_v50 = vld [vmem:[#allocation5 + $0x558] sm:$0xff] }
 0x3be   :  { %v2195_v51 = vpack.c.bf16 %v652_v50, %v650_v49  ;;  %v776_v49 = vld [vmem:[#allocation7 + $0x8] sm:$0xff] }
 0x3bf   :  { %2142 = vmatpush1.bf16.msra.mxu1 %v2141_v55  ;;  %v618_v55 = vld [vmem:[#allocation5 + $0x448] sm:$0xff]  ;;  %2160 = vmatprep.subr.bf16.mxu0 %v2159_v52  ;;  %v649_v52 = vld [vmem:[#allocation5 + $0x540] sm:$0xff] }
 0x3c0   :  { %2144 = vmatprep.subr.bf16.mxu1 %v2143_v56  ;;  %v620_v56 = vld [vmem:[#allocation5 + $0x458] sm:$0xff]  ;;  %2162 = vmatpush1.bf16.msra.mxu0 %v2161_v57  ;;  %v2197_v54 = vpack.c.bf16 %v651_v53, %v649_v52  ;;  %v653_v57 = vld [vmem:[#allocation5 + $0x560] sm:$0xff]  ;;  %v780_v50 = vld [vmem:[#allocation7 + $0x28] sm:$0xff] }
 0x3c1   :  { %v2163_v58 = vpack.c.bf16 %v620_v56, %v618_v55  ;;  %v654_v55 = vld [vmem:[#allocation5 + $0x568] sm:$0xff]  ;;  %v656_v56 = vld [vmem:[#allocation5 + $0x578] sm:$0xff]  ;;  %v2219_v52 = vpack.c.bf16 %v780_v50, %v776_v49 }
 0x3c2   :  { %v782_v53 = vld [vmem:[#allocation7 + $0x38] sm:$0xff] }
 0x3c3   :  { %2146 = vmatpush1.bf16.msra.mxu1 %v2145_v63  ;;  %v622_v63 = vld [vmem:[#allocation5 + $0x468] sm:$0xff]  ;;  %2164 = vmatprep.subr.bf16.mxu0 %v2163_v58  ;;  %v2199_v58 = vpack.c.bf16 %v656_v56, %v654_v55  ;;  %v779_v55 = vld [vmem:[#allocation7 + $0x20] sm:$0xff] }
 0x3c4   :  { %2148 = vmatprep.subr.bf16.mxu1 %v2147_v0  ;;  %v624_v0 = vld [vmem:[#allocation5 + $0x478] sm:$0xff]  ;;  %2166 = vmatpush1.bf16.msra.mxu0 %v2165_v1 }
 0x3c5   :  { %v2167_v2 = vpack.c.bf16 %v624_v0, %v622_v63  ;;  %v660_v63 = vld [vmem:[#allocation5 + $0x598] sm:$0xff]  ;;  %v2201_v0 = vpack.c.bf16 %v655_v61, %v653_v57  ;;  %v781_v61 = vld [vmem:[#allocation7 + $0x30] sm:$0xff] }
 0x3c6   :  { %v2203_v1 = vpack.c.bf16 %v660_v63, %v658_v62  ;;  %v784_v62 = vld [vmem:[#allocation7 + $0x48] sm:$0xff] }
 0x3c7   :  { %2150 = vmatpush1.bf16.msra.mxu1 %v2149_v7  ;;  %v626_v7 = vld [vmem:[#allocation5 + $0x488] sm:$0xff]  ;;  %2168 = vmatprep.subr.bf16.mxu0 %v2167_v2  ;;  %v657_v2 = vld [vmem:[#allocation5 + $0x580] sm:$0xff] }
 0x3c8   :  { %2152 = vmatprep.subr.bf16.mxu1 %v2151_v8  ;;  %v628_v8 = vld [vmem:[#allocation5 + $0x498] sm:$0xff]  ;;  %2170 = vmatpush1.bf16.msra.mxu0 %v2169_v9 }
 0x3c9   :  { %v2171_v10 = vpack.c.bf16 %v628_v8, %v626_v7  ;;  %v664_v7 = vld [vmem:[#allocation5 + $0x5b8] sm:$0xff]  ;;  %v2205_v8 = vpack.c.bf16 %v659_v3, %v657_v2 }
 0x3ca   :  { %v2207_v9 = vpack.c.bf16 %v664_v7, %v662_v6  ;;  %v790_v2 = vld [vmem:[#allocation7 + $0x78] sm:$0xff]  ;;  %v783_v7 = vld [vmem:[#allocation7 + $0x40] sm:$0xff] }
 0x3cb   :  { %2154 = vmatpush1.bf16.msra.mxu1 %v2153_v11  ;;  %v625_v11 = vld [vmem:[#allocation5 + $0x480] sm:$0xff]  ;;  %2172 = vmatprep.subr.bf16.mxu0 %v2171_v10 }
 0x3cc   :  { %v661_v10 = vld [vmem:[#allocation5 + $0x5a0] sm:$0xff]  ;;  %2220 = vmatprep.subr.bf16.mxu1 %v2219_v52 }
 0x3cd   :  { %v815_v52 = vld [vmem:[#allocation7 + $0x140] sm:$0xff] }
 0x43f   :  { %v361_v14 = vpop.xlane.xlu1 %360 }
 0x440   :  { %v362_v15 = vmul.f32 0.00390625, %v361_v14  ;;  %v627_v14 = vld [vmem:[#allocation5 + $0x490] sm:$0xff] }
 0x441   :  { %v2173_v17 = vpack.c.bf16 %v627_v14, %v625_v11  ;;  %v663_v11 = vld [vmem:[#allocation5 + $0x5b0] sm:$0xff]  ;;  %v666_v14 = vld [vmem:[#allocation5 + $0x5c8] sm:$0xff] }
 0x442   :  { %v363_v16 = vadd.f32 1e-05, %v362_v15  ;;  %v630_v15 = vld [vmem:[#allocation5 + $0x4a8] sm:$0xff] }
 0x443   :  { %2174 = vmatpush1.bf16.msra.mxu0 %v2173_v17 }
 0x444   :  { %2625 = vrsqrt.f32 %v363_v16  ;;  %v632_v16 = vld [vmem:[#allocation5 + $0x4b8] sm:$0xff] }
 0x445   :  { %v2175_v18 = vpack.c.bf16 %v632_v16, %v630_v15  ;;  %v668_v15 = vld [vmem:[#allocation5 + $0x5d8] sm:$0xff]  ;;  %v2209_v16 = vpack.c.bf16 %v663_v11, %v661_v10  ;;  %v789_v11 = vld [vmem:[#allocation7 + $0x70] sm:$0xff] }
 0x446   :  { %v2211_v17 = vpack.c.bf16 %v668_v15, %v666_v14  ;;  %v792_v14 = vld [vmem:[#allocation7 + $0x88] sm:$0xff] }
 0x447   :  { %2176 = vmatprep.subr.bf16.mxu0 %v2175_v18  ;;  %v665_v18 = vld [vmem:[#allocation5 + $0x5c0] sm:$0xff]  ;;  %v796_v15 = vld [vmem:[#allocation7 + $0xa8] sm:$0xff] }
 0x44e   :  { %v2626_v21 = vpop.eup %2625 }
 0x44f   :  { %v366_v60 = vmul.f32 %v2626_v21, %v3029_v13  ;;  %v365_v24 = vmul.f32 %v2626_v21, %v3027_v12  ;;  %v474_v12 = vrot.slane %v469_v37, %v3003_v4  ;;  %v634_v21 = vld [vmem:[#allocation5 + $0x4c8] sm:$0xff] }
 0x451   :  { %v379_v59 = vmul.f32 %v375_v20, %v366_v60  ;;  %v378_v25 = vmul.f32 %v371_v19, %v365_v24  ;;  %v629_v19 = vld [vmem:[#allocation5 + $0x4a0] sm:$0xff]  ;;  %v631_v20 = vld [vmem:[#allocation5 + $0x4b0] sm:$0xff]  ;;  %v636_v60 = vld [vmem:[#allocation5 + $0x4d8] sm:$0xff] }
 0x453   :  { %v392_v26 = vadd.f32 %v388_v23, %v379_v59  ;;  %v391_v27 = vadd.f32 %v384_v22, %v378_v25  ;;  %v2177_v22 = vpack.c.bf16 %v631_v20, %v629_v19  ;;  %v2179_v23 = vpack.c.bf16 %v636_v60, %v634_v21  ;;  %v667_v19 = vld [vmem:[#allocation5 + $0x5d0] sm:$0xff]  ;;  %v670_v20 = vld [vmem:[#allocation5 + $0x5e8] sm:$0xff]  ;;  %v672_v21 = vld [vmem:[#allocation5 + $0x5f8] sm:$0xff] }
 0x454   :  { %v2213_v60 = vpack.c.bf16 %v667_v19, %v665_v18  ;;  %v794_v18 = vld [vmem:[#allocation7 + $0x98] sm:$0xff] }
 0x455   :  { %v396_v28 = vmul.f32 0.70710677, %v392_v26  ;;  %v395_v29 = vmul.f32 0.70710677, %v391_v27  ;;  %v394_v32 = vmul.f32 0.5, %v392_v26  ;;  %v393_v34 = vmul.f32 0.5, %v391_v27  ;;  %2178 = vmatpush1.bf16.msra.mxu0 %v2177_v22 }
 0x456   :  { %2180 = vmatprep.subr.bf16.mxu0 %v2179_v23  ;;  %v2215_v22 = vpack.c.bf16 %v672_v21, %v670_v20  ;;  %v669_v23 = vld [vmem:[#allocation5 + $0x5e0] sm:$0xff]  ;;  %v798_v19 = vld [vmem:[#allocation7 + $0xb8] sm:$0xff] }
 0x457   :  { %2627 = verf.f32 %v396_v28  ;;  %v791_v20 = vld [vmem:[#allocation7 + $0x80] sm:$0xff]  ;;  %v2291_v21 = vpack.c.bf16 %v798_v19, %v794_v18 }
 0x458   :  { %2629 = verf.f32 %v395_v29  ;;  %v831_v18 = vld [vmem:[#allocation7 + $0x1c0] sm:$0xff] }
 0x459   :  { %v835_v19 = vld [vmem:[#allocation7 + $0x1e0] sm:$0xff] }
 0x461   :  { %v2628_v30 = vpop.eup %2627 }
 0x462   :  { %v2630_v31 = vpop.eup %2629  ;;  %v400_v33 = vadd.f32 1.0, %v2628_v30  ;;  %v633_v30 = vld [vmem:[#allocation5 + $0x4c0] sm:$0xff] }
 0x463   :  { %v399_v13 = vadd.f32 1.0, %v2630_v31  ;;  %v635_v31 = vld [vmem:[#allocation5 + $0x4d0] sm:$0xff] }
 0x464   :  { %v402_v35 = vmul.f32 %v400_v33, %v394_v32  ;;  %v2181_v32 = vpack.c.bf16 %v635_v31, %v633_v30  ;;  %v638_v33 = vld [vmem:[#allocation5 + $0x4e8] sm:$0xff]  ;;  %v555_v31 = vld [vmem:[#allocation10 + $0x10] ss:$8 sm:$0x3] }
 0x465   :  { %v401_v36 = vmul.f32 %v399_v13, %v393_v34  ;;  %v640_v34 = vld [vmem:[#allocation5 + $0x4f8] sm:$0xff]  ;;  %v553_v30 = vld [vmem:[#allocation10 + $0x7] ss:$8 sm:$0x3] }
 0x466   :  { %545 = vmatprep.mubr.f32.mxu1 %v402_v35  ;;  %2182 = vmatpush1.bf16.msra.mxu0 %v2181_v32  ;;  %v2183_v13 = vpack.c.bf16 %v640_v34, %v638_v33  ;;  %v637_v35 = vld [vmem:[#allocation5 + $0x4e0] sm:$0xff]  ;;  %v576_v32 = vrot.slane %v553_v30, %v3003_v4  ;;  %v580_v33 = vrot.slane %v553_v30, %v3005_v5 }
 0x467   :  { %546 = vmatmul.mubr.f32.vlgmr.msra.gmra.mrb[0].mxu1 %v401_v36  ;;  %v639_v36 = vld [vmem:[#allocation5 + $0x4f0] sm:$0xff] }
 0x468   :  { %v2185_v37 = vpack.c.bf16 %v639_v36, %v637_v35  ;;  %2184 = vmatprep.subr.bf16.mxu0 %v2183_v13  ;;  %v589_v36 = vrot.slane %v555_v31, %v3003_v4 }
 0x46a   :  { %2186 = vmatpush1.bf16.msra.mxu0 %v2185_v37  ;;  %v593_v37 = vrot.slane %v555_v31, %v3005_v5  ;;  %v806_v31 = vld [vmem:[#allocation7 + $0xf8] sm:$0xff] }
 0x53a   :  { %v547_v39 = vpop.f32.mrb[0].mxu1 }
 0x53b   :  { %v548_v40 = vadd.f32 %v547_v39, %v474_v12  ;;  %v549_v41 = vpop.f32.mrb[1].mxu1  ;;  %v642_v12 = vld [vmem:[#allocation5 + $0x508] sm:$0xff] }
 0x53c   :  { %v550_v42 = vadd.f32 %v549_v41, %v478_v38  ;;  %v644_v38 = vld [vmem:[#allocation5 + $0x518] sm:$0xff]  ;;  %v643_v41 = vld [vmem:[#allocation5 + $0x510] sm:$0xff] }
 0x53d   :  { %v2187_v39 = vpack.c.bf16 %v644_v38, %v642_v12 }
 0x53e   :  { %v556_v43 = vadd.f32 %v550_v42, %v548_v40 }
 0x53f   :  { %2188 = vmatprep.subr.bf16.mxu0 %v2187_v39 }
 0x540   :  { %557 = vadd.xlane.f32.xlu1 %v556_v43  ;;  %v646_v43 = vld [vmem:[#allocation5 + $0x528] sm:$0xff] }
 0x541   :  { %v2191_v45 = vpack.c.bf16 %v648_v44, %v646_v43 }
 0x5cd   :  { %v558_v24 = vpop.xlane.xlu1 %557 }
 0x5ce   :  { %v559_v59 = vmul.f32 0.00390625, %v558_v24  ;;  %v671_v24 = vld [vmem:[#allocation5 + $0x5f0] sm:$0xff] }
 0x5d0   :  { %v3043_v25 = vsub.f32 %v548_v40, %v559_v59  ;;  %v3045_v26 = vsub.f32 %v550_v42, %v559_v59  ;;  %v641_v40 = vld [vmem:[#allocation5 + $0x500] sm:$0xff]  ;;  %v2217_v59 = vpack.c.bf16 %v671_v24, %v669_v23  ;;  %v797_v23 = vld [vmem:[#allocation7 + $0xb0] sm:$0xff] }
 0x5d1   :  { %v2189_v42 = vpack.c.bf16 %v643_v41, %v641_v40 }
 0x5d2   :  { %v562_v27 = vmul.f32 %v3043_v25, %v3043_v25  ;;  %v563_v28 = vmul.f32 %v3045_v26, %v3045_v26 }
 0x5d3   :  { %2190 = vmatpush1.bf16.msra.mxu0 %v2189_v42 }
 0x5d4   :  { %v564_v29 = vadd.f32 %v563_v28, %v562_v27  ;;  %2192 = vmatprep.subr.bf16.mxu0 %v2191_v45 }
 0x5d6   :  { %565 = vadd.xlane.f32.xlu1 %v564_v29 }
 0x5d7   :  { %2194 = vmatpush1.bf16.msra.mxu0 %v2193_v48 }
 0x5d8   :  { %2196 = vmatprep.subr.bf16.mxu0 %v2195_v51  ;;  %v778_v51 = vld [vmem:[#allocation7 + $0x18] sm:$0xff] }
 0x5d9   :  { %v2283_v56 = vpack.c.bf16 %v782_v53, %v778_v51  ;;  %v819_v53 = vld [vmem:[#allocation7 + $0x160] sm:$0xff] }
 0x5db   :  { %2198 = vmatpush1.bf16.msra.mxu0 %v2197_v54  ;;  %v775_v54 = vld [vmem:[#allocation7] sm:$0xff] }
 0x5dc   :  { %2200 = vmatprep.subr.bf16.mxu0 %v2199_v58  ;;  %v2221_v57 = vpack.c.bf16 %v779_v55, %v775_v54  ;;  %v777_v58 = vld [vmem:[#allocation7 + $0x10] sm:$0xff] }
 0x5dd   :  { %v2285_v63 = vpack.c.bf16 %v781_v61, %v777_v58  ;;  %v817_v54 = vld [vmem:[#allocation7 + $0x150] sm:$0xff]  ;;  %v828_v58 = vld [vmem:[#allocation7 + $0x1a8] sm:$0xff]  ;;  %v826_v61 = vld [vmem:[#allocation7 + $0x198] sm:$0xff] }
 0x5de   :  { %2222 = vmatpush1.bf16.msra.mxu1 %v2221_v57  ;;  %v824_v57 = vld [vmem:[#allocation7 + $0x188] sm:$0xff] }
 0x5df   :  { %2202 = vmatpush1.bf16.msra.mxu0 %v2201_v0  ;;  %v788_v0 = vld [vmem:[#allocation7 + $0x68] sm:$0xff] }
 0x5e0   :  { %2204 = vmatprep.subr.bf16.mxu0 %v2203_v1  ;;  %v786_v1 = vld [vmem:[#allocation7 + $0x58] sm:$0xff]  ;;  %v2223_v3 = vpack.c.bf16 %v788_v0, %v784_v62 }
 0x5e1   :  { %v2287_v6 = vpack.c.bf16 %v790_v2, %v786_v1  ;;  %v830_v62 = vld [vmem:[#allocation7 + $0x1b8] sm:$0xff]  ;;  %v2243_v1 = vpack.c.bf16 %v828_v58, %v824_v57  ;;  %v823_v2 = vld [vmem:[#allocation7 + $0x180] sm:$0xff] }
 0x5e2   :  { %2224 = vmatprep.subr.bf16.mxu1 %v2223_v3  ;;  %v827_v3 = vld [vmem:[#allocation7 + $0x1a0] sm:$0xff]  ;;  %v858_v57 = vld [vmem:[#allocation7 + $0x298] sm:$0xff] }
 0x5e3   :  { %2206 = vmatpush1.bf16.msra.mxu0 %v2205_v8  ;;  %v787_v8 = vld [vmem:[#allocation7 + $0x60] sm:$0xff] }
 0x5e4   :  { %2208 = vmatprep.subr.bf16.mxu0 %v2207_v9  ;;  %v785_v9 = vld [vmem:[#allocation7 + $0x50] sm:$0xff]  ;;  %v2225_v10 = vpack.c.bf16 %v787_v8, %v783_v7  ;;  %v2307_v7 = vpack.c.bf16 %v830_v62, %v826_v61  ;;  %v862_v61 = vld [vmem:[#allocation7 + $0x2b8] sm:$0xff]  ;;  %v855_v62 = vld [vmem:[#allocation7 + $0x280] sm:$0xff] }
 0x5e5   :  { %v829_v8 = vld [vmem:[#allocation7 + $0x1b0] sm:$0xff] }
 0x5e6   :  { %2226 = vmatpush1.bf16.msra.mxu1 %v2225_v10  ;;  %v836_v10 = vld [vmem:[#allocation7 + $0x1e8] sm:$0xff] }
 0x5e7   :  { %2210 = vmatpush1.bf16.msra.mxu0 %v2209_v16  ;;  %v2289_v16 = vpack.c.bf16 %v789_v11, %v785_v9  ;;  %v832_v9 = vld [vmem:[#allocation7 + $0x1c8] sm:$0xff]  ;;  %v834_v11 = vld [vmem:[#allocation7 + $0x1d8] sm:$0xff] }
 0x5e8   :  { %2212 = vmatprep.subr.bf16.mxu0 %v2211_v17  ;;  %v2227_v17 = vpack.c.bf16 %v796_v15, %v792_v14  ;;  %v838_v14 = vld [vmem:[#allocation7 + $0x1f8] sm:$0xff]  ;;  %v2245_v15 = vpack.c.bf16 %v827_v3, %v823_v2  ;;  %v857_v2 = vld [vmem:[#allocation7 + $0x290] sm:$0xff] }
 0x5e9   :  { %v861_v3 = vld [vmem:[#allocation7 + $0x2b0] sm:$0xff] }
 0x5ea   :  { %2228 = vmatprep.subr.bf16.mxu1 %v2227_v17  ;;  %v2247_v17 = vpack.c.bf16 %v836_v10, %v832_v9  ;;  %v866_v9 = vld [vmem:[#allocation7 + $0x2d8] sm:$0xff] }
 0x5eb   :  { %2214 = vmatpush1.bf16.msra.mxu0 %v2213_v60  ;;  %v795_v60 = vld [vmem:[#allocation7 + $0xa0] sm:$0xff] }
 0x5ec   :  { %2216 = vmatprep.subr.bf16.mxu0 %v2215_v22  ;;  %v793_v22 = vld [vmem:[#allocation7 + $0x90] sm:$0xff]  ;;  %v2229_v24 = vpack.c.bf16 %v795_v60, %v791_v20 }
 0x5ed   :  { %v833_v20 = vld [vmem:[#allocation7 + $0x1d0] sm:$0xff] }
 0x5ee   :  { %2230 = vmatpush1.bf16.msra.mxu1 %v2229_v24  ;;  %v837_v60 = vld [vmem:[#allocation7 + $0x1f0] sm:$0xff]  ;;  %v842_v24 = vld [vmem:[#allocation7 + $0x218] sm:$0xff] }
 0x5ef   :  { %2218 = vmatpush1.bf16.msra.mxu0 %v2217_v59  ;;  %v800_v59 = vld [vmem:[#allocation7 + $0xc8] sm:$0xff] }
 0x5f0   :  { %2284 = vmatprep.subr.bf16.mxu0 %v2283_v56  ;;  %v821_v56 = vld [vmem:[#allocation7 + $0x170] sm:$0xff] }
 0x5f1   :  { %v2305_v0 = vpack.c.bf16 %v821_v56, %v817_v54  ;;  %v860_v56 = vld [vmem:[#allocation7 + $0x2a8] sm:$0xff] }
 0x663   :  { %v566_v27 = vpop.xlane.xlu1 %565 }
 0x664   :  { %v567_v28 = vmul.f32 0.00390625, %v566_v27  ;;  %v804_v27 = vld [vmem:[#allocation7 + $0xe8] sm:$0xff] }
 0x665   :  { %v2231_v30 = vpack.c.bf16 %v804_v27, %v800_v59  ;;  %v846_v59 = vld [vmem:[#allocation7 + $0x238] sm:$0xff]  ;;  %v2249_v27 = vpack.c.bf16 %v835_v19, %v831_v18  ;;  %v865_v18 = vld [vmem:[#allocation7 + $0x2d0] sm:$0xff] }
 0x666   :  { %v568_v29 = vadd.f32 1e-05, %v567_v28  ;;  %v802_v28 = vld [vmem:[#allocation7 + $0xd8] sm:$0xff]  ;;  %v869_v19 = vld [vmem:[#allocation7 + $0x2f0] sm:$0xff] }
 0x667   :  { %2232 = vmatprep.subr.bf16.mxu1 %v2231_v30  ;;  %v2315_v30 = vpack.c.bf16 %v846_v59, %v842_v24  ;;  %v878_v24 = vld [vmem:[#allocation7 + $0x338] sm:$0xff]  ;;  %v871_v59 = vld [vmem:[#allocation7 + $0x300] sm:$0xff] }
 0x668   :  { %2631 = vrsqrt.f32 %v568_v29  ;;  %v2293_v29 = vpack.c.bf16 %v797_v23, %v793_v22  ;;  %v840_v22 = vld [vmem:[#allocation7 + $0x208] sm:$0xff] }
 0x669   :  { %v844_v23 = vld [vmem:[#allocation7 + $0x228] sm:$0xff] }
 0x672   :  { %v2632_v34 = vpop.eup %2631 }
 0x673   :  { %v570_v13 = vmul.f32 %v2632_v34, %v3043_v25  ;;  %v571_v35 = vmul.f32 %v2632_v34, %v3045_v26  ;;  %v2295_v34 = vpack.c.bf16 %v806_v31, %v802_v28  ;;  %v2313_v28 = vpack.c.bf16 %v837_v60, %v833_v20  ;;  %v674_v31 = vld [vmem:[#allocation10 + $0x11] ss:$8 sm:$0x3]  ;;  %v876_v60 = vld [vmem:[#allocation7 + $0x328] sm:$0xff] }
 0x674   :  { %v2329_v20 = vpack.c.bf16 %v869_v19, %v865_v18  ;;  %v1046_v19 = vld [vmem:[#allocation10 + $0x12] ss:$8 sm:$0x3] }
 0x675   :  { %v584_v12 = vmul.f32 %v580_v33, %v571_v35  ;;  %v583_v38 = vmul.f32 %v576_v32, %v570_v13  ;;  %v799_v32 = vld [vmem:[#allocation7 + $0xc0] sm:$0xff]  ;;  %v801_v13 = vld [vmem:[#allocation7 + $0xd0] sm:$0xff] }
 0x676   :  { %v803_v33 = vld [vmem:[#allocation7 + $0xe0] sm:$0xff]  ;;  %v805_v35 = vld [vmem:[#allocation7 + $0xf0] sm:$0xff] }
 0x677   :  { %v597_v39 = vadd.f32 %v593_v37, %v584_v12  ;;  %v596_v40 = vadd.f32 %v589_v36, %v583_v38  ;;  %v808_v36 = vld [vmem:[#allocation7 + $0x108] sm:$0xff]  ;;  %v810_v12 = vld [vmem:[#allocation7 + $0x118] sm:$0xff] }
 0x678   :  { %v812_v37 = vld [vmem:[#allocation7 + $0x128] sm:$0xff]  ;;  %v814_v38 = vld [vmem:[#allocation7 + $0x138] sm:$0xff] }
 0x679   :  { %v601_v41 = vmul.f32 0.70710677, %v597_v39  ;;  %v600_v42 = vmul.f32 0.70710677, %v596_v40  ;;  %v599_v45 = vmul.f32 0.5, %v597_v39  ;;  %v598_v47 = vmul.f32 0.5, %v596_v40 }
 0x67a   :  { %v2233_v39 = vpack.c.bf16 %v803_v33, %v799_v32  ;;  %v2297_v40 = vpack.c.bf16 %v805_v35, %v801_v13  ;;  %v679_v32 = vrot.slane %v674_v31, %v3003_v4  ;;  %v683_v33 = vrot.slane %v674_v31, %v3005_v5  ;;  %v877_v31 = vld [vmem:[#allocation7 + $0x330] sm:$0xff] }
 0x67b   :  { %2633 = verf.f32 %v601_v41  ;;  %v2235_v41 = vpack.c.bf16 %v812_v37, %v808_v36 }
 0x67c   :  { %2635 = verf.f32 %v600_v42  ;;  %v807_v42 = vld [vmem:[#allocation7 + $0x100] sm:$0xff]  ;;  %2234 = vmatpush1.bf16.msra.mxu1 %v2233_v39 }
 0x67d   :  { %2236 = vmatprep.subr.bf16.mxu1 %v2235_v41  ;;  %v839_v39 = vld [vmem:[#allocation7 + $0x200] sm:$0xff]  ;;  %v841_v41 = vld [vmem:[#allocation7 + $0x210] sm:$0xff] }
 0x685   :  { %v2634_v43 = vpop.eup %2633 }
 0x686   :  { %v2636_v44 = vpop.eup %2635  ;;  %v605_v46 = vadd.f32 1.0, %v2634_v43  ;;  %v811_v43 = vld [vmem:[#allocation7 + $0x120] sm:$0xff] }
 0x687   :  { %v604_v25 = vadd.f32 1.0, %v2636_v44  ;;  %v809_v44 = vld [vmem:[#allocation7 + $0x110] sm:$0xff]  ;;  %v2237_v49 = vpack.c.bf16 %v811_v43, %v807_v42 }
 0x688   :  { %v607_v48 = vmul.f32 %v605_v46, %v599_v45  ;;  %v2299_v45 = vpack.c.bf16 %v814_v38, %v810_v12  ;;  %v813_v46 = vld [vmem:[#allocation7 + $0x130] sm:$0xff] }
 0x689   :  { %v606_v26 = vmul.f32 %v604_v25, %v598_v47  ;;  %v816_v47 = vld [vmem:[#allocation7 + $0x148] sm:$0xff]  ;;  %v2301_v50 = vpack.c.bf16 %v813_v46, %v809_v44  ;;  %2238 = vmatpush1.bf16.msra.mxu1 %v2237_v49  ;;  %v845_v43 = vld [vmem:[#allocation7 + $0x230] sm:$0xff]  ;;  %v851_v49 = vld [vmem:[#allocation7 + $0x260] sm:$0xff] }
 0x68a   :  { %750 = vmatprep.mubr.f32.mxu0 %v607_v48  ;;  %v820_v25 = vld [vmem:[#allocation7 + $0x168] sm:$0xff]  ;;  %v818_v48 = vld [vmem:[#allocation7 + $0x158] sm:$0xff]  ;;  %v2317_v44 = vpack.c.bf16 %v845_v43, %v841_v41  ;;  %v885_v43 = vld [vmem:[#allocation7 + $0x370] sm:$0xff] }
 0x68b   :  { %751 = vmatmul.mubr.f32.vlgmr.msra.gmra.mrb[2].mxu0 %v606_v26  ;;  %v822_v26 = vld [vmem:[#allocation7 + $0x178] sm:$0xff]  ;;  %v2239_v51 = vpack.c.bf16 %v820_v25, %v816_v47  ;;  %v852_v46 = vld [vmem:[#allocation7 + $0x268] sm:$0xff] }
 0x68c   :  { %2286 = vmatpush1.bf16.msra.mxu0 %v2285_v63  ;;  %v2303_v55 = vpack.c.bf16 %v822_v26, %v818_v48  ;;  %v2241_v63 = vpack.c.bf16 %v819_v53, %v815_v52  ;;  %v850_v47 = vld [vmem:[#allocation7 + $0x258] sm:$0xff]  ;;  %v847_v26 = vld [vmem:[#allocation7 + $0x240] sm:$0xff]  ;;  %v849_v52 = vld [vmem:[#allocation7 + $0x250] sm:$0xff] }
 0x68d   :  { %2288 = vmatprep.subr.bf16.mxu0 %v2287_v6  ;;  %2240 = vmatprep.subr.bf16.mxu1 %v2239_v51  ;;  %v825_v6 = vld [vmem:[#allocation7 + $0x190] sm:$0xff]  ;;  %v854_v48 = vld [vmem:[#allocation7 + $0x278] sm:$0xff]  ;;  %v2257_v51 = vpack.c.bf16 %v851_v49, %v847_v26  ;;  %v887_v49 = vld [vmem:[#allocation7 + $0x380] sm:$0xff] }
 0x68e   :  { %2242 = vmatpush1.bf16.msra.mxu1 %v2241_v63  ;;  %v853_v53 = vld [vmem:[#allocation7 + $0x270] sm:$0xff]  ;;  %v859_v63 = vld [vmem:[#allocation7 + $0x2a0] sm:$0xff] }
 0x68f   :  { %2244 = vmatprep.subr.bf16.mxu1 %v2243_v1  ;;  %v2321_v54 = vpack.c.bf16 %v853_v53, %v849_v52  ;;  %v2261_v1 = vpack.c.bf16 %v859_v63, %v855_v62  ;;  %v893_v53 = vld [vmem:[#allocation7 + $0x3b0] sm:$0xff]  ;;  %v895_v62 = vld [vmem:[#allocation7 + $0x3c0] sm:$0xff] }
 0x690   :  { %2290 = vmatpush1.bf16.msra.mxu0 %v2289_v16  ;;  %v2309_v16 = vpack.c.bf16 %v829_v8, %v825_v6  ;;  %v2325_v6 = vpack.c.bf16 %v861_v3, %v857_v2  ;;  %v868_v8 = vld [vmem:[#allocation7 + $0x2e8] sm:$0xff]  ;;  %v901_v2 = vld [vmem:[#allocation7 + $0x3f0] sm:$0xff] }
 0x691   :  { %2292 = vmatprep.subr.bf16.mxu0 %v2291_v21  ;;  %v2311_v21 = vpack.c.bf16 %v838_v14, %v834_v11  ;;  %v870_v11 = vld [vmem:[#allocation7 + $0x2f8] sm:$0xff]  ;;  %v863_v14 = vld [vmem:[#allocation7 + $0x2c0] sm:$0xff] }
 0x692   :  { %2246 = vmatpush1.bf16.msra.mxu1 %v2245_v15  ;;  %v867_v15 = vld [vmem:[#allocation7 + $0x2e0] sm:$0xff] }
 0x693   :  { %2248 = vmatprep.subr.bf16.mxu1 %v2247_v17  ;;  %v2265_v17 = vpack.c.bf16 %v867_v15, %v863_v14 }
 0x694   :  { %2294 = vmatpush1.bf16.msra.mxu0 %v2293_v29  ;;  %v2251_v29 = vpack.c.bf16 %v844_v23, %v840_v22  ;;  %v874_v22 = vld [vmem:[#allocation7 + $0x318] sm:$0xff] }
 0x695   :  { %2296 = vmatprep.subr.bf16.mxu0 %v2295_v34 }
 0x696   :  { %2250 = vmatpush1.bf16.msra.mxu1 %v2249_v27  ;;  %v875_v27 = vld [vmem:[#allocation7 + $0x320] sm:$0xff] }
 0x697   :  { %2252 = vmatprep.subr.bf16.mxu1 %v2251_v29  ;;  %v2269_v29 = vpack.c.bf16 %v875_v27, %v871_v59  ;;  %v1143_v27 = vld [vmem:[#allocation5 + $0x608] sm:$0xff] }
 0x698   :  { %2298 = vmatpush1.bf16.msra.mxu0 %v2297_v40  ;;  %v843_v40 = vld [vmem:[#allocation7 + $0x220] sm:$0xff] }
 0x699   :  { %2300 = vmatprep.subr.bf16.mxu0 %v2299_v45  ;;  %v2253_v42 = vpack.c.bf16 %v843_v40, %v839_v39  ;;  %v848_v45 = vld [vmem:[#allocation7 + $0x248] sm:$0xff]  ;;  %v883_v39 = vld [vmem:[#allocation7 + $0x360] sm:$0xff] }
 0x69a   :  { %v2255_v25 = vpack.c.bf16 %v852_v46, %v848_v45  ;;  %v892_v46 = vld [vmem:[#allocation7 + $0x3a8] sm:$0xff] }
 0x69b   :  { %2254 = vmatpush1.bf16.msra.mxu1 %v2253_v42  ;;  %v881_v42 = vld [vmem:[#allocation7 + $0x350] sm:$0xff] }
 0x69c   :  { %2302 = vmatpush1.bf16.msra.mxu0 %v2301_v50  ;;  %v2319_v50 = vpack.c.bf16 %v854_v48, %v850_v47  ;;  %2256 = vmatprep.subr.bf16.mxu1 %v2255_v25  ;;  %v2337_v45 = vpack.c.bf16 %v885_v43, %v881_v42  ;;  %v890_v47 = vld [vmem:[#allocation7 + $0x398] sm:$0xff]  ;;  %v1150_v42 = vld [vmem:[#allocation5 + $0x640] sm:$0xff]  ;;  %v1152_v43 = vld [vmem:[#allocation5 + $0x650] sm:$0xff] }
 0x69d   :  { %2304 = vmatprep.subr.bf16.mxu0 %v2303_v55  ;;  %v856_v55 = vld [vmem:[#allocation7 + $0x288] sm:$0xff]  ;;  %v894_v25 = vld [vmem:[#allocation7 + $0x3b8] sm:$0xff] }
 0x69e   :  { %v2259_v58 = vpack.c.bf16 %v860_v56, %v856_v55  ;;  %v2339_v26 = vpack.c.bf16 %v894_v25, %v890_v47  ;;  %v900_v55 = vld [vmem:[#allocation7 + $0x3e8] sm:$0xff]  ;;  %v1154_v25 = vld [vmem:[#allocation5 + $0x660] sm:$0xff] }
 0x69f   :  { %2258 = vmatpush1.bf16.msra.mxu1 %v2257_v51  ;;  %v889_v51 = vld [vmem:[#allocation7 + $0x390] sm:$0xff] }
 0x6a0   :  { %2306 = vmatpush1.bf16.msra.mxu0 %v2305_v0  ;;  %v2323_v0 = vpack.c.bf16 %v862_v61, %v858_v57  ;;  %2260 = vmatprep.subr.bf16.mxu1 %v2259_v58  ;;  %v2341_v56 = vpack.c.bf16 %v893_v53, %v889_v51  ;;  %v898_v58 = vld [vmem:[#allocation7 + $0x3d8] sm:$0xff]  ;;  %v1160_v53 = vld [vmem:[#allocation5 + $0x690] sm:$0xff] }
 0x6a1   :  { %2308 = vmatprep.subr.bf16.mxu0 %v2307_v7  ;;  %v864_v7 = vld [vmem:[#allocation7 + $0x2c8] sm:$0xff]  ;;  %v902_v61 = vld [vmem:[#allocation7 + $0x3f8] sm:$0xff] }
 0x6a2   :  { %v2263_v10 = vpack.c.bf16 %v868_v8, %v864_v7  ;;  %v2343_v63 = vpack.c.bf16 %v902_v61, %v898_v58  ;;  %v1162_v58 = vld [vmem:[#allocation5 + $0x6a0] sm:$0xff]  ;;  %v1164_v61 = vld [vmem:[#allocation5 + $0x6b0] sm:$0xff] }
 0x6a3   :  { %2262 = vmatpush1.bf16.msra.mxu1 %v2261_v1  ;;  %v897_v1 = vld [vmem:[#allocation7 + $0x3d0] sm:$0xff] }
 0x6a4   :  { %2310 = vmatpush1.bf16.msra.mxu0 %v2309_v16  ;;  %v2327_v16 = vpack.c.bf16 %v870_v11, %v866_v9  ;;  %2264 = vmatprep.subr.bf16.mxu1 %v2263_v10 }
 0x6a5   :  { %2312 = vmatprep.subr.bf16.mxu0 %v2311_v21  ;;  %v872_v21 = vld [vmem:[#allocation7 + $0x308] sm:$0xff] }
 0x6a6   :  { %v2267_v23 = vpack.c.bf16 %v876_v60, %v872_v21  ;;  %v1055_v21 = vrot.slane %v1046_v19, %v3005_v5 }
 0x6a7   :  { %2266 = vmatpush1.bf16.msra.mxu1 %v2265_v17 }
 0x6a8   :  { %2314 = vmatpush1.bf16.msra.mxu0 %v2313_v28  ;;  %v2331_v28 = vpack.c.bf16 %v878_v24, %v874_v22  ;;  %2268 = vmatprep.subr.bf16.mxu1 %v2267_v23 }
 0x6a9   :  { %2316 = vmatprep.subr.bf16.mxu0 %v2315_v30  ;;  %v873_v30 = vld [vmem:[#allocation7 + $0x310] sm:$0xff] }
 0x6ab   :  { %2270 = vmatpush1.bf16.msra.mxu1 %v2269_v29  ;;  %v1142_v29 = vld [vmem:[#allocation5 + $0x600] sm:$0xff] }
 0x6ac   :  { %2318 = vmatpush1.bf16.msra.mxu0 %v2317_v44  ;;  %v888_v44 = vld [vmem:[#allocation7 + $0x388] sm:$0xff] }
 0x6ad   :  { %2320 = vmatprep.subr.bf16.mxu0 %v2319_v50  ;;  %v2275_v48 = vpack.c.bf16 %v892_v46, %v888_v44  ;;  %v891_v50 = vld [vmem:[#allocation7 + $0x3a0] sm:$0xff]  ;;  %v1155_v44 = vld [vmem:[#allocation5 + $0x668] sm:$0xff]  ;;  %v2357_v46 = vpack.c.bf16 %v1152_v43, %v1150_v42 }
 0x6ae   :  { %v2277_v52 = vpack.c.bf16 %v891_v50, %v887_v49  ;;  %v1161_v49 = vld [vmem:[#allocation5 + $0x698] sm:$0xff]  ;;  %v1186_v42 = vld [vmem:[#allocation5 + $0x760] sm:$0xff] }
 0x6b0   :  { %2322 = vmatpush1.bf16.msra.mxu0 %v2321_v54  ;;  %v896_v54 = vld [vmem:[#allocation7 + $0x3c8] sm:$0xff] }
 0x6b1   :  { %2324 = vmatprep.subr.bf16.mxu0 %v2323_v0  ;;  %v2279_v57 = vpack.c.bf16 %v900_v55, %v896_v54  ;;  %v899_v0 = vld [vmem:[#allocation7 + $0x3e0] sm:$0xff]  ;;  %v1163_v54 = vld [vmem:[#allocation5 + $0x6a8] sm:$0xff]  ;;  %v1165_v55 = vld [vmem:[#allocation5 + $0x6b8] sm:$0xff] }
 0x6b2   :  { %v2281_v3 = vpack.c.bf16 %v899_v0, %v895_v62  ;;  %v1167_v62 = vld [vmem:[#allocation5 + $0x6c8] sm:$0xff]  ;;  %v2369_v0 = vpack.c.bf16 %v1164_v61, %v1162_v58  ;;  %v1198_v61 = vld [vmem:[#allocation5 + $0x7c0] sm:$0xff] }
 0x6b4   :  { %2326 = vmatpush1.bf16.msra.mxu0 %v2325_v6  ;;  %v2345_v6 = vpack.c.bf16 %v901_v2, %v897_v1  ;;  %v1166_v2 = vld [vmem:[#allocation5 + $0x6c0] sm:$0xff] }
 0x6b5   :  { %2328 = vmatprep.subr.bf16.mxu0 %v2327_v16 }
 0x6b8   :  { %2330 = vmatpush1.bf16.msra.mxu0 %v2329_v20  ;;  %v1051_v20 = vrot.slane %v1046_v19, %v3003_v4  ;;  %v1170_v19 = vld [vmem:[#allocation5 + $0x6e0] sm:$0xff] }
 0x6b9   :  { %2332 = vmatprep.subr.bf16.mxu0 %v2331_v28  ;;  %v1145_v28 = vld [vmem:[#allocation5 + $0x618] sm:$0xff] }
 0x75e   :  { %v752_v34 = vpop.f32.mrb[2].mxu0 }
 0x75f   :  { %v3059_v13 = vadd.f32 %v752_v34, %v679_v32  ;;  %v754_v35 = vpop.f32.mrb[3].mxu0  ;;  %v2333_v32 = vpack.c.bf16 %v877_v31, %v873_v30  ;;  %v884_v34 = vld [vmem:[#allocation7 + $0x368] sm:$0xff]  ;;  %v2347_v30 = vpack.c.bf16 %v1145_v28, %v1143_v27  ;;  %v1144_v31 = vld [vmem:[#allocation5 + $0x610] sm:$0xff] }
 0x760   :  { %v3061_v36 = vadd.f32 %v754_v35, %v683_v33  ;;  %v880_v33 = vld [vmem:[#allocation7 + $0x348] sm:$0xff]  ;;  %v882_v35 = vld [vmem:[#allocation7 + $0x358] sm:$0xff] }
 0x761   :  { %v757_v37 = vmul.f32 %v3059_v13, %v3059_v13  ;;  %2334 = vmatpush1.bf16.msra.mxu0 %v2333_v32  ;;  %v1147_v32 = vld [vmem:[#allocation5 + $0x628] sm:$0xff] }
 0x762   :  { %v758_v12 = vmul.f32 %v3061_v36, %v3061_v36  ;;  %v1179_v28 = vld [vmem:[#allocation5 + $0x728] sm:$0xff] }
 0x764   :  { %v759_v38 = vadd.f32 %v758_v12, %v757_v37  ;;  %v2271_v37 = vpack.c.bf16 %v884_v34, %v880_v33  ;;  %v886_v12 = vld [vmem:[#allocation7 + $0x378] sm:$0xff]  ;;  %v2349_v34 = vpack.c.bf16 %v1144_v31, %v1142_v29  ;;  %v1178_v31 = vld [vmem:[#allocation5 + $0x720] sm:$0xff] }
 0x765   :  { %v2335_v40 = vpack.c.bf16 %v886_v12, %v882_v35  ;;  %v1149_v33 = vld [vmem:[#allocation5 + $0x638] sm:$0xff]  ;;  %v1148_v12 = vld [vmem:[#allocation5 + $0x630] sm:$0xff] }
 0x766   :  { %760 = vadd.xlane.f32.xlu1 %v759_v38  ;;  %v879_v38 = vld [vmem:[#allocation7 + $0x340] sm:$0xff]  ;;  %2272 = vmatprep.subr.bf16.mxu1 %v2271_v37  ;;  %v2351_v35 = vpack.c.bf16 %v1149_v33, %v1147_v32  ;;  %v1181_v29 = vld [vmem:[#allocation5 + $0x738] sm:$0xff]  ;;  %v1180_v32 = vld [vmem:[#allocation5 + $0x730] sm:$0xff] }
 0x767   :  { %v2273_v41 = vpack.c.bf16 %v883_v39, %v879_v38  ;;  %2336 = vmatprep.subr.bf16.mxu0 %v2335_v40  ;;  %v1146_v37 = vld [vmem:[#allocation5 + $0x620] sm:$0xff]  ;;  %v1151_v38 = vld [vmem:[#allocation5 + $0x648] sm:$0xff]  ;;  %v1153_v39 = vld [vmem:[#allocation5 + $0x658] sm:$0xff]  ;;  %v2385_v33 = vpack.c.bf16 %v1180_v32, %v1178_v31 }
 0x768   :  { %2338 = vmatpush1.bf16.msra.mxu0 %v2337_v45  ;;  %v2353_v40 = vpack.c.bf16 %v1148_v12, %v1146_v37  ;;  %v1157_v45 = vld [vmem:[#allocation5 + $0x678] sm:$0xff]  ;;  %v1182_v12 = vld [vmem:[#allocation5 + $0x740] sm:$0xff] }
 0x769   :  { %2274 = vmatpush1.bf16.msra.mxu1 %v2273_v41  ;;  %2340 = vmatprep.subr.bf16.mxu0 %v2339_v26  ;;  %v2355_v41 = vpack.c.bf16 %v1153_v39, %v1151_v38  ;;  %v2359_v47 = vpack.c.bf16 %v1157_v45, %v1155_v44  ;;  %v1159_v26 = vld [vmem:[#allocation5 + $0x688] sm:$0xff]  ;;  %v1184_v38 = vld [vmem:[#allocation5 + $0x750] sm:$0xff] }
 0x76a   :  { %2276 = vmatprep.subr.bf16.mxu1 %v2275_v48  ;;  %v1156_v48 = vld [vmem:[#allocation5 + $0x670] sm:$0xff]  ;;  %v2363_v51 = vpack.c.bf16 %v1161_v49, %v1159_v26  ;;  %v2389_v39 = vpack.c.bf16 %v1184_v38, %v1182_v12  ;;  %v1191_v45 = vld [vmem:[#allocation5 + $0x788] sm:$0xff]  ;;  %v1552_v38 = vld [vmem:[#allocation5 + $0xa00] sm:$0xff] }
 0x76b   :  { %v2361_v50 = vpack.c.bf16 %v1156_v48, %v1154_v25  ;;  %v1188_v44 = vld [vmem:[#allocation5 + $0x770] sm:$0xff]  ;;  %v1190_v48 = vld [vmem:[#allocation5 + $0x780] sm:$0xff]  ;;  %v1195_v49 = vld [vmem:[#allocation5 + $0x7a8] sm:$0xff] }
 0x76c   :  { %2342 = vmatpush1.bf16.msra.mxu0 %v2341_v56  ;;  %v1192_v26 = vld [vmem:[#allocation5 + $0x790] sm:$0xff] }
 0x76d   :  { %2278 = vmatpush1.bf16.msra.mxu1 %v2277_v52  ;;  %2344 = vmatprep.subr.bf16.mxu0 %v2343_v63  ;;  %v1158_v52 = vld [vmem:[#allocation5 + $0x680] sm:$0xff]  ;;  %v1169_v63 = vld [vmem:[#allocation5 + $0x6d8] sm:$0xff] }
 0x76e   :  { %2280 = vmatprep.subr.bf16.mxu1 %v2279_v57  ;;  %v2365_v56 = vpack.c.bf16 %v1160_v53, %v1158_v52  ;;  %v2367_v57 = vpack.c.bf16 %v1165_v55, %v1163_v54  ;;  %v2371_v1 = vpack.c.bf16 %v1169_v63, %v1167_v62  ;;  %v1194_v53 = vld [vmem:[#allocation5 + $0x7a0] sm:$0xff]  ;;  %v1196_v54 = vld [vmem:[#allocation5 + $0x7b0] sm:$0xff]  ;;  %v1199_v55 = vld [vmem:[#allocation5 + $0x7c8] sm:$0xff] }
 0x76f   :  { %v1200_v62 = vld [vmem:[#allocation5 + $0x7d0] sm:$0xff]  ;;  %v1203_v63 = vld [vmem:[#allocation5 + $0x7e8] sm:$0xff] }
 0x770   :  { %2346 = vmatpush1.bf16.msra.mxu0 %v2345_v6 }
 0x771   :  { %2282 = vmatpush1.bf16.msra.mxu1 %v2281_v3  ;;  %v1168_v3 = vld [vmem:[#allocation5 + $0x6d0] sm:$0xff] }
 0x772   :  { %2348 = vmatprep.subr.bf16.mxu1 %v2347_v30  ;;  %v2373_v6 = vpack.c.bf16 %v1168_v3, %v1166_v2  ;;  %v2383_v30 = vpack.c.bf16 %v1181_v29, %v1179_v28  ;;  %v1202_v3 = vld [vmem:[#allocation5 + $0x7e0] sm:$0xff] }
 0x7f3   :  { %v761_v7 = vpop.xlane.xlu1 %760 }
 0x7f4   :  { %2637 = vrsqrt.f32 %v761_v7  ;;  %vm764_vm0 = vcmp.eq.f32.partialorder %v761_v7, inf  ;;  %v767_v10 = vand.u32 2147483648, %v761_v7  ;;  %vm766_vm1 = vcmp.eq.f32.partialorder %v761_v7, 0.0 }
 0x7fe   :  { %v2638_v8 = vpop.eup %2637 }
 0x7ff   :  { %v763_v9 = vmul.f32 %v2638_v8, %v761_v7 }
 0x801   :  { %v765_v11 = vsel %vm764_vm0, %v761_v7, %v763_v9 }
 0x802   :  { %v768_v14 = vsel %vm766_vm1, %v767_v10, %v765_v11 }
 0x803   :  { %v769_v15 = vmax.f32 %v768_v14, 1e-12 }
 0x805   :  { %2639 = vrcp.f32 %v769_v15 }
 0x80f   :  { %v2640_v16 = vpop.eup %2639 }
 0x810   :  { %v772_v17 = vmul.f32 %v2640_v16, %v3061_v36  ;;  %v771_v18 = vmul.f32 %v2640_v16, %v3059_v13  ;;  %v1171_v16 = vld [vmem:[#allocation5 + $0x6e8] sm:$0xff] }
 0x812   :  { %967 = vmatprep.mubr.f32.mxu1 %v772_v17  ;;  %774 = vst [vmem:[#allocation14 + $0x8] sm:$0xff] %v772_v17  ;;  %1038 = vmatprep.mubr.f32.mxu0 %v772_v17  ;;  %773 = vst [vmem:[#allocation14] sm:$0xff] %v771_v18  ;;  %v1173_v17 = vld [vmem:[#allocation5 + $0x6f8] sm:$0xff] }
 0x813   :  { %968 = vmatmul.mubr.f32.vlgmr.msra.gmra.mrb[2].mxu1 %v771_v18  ;;  %1039 = vmatmul.mubr.f32.vlgmr.msra.gmra.mrb[4].mxu0 %v771_v18  ;;  %v2375_v18 = vpack.c.bf16 %v1173_v17, %v1171_v16 }
 0x814   :  { %2350 = vmatpush1.bf16.msra.mxu1 %v2349_v34  ;;  %v1183_v34 = vld [vmem:[#allocation5 + $0x748] sm:$0xff] }
 0x815   :  { %2352 = vmatprep.subr.bf16.mxu1 %v2351_v35  ;;  %v1185_v35 = vld [vmem:[#allocation5 + $0x758] sm:$0xff] }
 0x816   :  { %v2387_v37 = vpack.c.bf16 %v1185_v35, %v1183_v34 }
 0x818   :  { %2354 = vmatpush1.bf16.msra.mxu1 %v2353_v40  ;;  %v1187_v40 = vld [vmem:[#allocation5 + $0x768] sm:$0xff] }
 0x819   :  { %2356 = vmatprep.subr.bf16.mxu1 %v2355_v41  ;;  %v1189_v41 = vld [vmem:[#allocation5 + $0x778] sm:$0xff] }
 0x81a   :  { %v2391_v43 = vpack.c.bf16 %v1189_v41, %v1187_v40 }
 0x81c   :  { %2358 = vmatpush1.bf16.msra.mxu1 %v2357_v46  ;;  %v1193_v46 = vld [vmem:[#allocation5 + $0x798] sm:$0xff] }
 0x81d   :  { %2360 = vmatprep.subr.bf16.mxu1 %v2359_v47  ;;  %v2393_v47 = vpack.c.bf16 %v1188_v44, %v1186_v42  ;;  %v2395_v25 = vpack.c.bf16 %v1193_v46, %v1191_v45  ;;  %v1557_v42 = vld [vmem:[#allocation5 + $0xa28] sm:$0xff] }
 0x820   :  { %2362 = vmatpush1.bf16.msra.mxu1 %v2361_v50  ;;  %v1197_v50 = vld [vmem:[#allocation5 + $0x7b8] sm:$0xff] }
 0x821   :  { %2364 = vmatprep.subr.bf16.mxu1 %v2363_v51  ;;  %v2397_v51 = vpack.c.bf16 %v1192_v26, %v1190_v48  ;;  %v2399_v52 = vpack.c.bf16 %v1197_v50, %v1195_v49  ;;  %v1556_v49 = vld [vmem:[#allocation5 + $0xa20] sm:$0xff]  ;;  %v1558_v50 = vld [vmem:[#allocation5 + $0xa30] sm:$0xff] }
 0x824   :  { %2366 = vmatpush1.bf16.msra.mxu1 %v2365_v56  ;;  %v1201_v56 = vld [vmem:[#allocation5 + $0x7d8] sm:$0xff] }
 0x825   :  { %2368 = vmatprep.subr.bf16.mxu1 %v2367_v57  ;;  %v2401_v57 = vpack.c.bf16 %v1196_v54, %v1194_v53  ;;  %v2403_v58 = vpack.c.bf16 %v1201_v56, %v1199_v55  ;;  %v1563_v53 = vld [vmem:[#allocation5 + $0xa58] sm:$0xff]  ;;  %v2481_v54 = vpack.c.bf16 %v1558_v50, %v1556_v49  ;;  %v1560_v56 = vld [vmem:[#allocation5 + $0xa40] sm:$0xff] }
 0x828   :  { %2370 = vmatpush1.bf16.msra.mxu1 %v2369_v0  ;;  %v1205_v0 = vld [vmem:[#allocation5 + $0x7f8] sm:$0xff] }
 0x829   :  { %2372 = vmatprep.subr.bf16.mxu1 %v2371_v1  ;;  %v2405_v1 = vpack.c.bf16 %v1200_v62, %v1198_v61  ;;  %v2407_v2 = vpack.c.bf16 %v1205_v0, %v1203_v63  ;;  %v1567_v61 = vld [vmem:[#allocation5 + $0xa78] sm:$0xff]  ;;  %v1564_v0 = vld [vmem:[#allocation5 + $0xa60] sm:$0xff] }
 0x82c   :  { %2374 = vmatpush1.bf16.msra.mxu1 %v2373_v6  ;;  %v1204_v6 = vld [vmem:[#allocation5 + $0x7f0] sm:$0xff] }
 0x82d   :  { %2376 = vmatprep.subr.bf16.mxu1 %v2375_v18  ;;  %v3087_v18 = vld [vmem:[#allocation10 + $0x23] ss:$8 sm:$0x3] }
 0x8e6   :  { %v969_v60 = vpop.f32.mrb[2].mxu1  ;;  %v3071_v22 = vpop.f32.mrb[4].mxu0 }
 0x8e7   :  { %v3073_v23 = vadd.f32 %v1051_v20, %v969_v60  ;;  %v971_v24 = vpop.f32.mrb[3].mxu1  ;;  %v3075_v36 = vpop.f32.mrb[5].mxu0  ;;  %v1172_v20 = vld [vmem:[#allocation5 + $0x6f0] sm:$0xff]  ;;  %v1175_v60 = vld [vmem:[#allocation5 + $0x708] sm:$0xff] }
 0x8e8   :  { %v1059_v13 = vadd.f32 %v1055_v21, %v971_v24  ;;  %v2377_v21 = vpack.c.bf16 %v1172_v20, %v1170_v19  ;;  %v1126_v19 = vrot.slane %v3087_v18, %v3005_v5  ;;  %v1061_v20 = vld [vmem:[#allocation10 + $0x13] ss:$8 sm:$0x3] }
 0x8ea   :  { %v1064_v59 = vadd.f32 %v1059_v13, %v3073_v23  ;;  %2378 = vmatpush1.bf16.msra.mxu1 %v2377_v21  ;;  %v1063_v21 = vld [vmem:[#allocation10 + $0x14] ss:$8 sm:$0x3] }
 0x8eb   :  { %v1097_v28 = vrot.slane %v1063_v21, %v3003_v4  ;;  %v1101_v29 = vrot.slane %v1063_v21, %v3005_v5  ;;  %v1577_v21 = vld [vmem:[#allocation5 + $0xac8] sm:$0xff] }
 0x8ec   :  { %1065 = vadd.xlane.f32.xlu1 %v1064_v59  ;;  %v1176_v59 = vld [vmem:[#allocation5 + $0x710] sm:$0xff] }
 0x979   :  { %v1066_v7 = vpop.xlane.xlu1 %1065 }
 0x97a   :  { %v1067_v8 = vmul.f32 0.00390625, %v1066_v7  ;;  %v2409_v7 = vpack.c.bf16 %v1204_v6, %v1202_v3  ;;  %v1571_v3 = vld [vmem:[#allocation5 + $0xa98] sm:$0xff] }
 0x97c   :  { %v3079_v9 = vsub.f32 %v3073_v23, %v1067_v8  ;;  %v3081_v10 = vsub.f32 %v1059_v13, %v1067_v8  ;;  %v1177_v23 = vld [vmem:[#allocation5 + $0x718] sm:$0xff]  ;;  %v1174_v13 = vld [vmem:[#allocation5 + $0x700] sm:$0xff]  ;;  %v1553_v8 = vld [vmem:[#allocation5 + $0xa08] sm:$0xff] }
 0x97d   :  { %v2379_v24 = vpack.c.bf16 %v1177_v23, %v1175_v60  ;;  %v2381_v27 = vpack.c.bf16 %v1176_v59, %v1174_v13  ;;  %v1130_v60 = vadd.f32 %v1126_v19, %v3075_v36  ;;  %v1084_v23 = vrot.slane %v1061_v20, %v3003_v4  ;;  %v1572_v19 = vld [vmem:[#allocation5 + $0xaa0] sm:$0xff] }
 0x97e   :  { %v1070_v11 = vmul.f32 %v3079_v9, %v3079_v9  ;;  %v1071_v14 = vmul.f32 %v3081_v10, %v3081_v10 }
 0x97f   :  { %2380 = vmatprep.subr.bf16.mxu1 %v2379_v24  ;;  %v1088_v24 = vrot.slane %v1061_v20, %v3005_v5  ;;  %v1132_v46 = vmul.f32 0.5, %v1130_v60  ;;  %v1574_v20 = vld [vmem:[#allocation5 + $0xab0] sm:$0xff] }
 0x980   :  { %v1072_v15 = vadd.f32 %v1071_v14, %v1070_v11  ;;  %2382 = vmatpush1.bf16.msra.mxu1 %v2381_v27  ;;  %v1555_v11 = vld [vmem:[#allocation5 + $0xa18] sm:$0xff] }
 0x981   :  { %2384 = vmatprep.subr.bf16.mxu1 %v2383_v30  ;;  %v2475_v14 = vpack.c.bf16 %v1555_v11, %v1553_v8  ;;  %v1134_v30 = vmul.f32 0.70710677, %v1130_v60  ;;  %v1568_v8 = vld [vmem:[#allocation5 + $0xa80] sm:$0xff]  ;;  %v1570_v11 = vld [vmem:[#allocation5 + $0xa90] sm:$0xff]  ;;  %v1579_v60 = vld [vmem:[#allocation5 + $0xad8] sm:$0xff] }
 0x982   :  { %1073 = vadd.xlane.f32.xlu1 %v1072_v15 }
 0x984   :  { %2386 = vmatpush1.bf16.msra.mxu1 %v2385_v33 }
 0x985   :  { %2388 = vmatprep.subr.bf16.mxu1 %v2387_v37 }
 0x988   :  { %2390 = vmatpush1.bf16.msra.mxu1 %v2389_v39 }
 0x989   :  { %2392 = vmatprep.subr.bf16.mxu1 %v2391_v43  ;;  %v1559_v43 = vld [vmem:[#allocation5 + $0xa38] sm:$0xff] }
 0x98a   :  { %v2479_v26 = vpack.c.bf16 %v1559_v43, %v1557_v42  ;;  %v1593_v42 = vld [vmem:[#allocation5 + $0xb48] sm:$0xff]  ;;  %v1595_v43 = vld [vmem:[#allocation5 + $0xb58] sm:$0xff] }
 0x98c   :  { %2394 = vmatpush1.bf16.msra.mxu1 %v2393_v47 }
 0x98d   :  { %2396 = vmatprep.subr.bf16.mxu1 %v2395_v25 }
 0x990   :  { %2398 = vmatpush1.bf16.msra.mxu1 %v2397_v51 }
 0x991   :  { %2400 = vmatprep.subr.bf16.mxu1 %v2399_v52  ;;  %v1561_v52 = vld [vmem:[#allocation5 + $0xa48] sm:$0xff] }
 0x992   :  { %v2483_v55 = vpack.c.bf16 %v1563_v53, %v1561_v52  ;;  %v1596_v52 = vld [vmem:[#allocation5 + $0xb60] sm:$0xff]  ;;  %v1598_v53 = vld [vmem:[#allocation5 + $0xb70] sm:$0xff] }
 0x994   :  { %2402 = vmatpush1.bf16.msra.mxu1 %v2401_v57  ;;  %v1562_v57 = vld [vmem:[#allocation5 + $0xa50] sm:$0xff] }
 0x995   :  { %2404 = vmatprep.subr.bf16.mxu1 %v2403_v58  ;;  %v1565_v58 = vld [vmem:[#allocation5 + $0xa68] sm:$0xff]  ;;  %v2485_v62 = vpack.c.bf16 %v1562_v57, %v1560_v56 }
 0x996   :  { %v2487_v63 = vpack.c.bf16 %v1567_v61, %v1565_v58  ;;  %v1600_v58 = vld [vmem:[#allocation5 + $0xb80] sm:$0xff]  ;;  %v1602_v61 = vld [vmem:[#allocation5 + $0xb90] sm:$0xff] }
 0x998   :  { %2406 = vmatpush1.bf16.msra.mxu1 %v2405_v1  ;;  %v1566_v1 = vld [vmem:[#allocation5 + $0xa70] sm:$0xff] }
 0x999   :  { %2408 = vmatprep.subr.bf16.mxu1 %v2407_v2  ;;  %v1569_v2 = vld [vmem:[#allocation5 + $0xa88] sm:$0xff]  ;;  %v2489_v6 = vpack.c.bf16 %v1566_v1, %v1564_v0  ;;  %v1604_v1 = vld [vmem:[#allocation5 + $0xba0] sm:$0xff] }
 0x99c   :  { %2410 = vmatpush1.bf16.msra.mxu1 %v2409_v7  ;;  %v2491_v7 = vpack.c.bf16 %v1571_v3, %v1569_v2  ;;  %v1606_v2 = vld [vmem:[#allocation5 + $0xbb0] sm:$0xff]  ;;  %v1609_v3 = vld [vmem:[#allocation5 + $0xbc8] sm:$0xff] }
 0x99d   :  { %2476 = vmatprep.subr.bf16.mxu1 %v2475_v14  ;;  %v1573_v14 = vld [vmem:[#allocation5 + $0xaa8] sm:$0xff] }
 0xa0f   :  { %v1074_v15 = vpop.xlane.xlu1 %1073 }
 0xa10   :  { %v1075_v16 = vmul.f32 0.00390625, %v1074_v15  ;;  %v1575_v15 = vld [vmem:[#allocation5 + $0xab8] sm:$0xff] }
 0xa12   :  { %v1076_v17 = vadd.f32 1e-05, %v1075_v16  ;;  %v2493_v16 = vpack.c.bf16 %v1570_v11, %v1568_v8  ;;  %v1608_v11 = vld [vmem:[#allocation5 + $0xbc0] sm:$0xff] }
 0xa14   :  { %2641 = vrsqrt.f32 %v1076_v17  ;;  %v2495_v17 = vpack.c.bf16 %v1575_v15, %v1573_v14  ;;  %v1610_v14 = vld [vmem:[#allocation5 + $0xbd0] sm:$0xff]  ;;  %v1613_v15 = vld [vmem:[#allocation5 + $0xbe8] sm:$0xff] }
 0xa15   :  { %2643 = verf.f32 %v1134_v30 }
 0xa1e   :  { %v2642_v13 = vpop.eup %2641 }
 0xa1f   :  { %v1078_v59 = vmul.f32 %v2642_v13, %v3079_v9  ;;  %v1079_v27 = vmul.f32 %v2642_v13, %v3081_v10  ;;  %v2644_v37 = vpop.eup %2643  ;;  %v1554_v9 = vld [vmem:[#allocation5 + $0xa10] sm:$0xff]  ;;  %v1576_v13 = vld [vmem:[#allocation5 + $0xac0] sm:$0xff] }
 0xa20   :  { %v1138_v10 = vadd.f32 1.0, %v2644_v37  ;;  %v2477_v25 = vpack.c.bf16 %v1554_v9, %v1552_v38  ;;  %v1584_v37 = vld [vmem:[#allocation5 + $0xb00] sm:$0xff]  ;;  %v1589_v38 = vld [vmem:[#allocation5 + $0xb28] sm:$0xff]  ;;  %v1591_v9 = vld [vmem:[#allocation5 + $0xb38] sm:$0xff] }
 0xa21   :  { %v1092_v31 = vmul.f32 %v1088_v24, %v1079_v27  ;;  %v1091_v32 = vmul.f32 %v1084_v23, %v1078_v59  ;;  %v2497_v23 = vpack.c.bf16 %v1574_v20, %v1572_v19  ;;  %v2499_v24 = vpack.c.bf16 %v1579_v60, %v1577_v21  ;;  %v1578_v59 = vld [vmem:[#allocation5 + $0xad0] sm:$0xff]  ;;  %v1581_v27 = vld [vmem:[#allocation5 + $0xae8] sm:$0xff]  ;;  %v1612_v20 = vld [vmem:[#allocation5 + $0xbe0] sm:$0xff] }
 0xa22   :  { %v1140_v51 = vmul.f32 %v1138_v10, %v1132_v46  ;;  %v2511_v10 = vpack.c.bf16 %v1591_v9, %v1589_v38  ;;  %v2515_v46 = vpack.c.bf16 %v1595_v43, %v1593_v42  ;;  %v1614_v21 = vld [vmem:[#allocation5 + $0xbf0] sm:$0xff]  ;;  %v1352_v9 = vld [vmem:[#allocation5 + $0x828] sm:$0xff] }
 0xa23   :  { %v1105_v33 = vadd.f32 %v1101_v29, %v1092_v31  ;;  %v1104_v34 = vadd.f32 %v1097_v28, %v1091_v32  ;;  %v1583_v28 = vld [vmem:[#allocation5 + $0xaf8] sm:$0xff]  ;;  %v2501_v29 = vpack.c.bf16 %v1578_v59, %v1576_v13  ;;  %v1580_v31 = vld [vmem:[#allocation5 + $0xae0] sm:$0xff]  ;;  %v1582_v32 = vld [vmem:[#allocation5 + $0xaf0] sm:$0xff] }
 0xa24   :  { %v2503_v30 = vpack.c.bf16 %v1583_v28, %v1581_v27  ;;  %v1207_v27 = vld [vmem:[#allocation10 + $0x15] ss:$8 sm:$0x3]  ;;  %v1356_v43 = vld [vmem:[#allocation5 + $0x848] sm:$0xff] }
 0xa25   :  { %v1109_v36 = vmul.f32 0.70710677, %v1105_v33  ;;  %v1108_v35 = vmul.f32 0.70710677, %v1104_v34  ;;  %v1107_v40 = vmul.f32 0.5, %v1105_v33  ;;  %v1106_v44 = vmul.f32 0.5, %v1104_v34 }
 0xa26   :  { %v1585_v33 = vld [vmem:[#allocation5 + $0xb08] sm:$0xff]  ;;  %v1587_v34 = vld [vmem:[#allocation5 + $0xb18] sm:$0xff]  ;;  %v1212_v28 = vrot.slane %v1207_v27, %v3003_v4  ;;  %v1349_v38 = vld [vmem:[#allocation5 + $0x810] sm:$0xff] }
 0xa27   :  { %2645 = verf.f32 %v1109_v36  ;;  %v2505_v36 = vpack.c.bf16 %v1582_v32, %v1580_v31  ;;  %v1353_v42 = vld [vmem:[#allocation5 + $0x830] sm:$0xff] }
 0xa28   :  { %2647 = verf.f32 %v1108_v35  ;;  %v2507_v35 = vpack.c.bf16 %v1587_v34, %v1585_v33 }
 0xa31   :  { %v2646_v12 = vpop.eup %2645 }
 0xa32   :  { %v2648_v39 = vpop.eup %2647  ;;  %v1113_v41 = vadd.f32 1.0, %v2646_v12  ;;  %v1586_v12 = vld [vmem:[#allocation5 + $0xb10] sm:$0xff] }
 0xa33   :  { %v1112_v45 = vadd.f32 1.0, %v2648_v39  ;;  %v2509_v39 = vpack.c.bf16 %v1586_v12, %v1584_v37  ;;  %v1347_v37 = vld [vmem:[#allocation5 + $0x800] sm:$0xff] }
 0xa34   :  { %v1115_v47 = vmul.f32 %v1113_v41, %v1107_v40  ;;  %v1588_v40 = vld [vmem:[#allocation5 + $0xb20] sm:$0xff]  ;;  %v1590_v41 = vld [vmem:[#allocation5 + $0xb30] sm:$0xff] }
 0xa35   :  { %v1114_v48 = vmul.f32 %v1112_v45, %v1106_v44  ;;  %v1122_v44 = vrot.slane %v3087_v18, %v3003_v4  ;;  %v2513_v45 = vpack.c.bf16 %v1590_v41, %v1588_v40  ;;  %v2521_v18 = vpack.c.bf16 %v1598_v53, %v1596_v52  ;;  %v1351_v41 = vld [vmem:[#allocation5 + $0x820] sm:$0xff]  ;;  %v1361_v52 = vld [vmem:[#allocation5 + $0x870] sm:$0xff]  ;;  %v1364_v53 = vld [vmem:[#allocation5 + $0x888] sm:$0xff] }
 0xa36   :  { %1283 = vmatprep.mubr.f32.mxu1 %v1115_v47  ;;  %v1592_v47 = vld [vmem:[#allocation5 + $0xb40] sm:$0xff] }
 0xa37   :  { %1284 = vmatmul.mubr.f32.vlgmr.msra.gmra.mrb[4].mxu1 %v1114_v48  ;;  %v1597_v48 = vld [vmem:[#allocation5 + $0xb68] sm:$0xff]  ;;  %v1129_v49 = vadd.f32 %v1122_v44, %v3071_v22  ;;  %v2525_v22 = vpack.c.bf16 %v1602_v61, %v1600_v58  ;;  %v1358_v44 = vld [vmem:[#allocation5 + $0x858] sm:$0xff] }
 0xa38   :  { %2478 = vmatpush1.bf16.msra.mxu1 %v2477_v25  ;;  %1693 = vmatprep.mubr.f32.mxu1 %v1140_v51  ;;  %v1594_v25 = vld [vmem:[#allocation5 + $0xb50] sm:$0xff]  ;;  %v1368_v58 = vld [vmem:[#allocation5 + $0x8a8] sm:$0xff]  ;;  %v1370_v61 = vld [vmem:[#allocation5 + $0x8b8] sm:$0xff] }
 0xa39   :  { %2480 = vmatprep.subr.bf16.mxu1 %v2479_v26  ;;  %v1599_v26 = vld [vmem:[#allocation5 + $0xb78] sm:$0xff]  ;;  %v2517_v50 = vpack.c.bf16 %v1594_v25, %v1592_v47  ;;  %v1133_v56 = vmul.f32 0.70710677, %v1129_v49  ;;  %v1131_v13 = vmul.f32 0.5, %v1129_v49  ;;  %v1355_v47 = vld [vmem:[#allocation5 + $0x840] sm:$0xff]  ;;  %v1357_v25 = vld [vmem:[#allocation5 + $0x850] sm:$0xff] }
 0xa3a   :  { %v2519_v51 = vpack.c.bf16 %v1599_v26, %v1597_v48  ;;  %v1360_v48 = vld [vmem:[#allocation5 + $0x868] sm:$0xff]  ;;  %v1362_v26 = vld [vmem:[#allocation5 + $0x878] sm:$0xff]  ;;  %v2421_v49 = vpack.c.bf16 %v1357_v25, %v1355_v47  ;;  %v1391_v47 = vld [vmem:[#allocation5 + $0x960] sm:$0xff] }
 0xa3b   :  { %2649 = verf.f32 %v1133_v56 }
 0xa3c   :  { %2482 = vmatpush1.bf16.msra.mxu1 %v2481_v54  ;;  %v1601_v54 = vld [vmem:[#allocation5 + $0xb88] sm:$0xff] }
 0xa3d   :  { %2484 = vmatprep.subr.bf16.mxu1 %v2483_v55  ;;  %v1603_v55 = vld [vmem:[#allocation5 + $0xb98] sm:$0xff] }
 0xa3e   :  { %v2523_v57 = vpack.c.bf16 %v1603_v55, %v1601_v54  ;;  %v1366_v54 = vld [vmem:[#allocation5 + $0x898] sm:$0xff] }
 0xa3f   :  { %v2427_v56 = vpack.c.bf16 %v1366_v54, %v1364_v53  ;;  %v1397_v53 = vld [vmem:[#allocation5 + $0x990] sm:$0xff]  ;;  %v1400_v54 = vld [vmem:[#allocation5 + $0x9a8] sm:$0xff] }
 0xa40   :  { %2486 = vmatpush1.bf16.msra.mxu1 %v2485_v62  ;;  %v1605_v62 = vld [vmem:[#allocation5 + $0xba8] sm:$0xff] }
 0xa41   :  { %2488 = vmatprep.subr.bf16.mxu1 %v2487_v63  ;;  %v1607_v63 = vld [vmem:[#allocation5 + $0xbb8] sm:$0xff] }
 0xa42   :  { %v2527_v0 = vpack.c.bf16 %v1607_v63, %v1605_v62  ;;  %v2431_v63 = vpack.c.bf16 %v1370_v61, %v1368_v58  ;;  %v1401_v58 = vld [vmem:[#allocation5 + $0x9b0] sm:$0xff]  ;;  %v1404_v61 = vld [vmem:[#allocation5 + $0x9c8] sm:$0xff] }
 0xa44   :  { %2490 = vmatpush1.bf16.msra.mxu1 %v2489_v6  ;;  %v1611_v6 = vld [vmem:[#allocation5 + $0xbd8] sm:$0xff] }
 0xa45   :  { %2492 = vmatprep.subr.bf16.mxu1 %v2491_v7  ;;  %v2529_v7 = vpack.c.bf16 %v1606_v2, %v1604_v1  ;;  %v2531_v8 = vpack.c.bf16 %v1611_v6, %v1609_v3  ;;  %v2650_v60 = vpop.eup %2649  ;;  %v1372_v1 = vld [vmem:[#allocation5 + $0x8c8] sm:$0xff]  ;;  %v1374_v2 = vld [vmem:[#allocation5 + $0x8d8] sm:$0xff] }
 0xa46   :  { %v2435_v6 = vpack.c.bf16 %v1374_v2, %v1372_v1  ;;  %v1405_v1 = vld [vmem:[#allocation5 + $0x9d0] sm:$0xff]  ;;  %v1408_v2 = vld [vmem:[#allocation5 + $0x9e8] sm:$0xff] }
 0xa48   :  { %2494 = vmatpush1.bf16.msra.mxu1 %v2493_v16  ;;  %v1615_v16 = vld [vmem:[#allocation5 + $0xbf8] sm:$0xff] }
 0xa49   :  { %2496 = vmatprep.subr.bf16.mxu1 %v2495_v17  ;;  %v2533_v17 = vpack.c.bf16 %v1610_v14, %v1608_v11  ;;  %v2535_v19 = vpack.c.bf16 %v1615_v16, %v1613_v15 }
 0xa4c   :  { %2498 = vmatpush1.bf16.msra.mxu1 %v2497_v23  ;;  %v2537_v23 = vpack.c.bf16 %v1614_v21, %v1612_v20 }
 0xa4d   :  { %2500 = vmatprep.subr.bf16.mxu1 %v2499_v24  ;;  %v1137_v24 = vadd.f32 1.0, %v2650_v60 }
 0xa4f   :  { %v1139_v59 = vmul.f32 %v1137_v24, %v1131_v13  ;;  %v1376_v24 = vld [vmem:[#allocation5 + $0x8e8] sm:$0xff]  ;;  %v1378_v13 = vld [vmem:[#allocation5 + $0x8f8] sm:$0xff] }
 0xa50   :  { %2502 = vmatpush1.bf16.msra.mxu1 %v2501_v29  ;;  %v1216_v29 = vrot.slane %v1207_v27, %v3005_v5  ;;  %v1375_v27 = vld [vmem:[#allocation5 + $0x8e0] sm:$0xff] }
 0xa51   :  { %2504 = vmatprep.subr.bf16.mxu1 %v2503_v30 }
 0xa54   :  { %2506 = vmatpush1.bf16.msra.mxu1 %v2505_v36  ;;  %v1348_v36 = vld [vmem:[#allocation5 + $0x808] sm:$0xff] }
 0xa55   :  { %2508 = vmatprep.subr.bf16.mxu1 %v2507_v35  ;;  %v1350_v35 = vld [vmem:[#allocation5 + $0x818] sm:$0xff] }
 0xa56   :  { %v2411_v12 = vpack.c.bf16 %v1350_v35, %v1348_v36  ;;  %v1384_v35 = vld [vmem:[#allocation5 + $0x928] sm:$0xff] }
 0xa58   :  { %2510 = vmatpush1.bf16.msra.mxu1 %v2509_v39  ;;  %v1354_v39 = vld [vmem:[#allocation5 + $0x838] sm:$0xff]  ;;  %2412 = vmatprep.subr.bf16.mxu0 %v2411_v12 }
 0xa59   :  { %2512 = vmatprep.subr.bf16.mxu1 %v2511_v10  ;;  %v2413_v10 = vpack.c.bf16 %v1349_v38, %v1347_v37  ;;  %v2415_v40 = vpack.c.bf16 %v1354_v39, %v1352_v9  ;;  %v1386_v37 = vld [vmem:[#allocation5 + $0x938] sm:$0xff]  ;;  %v1383_v38 = vld [vmem:[#allocation5 + $0x920] sm:$0xff]  ;;  %v1385_v9 = vld [vmem:[#allocation5 + $0x930] sm:$0xff] }
 0xa5a   :  { %v2447_v12 = vpack.c.bf16 %v1386_v37, %v1384_v35  ;;  %v2449_v39 = vpack.c.bf16 %v1385_v9, %v1383_v38 }
 0xa5b   :  { %2414 = vmatpush1.bf16.msra.mxu0 %v2413_v10  ;;  %v1388_v10 = vld [vmem:[#allocation5 + $0x948] sm:$0xff] }
 0xa5c   :  { %2514 = vmatpush1.bf16.msra.mxu1 %v2513_v45  ;;  %v2417_v45 = vpack.c.bf16 %v1353_v42, %v1351_v41  ;;  %2416 = vmatprep.subr.bf16.mxu0 %v2415_v40  ;;  %v1390_v40 = vld [vmem:[#allocation5 + $0x958] sm:$0xff]  ;;  %v1387_v42 = vld [vmem:[#allocation5 + $0x940] sm:$0xff] }
 0xa5d   :  { %2516 = vmatprep.subr.bf16.mxu1 %v2515_v46  ;;  %v2419_v46 = vpack.c.bf16 %v1358_v44, %v1356_v43  ;;  %v2451_v41 = vpack.c.bf16 %v1390_v40, %v1388_v10  ;;  %v1389_v43 = vld [vmem:[#allocation5 + $0x950] sm:$0xff] }
 0xa5e   :  { %v2453_v44 = vpack.c.bf16 %v1389_v43, %v1387_v42  ;;  %v1743_v43 = vld [vmem:[#allocation8 + $0x100] sm:$0xff] }
 0xa5f   :  { %2418 = vmatpush1.bf16.msra.mxu0 %v2417_v45  ;;  %v1392_v45 = vld [vmem:[#allocation5 + $0x968] sm:$0xff] }
 0xa60   :  { %2518 = vmatpush1.bf16.msra.mxu1 %v2517_v50  ;;  %2420 = vmatprep.subr.bf16.mxu0 %v2419_v46  ;;  %v2423_v50 = vpack.c.bf16 %v1362_v26, %v1360_v48  ;;  %v1394_v46 = vld [vmem:[#allocation5 + $0x978] sm:$0xff]  ;;  %v1393_v48 = vld [vmem:[#allocation5 + $0x970] sm:$0xff]  ;;  %v1396_v26 = vld [vmem:[#allocation5 + $0x988] sm:$0xff] }
 0xa61   :  { %2520 = vmatprep.subr.bf16.mxu1 %v2519_v51  ;;  %v1359_v51 = vld [vmem:[#allocation5 + $0x860] sm:$0xff]  ;;  %v2455_v25 = vpack.c.bf16 %v1394_v46, %v1392_v45 }
 0xa62   :  { %v2425_v55 = vpack.c.bf16 %v1361_v52, %v1359_v51  ;;  %v1395_v52 = vld [vmem:[#allocation5 + $0x980] sm:$0xff] }
 0xa63   :  { %2422 = vmatpush1.bf16.msra.mxu0 %v2421_v49  ;;  %v1398_v49 = vld [vmem:[#allocation5 + $0x998] sm:$0xff] }
 0xa64   :  { %2522 = vmatpush1.bf16.msra.mxu1 %v2521_v18  ;;  %2424 = vmatprep.subr.bf16.mxu0 %v2423_v50  ;;  %v1363_v18 = vld [vmem:[#allocation5 + $0x880] sm:$0xff]  ;;  %v2457_v50 = vpack.c.bf16 %v1393_v48, %v1391_v47  ;;  %v2459_v51 = vpack.c.bf16 %v1398_v49, %v1396_v26  ;;  %v1761_v47 = vld [vmem:[#allocation8 + $0x190] sm:$0xff] }
 0xa65   :  { %2524 = vmatprep.subr.bf16.mxu1 %v2523_v57  ;;  %v1365_v57 = vld [vmem:[#allocation5 + $0x890] sm:$0xff] }
 0xa66   :  { %v2429_v62 = vpack.c.bf16 %v1365_v57, %v1363_v18  ;;  %v1399_v57 = vld [vmem:[#allocation5 + $0x9a0] sm:$0xff] }
 0xa67   :  { %2426 = vmatpush1.bf16.msra.mxu0 %v2425_v55  ;;  %v1402_v55 = vld [vmem:[#allocation5 + $0x9b8] sm:$0xff] }
 0xa68   :  { %2526 = vmatpush1.bf16.msra.mxu1 %v2525_v22  ;;  %2428 = vmatprep.subr.bf16.mxu0 %v2427_v56  ;;  %v1367_v22 = vld [vmem:[#allocation5 + $0x8a0] sm:$0xff]  ;;  %v2461_v56 = vpack.c.bf16 %v1397_v53, %v1395_v52  ;;  %v2463_v18 = vpack.c.bf16 %v1402_v55, %v1400_v54  ;;  %v1745_v54 = vld [vmem:[#allocation8 + $0x110] sm:$0xff]  ;;  %v1746_v55 = vld [vmem:[#allocation8 + $0x118] sm:$0xff] }
 0xa69   :  { %2528 = vmatprep.subr.bf16.mxu1 %v2527_v0  ;;  %v1369_v0 = vld [vmem:[#allocation5 + $0x8b0] sm:$0xff] }
 0xa6a   :  { %v2433_v3 = vpack.c.bf16 %v1369_v0, %v1367_v22  ;;  %v1403_v0 = vld [vmem:[#allocation5 + $0x9c0] sm:$0xff] }
 0xa6b   :  { %2430 = vmatpush1.bf16.msra.mxu0 %v2429_v62  ;;  %v1406_v62 = vld [vmem:[#allocation5 + $0x9d8] sm:$0xff] }
 0xa6c   :  { %2530 = vmatpush1.bf16.msra.mxu1 %v2529_v7  ;;  %2432 = vmatprep.subr.bf16.mxu0 %v2431_v63  ;;  %v1371_v7 = vld [vmem:[#allocation5 + $0x8c0] sm:$0xff]  ;;  %v2465_v63 = vpack.c.bf16 %v1401_v58, %v1399_v57  ;;  %v2467_v22 = vpack.c.bf16 %v1406_v62, %v1404_v61  ;;  %v1764_v57 = vld [vmem:[#allocation8 + $0x1a8] sm:$0xff]  ;;  %v2545_v61 = vpack.c.bf16 %v1746_v55, %v1745_v54 }
 0xa6d   :  { %2532 = vmatprep.subr.bf16.mxu1 %v2531_v8  ;;  %v1373_v8 = vld [vmem:[#allocation5 + $0x8d0] sm:$0xff] }
 0xa6e   :  { %v2437_v11 = vpack.c.bf16 %v1373_v8, %v1371_v7  ;;  %v1407_v8 = vld [vmem:[#allocation5 + $0x9e0] sm:$0xff] }
 0xa6f   :  { %2434 = vmatpush1.bf16.msra.mxu0 %v2433_v3  ;;  %v1410_v3 = vld [vmem:[#allocation5 + $0x9f8] sm:$0xff] }
 0xa70   :  { %2534 = vmatpush1.bf16.msra.mxu1 %v2533_v17  ;;  %2436 = vmatprep.subr.bf16.mxu0 %v2435_v6  ;;  %v2469_v6 = vpack.c.bf16 %v1405_v1, %v1403_v0  ;;  %v2471_v7 = vpack.c.bf16 %v1410_v3, %v1408_v2  ;;  %v1765_v0 = vld [vmem:[#allocation8 + $0x1b0] sm:$0xff]  ;;  %v1766_v1 = vld [vmem:[#allocation8 + $0x1b8] sm:$0xff] }
 0xa71   :  { %2536 = vmatprep.subr.bf16.mxu1 %v2535_v19 }
 0xa73   :  { %2438 = vmatpush1.bf16.msra.mxu0 %v2437_v11  ;;  %v1409_v11 = vld [vmem:[#allocation5 + $0x9f0] sm:$0xff] }
 0xa74   :  { %2538 = vmatpush1.bf16.msra.mxu1 %v2537_v23 }
 0xa77   :  { %1694 = vmatmul.mubr.f32.vlgmr.msra.gmra.mrb[6].mxu1 %v1139_v59  ;;  %v2439_v59 = vpack.c.bf16 %v1378_v13, %v1376_v24 }
 0xa79   :  { %2440 = vmatprep.subr.bf16.mxu0 %v2439_v59  ;;  %v1617_v59 = vld [vmem:[#allocation10 + $0x24] ss:$8 sm:$0x3] }
 0xa7a   :  { %v1622_v58 = vrot.slane %v1617_v59, %v3003_v4 }
 0xb0a   :  { %v1285_v30 = vpop.f32.mrb[4].mxu1 }
 0xb0b   :  { %v3103_v31 = vadd.f32 %v1285_v30, %v1212_v28  ;;  %v1287_v32 = vpop.f32.mrb[5].mxu1  ;;  %v1377_v28 = vld [vmem:[#allocation5 + $0x8f0] sm:$0xff]  ;;  %v1380_v30 = vld [vmem:[#allocation5 + $0x908] sm:$0xff] }
 0xb0c   :  { %v3105_v33 = vadd.f32 %v1287_v32, %v1216_v29  ;;  %v2441_v29 = vpack.c.bf16 %v1377_v28, %v1375_v27  ;;  %v1626_v27 = vrot.slane %v1617_v59, %v3005_v5  ;;  %v1291_v28 = vld [vmem:[#allocation10 + $0x16] ss:$8 sm:$0x3] }
 0xb0d   :  { %v1770_v59 = vld [vmem:[#allocation8 + $0x1d8] sm:$0xff] }
 0xb0e   :  { %v1294_v34 = vadd.f32 %v3105_v33, %v3103_v31  ;;  %2442 = vmatpush1.bf16.msra.mxu0 %v2441_v29  ;;  %v1293_v29 = vld [vmem:[#allocation10 + $0x17] ss:$8 sm:$0x3] }
 0xb0f   :  { %v1327_v35 = vrot.slane %v1293_v29, %v3003_v4  ;;  %v1331_v37 = vrot.slane %v1293_v29, %v3005_v5  ;;  %v1754_v29 = vld [vmem:[#allocation8 + $0x158] sm:$0xff] }
 0xb10   :  { %1295 = vadd.xlane.f32.xlu1 %v1294_v34  ;;  %v1381_v34 = vld [vmem:[#allocation5 + $0x910] sm:$0xff] }
 0xb4a   :  { %v3109_v14 = vpop.f32.mrb[6].mxu1 }
 0xb4b   :  { %v3111_v15 = vpop.f32.mrb[7].mxu1  ;;  %v1696_v2 = vadd.f32 %v3109_v14, %v1622_v58 }
 0xb9d   :  { %v1296_v16 = vpop.xlane.xlu1 %1295 }
 0xb9e   :  { %v1297_v17 = vmul.f32 0.00390625, %v1296_v16  ;;  %v2473_v16 = vpack.c.bf16 %v1409_v11, %v1407_v8  ;;  %v1750_v8 = vld [vmem:[#allocation8 + $0x138] sm:$0xff]  ;;  %v1767_v11 = vld [vmem:[#allocation8 + $0x1c0] sm:$0xff] }
 0xba0   :  { %v3114_v19 = vsub.f32 %v3103_v31, %v1297_v17  ;;  %v3117_v20 = vsub.f32 %v3105_v33, %v1297_v17  ;;  %v1382_v31 = vld [vmem:[#allocation5 + $0x918] sm:$0xff]  ;;  %v1379_v33 = vld [vmem:[#allocation5 + $0x900] sm:$0xff] }
 0xba1   :  { %v2443_v32 = vpack.c.bf16 %v1382_v31, %v1380_v30  ;;  %v2445_v36 = vpack.c.bf16 %v1381_v34, %v1379_v33  ;;  %v1759_v17 = vld [vmem:[#allocation8 + $0x180] sm:$0xff]  ;;  %v1698_v30 = vadd.f32 %v3111_v15, %v1626_v27  ;;  %v1314_v31 = vrot.slane %v1291_v28, %v3003_v4 }
 0xba2   :  { %v1300_v21 = vmul.f32 %v3114_v19, %v3114_v19  ;;  %v1301_v60 = vmul.f32 %v3117_v20, %v3117_v20 }
 0xba3   :  { %2444 = vmatprep.subr.bf16.mxu0 %v2443_v32  ;;  %v1318_v32 = vrot.slane %v1291_v28, %v3005_v5  ;;  %v1701_v49 = vmul.f32 0.5, %v1698_v30  ;;  %v1753_v28 = vld [vmem:[#allocation8 + $0x150] sm:$0xff] }
 0xba4   :  { %v1302_v23 = vadd.f32 %v1301_v60, %v1300_v21  ;;  %2446 = vmatpush1.bf16.msra.mxu0 %v2445_v36  ;;  %v1760_v21 = vld [vmem:[#allocation8 + $0x188] sm:$0xff] }
 0xba5   :  { %2448 = vmatprep.subr.bf16.mxu0 %v2447_v12  ;;  %v2539_v60 = vpack.c.bf16 %v1760_v21, %v1759_v17  ;;  %v1703_v12 = vmul.f32 0.70710677, %v1698_v30  ;;  %v1702_v17 = vmul.f32 0.70710677, %v1696_v2  ;;  %v1771_v30 = vld [vmem:[#allocation8 + $0x1e0] sm:$0xff] }
 0xba6   :  { %1303 = vadd.xlane.f32.xlu0 %v1302_v23 }
 0xba8   :  { %2450 = vmatpush1.bf16.msra.mxu0 %v2449_v39 }
 0xba9   :  { %2452 = vmatprep.subr.bf16.mxu0 %v2451_v41 }
 0xbac   :  { %2454 = vmatpush1.bf16.msra.mxu0 %v2453_v44 }
 0xbad   :  { %2456 = vmatprep.subr.bf16.mxu0 %v2455_v25  ;;  %v1762_v25 = vld [vmem:[#allocation8 + $0x198] sm:$0xff] }
 0xbae   :  { %v2543_v53 = vpack.c.bf16 %v1762_v25, %v1761_v47 }
 0xbb0   :  { %2458 = vmatpush1.bf16.msra.mxu0 %v2457_v50 }
 0xbb1   :  { %2460 = vmatprep.subr.bf16.mxu0 %v2459_v51 }
 0xbb4   :  { %2462 = vmatpush1.bf16.msra.mxu0 %v2461_v56 }
 0xbb5   :  { %2464 = vmatprep.subr.bf16.mxu0 %v2463_v18  ;;  %v1763_v18 = vld [vmem:[#allocation8 + $0x1a0] sm:$0xff] }
 0xbb6   :  { %v2547_v62 = vpack.c.bf16 %v1764_v57, %v1763_v18  ;;  %v1726_v18 = vld [vmem:[#allocation8 + $0x80] sm:$0xff]  ;;  %v1727_v57 = vld [vmem:[#allocation8 + $0x88] sm:$0xff] }
 0xbb7   :  { %v2571_v58 = vpack.c.bf16 %v1727_v57, %v1726_v18 }
 0xbb8   :  { %2466 = vmatpush1.bf16.msra.mxu0 %v2465_v63  ;;  %v1747_v63 = vld [vmem:[#allocation8 + $0x120] sm:$0xff] }
 0xbb9   :  { %2468 = vmatprep.subr.bf16.mxu0 %v2467_v22  ;;  %v1748_v22 = vld [vmem:[#allocation8 + $0x128] sm:$0xff]  ;;  %2572 = vmatprep.subr.bf16.mxu1 %v2571_v58 }
 0xbba   :  { %v2549_v3 = vpack.c.bf16 %v1748_v22, %v1747_v63  ;;  %v1728_v22 = vld [vmem:[#allocation8 + $0x90] sm:$0xff] }
 0xbbc   :  { %2470 = vmatpush1.bf16.msra.mxu0 %v2469_v6  ;;  %v2551_v6 = vpack.c.bf16 %v1766_v1, %v1765_v0  ;;  %v1729_v0 = vld [vmem:[#allocation8 + $0x98] sm:$0xff] }
 0xbbd   :  { %2472 = vmatprep.subr.bf16.mxu0 %v2471_v7  ;;  %v1749_v7 = vld [vmem:[#allocation8 + $0x130] sm:$0xff]  ;;  %v2575_v1 = vpack.c.bf16 %v1729_v0, %v1728_v22 }
 0xbbe   :  { %v2553_v21 = vpack.c.bf16 %v1750_v8, %v1749_v7  ;;  %v1730_v7 = vld [vmem:[#allocation8 + $0xa0] sm:$0xff]  ;;  %v1731_v8 = vld [vmem:[#allocation8 + $0xa8] sm:$0xff] }
 0xbc0   :  { %2474 = vmatpush1.bf16.msra.mxu0 %v2473_v16  ;;  %v1768_v16 = vld [vmem:[#allocation8 + $0x1c8] sm:$0xff] }
 0xbc1   :  { %2540 = vmatprep.subr.bf16.mxu0 %v2539_v60  ;;  %v2555_v60 = vpack.c.bf16 %v1768_v16, %v1767_v11  ;;  %v2579_v11 = vpack.c.bf16 %v1731_v8, %v1730_v7  ;;  %v1714_v16 = vld [vmem:[#allocation8 + $0x20] sm:$0xff] }
 0xc33   :  { %v1304_v23 = vpop.xlane.xlu0 %1303 }
 0xc34   :  { %v1305_v24 = vmul.f32 0.00390625, %v1304_v23  ;;  %v1751_v23 = vld [vmem:[#allocation8 + $0x140] sm:$0xff] }
 0xc36   :  { %v1306_v13 = vadd.f32 1e-05, %v1305_v24  ;;  %v1752_v24 = vld [vmem:[#allocation8 + $0x148] sm:$0xff] }
 0xc37   :  { %v2557_v14 = vpack.c.bf16 %v1752_v24, %v1751_v23  ;;  %v1733_v23 = vld [vmem:[#allocation8 + $0xb8] sm:$0xff]  ;;  %v1716_v24 = vld [vmem:[#allocation8 + $0x30] sm:$0xff] }
 0xc38   :  { %2651 = vrsqrt.f32 %v1306_v13  ;;  %v1769_v13 = vld [vmem:[#allocation8 + $0x1d0] sm:$0xff] }
 0xc39   :  { %2653 = verf.f32 %v1703_v12  ;;  %v2559_v27 = vpack.c.bf16 %v1770_v59, %v1769_v13  ;;  %v1717_v59 = vld [vmem:[#allocation8 + $0x38] sm:$0xff] }
 0xc42   :  { %v2652_v33 = vpop.eup %2651 }
 0xc43   :  { %v1308_v34 = vmul.f32 %v2652_v33, %v3114_v19  ;;  %v1309_v36 = vmul.f32 %v2652_v33, %v3117_v20  ;;  %v2654_v41 = vpop.eup %2653  ;;  %v1744_v19 = vld [vmem:[#allocation8 + $0x108] sm:$0xff] }
 0xc44   :  { %v1707_v20 = vadd.f32 1.0, %v2654_v41  ;;  %v2541_v51 = vpack.c.bf16 %v1744_v19, %v1743_v43  ;;  %v1700_v41 = vmul.f32 0.5, %v1696_v2  ;;  %v1412_v43 = vld [vmem:[#allocation10 + $0x20] ss:$8 sm:$0x3]  ;;  %v1712_v2 = vld [vmem:[#allocation8 + $0x10] sm:$0xff] }
 0xc45   :  { %v1322_v38 = vmul.f32 %v1318_v32, %v1309_v36  ;;  %v1321_v9 = vmul.f32 %v1314_v31, %v1308_v34  ;;  %v1772_v31 = vld [vmem:[#allocation8 + $0x1e8] sm:$0xff]  ;;  %v2561_v32 = vpack.c.bf16 %v1754_v29, %v1753_v28  ;;  %v1755_v34 = vld [vmem:[#allocation8 + $0x160] sm:$0xff]  ;;  %v1417_v19 = vrot.slane %v1412_v43, %v3003_v4 }
 0xc46   :  { %v1709_v56 = vmul.f32 %v1707_v20, %v1701_v49  ;;  %v2563_v33 = vpack.c.bf16 %v1772_v31, %v1771_v30  ;;  %v1756_v36 = vld [vmem:[#allocation8 + $0x168] sm:$0xff]  ;;  %v2585_v28 = vpack.c.bf16 %v1717_v59, %v1716_v24  ;;  %v1718_v30 = vld [vmem:[#allocation8 + $0x40] sm:$0xff] }
 0xc47   :  { %v1335_v39 = vadd.f32 %v1331_v37, %v1322_v38  ;;  %v1334_v10 = vadd.f32 %v1327_v35, %v1321_v9  ;;  %v1773_v35 = vld [vmem:[#allocation8 + $0x1f0] sm:$0xff]  ;;  %v1774_v37 = vld [vmem:[#allocation8 + $0x1f8] sm:$0xff]  ;;  %v2565_v12 = vpack.c.bf16 %v1756_v36, %v1755_v34  ;;  %v1719_v31 = vld [vmem:[#allocation8 + $0x48] sm:$0xff] }
 0xc48   :  { %v2567_v38 = vpack.c.bf16 %v1774_v37, %v1773_v35  ;;  %v1757_v9 = vld [vmem:[#allocation8 + $0x170] sm:$0xff]  ;;  %v2589_v34 = vpack.c.bf16 %v1719_v31, %v1718_v30  ;;  %v1721_v37 = vld [vmem:[#allocation8 + $0x58] sm:$0xff] }
 0xc49   :  { %v1339_v15 = vmul.f32 0.70710677, %v1335_v39  ;;  %v1338_v40 = vmul.f32 0.70710677, %v1334_v10  ;;  %v1337_v45 = vmul.f32 0.5, %v1335_v39  ;;  %v1336_v48 = vmul.f32 0.5, %v1334_v10 }
 0xc4a   :  { %v1758_v39 = vld [vmem:[#allocation8 + $0x178] sm:$0xff]  ;;  %v1720_v35 = vld [vmem:[#allocation8 + $0x50] sm:$0xff] }
 0xc4b   :  { %2655 = verf.f32 %v1339_v15  ;;  %v2569_v15 = vpack.c.bf16 %v1758_v39, %v1757_v9  ;;  %v2593_v9 = vpack.c.bf16 %v1721_v37, %v1720_v35 }
 0xc4c   :  { %2657 = verf.f32 %v1338_v40 }
 0xc4d   :  { %2659 = verf.f32 %v1702_v17  ;;  %v1715_v17 = vld [vmem:[#allocation8 + $0x28] sm:$0xff] }
 0xc55   :  { %v2656_v42 = vpop.eup %2655 }
 0xc56   :  { %v2658_v44 = vpop.eup %2657  ;;  %v1343_v46 = vadd.f32 1.0, %v2656_v42 }
 0xc57   :  { %v1342_v26 = vadd.f32 1.0, %v2658_v44  ;;  %v2660_v10 = vpop.eup %2659  ;;  %v1421_v44 = vrot.slane %v1412_v43, %v3005_v5 }
 0xc58   :  { %v1345_v50 = vmul.f32 %v1343_v46, %v1337_v45  ;;  %v1706_v40 = vadd.f32 1.0, %v2660_v10  ;;  %v1722_v10 = vld [vmem:[#allocation8 + $0x60] sm:$0xff] }
 0xc59   :  { %v1344_v52 = vmul.f32 %v1342_v26, %v1336_v48 }
 0xc5a   :  { %1488 = vmatprep.mubr.f32.mxu0 %v1345_v50  ;;  %v1708_v42 = vmul.f32 %v1706_v40, %v1700_v41  ;;  %v1740_v40 = vld [vmem:[#allocation8 + $0xf0] sm:$0xff]  ;;  %v1741_v41 = vld [vmem:[#allocation8 + $0xf8] sm:$0xff] }
 0xc5b   :  { %1489 = vmatmul.mubr.f32.vlgmr.msra.gmra.mrb[6].mxu0 %v1344_v52  ;;  %v2599_v43 = vpack.c.bf16 %v1741_v41, %v1740_v40 }
 0xc5c   :  { %2542 = vmatpush3.bf16.msra.mxu0 %v2541_v51  ;;  %1839 = vmatprep.mubr.f32.mxu0 %v1709_v56 }
 0xc5d   :  { %2544 = vmatprep.subr.bf16.mxu0 %v2543_v53 }
 0xc60   :  { %2546 = vmatpush3.bf16.msra.mxu0 %v2545_v61  ;;  %v1710_v61 = vld [vmem:[#allocation8] sm:$0xff] }
 0xc61   :  { %2548 = vmatprep.subr.bf16.mxu0 %v2547_v62  ;;  %v1711_v62 = vld [vmem:[#allocation8 + $0x8] sm:$0xff] }
 0xc62   :  { %v2573_v63 = vpack.c.bf16 %v1711_v62, %v1710_v61 }
 0xc64   :  { %2550 = vmatpush3.bf16.msra.mxu0 %v2549_v3  ;;  %2574 = vmatpush3.bf16.msra.mxu1 %v2573_v63  ;;  %v1713_v3 = vld [vmem:[#allocation8 + $0x18] sm:$0xff] }
 0xc65   :  { %2552 = vmatprep.subr.bf16.mxu0 %v2551_v6  ;;  %v2577_v6 = vpack.c.bf16 %v1713_v3, %v1712_v2  ;;  %2576 = vmatprep.subr.bf16.mxu1 %v2575_v1 }
 0xc68   :  { %2554 = vmatpush3.bf16.msra.mxu0 %v2553_v21  ;;  %2578 = vmatpush3.bf16.msra.mxu1 %v2577_v6  ;;  %v2581_v21 = vpack.c.bf16 %v1715_v17, %v1714_v16 }
 0xc69   :  { %2556 = vmatprep.subr.bf16.mxu0 %v2555_v60  ;;  %v1732_v60 = vld [vmem:[#allocation8 + $0xb0] sm:$0xff]  ;;  %2580 = vmatprep.subr.bf16.mxu1 %v2579_v11 }
 0xc6a   :  { %v2583_v13 = vpack.c.bf16 %v1733_v23, %v1732_v60 }
 0xc6c   :  { %2558 = vmatpush3.bf16.msra.mxu0 %v2557_v14  ;;  %v1734_v14 = vld [vmem:[#allocation8 + $0xc0] sm:$0xff]  ;;  %2582 = vmatpush3.bf16.msra.mxu1 %v2581_v21 }
 0xc6d   :  { %2560 = vmatprep.subr.bf16.mxu0 %v2559_v27  ;;  %v1735_v27 = vld [vmem:[#allocation8 + $0xc8] sm:$0xff]  ;;  %2584 = vmatprep.subr.bf16.mxu1 %v2583_v13 }
 0xc6e   :  { %v2587_v29 = vpack.c.bf16 %v1735_v27, %v1734_v14 }
 0xc70   :  { %2562 = vmatpush3.bf16.msra.mxu0 %v2561_v32  ;;  %v1736_v32 = vld [vmem:[#allocation8 + $0xd0] sm:$0xff]  ;;  %2586 = vmatpush3.bf16.msra.mxu1 %v2585_v28 }
 0xc71   :  { %2564 = vmatprep.subr.bf16.mxu0 %v2563_v33  ;;  %v1737_v33 = vld [vmem:[#allocation8 + $0xd8] sm:$0xff]  ;;  %2588 = vmatprep.subr.bf16.mxu1 %v2587_v29 }
 0xc72   :  { %v2591_v36 = vpack.c.bf16 %v1737_v33, %v1736_v32 }
 0xc74   :  { %2566 = vmatpush3.bf16.msra.mxu0 %v2565_v12  ;;  %v1738_v12 = vld [vmem:[#allocation8 + $0xe0] sm:$0xff]  ;;  %2590 = vmatpush3.bf16.msra.mxu1 %v2589_v34 }
 0xc75   :  { %2568 = vmatprep.subr.bf16.mxu0 %v2567_v38  ;;  %v1739_v38 = vld [vmem:[#allocation8 + $0xe8] sm:$0xff]  ;;  %2592 = vmatprep.subr.bf16.mxu1 %v2591_v36 }
 0xc76   :  { %v2595_v39 = vpack.c.bf16 %v1739_v38, %v1738_v12 }
 0xc78   :  { %2570 = vmatpush3.bf16.msra.mxu0 %v2569_v15  ;;  %v1723_v15 = vld [vmem:[#allocation8 + $0x68] sm:$0xff]  ;;  %2594 = vmatpush3.bf16.msra.mxu1 %v2593_v9 }
 0xc79   :  { %2596 = vmatprep.subr.bf16.mxu1 %v2595_v39 }
 0xc7b   :  { %1840 = vmatmul.mubr.f32.vlgmr.msra.gmra.mrb[8].mxu0 %v1708_v42  ;;  %v2597_v42 = vpack.c.bf16 %v1723_v15, %v1722_v10 }
 0xc7d   :  { %2598 = vmatpush3.bf16.msra.mxu1 %v2597_v42 }
 0xc7e   :  { %2600 = vmatprep.subr.bf16.mxu1 %v2599_v43 }
 0xd2e   :  { %v1490_v20 = vpop.f32.mrb[6].mxu0 }
 0xd2f   :  { %v1491_v45 = vadd.f32 %v1490_v20, %v1417_v19  ;;  %v1492_v46 = vpop.f32.mrb[7].mxu0  ;;  %v1724_v19 = vld [vmem:[#allocation8 + $0x70] sm:$0xff] }
 0xd30   :  { %v1493_v47 = vadd.f32 %v1492_v46, %v1421_v44  ;;  %v1725_v44 = vld [vmem:[#allocation8 + $0x78] sm:$0xff] }
 0xd31   :  { %v2601_v20 = vpack.c.bf16 %v1725_v44, %v1724_v19 }
 0xd32   :  { %v1499_v25 = vadd.f32 %v1493_v47, %v1491_v45 }
 0xd33   :  { %2602 = vmatpush3.bf16.msra.mxu1 %v2601_v20 }
 0xd34   :  { %1500 = vadd.xlane.f32.xlu1 %v1499_v25  ;;  %v1496_v25 = vld [vmem:[#allocation10 + $0x21] ss:$8 sm:$0x3] }
 0xd4e   :  { %v1989_v48 = vpop.f32.mrb[8].mxu0 }
 0xd4f   :  { %v1990_v26 = vpop.f32.mrb[9].mxu0 }
 0xd50   :  { %v3135_v49 = vadd.f32 %v1990_v26, %v1989_v48  ;;  %v1498_v48 = vld [vmem:[#allocation10 + $0x22] ss:$8 sm:$0x3]  ;;  %v1519_v26 = vrot.slane %v1496_v25, %v3003_v4 }
 0xd51   :  { %v1536_v18 = vrot.slane %v1498_v48, %v3005_v5 }
 0xdc1   :  { %v1501_v50 = vpop.xlane.xlu1 %1500 }
 0xdc2   :  { %v1502_v51 = vmul.f32 0.00390625, %v1501_v50  ;;  %v1523_v50 = vrot.slane %v1496_v25, %v3005_v5 }
 0xdc4   :  { %v3137_v52 = vsub.f32 %v1491_v45, %v1502_v51  ;;  %v3139_v53 = vsub.f32 %v1493_v47, %v1502_v51 }
 0xdc6   :  { %v1505_v54 = vmul.f32 %v3137_v52, %v3137_v52  ;;  %v1506_v55 = vmul.f32 %v3139_v53, %v3139_v53 }
 0xdc8   :  { %v1507_v56 = vadd.f32 %v1506_v55, %v1505_v54 }
 0xdca   :  { %1508 = vadd.xlane.f32.xlu0 %v1507_v56  ;;  %v1532_v56 = vrot.slane %v1498_v48, %v3003_v4 }
 0xe57   :  { %v1509_v45 = vpop.xlane.xlu0 %1508 }
 0xe58   :  { %v1510_v46 = vmul.f32 0.00390625, %v1509_v45 }
 0xe5a   :  { %v1511_v47 = vadd.f32 1e-05, %v1510_v46 }
 0xe5c   :  { %2661 = vrsqrt.f32 %v1511_v47 }
 0xe66   :  { %v2662_v51 = vpop.eup %2661 }
 0xe67   :  { %v1513_v54 = vmul.f32 %v2662_v51, %v3137_v52  ;;  %v1514_v55 = vmul.f32 %v2662_v51, %v3139_v53 }
 0xe69   :  { %v1527_v57 = vmul.f32 %v1523_v50, %v1514_v55  ;;  %v1526_v58 = vmul.f32 %v1519_v26, %v1513_v54 }
 0xe6b   :  { %v1540_v61 = vadd.f32 %v1536_v18, %v1527_v57  ;;  %v1539_v62 = vadd.f32 %v1532_v56, %v1526_v58 }
 0xe6d   :  { %v1544_v63 = vmul.f32 0.70710677, %v1540_v61  ;;  %v1543_v22 = vmul.f32 0.70710677, %v1539_v62  ;;  %v1542_v2 = vmul.f32 0.5, %v1540_v61  ;;  %v1541_v6 = vmul.f32 0.5, %v1539_v62 }
 0xe6f   :  { %2663 = verf.f32 %v1544_v63 }
 0xe70   :  { %2665 = verf.f32 %v1543_v22 }
 0xe79   :  { %v2664_v0 = vpop.eup %2663 }
 0xe7a   :  { %v2666_v1 = vpop.eup %2665  ;;  %v1548_v3 = vadd.f32 1.0, %v2664_v0 }
 0xe7b   :  { %v1547_v52 = vadd.f32 1.0, %v2666_v1 }
 0xe7c   :  { %v1550_v7 = vmul.f32 %v1548_v3, %v1542_v2 }
 0xe7d   :  { %v1549_v53 = vmul.f32 %v1547_v52, %v1541_v6 }
 0xe7e   :  { %1909 = vmatprep.mubr.f32.mxu1 %v1550_v7 }
 0xe7f   :  { %1910 = vmatmul.mubr.f32.vlgmr.msra.gmra.mrb[8].mxu1 %v1549_v53 }
 0xe80   :  { %2810 = shalt.err (!%p2807_p10)
}
 0xe81   :  { %s2811_s19 = scalar_lea.hbm %s3184_s8, 256 }
 0xe82   :  { %p2812_p11 = scmp.ne.s32.totalorder %s3184_s8, %s2811_s19  ;;  %p2815_p12 = scmp.lt.u32.totalorder %s2811_s19, %s3184_s8 }
 0xe84   :  { %p2817_p13 = pnand %p2815_p12, %p2812_p11 }
 0xe86   :  { %2820 = shalt.err (!%p2817_p13)
}
 0xe87   :  { %1943 = dma.vmem_to_hbm [thread:$0]  %s1941_s6, 256, %s3184_s8, [#allocation15]   ;;  %v1956_v11 = vld [vmem:[#allocation11] ss:$0 sm:$0xff] }
 0xe88   :  { %s2869_s25 = smov [#allocation13]  }
 0xe89   :  { %s1930_s3 = sshll.u32 %s2869_s25, 4  ;;  %s1931_s3 = int_to_ptr.vmem [resolvable:$true] %s1930_s3 }
 0xe8a   :  { %s2821_s13 = scalar_lea.vmem %s1931_s3, 128  ;;  %p2826_p1 = scmp.lt.s32.totalorder %s1931_s3, %s1931_s3 }
 0xe8b   :  { %p2822_p0 = scmp.ne.s32.totalorder %s1931_s3, %s2821_s13  ;;  %p2827_p2 = scmp.lt.s32.totalorder %s2821_s13, %s2821_s13 }
 0xe8d   :  { %p2828_p3 = por %p2827_p2, %p2826_p1 }
 0xe8f   :  { %p2829_p4 = pnand %p2828_p3, %p2822_p0 }
 0xf52   :  { %v2024_v4 = vpop.f32.mrb[8].mxu1 }
 0xf53   :  { %v2025_v5 = vpop.f32.mrb[9].mxu1 }
 0xf54   :  { %v2026_v8 = vadd.f32 %v2025_v5, %v2024_v4 }
 0xf56   :  { %v1912_v16 = vadd.f32 %v2026_v8, %v3135_v49 }
 0xf58   :  { %v1922_v17 = vadd.f32 %v1956_v11, %v1912_v16 }
 0xf5a   :  { %1923 = vst [vmem:[#allocation13] sm:$0xff] %v1922_v17 }
 0xf5b   :  { %2832 = shalt.err (!%p2829_p4)
}
 0xf5c   :  { %s2833_s27 = scalar_lea.hbm %s3183_s7, 128 }
 0xf5d   :  { %p2834_p5 = scmp.ne.s32.totalorder %s3183_s7, %s2833_s27  ;;  %p2837_p6 = scmp.lt.u32.totalorder %s2833_s27, %s3183_s7 }
 0xf5f   :  { %p2839_p7 = pnand %p2837_p6, %p2834_p5 }
 0xf61   :  { %2842 = shalt.err (!%p2839_p7)
}
 0xf62   :  { %1933 = dma.vmem_to_hbm [thread:$0]  %s1931_s3, 128, %s3183_s7, [#allocation4]  }
 0xf63   :  { %2851 = dma.done.wait [#allocation4], 128  }
 0xf64   :  { %2852 = vsyncadd [#allocation4], 4294967168 }
 0xf65   :  { %2853 = dma.done.wait [#allocation15], 256  }
 0xf66   :  { %2854 = vsyncadd [#allocation15], 4294967040 }
 0xf67   :  { %1950 = vsyncpa [#allocation3], 1 }
 0xf68   :  { %1951 = vsyncpa [#allocation6], 1 }
 0xf69   :  { %1952 = vsyncpa [#allocation9], 1 }
 0xf6a   :  { %1953 = vsyncpa [#allocation12], 1 }
 0xf6b   :  { %1954 = vsyncpa [#allocation4], 1 }
 0xf6c   :  { %1955 = vsyncpa [#allocation15], 1 }

</bundles_post_ra>
